<compile_context>
chip_gen: v5e
topology: v5e:2x2
jax: 0.10.0
libtpu: 0.0.40
codegen_flags: <defaults>
</compile_context>

<pallas_src>
import functools

import jax
import jax.numpy as jnp
import numpy as np
from jax.experimental import pallas as pl
from jax.experimental.pallas import tpu as pltpu

L_IN = 1024     # size[0]
D1 = 512        # size[1]
D2 = 256        # size[2]
N_CLASSES = 3

# Lane offsets inside the packed "small params" row (all starts 128-aligned).
_SM_B1 = 0                      # b1       [512]
_SM_BAB = _SM_B1 + D1           # ba | bb  [512]
_SM_BR = _SM_BAB + 2 * D2       # br       [256]
_SM_WC = _SM_BR + D2            # wc row   [256]
_SM_BCLS = _SM_WC + D2          # bcls     [3]   (padded to 128)
_SM_BC = _SM_BCLS + 128         # bc       [1]   (padded to 128)
_SM_TOTAL = _SM_BC + 128        # 1792 lanes total (~7 KiB)


# ---------------------------------------------------------------------------
# Stage 1: per-instance trunk + per-tile partial softmax / pooling statistics.
# The instance-tile grid axis is fully parallel (no carried state).
# ---------------------------------------------------------------------------
def _mil_tile_kernel(n_ref, x_ref, w1_ref, wab_ref, sm_ref,
                     acc_ref, m_ref, l_ref):
    i = pl.program_id(0)
    tile = x_ref.shape[0]
    n_valid = n_ref[0]

    # ---- per-instance trunk (bf16 MXU operands, f32 accumulation) ----------
    x = x_ref[...]                                                # [T, 1024] bf16
    b1 = sm_ref[:, _SM_B1:_SM_B1 + D1]                            # [1, 512]
    h = jnp.dot(x, w1_ref[...], preferred_element_type=jnp.float32) + b1
    h = jnp.maximum(h, 0.0)                                       # [T, 512] f32

    # Rows past the true bag length carry undefined data (partial last tile,
    # no wrapper-side pad copy). Zero them so they cannot poison anything.
    rows = i * tile + jax.lax.broadcasted_iota(jnp.int32, (tile, 1), 0)
    valid = rows < n_valid
    h = jnp.where(valid, h, 0.0)

    bab = sm_ref[:, _SM_BAB:_SM_BAB + 2 * D2]                     # [1, 512]
    z = jnp.dot(h.astype(jnp.bfloat16), wab_ref[...],
                preferred_element_type=jnp.float32) + bab         # [T, 512]
    a = jnp.tanh(z[:, :D2])                                       # [T, 256]
    g = jax.nn.sigmoid(z[:, D2:])                                 # [T, 256]

    # Attention score head: VPU broadcast-mul + lane reduce instead of a
    # degenerate 1-column MXU matmul (MXU is the binding unit here).
    wc_row = sm_ref[:, _SM_WC:_SM_WC + D2]                        # [1, 256]
    bc = sm_ref[:, _SM_BC:_SM_BC + 1]                             # [1, 1]
    att = jnp.sum((a * g) * wc_row, axis=-1, keepdims=True) + bc  # [T, 1]
    att = jnp.where(valid, att, jnp.float32(-1e30))

    # Per-tile partial softmax statistics (merged in the combine kernel).
    m_t = jnp.max(att, axis=0, keepdims=True)                     # [1, 1]
    p = jnp.where(valid, jnp.exp(att - m_t), 0.0)                 # [T, 1]
    l_t = jnp.sum(p, axis=0, keepdims=True)                       # [1, 1]
    acc = jnp.sum(p * h, axis=0, keepdims=True)                   # [1, 512]

    acc_ref[...] = acc.reshape(1, 1, D1)
    m_ref[...] = m_t.reshape(1, 1, 1)
    l_ref[...] = l_t.reshape(1, 1, 1)


# ---------------------------------------------------------------------------
# Stage 2: merge per-tile partials + rho / classifier / survival epilogue.
# Tiny (one grid step, full arrays in VMEM).
# ---------------------------------------------------------------------------
def _mil_combine_kernel(m_ref, l_ref, acc_ref, wr_ref, wcls_ref, sm_ref,
                        logits_ref, hazards_ref, surv_ref):
    m = m_ref[...][:, 0, :]                                       # [T, 1]
    l = l_ref[...][:, 0, :]                                       # [T, 1]
    acc = acc_ref[...][:, 0, :]                                   # [T, 512]

    m_all = jnp.max(m, axis=0, keepdims=True)                     # [1, 1]
    scale = jnp.exp(m - m_all)                                    # [T, 1]
    l_all = jnp.sum(l * scale, axis=0, keepdims=True)             # [1, 1]
    h_pool = jnp.sum(acc * scale, axis=0, keepdims=True) / l_all  # [1, 512]

    br = sm_ref[:, _SM_BR:_SM_BR + D2]
    h_rho = jnp.dot(h_pool.astype(jnp.bfloat16), wr_ref[...],
                    preferred_element_type=jnp.float32) + br
    h_rho = jnp.maximum(h_rho, 0.0)                               # [1, 256]

    bcls = sm_ref[:, _SM_BCLS:_SM_BCLS + N_CLASSES]
    logits = jnp.dot(h_rho, wcls_ref[...],
                     preferred_element_type=jnp.float32) + bcls   # [1, 3]
    hazards = jax.nn.sigmoid(logits)

    # Unrolled 3-element cumprod(1 - hazards) on the VPU.
    om = 1.0 - hazards
    s0 = om[:, 0:1]
    s1 = s0 * om[:, 1:2]
    s2 = s1 * om[:, 2:3]

    logits_ref[...] = logits
    hazards_ref[...] = hazards
    surv_ref[...] = jnp.concatenate([s0, s1, s2], axis=1)


def prepare_params(p):
    """One-time packing/casting of module parameters for the kernels.

    Big weights are stored bf16 (halves weight DMA); Wa|Wb are fused; all tiny
    operands are packed into one lane-aligned f32 row."""
    def pad_row(x, width):
        x = jnp.asarray(x, jnp.float32).reshape(1, -1)
        return jnp.pad(x, ((0, 0), (0, width - x.shape[1])))

    smalls = jnp.concatenate([
        p["b1"].reshape(1, D1),
        jnp.concatenate([p["ba"].reshape(1, D2), p["bb"].reshape(1, D2)], axis=1),
        p["br"].reshape(1, D2),
        p["wc"].reshape(1, D2),            # attention_c weight as a lane row
        pad_row(p["bcls"], 128),
        pad_row(p["bc"], 128),
    ], axis=1).astype(jnp.float32)
    assert smalls.shape == (1, _SM_TOTAL)

    return dict(
        w1=p["w1"].astype(jnp.bfloat16),                                       # [1024, 512]
        wab=jnp.concatenate([p["wa"], p["wb"]], axis=1).astype(jnp.bfloat16),  # [512, 512]
        wr=p["wr"].astype(jnp.bfloat16),                                       # [512, 256]
        wcls=p["wcls"].astype(jnp.float32),                                    # [256, 3]
        smalls=smalls,                                                         # [1, 1792]
    )


def _round_up(x, m):
    return (x + m - 1) // m * m


@functools.partial(jax.jit, static_argnames=("block_n",))
def mil_attention_fc_surv_forward(feats, prep, n_valid=None, *, block_n=1024):
    """feats: [N, 1024] float (or bfloat16), prep: prepare_params() output.

    n_valid optionally overrides the true bag length (for callers that pad
    feats to bucketed lengths to amortize compilation across bags).
    Returns (hazards, S, Y_hat, None, None) like the PyTorch module."""
    n = feats.shape[0]
    if n_valid is None:
        n_valid = n
    n_arr = jnp.asarray(n_valid, dtype=jnp.int32).reshape((1,))

    # Stream feats as bf16 (one fused cast pass; no full-array pad copy).
    feats_bf16 = feats.astype(jnp.bfloat16)

    # Tile rows rounded to a multiple of 16 (bf16 sublane packing).
    tile = _round_up(min(block_n, n), 16)
    num_tiles = pl.cdiv(n, tile)
    # TODO(synk): bucket num_tiles (with caller-side padded feats) to further
    # reduce distinct compilations across wildly varying bag sizes.

    grid_spec = pltpu.PrefetchScalarGridSpec(
        num_scalar_prefetch=1,                 # n_valid lives in SMEM
        grid=(num_tiles,),
        in_specs=[
            pl.BlockSpec((tile, L_IN), lambda i, n_ref: (i, 0)),       # feats tile (bf16)
            # TODO(synk): single-buffer the resident weight operands
            # (pipeline_mode=pl.Buffered(1)) once broadly supported; their
            # blocks never change so the second buffer is dead VMEM.
            pl.BlockSpec((L_IN, D1), lambda i, n_ref: (0, 0)),         # W1 (resident)
            pl.BlockSpec((D1, 2 * D2), lambda i, n_ref: (0, 0)),       # Wa|Wb (resident)
            pl.BlockSpec((1, _SM_TOTAL), lambda i, n_ref: (0, 0)),     # packed small params
        ],
        out_specs=(
            pl.BlockSpec((1, 1, D1), lambda i, n_ref: (i, 0, 0)),      # sum(p*h) partial
            pl.BlockSpec((1, 1, 1), lambda i, n_ref: (i, 0, 0)),       # m partial
            pl.BlockSpec((1, 1, 1), lambda i, n_ref: (i, 0, 0)),       # l partial
        ),
    )

    acc_parts, m_parts, l_parts = pl.pallas_call(
        _mil_tile_kernel,
        out_shape=(
            jax.ShapeDtypeStruct((num_tiles, 1, D1), jnp.float32),
            jax.ShapeDtypeStruct((num_tiles, 1, 1), jnp.float32),
            jax.ShapeDtypeStruct((num_tiles, 1, 1), jnp.float32),
        ),
        grid_spec=grid_spec,
        compiler_params=pltpu.CompilerParams(
            # Tiles are independent partials -> "parallel" lets Mosaic shard
            # the instance axis across both TensorCores on v7x.
            dimension_semantics=("parallel",),
            # Explicit so tile=1024 bf16 streaming is safe on v5e (16 MiB
            # default scoped VMEM) and within v7x's 64 MiB physical VMEM.
            vmem_limit_bytes=32 * 1024 * 1024,
        ),
    )(n_arr, feats_bf16, prep["w1"], prep["wab"], prep["smalls"])

    # Tiny combine + epilogue kernel: whole (small) arrays resident in VMEM.
    logits, hazards, surv = pl.pallas_call(
        _mil_combine_kernel,
        out_shape=tuple(jax.ShapeDtypeStruct((1, N_CLASSES), jnp.float32)
                        for _ in range(3)),
    )(m_parts, l_parts, acc_parts, prep["wr"], prep["wcls"], prep["smalls"])

    # topk(logits, 1, dim=1)[1] -> argmax index, shape [1, 1]
    y_hat = jnp.argmax(logits, axis=1, keepdims=True).astype(jnp.int32)
    return hazards, surv, y_hat, None, None


def init_params(key):
    """Deterministic parameter init matching the module's layer shapes."""
    ks = jax.random.split(key, 6)

    def lin(k, fan_in, fan_out):
        kw, kb = jax.random.split(k)
        bound = 1.0 / np.sqrt(fan_in)
        w = jax.random.uniform(kw, (fan_in, fan_out), jnp.float32, -bound, bound)
        b = jax.random.uniform(kb, (1, fan_out), jnp.float32, -bound, bound)
        return w, b

    w1, b1 = lin(ks[0], L_IN, D1)            # fc: Linear(1024, 512)
    wa, ba = lin(ks[1], D1, D2)              # attention_a: Linear(512, 256)
    wb, bb = lin(ks[2], D1, D2)              # attention_b: Linear(512, 256)
    wc, bc = lin(ks[3], D2, 1)               # attention_c: Linear(256, 1)
    wr, br = lin(ks[4], D1, D2)              # rho: Linear(512, 256)
    wcls, bcls = lin(ks[5], D2, N_CLASSES)   # classifier: Linear(256, 3)
    return dict(w1=w1, b1=b1, wa=wa, ba=ba, wb=wb, bb=bb,
                wc=wc, bc=bc, wr=wr, br=br, wcls=wcls, bcls=bcls)


def _reference(feats, p):
    """Plain-JAX reference of the same forward pass (bf16-weight matmuls with
    f32 accumulation to mirror the kernel's precision choices)."""
    def mm(x, w):
        return jnp.dot(x.astype(jnp.bfloat16), w.astype(jnp.bfloat16),
                       preferred_element_type=jnp.float32)

    h = jnp.maximum(mm(feats, p["w1"]) + p["b1"], 0.0)
    a = jnp.tanh(mm(h, p["wa"]) + p["ba"])
    g = jax.nn.sigmoid(mm(h, p["wb"]) + p["bb"])
    att = (a * g) @ p["wc"] + p["bc"]                  # [N, 1]
    w = jax.nn.softmax(att.T, axis=1)                  # [1, N]
    h_pool = w @ h                                     # [1, 512]
    h_rho = jnp.maximum(mm(h_pool, p["wr"]) + p["br"], 0.0)
    logits = h_rho @ p["wcls"] + p["bcls"]             # [1, 3]
    hazards = jax.nn.sigmoid(logits)
    surv = jnp.cumprod(1.0 - hazards, axis=1)
    y_hat = jnp.argmax(logits, axis=1, keepdims=True).astype(jnp.int32)
    return logits, hazards, surv, y_hat


if __name__ == "__main__":
    key = jax.random.PRNGKey(0)
    k_param, k_feat = jax.random.split(key)
    params = init_params(k_param)
    prep = prepare_params(params)

    # Small demo bag: 200 instances of 1024-dim features; block_n=128 gives a
    # 2-tile grid and a partial (masked) last tile, exercising the
    # parallel-partials + combine path.
    N = 200
    feats = jax.random.normal(k_feat, (N, L_IN), dtype=jnp.float32)

    hazards, surv, y_hat, _, _ = mil_attention_fc_surv_forward(
        feats, prep, block_n=128)
    jax.block_until_ready((hazards, surv, y_hat))

    ref_logits, ref_h, ref_s, ref_y = _reference(feats, params)
    np.testing.assert_allclose(np.asarray(hazards), np.asarray(ref_h),
                               rtol=2e-3, atol=5e-4)
    np.testing.assert_allclose(np.asarray(surv), np.asarray(ref_s),
                               rtol=2e-3, atol=5e-4)
    # Only check the hard argmax when the reference's top-2 logits are not a
    # near-tie (bf16 rounding could legitimately flip a tie).
    top2 = np.sort(np.asarray(ref_logits)[0])[-2:]
    if top2[1] - top2[0] > 1e-2:
        assert np.array_equal(np.asarray(y_hat), np.asarray(ref_y))

    print("KERNEL_OK")
</pallas_src>

<mosaic_0001>
module attributes {stable_mosaic.version = 11 : i64} {
  func.func @_mil_tile_kernel(%arg0: i32, %arg1: memref<1xi32, #tpu.memory_space<smem>>, %arg2: memref<128x1024xbf16, #tpu.memory_space<vmem>>, %arg3: memref<1024x512xbf16, #tpu.memory_space<vmem>>, %arg4: memref<512x512xbf16, #tpu.memory_space<vmem>>, %arg5: memref<1x1792xf32, #tpu.memory_space<vmem>>, %arg6: memref<1x1x512xf32, #tpu.memory_space<vmem>>, %arg7: memref<1x1x1xf32, #tpu.memory_space<vmem>>, %arg8: memref<1x1x1xf32, #tpu.memory_space<vmem>>) attributes {dimension_semantics = [#tpu.dimension_semantics<parallel>], iteration_bounds = array<i64: 2>, scalar_prefetch = 1 : i64, scratch_operands = 0 : i64, tpu.core_type = #tpu.core_type<tc>, window_params = [{transform_indices = @transform_0, window_bounds = array<i64: 128, 1024>}, {pipeline_mode = #tpu.pipeline_mode<synchronous>, transform_indices = @transform_1, window_bounds = array<i64: 1024, 512>}, {pipeline_mode = #tpu.pipeline_mode<synchronous>, transform_indices = @transform_2, window_bounds = array<i64: 512, 512>}, {pipeline_mode = #tpu.pipeline_mode<synchronous>, transform_indices = @transform_3, window_bounds = array<i64: 1, 1792>}, {transform_indices = @transform_4, window_bounds = array<i64: 1, 1, 512>}, {transform_indices = @transform_5, window_bounds = array<i64: 1, 1, 1>}, {transform_indices = @transform_6, window_bounds = array<i64: 1, 1, 1>}]} {
    %c0 = arith.constant 0 : index
    %0 = memref.load %arg1[%c0] : memref<1xi32, #tpu.memory_space<smem>>
    %c0_0 = arith.constant 0 : index
    %c0_1 = arith.constant 0 : index
    %1 = vector.load %arg2[%c0_0, %c0_1] : memref<128x1024xbf16, #tpu.memory_space<vmem>>, vector<128x1024xbf16>
    %c0_2 = arith.constant 0 : index
    %c0_3 = arith.constant 0 : index
    %2 = vector.load %arg5[%c0_2, %c0_3] : memref<1x1792xf32, #tpu.memory_space<vmem>>, vector<1x512xf32>
    %c0_4 = arith.constant 0 : index
    %c0_5 = arith.constant 0 : index
    %3 = vector.load %arg3[%c0_4, %c0_5] : memref<1024x512xbf16, #tpu.memory_space<vmem>>, vector<1024x512xbf16>
    %cst = arith.constant dense<0.000000e+00> : vector<128x512xf32>
    %4 = tpu.matmul %1, %3, %cst {dimension_numbers = #tpu.dot_dimension_numbers<[1], [0], [0], [1], [0, 0, 1, 1], [], []>} : vector<128x1024xbf16>, vector<1024x512xbf16>, vector<128x512xf32> -> vector<128x512xf32>
    %5 = vector.broadcast %2 : vector<1x512xf32> to vector<128x512xf32>
    %6 = arith.addf %4, %5 : vector<128x512xf32>
    %cst_6 = arith.constant 0.000000e+00 : f32
    %7 = vector.broadcast %cst_6 : f32 to vector<128x512xf32>
    %8 = arith.maximumf %6, %7 : vector<128x512xf32>
    %c128_i32 = arith.constant 128 : i32
    %9 = arith.muli %arg0, %c128_i32 : i32
    %10 = tpu.iota {dimensions = array<i32: 0>} : vector<128x1xi32>
    %11 = vector.broadcast %9 : i32 to vector<128x1xi32>
    %12 = arith.addi %11, %10 : vector<128x1xi32>
    %13 = vector.broadcast %0 : i32 to vector<128x1xi32>
    %14 = arith.cmpi slt, %12, %13 : vector<128x1xi32>
    %cst_7 = arith.constant 0.000000e+00 : f32
    %15 = vector.shape_cast %14 : vector<128x1xi1> to vector<128x1xi1>
    %16 = vector.broadcast %15 : vector<128x1xi1> to vector<128x512xi1>
    %17 = vector.broadcast %cst_7 : f32 to vector<128x512xf32>
    %18 = arith.select %16, %8, %17 : vector<128x512xi1>, vector<128x512xf32>
    %c0_8 = arith.constant 0 : index
    %c512 = arith.constant 512 : index
    %19 = vector.load %arg5[%c0_8, %c512] : memref<1x1792xf32, #tpu.memory_space<vmem>>, vector<1x512xf32>
    %20 = arith.truncf %18 : vector<128x512xf32> to vector<128x512xbf16>
    %c0_9 = arith.constant 0 : index
    %c0_10 = arith.constant 0 : index
    %21 = vector.load %arg4[%c0_9, %c0_10] : memref<512x512xbf16, #tpu.memory_space<vmem>>, vector<512x512xbf16>
    %cst_11 = arith.constant dense<0.000000e+00> : vector<128x512xf32>
    %22 = tpu.matmul %20, %21, %cst_11 {dimension_numbers = #tpu.dot_dimension_numbers<[1], [0], [0], [1], [0, 0, 1, 1], [], []>} : vector<128x512xbf16>, vector<512x512xbf16>, vector<128x512xf32> -> vector<128x512xf32>
    %23 = vector.broadcast %19 : vector<1x512xf32> to vector<128x512xf32>
    %24 = arith.addf %22, %23 : vector<128x512xf32>
    %25 = vector.extract_strided_slice %24 {offsets = [0, 0], sizes = [128, 256], strides = [1, 1]} : vector<128x512xf32> to vector<128x256xf32>
    %26 = math.tanh %25 : vector<128x256xf32>
    %27 = vector.extract_strided_slice %24 {offsets = [0, 256], sizes = [128, 256], strides = [1, 1]} : vector<128x512xf32> to vector<128x256xf32>
    %28 = arith.negf %27 : vector<128x256xf32>
    %29 = math.exp %28 : vector<128x256xf32>
    %cst_12 = arith.constant 1.000000e+00 : f32
    %30 = vector.broadcast %cst_12 : f32 to vector<128x256xf32>
    %31 = arith.addf %30, %29 : vector<128x256xf32>
    %32 = arith.divf %30, %31 : vector<128x256xf32>
    %c0_13 = arith.constant 0 : index
    %c1280 = arith.constant 1280 : index
    %33 = vector.load %arg5[%c0_13, %c1280] : memref<1x1792xf32, #tpu.memory_space<vmem>>, vector<1x256xf32>
    %c0_14 = arith.constant 0 : index
    %c1664 = arith.constant 1664 : index
    %34 = vector.load %arg5[%c0_14, %c1664] : memref<1x1792xf32, #tpu.memory_space<vmem>>, vector<1x1xf32>
    %35 = arith.mulf %26, %32 : vector<128x256xf32>
    %36 = vector.broadcast %33 : vector<1x256xf32> to vector<128x256xf32>
    %37 = arith.mulf %35, %36 : vector<128x256xf32>
    %cst_15 = arith.constant dense<0.000000e+00> : vector<128xf32>
    %38 = vector.multi_reduction <add>, %37, %cst_15 [1] : vector<128x256xf32> to vector<128xf32>
    %39 = vector.shape_cast %38 : vector<128xf32> to vector<128x1xf32>
    %40 = vector.broadcast %34 : vector<1x1xf32> to vector<128x1xf32>
    %41 = arith.addf %39, %40 : vector<128x1xf32>
    %cst_16 = arith.constant -1.000000e+30 : f32
    %42 = vector.broadcast %cst_16 : f32 to vector<128x1xf32>
    %43 = arith.select %14, %41, %42 : vector<128x1xi1>, vector<128x1xf32>
    %cst_17 = arith.constant dense<0xFF800000> : vector<1xf32>
    %44 = vector.multi_reduction <maximumf>, %43, %cst_17 [0] : vector<128x1xf32> to vector<1xf32>
    %45 = vector.shape_cast %44 : vector<1xf32> to vector<1x1xf32>
    %46 = vector.broadcast %45 : vector<1x1xf32> to vector<128x1xf32>
    %47 = arith.subf %43, %46 : vector<128x1xf32>
    %48 = math.exp %47 : vector<128x1xf32>
    %cst_18 = arith.constant 0.000000e+00 : f32
    %49 = vector.broadcast %cst_18 : f32 to vector<128x1xf32>
    %50 = arith.select %14, %48, %49 : vector<128x1xi1>, vector<128x1xf32>
    %cst_19 = arith.constant dense<0.000000e+00> : vector<1xf32>
    %51 = vector.multi_reduction <add>, %50, %cst_19 [0] : vector<128x1xf32> to vector<1xf32>
    %52 = vector.shape_cast %51 : vector<1xf32> to vector<1x1xf32>
    %53 = vector.broadcast %50 : vector<128x1xf32> to vector<128x512xf32>
    %54 = arith.mulf %53, %18 : vector<128x512xf32>
    %cst_20 = arith.constant dense<0.000000e+00> : vector<512xf32>
    %55 = vector.multi_reduction <add>, %54, %cst_20 [0] : vector<128x512xf32> to vector<512xf32>
    %56 = vector.shape_cast %55 : vector<512xf32> to vector<1x512xf32>
    %57 = vector.shape_cast %56 : vector<1x512xf32> to vector<1x1x512xf32>
    %c0_21 = arith.constant 0 : index
    %c0_22 = arith.constant 0 : index
    %c0_23 = arith.constant 0 : index
    %58 = vector.load %arg6[%c0_21, %c0_22, %c0_23] : memref<1x1x512xf32, #tpu.memory_space<vmem>>, vector<1x1x512xf32>
    tpu.vector_store %arg6[%c0_21, %c0_22, %c0_23], %57 {strides = array<i32>} : memref<1x1x512xf32, #tpu.memory_space<vmem>>, vector<1x1x512xf32>,
    %59 = vector.shape_cast %45 : vector<1x1xf32> to vector<1x1x1xf32>
    %c0_24 = arith.constant 0 : index
    %c0_25 = arith.constant 0 : index
    %c0_26 = arith.constant 0 : index
    %60 = vector.load %arg7[%c0_24, %c0_25, %c0_26] : memref<1x1x1xf32, #tpu.memory_space<vmem>>, vector<1x1x1xf32>
    tpu.vector_store %arg7[%c0_24, %c0_25, %c0_26], %59 {strides = array<i32>} : memref<1x1x1xf32, #tpu.memory_space<vmem>>, vector<1x1x1xf32>,
    %61 = vector.shape_cast %52 : vector<1x1xf32> to vector<1x1x1xf32>
    %c0_27 = arith.constant 0 : index
    %c0_28 = arith.constant 0 : index
    %c0_29 = arith.constant 0 : index
    %62 = vector.load %arg8[%c0_27, %c0_28, %c0_29] : memref<1x1x1xf32, #tpu.memory_space<vmem>>, vector<1x1x1xf32>
    tpu.vector_store %arg8[%c0_27, %c0_28, %c0_29], %61 {strides = array<i32>} : memref<1x1x1xf32, #tpu.memory_space<vmem>>, vector<1x1x1xf32>,
    return
  }
  func.func @transform_0(%arg0: i32, %arg1: memref<1xi32, #tpu.memory_space<smem>>) -> (i32, i32) {
    %c0_i32 = arith.constant 0 : i32
    %c0_i32_0 = arith.constant 0 : i32
    return %arg0, %c0_i32 : i32, i32
  }
  func.func @transform_1(%arg0: i32, %arg1: memref<1xi32, #tpu.memory_space<smem>>) -> (i32, i32) {
    %c0_i32 = arith.constant 0 : i32
    %c0_i32_0 = arith.constant 0 : i32
    %c0_i32_1 = arith.constant 0 : i32
    return %c0_i32, %c0_i32_0 : i32, i32
  }
  func.func @transform_2(%arg0: i32, %arg1: memref<1xi32, #tpu.memory_space<smem>>) -> (i32, i32) {
    %c0_i32 = arith.constant 0 : i32
    %c0_i32_0 = arith.constant 0 : i32
    %c0_i32_1 = arith.constant 0 : i32
    return %c0_i32, %c0_i32_0 : i32, i32
  }
  func.func @transform_3(%arg0: i32, %arg1: memref<1xi32, #tpu.memory_space<smem>>) -> (i32, i32) {
    %c0_i32 = arith.constant 0 : i32
    %c0_i32_0 = arith.constant 0 : i32
    %c0_i32_1 = arith.constant 0 : i32
    return %c0_i32, %c0_i32_0 : i32, i32
  }
  func.func @transform_4(%arg0: i32, %arg1: memref<1xi32, #tpu.memory_space<smem>>) -> (i32, i32, i32) {
    %c0_i32 = arith.constant 0 : i32
    %c0_i32_0 = arith.constant 0 : i32
    %c0_i32_1 = arith.constant 0 : i32
    return %arg0, %c0_i32, %c0_i32_0 : i32, i32, i32
  }
  func.func @transform_5(%arg0: i32, %arg1: memref<1xi32, #tpu.memory_space<smem>>) -> (i32, i32, i32) {
    %c0_i32 = arith.constant 0 : i32
    %c0_i32_0 = arith.constant 0 : i32
    %c0_i32_1 = arith.constant 0 : i32
    return %arg0, %c0_i32, %c0_i32_0 : i32, i32, i32
  }
  func.func @transform_6(%arg0: i32, %arg1: memref<1xi32, #tpu.memory_space<smem>>) -> (i32, i32, i32) {
    %c0_i32 = arith.constant 0 : i32
    %c0_i32_0 = arith.constant 0 : i32
    %c0_i32_1 = arith.constant 0 : i32
    return %arg0, %c0_i32, %c0_i32_0 : i32, i32, i32
  }
}

module attributes {stable_mosaic.version = 11 : i64} {
  func.func @_mil_combine_kernel(%arg0: memref<2x1x1xf32, #tpu.memory_space<vmem>>, %arg1: memref<2x1x1xf32, #tpu.memory_space<vmem>>, %arg2: memref<2x1x512xf32, #tpu.memory_space<vmem>>, %arg3: memref<512x256xbf16, #tpu.memory_space<vmem>>, %arg4: memref<256x3xf32, #tpu.memory_space<vmem>>, %arg5: memref<1x1792xf32, #tpu.memory_space<vmem>>, %arg6: memref<1x3xf32, #tpu.memory_space<vmem>>, %arg7: memref<1x3xf32, #tpu.memory_space<vmem>>, %arg8: memref<1x3xf32, #tpu.memory_space<vmem>>) attributes {dimension_semantics = [], scalar_prefetch = 0 : i64, scratch_operands = 0 : i64, tpu.core_type = #tpu.core_type<tc>} {
    %c0 = arith.constant 0 : index
    %c0_0 = arith.constant 0 : index
    %c0_1 = arith.constant 0 : index
    %0 = vector.load %arg0[%c0, %c0_0, %c0_1] : memref<2x1x1xf32, #tpu.memory_space<vmem>>, vector<2x1x1xf32>
    %1 = vector.shape_cast %0 : vector<2x1x1xf32> to vector<2x1xf32>
    %c0_2 = arith.constant 0 : index
    %c0_3 = arith.constant 0 : index
    %c0_4 = arith.constant 0 : index
    %2 = vector.load %arg1[%c0_2, %c0_3, %c0_4] : memref<2x1x1xf32, #tpu.memory_space<vmem>>, vector<2x1x1xf32>
    %3 = vector.shape_cast %2 : vector<2x1x1xf32> to vector<2x1xf32>
    %c0_5 = arith.constant 0 : index
    %c0_6 = arith.constant 0 : index
    %c0_7 = arith.constant 0 : index
    %4 = vector.load %arg2[%c0_5, %c0_6, %c0_7] : memref<2x1x512xf32, #tpu.memory_space<vmem>>, vector<2x1x512xf32>
    %5 = vector.shape_cast %4 : vector<2x1x512xf32> to vector<2x512xf32>
    %cst = arith.constant dense<0xFF800000> : vector<1xf32>
    %6 = vector.multi_reduction <maximumf>, %1, %cst [0] : vector<2x1xf32> to vector<1xf32>
    %7 = vector.shape_cast %6 : vector<1xf32> to vector<1x1xf32>
    %8 = vector.broadcast %7 : vector<1x1xf32> to vector<2x1xf32>
    %9 = arith.subf %1, %8 : vector<2x1xf32>
    %10 = math.exp %9 : vector<2x1xf32>
    %11 = arith.mulf %3, %10 : vector<2x1xf32>
    %cst_8 = arith.constant dense<0.000000e+00> : vector<1xf32>
    %12 = vector.multi_reduction <add>, %11, %cst_8 [0] : vector<2x1xf32> to vector<1xf32>
    %13 = vector.shape_cast %12 : vector<1xf32> to vector<1x1xf32>
    %14 = vector.broadcast %10 : vector<2x1xf32> to vector<2x512xf32>
    %15 = arith.mulf %5, %14 : vector<2x512xf32>
    %cst_9 = arith.constant dense<0.000000e+00> : vector<512xf32>
    %16 = vector.multi_reduction <add>, %15, %cst_9 [0] : vector<2x512xf32> to vector<512xf32>
    %17 = vector.shape_cast %16 : vector<512xf32> to vector<1x512xf32>
    %18 = vector.broadcast %13 : vector<1x1xf32> to vector<1x512xf32>
    %19 = arith.divf %17, %18 : vector<1x512xf32>
    %c0_10 = arith.constant 0 : index
    %c1024 = arith.constant 1024 : index
    %20 = vector.load %arg5[%c0_10, %c1024] : memref<1x1792xf32, #tpu.memory_space<vmem>>, vector<1x256xf32>
    %21 = arith.truncf %19 : vector<1x512xf32> to vector<1x512xbf16>
    %c0_11 = arith.constant 0 : index
    %c0_12 = arith.constant 0 : index
    %22 = vector.load %arg3[%c0_11, %c0_12] : memref<512x256xbf16, #tpu.memory_space<vmem>>, vector<512x256xbf16>
    %cst_13 = arith.constant dense<0.000000e+00> : vector<1x256xf32>
    %23 = tpu.matmul %21, %22, %cst_13 {dimension_numbers = #tpu.dot_dimension_numbers<[1], [0], [0], [1], [0, 0, 1, 1], [], []>} : vector<1x512xbf16>, vector<512x256xbf16>, vector<1x256xf32> -> vector<1x256xf32>
    %24 = arith.addf %23, %20 : vector<1x256xf32>
    %cst_14 = arith.constant 0.000000e+00 : f32
    %25 = vector.broadcast %cst_14 : f32 to vector<1x256xf32>
    %26 = arith.maximumf %24, %25 : vector<1x256xf32>
    %c0_15 = arith.constant 0 : index
    %c1536 = arith.constant 1536 : index
    %27 = vector.load %arg5[%c0_15, %c1536] : memref<1x1792xf32, #tpu.memory_space<vmem>>, vector<1x3xf32>
    %c0_16 = arith.constant 0 : index
    %c0_17 = arith.constant 0 : index
    %28 = vector.load %arg4[%c0_16, %c0_17] : memref<256x3xf32, #tpu.memory_space<vmem>>, vector<256x3xf32>
    %cst_18 = arith.constant dense<0.000000e+00> : vector<1x3xf32>
    %29 = tpu.matmul %26, %28, %cst_18 {dimension_numbers = #tpu.dot_dimension_numbers<[1], [0], [0], [1], [0, 0, 1, 1], [], []>} : vector<1x256xf32>, vector<256x3xf32>, vector<1x3xf32> -> vector<1x3xf32>
    %30 = arith.addf %29, %27 : vector<1x3xf32>
    %31 = arith.negf %30 : vector<1x3xf32>
    %32 = math.exp %31 : vector<1x3xf32>
    %cst_19 = arith.constant 1.000000e+00 : f32
    %33 = vector.broadcast %cst_19 : f32 to vector<1x3xf32>
    %34 = arith.addf %33, %32 : vector<1x3xf32>
    %35 = arith.divf %33, %34 : vector<1x3xf32>
    %cst_20 = arith.constant 1.000000e+00 : f32
    %36 = vector.broadcast %cst_20 : f32 to vector<1x3xf32>
    %37 = arith.subf %36, %35 : vector<1x3xf32>
    %38 = vector.extract_strided_slice %37 {offsets = [0, 0], sizes = [1, 1], strides = [1, 1]} : vector<1x3xf32> to vector<1x1xf32>
    %39 = vector.extract_strided_slice %37 {offsets = [0, 1], sizes = [1, 1], strides = [1, 1]} : vector<1x3xf32> to vector<1x1xf32>
    %40 = arith.mulf %38, %39 : vector<1x1xf32>
    %41 = vector.extract_strided_slice %37 {offsets = [0, 2], sizes = [1, 1], strides = [1, 1]} : vector<1x3xf32> to vector<1x1xf32>
    %42 = arith.mulf %40, %41 : vector<1x1xf32>
    %c0_21 = arith.constant 0 : index
    %c0_22 = arith.constant 0 : index
    %43 = vector.load %arg6[%c0_21, %c0_22] : memref<1x3xf32, #tpu.memory_space<vmem>>, vector<1x3xf32>
    tpu.vector_store %arg6[%c0_21, %c0_22], %30 {strides = array<i32>} : memref<1x3xf32, #tpu.memory_space<vmem>>, vector<1x3xf32>,
    %c0_23 = arith.constant 0 : index
    %c0_24 = arith.constant 0 : index
    %44 = vector.load %arg7[%c0_23, %c0_24] : memref<1x3xf32, #tpu.memory_space<vmem>>, vector<1x3xf32>
    tpu.vector_store %arg7[%c0_23, %c0_24], %35 {strides = array<i32>} : memref<1x3xf32, #tpu.memory_space<vmem>>, vector<1x3xf32>,
    %45 = tpu.concatenate %38, %40, %42 in 1 : vector<1x1xf32>, vector<1x1xf32>, vector<1x1xf32> -> vector<1x3xf32>
    %c0_25 = arith.constant 0 : index
    %c0_26 = arith.constant 0 : index
    %46 = vector.load %arg8[%c0_25, %c0_26] : memref<1x3xf32, #tpu.memory_space<vmem>>, vector<1x3xf32>
    tpu.vector_store %arg8[%c0_25, %c0_26], %45 {strides = array<i32>} : memref<1x3xf32, #tpu.memory_space<vmem>>, vector<1x3xf32>,
    return
  }
}

</mosaic_0001>

<bundles_post_ra>
// kernel: mil_attention_fc_surv_forward.3
= control target key start
LH: loop header
LB: loop body
LE: loop exit
PB: predicated region body
PF: predicated region fallthrough
CT: control target
= control target key end

     0   :  { %14 = vsyncpa [#allocation3], 0  ;;  %v34_v2 = vlaneseq  ;;  %v1194_v3 = vmov 0   ;;  %s1766_s0 = inlined_call_operand.vmem [shape: f32[2,1,1], index: 0, kind: input, shape index: {}]   ;;  %s1767_s1 = inlined_call_operand.vmem [shape: f32[2,1,1], index: 1, kind: input, shape index: {}]   ;;  %s1768_s2 = inlined_call_operand.vmem [shape: f32[2,1,512], index: 2, kind: input, shape index: {}]   ;;  %s1769_s3 = inlined_call_operand.vmem [shape: bf16[512,256], index: 3, kind: input, shape index: {}]   ;;  %s1770_s4 = inlined_call_operand.vmem [shape: f32[256,3], index: 4, kind: input, shape index: {}]   ;;  %s1771_s5 = inlined_call_operand.vmem [shape: f32[1,1792], index: 5, kind: input, shape index: {}]   ;;  %s1772_s6 = inlined_call_operand.vmem [shape: f32[1,3], index: 6, kind: output, shape index: {0}]   ;;  %s1773_s7 = inlined_call_operand.hbm [shape: f32[1,3], index: 7, kind: output, shape index: {1}]   ;;  %s1774_s8 = inlined_call_operand.hbm [shape: f32[1,3], index: 8, kind: output, shape index: {2}]  }
   0x1   :  { %v28_v0 = vld [vmem:[%s1766_s0] sm:$0x1]  ;;  %v29_v1 = vld [vmem:[%s1766_s0 + $0x1] sm:$0x1]  ;;  %1130 = vset.pattern.permute.xlu0 %v1194_v3  ;;  %1131 = vset.pattern.permute.xlu1 %v1194_v3 }
   0x2   :  { %15 = vsyncpa [#allocation5], 0  ;;  %vm36_vm0 = vcmp.lt.s32.totalorder %v34_v2, 1  ;;  %v30_v13 = vld [vmem:[%s1767_s1] sm:$0x1]  ;;  %vm61_vm1 = vcmask 1024  }
   0x3   :  { %v38_v4 = vsel %vm36_vm0, %v28_v0, -inf  ;;  %v39_v5 = vsel %vm36_vm0, %v29_v1, -inf  ;;  %v31_v15 = vld [vmem:[%s1767_s1 + $0x1] sm:$0x1]  ;;  %v860_v27 = vld [vmem:[%s1769_s3 + $0x70] sm:$0xf] }
   0x4   :  { %v40_v6 = vmax.f32 %v38_v4, %v39_v5  ;;  %v1074_v28 = vld [vmem:[%s1769_s3 + $0x74] sm:$0xf0]  ;;  %v924_v29 = vld [vmem:[%s1769_s3 + $0xf0] sm:$0xf]  ;;  %v852_v39 = vld [vmem:[%s1769_s3 + $0x60] sm:$0xf] }
   0x5   :  { %v861_v30 = vor.u32 %v1074_v28, %v860_v27  ;;  %v1090_v31 = vld [vmem:[%s1769_s3 + $0xf4] sm:$0xf0]  ;;  %v988_v32 = vld [vmem:[%s1769_s3 + $0x170] sm:$0xf]  ;;  %v1072_v40 = vld [vmem:[%s1769_s3 + $0x64] sm:$0xf0] }
   0x6   :  { %v42_v7 = vperm.slane %v40_v6, 0  ;;  %v1106_v33 = vld [vmem:[%s1769_s3 + $0x174] sm:$0xf0]  ;;  %v925_v34 = vor.u32 %v1090_v31, %v924_v29  ;;  %v1052_v36 = vld [vmem:[%s1769_s3 + $0x1f0] sm:$0xf]  ;;  %v853_v42 = vor.u32 %v1072_v40, %v852_v39  ;;  %vm96_vm2 = vcmask 1041408  }
   0x7   :  { %v989_v35 = vor.u32 %v1106_v33, %v988_v32  ;;  %v1122_v37 = vld [vmem:[%s1769_s3 + $0x1f4] sm:$0xf0]  ;;  %542 = vmatpush.bf16.msra.mxu0 %v861_v30  ;;  %v916_v41 = vld [vmem:[%s1769_s3 + $0xe0] sm:$0xf]  ;;  %v1088_v43 = vld [vmem:[%s1769_s3 + $0xe4] sm:$0xf0] }
   0x8   :  { %v46_v8 = vsub.f32 %v28_v0, %v42_v7  ;;  %v44_v9 = vrot.slane %v42_v7, 1  ;;  %v1053_v38 = vor.u32 %v1122_v37, %v1052_v36  ;;  %555 = vmatpush.bf16.msra.mxu1 %v925_v34  ;;  %v980_v44 = vld [vmem:[%s1769_s3 + $0x160] sm:$0xf]  ;;  %v1104_v45 = vld [vmem:[%s1769_s3 + $0x164] sm:$0xf0]  ;;  %v917_v46 = vor.u32 %v1088_v43, %v916_v41  ;;  %s775_s22 = sshll.u32 %s1773_s7, 4  ;;  %s776_s22 = int_to_ptr.hbm [resolvable:$true] %s775_s22 }
   0x9   :  { %568 = vmatpush.bf16.msra.mxu2 %v989_v35  ;;  %v981_v47 = vor.u32 %v1104_v45, %v980_v44  ;;  %v1044_v48 = vld [vmem:[%s1769_s3 + $0x1e0] sm:$0xf]  ;;  %v1120_v49 = vld [vmem:[%s1769_s3 + $0x1e4] sm:$0xf0]  ;;  %v844_v51 = vld [vmem:[%s1769_s3 + $0x50] sm:$0xf] }
   0xa   :  { %v48_v10 = vmul.f32 1.442695, %v46_v8  ;;  %v47_v11 = vsub.f32 %v29_v1, %v44_v9  ;;  %581 = vmatpush.bf16.msra.mxu3 %v1053_v38  ;;  %v1045_v50 = vor.u32 %v1120_v49, %v1044_v48  ;;  %v1070_v52 = vld [vmem:[%s1769_s3 + $0x54] sm:$0xf0]  ;;  %v908_v53 = vld [vmem:[%s1769_s3 + $0xd0] sm:$0xf] }
   0xb   :  { %543 = vmatpush.bf16.msra.mxu0 %v853_v42  ;;  %v845_v54 = vor.u32 %v1070_v52, %v844_v51  ;;  %v1086_v55 = vld [vmem:[%s1769_s3 + $0xd4] sm:$0xf0]  ;;  %v972_v56 = vld [vmem:[%s1769_s3 + $0x150] sm:$0xf]  ;;  %v836_v63 = vld [vmem:[%s1769_s3 + $0x40] sm:$0xf] }
   0xc   :  { %1132 = vpow2.f32 %v48_v10  ;;  %v50_v12 = vmul.f32 1.442695, %v47_v11  ;;  %556 = vmatpush.bf16.msra.mxu1 %v917_v46  ;;  %v1102_v57 = vld [vmem:[%s1769_s3 + $0x154] sm:$0xf0]  ;;  %v909_v58 = vor.u32 %v1086_v55, %v908_v53  ;;  %v1036_v60 = vld [vmem:[%s1769_s3 + $0x1d0] sm:$0xf] }
   0xd   :  { %569 = vmatpush.bf16.msra.mxu2 %v981_v47  ;;  %v973_v59 = vor.u32 %v1102_v57, %v972_v56  ;;  %v1118_v61 = vld [vmem:[%s1769_s3 + $0x1d4] sm:$0xf0]  ;;  %v1068_v0 = vld [vmem:[%s1769_s3 + $0x44] sm:$0xf0]  ;;  %v900_v1 = vld [vmem:[%s1769_s3 + $0xc0] sm:$0xf] }
   0xe   :  { %1134 = vpow2.f32 %v50_v12  ;;  %582 = vmatpush.bf16.msra.mxu3 %v1045_v50  ;;  %v1037_v62 = vor.u32 %v1118_v61, %v1036_v60  ;;  %v837_v2 = vor.u32 %v1068_v0, %v836_v63  ;;  %v1084_v3 = vld [vmem:[%s1769_s3 + $0xc4] sm:$0xf0]  ;;  %v964_v4 = vld [vmem:[%s1769_s3 + $0x140] sm:$0xf]  ;;  %v828_v10 = vld [vmem:[%s1769_s3 + $0x30] sm:$0xf] }
   0xf   :  { %544 = vmatpush.bf16.msra.mxu0 %v845_v54  ;;  %v1100_v5 = vld [vmem:[%s1769_s3 + $0x144] sm:$0xf0]  ;;  %v901_v6 = vor.u32 %v1084_v3, %v900_v1  ;;  %v1028_v8 = vld [vmem:[%s1769_s3 + $0x1c0] sm:$0xf]  ;;  %v1066_v12 = vld [vmem:[%s1769_s3 + $0x34] sm:$0xf0] }
  0x10   :  { %557 = vmatpush.bf16.msra.mxu1 %v909_v58  ;;  %v965_v7 = vor.u32 %v1100_v5, %v964_v4  ;;  %v1116_v9 = vld [vmem:[%s1769_s3 + $0x1c4] sm:$0xf0]  ;;  %v948_v27 = vld [vmem:[%s1769_s3 + $0x120] sm:$0xf]  ;;  %v812_v35 = vld [vmem:[%s1769_s3 + $0x10] sm:$0xf] }
  0x11   :  { %570 = vmatpush.bf16.msra.mxu2 %v973_v59  ;;  %v1029_v11 = vor.u32 %v1116_v9, %v1028_v8  ;;  %v1096_v29 = vld [vmem:[%s1769_s3 + $0x124] sm:$0xf0]  ;;  %v1012_v30 = vld [vmem:[%s1769_s3 + $0x1a0] sm:$0xf]  ;;  %v1062_v36 = vld [vmem:[%s1769_s3 + $0x14] sm:$0xf0] }
  0x12   :  { %v1133_v14 = vpop.eup %1132  ;;  %583 = vmatpush.bf16.msra.mxu3 %v1037_v62  ;;  %v1112_v31 = vld [vmem:[%s1769_s3 + $0x1a4] sm:$0xf0]  ;;  %v949_v33 = vor.u32 %v1096_v29, %v948_v27  ;;  %v876_v37 = vld [vmem:[%s1769_s3 + $0x90] sm:$0xf]  ;;  %v813_v38 = vor.u32 %v1062_v36, %v812_v35  ;;  %v1078_v39 = vld [vmem:[%s1769_s3 + $0x94] sm:$0xf0] }
  0x13   :  { %71 = vperm.xlu0 %1130, %v1133_v14   ;;  %v52_v16 = vmul.f32 %v1133_v14, %v30_v13  ;;  %545 = vmatpush.bf16.msra.mxu0 %v837_v2  ;;  %v892_v13 = vld [vmem:[%s1769_s3 + $0xb0] sm:$0xf]  ;;  %v1082_v14 = vld [vmem:[%s1769_s3 + $0xb4] sm:$0xf0]  ;;  %v1013_v34 = vor.u32 %v1112_v31, %v1012_v30  ;;  %v877_v42 = vor.u32 %v1078_v39, %v876_v37  ;;  %v804_v47 = vld [vmem:[%s1769_s3] sm:$0xf] }
  0x14   :  { %v1135_v17 = vpop.eup %1134  ;;  %558 = vmatpush.bf16.msra.mxu1 %v901_v6  ;;  %v940_v40 = vld [vmem:[%s1769_s3 + $0x110] sm:$0xf]  ;;  %v1094_v41 = vld [vmem:[%s1769_s3 + $0x114] sm:$0xf0]  ;;  %v1060_v48 = vld [vmem:[%s1769_s3 + $0x4] sm:$0xf0] }
  0x15   :  { %v53_v18 = vmul.f32 %v1135_v17, %v31_v15  ;;  %56 = vst [vmem:[#allocation1] ss:$9 sm:$0xff] %v52_v16  ;;  %571 = vmatpush.bf16.msra.mxu2 %v965_v7  ;;  %v829_v15 = vor.u32 %v1066_v12, %v828_v10  ;;  %v893_v16 = vor.u32 %v1082_v14, %v892_v13  ;;  %v1004_v44 = vld [vmem:[%s1769_s3 + $0x190] sm:$0xf]  ;;  %v1110_v45 = vld [vmem:[%s1769_s3 + $0x194] sm:$0xf0] }
  0x16   :  { %584 = vmatpush.bf16.msra.mxu3 %v1029_v11  ;;  %v941_v43 = vor.u32 %v1094_v41, %v940_v40  ;;  %v1005_v46 = vor.u32 %v1110_v45, %v1004_v44  ;;  %v868_v49 = vld [vmem:[%s1769_s3 + $0x80] sm:$0xf]  ;;  %v805_v50 = vor.u32 %v1060_v48, %v804_v47  ;;  %v1076_v51 = vld [vmem:[%s1769_s3 + $0x84] sm:$0xf0]  ;;  %v1073_v59 = vld [vmem:[%s1769_s3 + $0x74] sm:$0xf] }
  0x17   :  { %58 = vst [vmem:[#allocation1 + $0x1] ss:$9 sm:$0xff] %v53_v18  ;;  %v1098_v18 = vld [vmem:[%s1769_s3 + $0x134] sm:$0xf0]  ;;  %546 = vmatpush.bf16.msra.mxu0 %v829_v15  ;;  %v932_v52 = vld [vmem:[%s1769_s3 + $0x100] sm:$0xf]  ;;  %v869_v55 = vor.u32 %v1076_v51, %v868_v49 }
  0x18   :  { %559 = vmatpush.bf16.msra.mxu1 %v893_v16  ;;  %v1092_v53 = vld [vmem:[%s1769_s3 + $0x104] sm:$0xf0]  ;;  %v32_v54 = vld [vmem:[%s1768_s2] sm:$0xf]  ;;  %v862_v61 = vld [vmem:[%s1769_s3 + $0x78] sm:$0xf0] }
  0x19   :  { %v933_v56 = vor.u32 %v1092_v53, %v932_v52  ;;  %v996_v57 = vld [vmem:[%s1769_s3 + $0x180] sm:$0xf]  ;;  %v1108_v58 = vld [vmem:[%s1769_s3 + $0x184] sm:$0xf0]  ;;  %v1089_v62 = vld [vmem:[%s1769_s3 + $0xf4] sm:$0xf]  ;;  %v865_v1 = vor.u32 %v1073_v59, %v862_v61 }
  0x1a   :  { %v997_v60 = vor.u32 %v1108_v58, %v996_v57  ;;  %v926_v63 = vld [vmem:[%s1769_s3 + $0xf8] sm:$0xf0]  ;;  %v1105_v3 = vld [vmem:[%s1769_s3 + $0x174] sm:$0xf]  ;;  %v1071_v9 = vld [vmem:[%s1769_s3 + $0x64] sm:$0xf] }
  0x1b   :  { %77 = vperm.xlu0 %1130, %v1135_v17   ;;  %v956_v17 = vld [vmem:[%s1769_s3 + $0x130] sm:$0xf]  ;;  %v929_v2 = vor.u32 %v1089_v62, %v926_v63  ;;  %v990_v4 = vld [vmem:[%s1769_s3 + $0x178] sm:$0xf0]  ;;  %v1121_v5 = vld [vmem:[%s1769_s3 + $0x1f4] sm:$0xf] }
  0x1c   :  { %v993_v7 = vor.u32 %v1105_v3, %v990_v4  ;;  %v1054_v8 = vld [vmem:[%s1769_s3 + $0x1f8] sm:$0xf0]  ;;  %v854_v11 = vld [vmem:[%s1769_s3 + $0x68] sm:$0xf0]  ;;  %v1087_v12 = vld [vmem:[%s1769_s3 + $0xe4] sm:$0xf] }
  0x1d   :  { %v1057_v10 = vor.u32 %v1121_v5, %v1054_v8  ;;  %v918_v13 = vld [vmem:[%s1769_s3 + $0xe8] sm:$0xf0]  ;;  %v857_v15 = vor.u32 %v1071_v9, %v854_v11  ;;  %v1085_v27 = vld [vmem:[%s1769_s3 + $0xd4] sm:$0xf]  ;;  %v974_v31 = vld [vmem:[%s1769_s3 + $0x158] sm:$0xf0] }
  0x1e   :  { %v59_v19 = vld [vmem:[#allocation1] sm:$0xff]  ;;  %v921_v16 = vor.u32 %v1087_v12, %v918_v13  ;;  %v1101_v29 = vld [vmem:[%s1769_s3 + $0x154] sm:$0xf]  ;;  %v902_v41 = vld [vmem:[%s1769_s3 + $0xc8] sm:$0xf0]  ;;  %vm750_vm7 = vcmask 16384  }
  0x1f   :  { %v62_v20 = vsel %vm61_vm1, %v59_v19, 0.0  ;;  %v1020_v19 = vld [vmem:[%s1769_s3 + $0x1b0] sm:$0xf]  ;;  %v977_v35 = vor.u32 %v1101_v29, %v974_v31  ;;  %v1067_v37 = vld [vmem:[%s1769_s3 + $0x44] sm:$0xf]  ;;  %s1198_s23 = smov 1  }
  0x20   :  { %v63_v21 = vrot.slane %v62_v20, 4  ;;  %v1083_v39 = vld [vmem:[%s1769_s3 + $0xc4] sm:$0xf]  ;;  %v966_v45 = vld [vmem:[%s1769_s3 + $0x148] sm:$0xf0]  ;;  %s1199_s24 = smov 2  }
  0x21   :  { %v905_v44 = vor.u32 %v1083_v39, %v902_v41  ;;  %v1030_v47 = vld [vmem:[%s1769_s3 + $0x1c8] sm:$0xf0]  ;;  %v1065_v51 = vld [vmem:[%s1769_s3 + $0x34] sm:$0xf]  ;;  %v830_v52 = vld [vmem:[%s1769_s3 + $0x38] sm:$0xf0] }
  0x22   :  { %v64_v22 = vadd.f32 %v63_v21, %v62_v20  ;;  %v957_v20 = vor.u32 %v1098_v18, %v956_v17  ;;  %v1114_v21 = vld [vmem:[%s1769_s3 + $0x1b4] sm:$0xf0]  ;;  %v1103_v17 = vld [vmem:[%s1769_s3 + $0x164] sm:$0xf]  ;;  %v982_v18 = vld [vmem:[%s1769_s3 + $0x168] sm:$0xf0] }
  0x23   :  { %v1081_v53 = vld [vmem:[%s1769_s3 + $0xb4] sm:$0xf]  ;;  %v958_v57 = vld [vmem:[%s1769_s3 + $0x138] sm:$0xf0]  ;;  %v1063_v62 = vld [vmem:[%s1769_s3 + $0x24] sm:$0xf] }
  0x24   :  { %v65_v23 = vrot.slane %v64_v22, 2  ;;  %572 = vmatpush.bf16.msra.mxu2 %v957_v20  ;;  %v985_v20 = vor.u32 %v1103_v17, %v982_v18  ;;  %v1022_v61 = vld [vmem:[%s1769_s3 + $0x1b8] sm:$0xf0]  ;;  %v1095_v5 = vld [vmem:[%s1769_s3 + $0x124] sm:$0xf]  ;;  %vm761_vm12 = vcmask 7168  }
  0x25   :  { %v1093_v31 = vld [vmem:[%s1769_s3 + $0x114] sm:$0xf]  ;;  %v1059_v39 = vld [vmem:[%s1769_s3 + $0x4] sm:$0xf]  ;;  %s1200_s25 = smov [#allocation4]   ;;  %s786_s28 = sshll.u32 %s1774_s8, 4  ;;  %s787_s28 = int_to_ptr.hbm [resolvable:$true] %s786_s28 }
  0x26   :  { %v66_v24 = vadd.f32 %v65_v23, %v64_v22  ;;  %v820_v22 = vld [vmem:[%s1769_s3 + $0x20] sm:$0xf]  ;;  %v1064_v23 = vld [vmem:[%s1769_s3 + $0x24] sm:$0xf0]  ;;  %s784_s26 = sshll.u32 %s1200_s25, 4  ;;  %vm763_vm13 = vcmask 15360   ;;  %s785_s26 = int_to_ptr.vmem [resolvable:$true] %s784_s26 }
  0x27   :  { %v821_v28 = vor.u32 %v1064_v23, %v820_v22  ;;  %v1069_v23 = vld [vmem:[%s1769_s3 + $0x54] sm:$0xf] }
  0x28   :  { %v67_v25 = vrot.slane %v66_v24, 1  ;;  %573 = vmatpush.bf16.msra.mxu2 %v949_v33  ;;  %v1038_v33 = vld [vmem:[%s1769_s3 + $0x1d8] sm:$0xf0] }
  0x29   :  { %547 = vmatpush.bf16.msra.mxu0 %v821_v28  ;;  %v910_v28 = vld [vmem:[%s1769_s3 + $0xd8] sm:$0xf0] }
  0x2a   :  { %v68_v26 = vadd.f32 %v67_v25, %v66_v24  ;;  %v1021_v24 = vor.u32 %v1114_v21, %v1020_v19  ;;  %v884_v25 = vld [vmem:[%s1769_s3 + $0xa0] sm:$0xf]  ;;  %v1119_v19 = vld [vmem:[%s1769_s3 + $0x1e4] sm:$0xf]  ;;  %v1046_v21 = vld [vmem:[%s1769_s3 + $0x1e8] sm:$0xf0]  ;;  %v913_v30 = vor.u32 %v1085_v27, %v910_v28 }
  0x2b   :  { %v1049_v22 = vor.u32 %v1119_v19, %v1046_v21  ;;  %v1061_v21 = vld [vmem:[%s1769_s3 + $0x14] sm:$0xf] }
  0x2c   :  { %127 = vperm.xlu1 %1131, %v68_v26   ;;  %v1080_v26 = vld [vmem:[%s1769_s3 + $0xa4] sm:$0xf0]  ;;  %585 = vmatpush.bf16.msra.mxu3 %v1021_v24  ;;  %v846_v24 = vld [vmem:[%s1769_s3 + $0x58] sm:$0xf0] }
  0x2d   :  { %v885_v32 = vor.u32 %v1080_v26, %v884_v25  ;;  %548 = vmatpush.bf16.msra.mxu0 %v813_v38  ;;  %574 = vmatpush.bf16.msra.mxu2 %v941_v43  ;;  %v33_v25 = vld [vmem:[%s1768_s2 + $0x4] sm:$0xf]  ;;  %v849_v26 = vor.u32 %v1069_v23, %v846_v24  ;;  %v838_v38 = vld [vmem:[%s1769_s3 + $0x48] sm:$0xf0]  ;;  %v814_v24 = vld [vmem:[%s1769_s3 + $0x18] sm:$0xf0] }
  0x2e   :  { %v841_v43 = vor.u32 %v1067_v37, %v838_v38  ;;  %v817_v29 = vor.u32 %v1061_v21, %v814_v24  ;;  %v1109_v37 = vld [vmem:[%s1769_s3 + $0x194] sm:$0xf]  ;;  %v1006_v38 = vld [vmem:[%s1769_s3 + $0x198] sm:$0xf0]  ;;  %s1197_s2 = smov [#allocation2]  }
  0x2f   :  { %560 = vmatpush.bf16.msra.mxu1 %v885_v32  ;;  %v1117_v32 = vld [vmem:[%s1769_s3 + $0x1d4] sm:$0xf]  ;;  %s773_s19 = sshll.u32 %s1197_s2, 4  ;;  %s774_s19 = int_to_ptr.vmem [resolvable:$true] %s773_s19 }
  0x30   :  { %586 = vmatpush.bf16.msra.mxu3 %v1013_v34  ;;  %v1041_v36 = vor.u32 %v1117_v32, %v1038_v33  ;;  %v942_v32 = vld [vmem:[%s1769_s3 + $0x118] sm:$0xf0]  ;;  %v663_v24 = vld [vmem:[%s1770_s4 + $0x70] sm:$0xff] }
  0x31   :  { %549 = vmatpush.bf16.msra.mxu0 %v805_v50  ;;  %575 = vmatpush.bf16.msra.mxu2 %v933_v56  ;;  %v1097_v56 = vld [vmem:[%s1769_s3 + $0x134] sm:$0xf] }
  0x32   :  { %v961_v59 = vor.u32 %v1097_v56, %v958_v57 }
  0x33   :  { %561 = vmatpush.bf16.msra.mxu1 %v877_v42  ;;  %v1099_v42 = vld [vmem:[%s1769_s3 + $0x144] sm:$0xf] }
  0x34   :  { %587 = vmatpush.bf16.msra.mxu3 %v1005_v46  ;;  %v1115_v46 = vld [vmem:[%s1769_s3 + $0x1c4] sm:$0xf]  ;;  %v969_v49 = vor.u32 %v1099_v42, %v966_v45 }
  0x35   :  { %594 = vmatpush.bf16.msrb.mxu0 %v865_v1  ;;  %620 = vmatpush.bf16.msrb.mxu2 %v993_v7  ;;  %v1033_v50 = vor.u32 %v1115_v46, %v1030_v47  ;;  %v1079_v1 = vld [vmem:[%s1769_s3 + $0xa4] sm:$0xf]  ;;  %v1009_v46 = vor.u32 %v1109_v37, %v1006_v38  ;;  %v652_v38 = vld [vmem:[%s1770_s4 + $0x18] sm:$0xff] }
  0x36   :  { %v1111_v7 = vld [vmem:[%s1769_s3 + $0x1a4] sm:$0xf] }
  0x37   :  { %562 = vmatpush.bf16.msra.mxu1 %v869_v55  ;;  %v894_v55 = vld [vmem:[%s1769_s3 + $0xb8] sm:$0xf0]  ;;  %v677_v37 = vld [vmem:[%s1770_s4 + $0xe0] sm:$0xff] }
  0x38   :  { %588 = vmatpush.bf16.msra.mxu3 %v997_v60  ;;  %v897_v58 = vor.u32 %v1081_v53, %v894_v55  ;;  %v1113_v60 = vld [vmem:[%s1769_s3 + $0x1b4] sm:$0xf] }
  0x39   :  { %595 = vmatpush.bf16.msrb.mxu0 %v857_v15  ;;  %621 = vmatpush.bf16.msrb.mxu2 %v985_v20  ;;  %v1025_v63 = vor.u32 %v1113_v60, %v1022_v61 }
  0x3b   :  { %607 = vmatpush.bf16.msrb.mxu1 %v929_v2  ;;  %v886_v2 = vld [vmem:[%s1769_s3 + $0xa8] sm:$0xf0] }
  0x3c   :  { %633 = vmatpush.bf16.msrb.mxu3 %v1057_v10  ;;  %v889_v4 = vor.u32 %v1079_v1, %v886_v2 }
  0x3d   :  { %596 = vmatpush.bf16.msrb.mxu0 %v849_v26  ;;  %622 = vmatpush.bf16.msrb.mxu2 %v977_v35 }
  0x3f   :  { %608 = vmatpush.bf16.msrb.mxu1 %v921_v16  ;;  %v1014_v16 = vld [vmem:[%s1769_s3 + $0x1a8] sm:$0xf0] }
  0x40   :  { %634 = vmatpush.bf16.msrb.mxu3 %v1049_v22  ;;  %v1017_v23 = vor.u32 %v1111_v7, %v1014_v16 }
  0x41   :  { %597 = vmatpush.bf16.msrb.mxu0 %v841_v43  ;;  %623 = vmatpush.bf16.msrb.mxu2 %v969_v49  ;;  %v1075_v43 = vld [vmem:[%s1769_s3 + $0x84] sm:$0xf] }
  0x42   :  { %v1091_v49 = vld [vmem:[%s1769_s3 + $0x104] sm:$0xf] }
  0x43   :  { %609 = vmatpush.bf16.msrb.mxu1 %v913_v30  ;;  %v878_v30 = vld [vmem:[%s1769_s3 + $0x98] sm:$0xf0] }
  0x44   :  { %635 = vmatpush.bf16.msrb.mxu3 %v1041_v36  ;;  %v945_v36 = vor.u32 %v1093_v31, %v942_v32  ;;  %v656_v31 = vld [vmem:[%s1770_s4 + $0x38] sm:$0xff]  ;;  %v655_v32 = vld [vmem:[%s1770_s4 + $0x30] sm:$0xff] }
  0x45   :  { %624 = vmatpush.bf16.msrb.mxu2 %v961_v59 }
  0x47   :  { %610 = vmatpush.bf16.msrb.mxu1 %v905_v44 }
  0x48   :  { %636 = vmatpush.bf16.msrb.mxu3 %v1033_v50  ;;  %v934_v50 = vld [vmem:[%s1769_s3 + $0x108] sm:$0xf0] }
  0x4b   :  { %611 = vmatpush.bf16.msrb.mxu1 %v897_v58 }
  0x4c   :  { %637 = vmatpush.bf16.msrb.mxu3 %v1025_v63 }
  0x4f   :  { %612 = vmatpush.bf16.msrb.mxu1 %v889_v4 }
  0x50   :  { %638 = vmatpush.bf16.msrb.mxu3 %v1017_v23  ;;  %v680_v23 = vld [vmem:[%s1770_s4 + $0xf8] sm:$0xff] }
  0x54   :  { %639 = vmatpush.bf16.msrb.mxu3 %v1009_v46  ;;  %v672_v46 = vld [vmem:[%s1770_s4 + $0xb8] sm:$0xff] }
  0x85   :  { %v72_v0 = vpop.permute.xlu0 %71 }
  0x86   :  { %v74_v6 = vperm.slane %v72_v0, 0  ;;  %v822_v0 = vld [vmem:[%s1769_s3 + $0x28] sm:$0xf0] }
  0x87   :  { %v825_v3 = vor.u32 %v1063_v62, %v822_v0 }
  0x88   :  { %v81_v14 = vmul.f32 %v74_v6, %v32_v54  ;;  %v833_v54 = vor.u32 %v1065_v51, %v830_v52  ;;  %v950_v6 = vld [vmem:[%s1769_s3 + $0x128] sm:$0xf0]  ;;  %v1107_v51 = vld [vmem:[%s1769_s3 + $0x184] sm:$0xf] }
  0x89   :  { %v953_v11 = vor.u32 %v1095_v5, %v950_v6  ;;  %v998_v52 = vld [vmem:[%s1769_s3 + $0x188] sm:$0xf0] }
  0x8a   :  { %85 = vst [vmem:[#allocation1] ss:$9 sm:$0xff] %v81_v14  ;;  %598 = vmatpush.bf16.msrb.mxu0 %v833_v54  ;;  %v937_v54 = vor.u32 %v1091_v49, %v934_v50  ;;  %v1001_v55 = vor.u32 %v1107_v51, %v998_v52  ;;  %v669_v49 = vld [vmem:[%s1770_s4 + $0xa0] sm:$0xff]  ;;  %v668_v50 = vld [vmem:[%s1770_s4 + $0x98] sm:$0xff]  ;;  %v667_v51 = vld [vmem:[%s1770_s4 + $0x90] sm:$0xff] }
  0x8b   :  { %625 = vmatpush.bf16.msrb.mxu2 %v953_v11  ;;  %v148_v52 = vld [vmem:[%s1771_s5 + $0x8] sm:$0x3] }
  0x8c   :  { %640 = vmatpush.bf16.msrb.mxu3 %v1001_v55  ;;  %v538_v55 = vperm.slane %v148_v52, 0 }
  0x8d   :  { %v78_v34 = vpop.permute.xlu0 %77 }
  0x8e   :  { %v80_v40 = vperm.slane %v78_v34, 0  ;;  %599 = vmatpush.bf16.msrb.mxu0 %v825_v3 }
  0x8f   :  { %626 = vmatpush.bf16.msrb.mxu2 %v945_v36  ;;  %v653_v36 = vld [vmem:[%s1770_s4 + $0x20] sm:$0xff] }
  0x90   :  { %v82_v48 = vmul.f32 %v80_v40, %v33_v25  ;;  %v1077_v25 = vld [vmem:[%s1769_s3 + $0x94] sm:$0xf]  ;;  %v806_v40 = vld [vmem:[%s1769_s3 + $0x8] sm:$0xf0] }
  0x91   :  { %v881_v35 = vor.u32 %v1077_v25, %v878_v30  ;;  %v809_v47 = vor.u32 %v1059_v39, %v806_v40  ;;  %v662_v25 = vld [vmem:[%s1770_s4 + $0x68] sm:$0xff]  ;;  %v657_v30 = vld [vmem:[%s1770_s4 + $0x40] sm:$0xff]  ;;  %v676_v39 = vld [vmem:[%s1770_s4 + $0xd8] sm:$0xff] }
  0x92   :  { %87 = vst [vmem:[#allocation1 + $0x1] ss:$9 sm:$0xff] %v82_v48  ;;  %600 = vmatpush.bf16.msrb.mxu0 %v817_v29  ;;  %v870_v48 = vld [vmem:[%s1769_s3 + $0x88] sm:$0xf0]  ;;  %v651_v40 = vld [vmem:[%s1770_s4 + $0x10] sm:$0xff] }
  0x93   :  { %613 = vmatpush.bf16.msrb.mxu1 %v881_v35  ;;  %v873_v53 = vor.u32 %v1075_v43, %v870_v48  ;;  %627 = vmatpush.bf16.msrb.mxu2 %v937_v54  ;;  %v658_v29 = vld [vmem:[%s1770_s4 + $0x48] sm:$0xff]  ;;  %v665_v54 = vld [vmem:[%s1770_s4 + $0x80] sm:$0xff] }
  0x94   :  { %v678_v35 = vld [vmem:[%s1770_s4 + $0xe8] sm:$0xff] }
  0x95   :  { %v674_v43 = vld [vmem:[%s1770_s4 + $0xc8] sm:$0xff] }
  0x96   :  { %601 = vmatpush.bf16.msrb.mxu0 %v809_v47  ;;  %v671_v47 = vld [vmem:[%s1770_s4 + $0xb0] sm:$0xff]  ;;  %v670_v48 = vld [vmem:[%s1770_s4 + $0xa8] sm:$0xff] }
  0x97   :  { %614 = vmatpush.bf16.msrb.mxu1 %v873_v53  ;;  %v666_v53 = vld [vmem:[%s1770_s4 + $0x88] sm:$0xff] }
  0x99   :  { %v88_v8 = vld [vmem:[#allocation1] sm:$0xff]  ;;  %v89_v9 = vld [vmem:[#allocation1 + $0x9] sm:$0xff]  ;;  %v90_v10 = vld [vmem:[#allocation1 + $0x12] sm:$0xff] }
  0x9a   :  { %v97_v12 = vsel %vm96_vm2, %v88_v8, 0.0  ;;  %v104_v13 = vsel %vm96_vm2, %v89_v9, 0.0  ;;  %v111_v14 = vsel %vm96_vm2, %v90_v10, 0.0  ;;  %v91_v15 = vld [vmem:[#allocation1 + $0x1b] sm:$0xff] }
  0x9b   :  { %v98_v17 = vrot.slane %v97_v12, 4  ;;  %v105_v18 = vrot.slane %v104_v13, 4  ;;  %v112_v19 = vrot.slane %v111_v14, 4  ;;  %v118_v20 = vsel %vm96_vm2, %v91_v15, 0.0 }
  0x9c   :  { %v119_v22 = vrot.slane %v118_v20, 4 }
  0x9d   :  { %v99_v26 = vadd.f32 %v98_v17, %v97_v12  ;;  %v106_v27 = vadd.f32 %v105_v18, %v104_v13  ;;  %v113_v28 = vadd.f32 %v112_v19, %v111_v14 }
  0x9e   :  { %v128_v33 = vpop.permute.xlu1 %127  ;;  %v120_v34 = vadd.f32 %v119_v22, %v118_v20  ;;  %v664_v22 = vld [vmem:[%s1770_s4 + $0x78] sm:$0xff] }
  0x9f   :  { %1136 = vrcp.f32 %v128_v33  ;;  %v100_v41 = vrot.slane %v99_v26, 2  ;;  %v107_v42 = vrot.slane %v106_v27, 2  ;;  %v114_v44 = vrot.slane %v113_v28, 2 }
  0xa0   :  { %v121_v45 = vrot.slane %v120_v34, 2  ;;  %v139_v63 = vand.u32 2147483647, %v128_v33  ;;  %v141_v0 = vand.u32 2147483648, %v128_v33  ;;  %vm135_vm4 = vweird.f32 %v128_v33 }
  0xa1   :  { %v101_v57 = vadd.f32 %v100_v41, %v99_v26  ;;  %v108_v58 = vadd.f32 %v107_v42, %v106_v27  ;;  %v115_v60 = vadd.f32 %v114_v44, %v113_v28  ;;  %v661_v26 = vld [vmem:[%s1770_s4 + $0x60] sm:$0xff]  ;;  %v660_v27 = vld [vmem:[%s1770_s4 + $0x58] sm:$0xff]  ;;  %v659_v28 = vld [vmem:[%s1770_s4 + $0x50] sm:$0xff] }
  0xa2   :  { %v122_v61 = vadd.f32 %v121_v45, %v120_v34  ;;  %v142_v7 = vor.u32 1.1754944e-38, %v141_v0  ;;  %vm140_vm6 = vcmp.eq.f32.partialorder %v139_v63, 8.507059e+37  ;;  %v654_v34 = vld [vmem:[%s1770_s4 + $0x28] sm:$0xff]  ;;  %v675_v41 = vld [vmem:[%s1770_s4 + $0xd0] sm:$0xff]  ;;  %v649_v44 = vld [vmem:[%s1770_s4] sm:$0xff] }
  0xa3   :  { %v102_v1 = vrot.slane %v101_v57, 1  ;;  %v109_v2 = vrot.slane %v108_v58, 1  ;;  %v116_v4 = vrot.slane %v115_v60, 1  ;;  %v650_v42 = vld [vmem:[%s1770_s4 + $0x8] sm:$0xff]  ;;  %v673_v45 = vld [vmem:[%s1770_s4 + $0xc0] sm:$0xff] }
  0xa4   :  { %v123_v5 = vrot.slane %v122_v61, 1 }
  0xa5   :  { %v1137_v56 = vpop.eup %1136  ;;  %v103_v8 = vadd.f32 %v102_v1, %v101_v57  ;;  %v110_v10 = vadd.f32 %v109_v2, %v108_v58  ;;  %v117_v11 = vadd.f32 %v116_v4, %v115_v60 }
  0xa6   :  { %v131_v59 = vmul.f32 %v1137_v56, %v128_v33  ;;  %vm136_vm3 = vweird.f32 %v1137_v56  ;;  %v124_v12 = vadd.f32 %v123_v5, %v122_v61  ;;  %v679_v33 = vld [vmem:[%s1770_s4 + $0xf0] sm:$0xff] }
  0xa7   :  { %vm137_vm5 = vmor %vm135_vm4, %vm136_vm3 }
  0xa8   :  { %v132_v62 = vsub.f32 1.0, %v131_v59 }
  0xaa   :  { %v133_v3 = vmul.f32 %v1137_v56, %v132_v62 }
  0xac   :  { %v134_v6 = vadd.f32 %v1137_v56, %v133_v3  ;;  %v539_v3 = vperm.slane %v148_v52, 1 }
  0xae   :  { %v138_v9 = vsel %vm137_vm5, %v1137_v56, %v134_v6 }
  0xaf   :  { %v143_v13 = vsel %vm140_vm6, %v142_v7, %v138_v9 }
  0xb0   :  { %v144_v14 = vmul.f32 %v143_v13, %v103_v8  ;;  %v145_v15 = vmul.f32 %v143_v13, %v110_v10  ;;  %v146_v16 = vmul.f32 %v143_v13, %v117_v11  ;;  %v147_v17 = vmul.f32 %v143_v13, %v124_v12 }
  0xb2   :  { %v149_v18 = vpack.c.bf16 %v144_v14, %v144_v14  ;;  %v150_v19 = vpack.c.bf16 %v145_v15, %v145_v15  ;;  %v151_v20 = vpack.c.bf16 %v146_v16, %v146_v16  ;;  %v152_v21 = vpack.c.bf16 %v147_v17, %v147_v17 }
  0xb4   :  { %550 = vmatmul.bf16.vlgmr.msra.gmra.mxu0 %v149_v18  ;;  %563 = vmatmul.bf16.vlgmr.msra.gmra.mxu1 %v150_v19 }
  0xb5   :  { %576 = vmatmul.bf16.vlgmr.msra.gmra.mxu2 %v151_v20  ;;  %589 = vmatmul.bf16.vlgmr.msra.gmra.mxu3 %v152_v21 }
  0xb6   :  { %681 = vmatpush.msra.mxu0 %v664_v22  ;;  %701 = vmatpush.msra.mxu1 %v680_v23 }
  0xb8   :  { %682 = vmatpush.msra.mxu0 %v663_v24  ;;  %702 = vmatpush.msra.mxu1 %v679_v33 }
  0xba   :  { %683 = vmatpush.msra.mxu0 %v662_v25  ;;  %703 = vmatpush.msra.mxu1 %v678_v35 }
  0xbc   :  { %684 = vmatpush.msra.mxu0 %v661_v26  ;;  %704 = vmatpush.msra.mxu1 %v677_v37 }
  0xbe   :  { %685 = vmatpush.msra.mxu0 %v660_v27  ;;  %705 = vmatpush.msra.mxu1 %v676_v39 }
  0xc0   :  { %686 = vmatpush.msra.mxu0 %v659_v28  ;;  %706 = vmatpush.msra.mxu1 %v675_v41 }
  0xc2   :  { %687 = vmatpush.msra.mxu0 %v658_v29  ;;  %707 = vmatpush.msra.mxu1 %v674_v43 }
  0xc4   :  { %602 = vmatmul.bf16.vlgmr.msrb.gmra.mxu0 %v149_v18  ;;  %615 = vmatmul.bf16.vlgmr.msrb.gmra.mxu1 %v150_v19  ;;  %v648_v19 = vld [vmem:[%s1771_s5 + $0xc] sm:$0x1]  ;;  %s1195_s5 = smov 126  }
  0xc5   :  { %628 = vmatmul.bf16.vlgmr.msrb.gmra.mxu2 %v151_v20  ;;  %641 = vmatmul.bf16.vlgmr.msrb.gmra.mxu3 %v152_v21 }
  0xc6   :  { %688 = vmatpush.msra.mxu0 %v657_v30  ;;  %708 = vmatpush.msra.mxu1 %v673_v45 }
  0xc8   :  { %689 = vmatpush.msra.mxu0 %v656_v31  ;;  %709 = vmatpush.msra.mxu1 %v672_v46 }
  0xca   :  { %690 = vmatpush.msra.mxu0 %v655_v32  ;;  %710 = vmatpush.msra.mxu1 %v671_v47 }
  0xcc   :  { %691 = vmatpush.msra.mxu0 %v654_v34  ;;  %711 = vmatpush.msra.mxu1 %v670_v48 }
  0xce   :  { %692 = vmatpush.msra.mxu0 %v653_v36  ;;  %712 = vmatpush.msra.mxu1 %v669_v49 }
  0xd0   :  { %693 = vmatpush.msra.mxu0 %v652_v38  ;;  %713 = vmatpush.msra.mxu1 %v668_v50 }
  0xd2   :  { %694 = vmatpush.msra.mxu0 %v651_v40  ;;  %714 = vmatpush.msra.mxu1 %v667_v51 }
  0xd4   :  { %695 = vmatpush.msra.mxu0 %v650_v42  ;;  %715 = vmatpush.msra.mxu1 %v666_v53 }
  0xd6   :  { %696 = vmatpush.msra.mxu0 %v649_v44  ;;  %716 = vmatpush.msra.mxu1 %v665_v54 }
 0x131   :  { %v551_v56 = vpop.f32.mrf.mxu0  ;;  %v564_v57 = vpop.f32.mrf.mxu1 }
 0x132   :  { %v552_v58 = vadd.f32 %v551_v56, %v538_v55 }
 0x134   :  { %v565_v59 = vadd.f32 %v564_v57, %v552_v58 }
 0x138   :  { %v577_v60 = vpop.f32.mrf.mxu2  ;;  %v590_v61 = vpop.f32.mrf.mxu3 }
 0x139   :  { %v578_v62 = vadd.f32 %v577_v60, %v565_v59  ;;  %v553_v63 = vpop.f32.mrf.mxu0  ;;  %v566_v0 = vpop.f32.mrf.mxu1 }
 0x13b   :  { %v591_v1 = vadd.f32 %v590_v61, %v578_v62 }
 0x13d   :  { %v646_v2 = vmax.f32 %v591_v1, 0.0 }
 0x13f   :  { %697 = vmatmul.f32.vlgmr.msra.gmra.mxu0 %v646_v2 }
 0x140   :  { %v579_v4 = vpop.f32.mrf.mxu2  ;;  %v592_v5 = vpop.f32.mrf.mxu3 }
 0x141   :  { %v603_v6 = vpop.f32.mrf.mxu0  ;;  %v616_v7 = vpop.f32.mrf.mxu1 }
 0x142   :  { %v604_v8 = vadd.f32 %v603_v6, %v539_v3 }
 0x144   :  { %v617_v9 = vadd.f32 %v616_v7, %v604_v8 }
 0x148   :  { %v629_v10 = vpop.f32.mrf.mxu2  ;;  %v642_v11 = vpop.f32.mrf.mxu3 }
 0x149   :  { %v630_v12 = vadd.f32 %v629_v10, %v617_v9  ;;  %v605_v13 = vpop.f32.mrf.mxu0  ;;  %v618_v14 = vpop.f32.mrf.mxu1 }
 0x14b   :  { %v643_v15 = vadd.f32 %v642_v11, %v630_v12 }
 0x14d   :  { %v647_v16 = vmax.f32 %v643_v15, 0.0 }
 0x14f   :  { %717 = vmatmul.f32.vlgmr.msra.gmra.mxu1 %v647_v16 }
 0x150   :  { %v631_v17 = vpop.f32.mrf.mxu2  ;;  %v644_v18 = vpop.f32.mrf.mxu3 }
 0x1bc   :  { %v698_v20 = vpop.f32.mrf.mxu0 }
 0x1bd   :  { %v699_v21 = vadd.f32 %v698_v20, %v648_v19 }
 0x1cc   :  { %v718_v22 = vpop.f32.mrf.mxu1 }
 0x1cd   :  { %v719_v23 = vadd.f32 %v718_v22, %v699_v21 }
 0x1cf   :  { %v1058_v24 = vmul.f32 -1.442695, %v719_v23  ;;  %751 = vst.msk [vmem:[%s1772_s6] sm:$0x1] %vm750_vm7, %v719_v23  ;;  %s1196_s6 = smov 127  }
 0x1d1   :  { %1138 = vpow2.f32 %v1058_v24 }
 0x1d7   :  { %v1139_v25 = vpop.eup %1138 }
 0x1d8   :  { %v724_v26 = vadd.f32 1.0, %v1139_v25 }
 0x1da   :  { %1140 = vrcp.f32 %v724_v26  ;;  %v736_v30 = vand.u32 2147483648, %v724_v26  ;;  %v734_v32 = vand.u32 2147483647, %v724_v26  ;;  %vm730_vm9 = vweird.f32 %v724_v26 }
 0x1dc   :  { %v737_v34 = vor.u32 1.1754944e-38, %v736_v30  ;;  %vm735_vm11 = vcmp.eq.f32.partialorder %v734_v32, 8.507059e+37 }
 0x1e0   :  { %v1141_v27 = vpop.eup %1140 }
 0x1e1   :  { %v726_v28 = vmul.f32 %v1141_v27, %v724_v26  ;;  %vm731_vm8 = vweird.f32 %v1141_v27 }
 0x1e2   :  { %vm732_vm10 = vmor %vm730_vm9, %vm731_vm8 }
 0x1e3   :  { %v727_v29 = vsub.f32 1.0, %v726_v28 }
 0x1e5   :  { %v728_v31 = vmul.f32 %v1141_v27, %v727_v29 }
 0x1e7   :  { %v729_v33 = vadd.f32 %v1141_v27, %v728_v31 }
 0x1e9   :  { %v733_v35 = vsel %vm732_vm10, %v1141_v27, %v729_v33 }
 0x1ea   :  { %v738_v36 = vsel %vm735_vm11, %v737_v34, %v733_v35 }
 0x1eb   :  { %v740_v37 = vsub.f32 1.0, %v738_v36  ;;  %752 = vst.msk [vmem:[#allocation2] sm:$0x1] %vm750_vm7, %v738_v36 }
 0x1ec   :  { %778 = dma.vmem_to_hbm [thread:$0]  %s774_s19, 16, %s776_s22, [#allocation3]  }
 0x1ed   :  { %746 = vrot.lane.b32.xlu2 %v740_v37, %s1195_s5  ;;  %742 = vrot.lane.b32.xlu1 %v740_v37, %s1196_s6 }
 0x247   :  { %v747_v40 = vpop.permute.xlu2 %746 }
 0x25f   :  { %v743_v38 = vpop.permute.xlu1 %742 }
 0x260   :  { %v745_v39 = vmul.f32 %v743_v38, %v740_v37 }
 0x262   :  { %v749_v41 = vmul.f32 %v747_v40, %v745_v39  ;;  %754 = vrot.lane.b32.xlu2 %v745_v39, %s1198_s23 }
 0x264   :  { %758 = vrot.lane.b32.xlu0 %v749_v41, %s1199_s24 }
 0x2bc   :  { %v755_v42 = vpop.permute.xlu2 %754 }
 0x2bd   :  { %v762_v43 = vsel %vm761_vm12, %v740_v37, %v755_v42 }
 0x2d6   :  { %v759_v44 = vpop.permute.xlu0 %758 }
 0x2d7   :  { %v764_v45 = vsel %vm763_vm13, %v762_v43, %v759_v44 }
 0x2d8   :  { %765 = vst.msk [vmem:[#allocation4] sm:$0x1] %vm750_vm7, %v764_v45 }
 0x2d9   :  { %789 = dma.vmem_to_hbm [thread:$0]  %s785_s26, 16, %s787_s28, [#allocation5]  }
 0x2da   :  { %1190 = dma.done.wait [#allocation3], 16  }
 0x2db   :  { %1191 = vsyncadd [#allocation3], 4294967280 }
 0x2dc   :  { %1192 = dma.done.wait [#allocation5], 16  }
 0x2dd   :  { %1193 = vsyncadd [#allocation5], 4294967280 }
 0x2de   :  { %800 = vsyncpa [#allocation3], 1 }
 0x2df   :  { %801 = vsyncpa [#allocation5], 1 }

// kernel: mil_attention_fc_surv_forward.2
= control target key start
LH: loop header
LB: loop body
LE: loop exit
PB: predicated region body
PF: predicated region fallthrough
CT: control target
= control target key end

     0   :  { %s14355_s0 = inlined_call_operand.<no memory space> [shape: s32[1], index: 0, kind: input, shape index: {}]   ;;  %s14356_s1 = inlined_call_operand.vmem [shape: bf16[200,1024], index: 1, kind: input, shape index: {}]   ;;  %s14357_s2 = inlined_call_operand.vmem [shape: bf16[1024,512], index: 2, kind: input, shape index: {}]   ;;  %s14358_s3 = inlined_call_operand.hbm [shape: bf16[512,512], index: 3, kind: input, shape index: {}]   ;;  %s14359_s4 = inlined_call_operand.hbm [shape: f32[1,1792], index: 4, kind: input, shape index: {}]   ;;  %s14360_s5 = inlined_call_operand.vmem [shape: f32[2,1,512], index: 5, kind: output, shape index: {0}]   ;;  %s14361_s6 = inlined_call_operand.vmem [shape: f32[2,1,1], index: 6, kind: output, shape index: {1}]   ;;  %s14362_s7 = inlined_call_operand.vmem [shape: f32[2,1,1], index: 7, kind: output, shape index: {2}]  }
   0x1   :  { %13 = sst [smem:[#allocation3]] %s14355_s0 }
   0x2   :  { %14 = vsyncpa [#allocation5], 0 }
   0x3   :  { %15 = vsyncpa [#allocation7], 0  ;;  %s10005_s26 = smov 0  }
   0x4 LB: > { %s207_s29 = sshll.u32 %s14358_s3, 4  ;;  %s10014_s30 = sadd.s32 4294967295, %s9955_s26   ;;  %s9955_s26 = sphi %s10005_s26, %s21_s26   ;;  %s208_s29 = int_to_ptr.hbm [resolvable:$true] %s207_s29 }
   0x5   : > { %p6946_p0 = scmp.ge.s32.totalorder %s9955_s26, 1  ;;  %p193_p1 = scmp.lt.s32.totalorder %s9955_s26, 3 }
   0x6   : > { %p9632_p2 = scmp.eq.s32.totalorder %s10014_s30, 0  ;;  %s9957_s8 = smov [#allocation4]  }
   0x7   : > { %p10019_p3 = pnand %p6946_p0, %p193_p1  ;;  %s209_s9 = sshll.u32 %s9957_s8, 4  ;;  %s210_s9 = int_to_ptr.vmem [resolvable:$true] %s209_s9 }
   0x8   : > { %s222_s12 = sshll.u32 %s14359_s4, 4  ;;  %s9958_s13 = smov [#allocation6]   ;;  %s223_s12 = int_to_ptr.hbm [resolvable:$true] %s222_s12 }
   0x9   : > { %p9625_p4 = pneg %p10019_p3  ;;  %s224_s14 = sshll.u32 %s9958_s13, 4  ;;  %s225_s14 = int_to_ptr.vmem [resolvable:$true] %s224_s14 }
   0xa   : > { %s9959_s15 = smov 256   ;;  %s9960_s16 = smov 16  }
   0xb   : > { %p9626_p5 = pnand %p9632_p2, %p9625_p4  ;;  %257 = sbr.rel (%p10019_p3) target bundleno = 2111 (0x83f), region = 36 }
   0xd   : > { %9628 = dma.hbm_to_vmem [thread:$0]  (!%p9626_p5), %s208_s29, 16384, %s210_s9, [#allocation5], %s9959_s15, %s9959_s15, %s9960_s16  }
   0xe   : > { %9631 = dma.hbm_to_vmem [thread:$0]  (!%p9626_p5), %s223_s12, 224, %s225_s14, [#allocation7]  }
  0x10   : > { %9946 = dma.done.wait (%p9632_p2), [#allocation5], 16384  }
  0x11   : > { %9948 = vsyncadd (%p9632_p2), [#allocation5], 4294950912 }
  0x12   : > { %9950 = dma.done.wait (%p9632_p2), [#allocation7], 224  }
  0x13   : > { %9952 = vsyncadd (%p9632_p2), [#allocation7], 4294967072  ;;  %s6953_s17 = sshll.u32 %s10014_s30, 4  ;;  %v7327_v0 = vld [vmem:[%s14357_s2 + $0xe0] sm:$0xf]  ;;  %s331_s0 = sld [smem:[#allocation3]] }
  0x14   : > { %v9263_v1 = vld [vmem:[%s14357_s2 + $0xec] sm:$0xf0]  ;;  %v7455_v2 = vld [vmem:[%s14357_s2 + $0x1e0] sm:$0xf]  ;;  %p10139_p6 = scmp.lt.s32.totalorder %s6953_s17, 24  ;;  %s8237_s10 = sshll.u32 %s10014_s30, 7 }
  0x15   : > { %v7328_v3 = vor.u32 %v9263_v1, %v7327_v0  ;;  %v9295_v4 = vld [vmem:[%s14357_s2 + $0x1ec] sm:$0xf0]  ;;  %v7583_v5 = vld [vmem:[%s14357_s2 + $0x2e0] sm:$0xf]  ;;  %p321_p7 = scmp.lt.s32.totalorder %s10014_s30, 1 }
  0x16   : > { %v9327_v6 = vld [vmem:[%s14357_s2 + $0x2ec] sm:$0xf0]  ;;  %v7456_v7 = vor.u32 %v9295_v4, %v7455_v2  ;;  %v7711_v9 = vld [vmem:[%s14357_s2 + $0x3e0] sm:$0xf]  ;;  %s15171_s17 = smov (!%p10139_p6, %s6953_s17), 24 }
  0x17   : > { %v7584_v8 = vor.u32 %v9327_v6, %v7583_v5  ;;  %v9359_v10 = vld [vmem:[%s14357_s2 + $0x3ec] sm:$0xf0]  ;;  %v7311_v11 = vld [vmem:[%s14357_s2 + $0xc0] sm:$0xf]  ;;  %2262 = vmatpush.bf16.msra.mxu0 %v7328_v3  ;;  %s9168_s9 = sshll.u32 %s15171_s17, 5  ;;  %s15173_s30 = smov (!%p321_p7, %s10014_s30), 1 }
  0x18   : > { %v7712_v12 = vor.u32 %v9359_v10, %v7711_v9  ;;  %v9259_v13 = vld [vmem:[%s14357_s2 + $0xcc] sm:$0xf0]  ;;  %v7439_v14 = vld [vmem:[%s14357_s2 + $0x1c0] sm:$0xf]  ;;  %2311 = vmatpush.bf16.msra.mxu1 %v7456_v7  ;;  %s10228_s8 = scalar_lea.vmem %s14356_s1, %s9168_s9  ;;  %s327_s13 = scalar_lea.vmem %s14361_s6, %s15173_s30 }
  0x19   : > { %v9291_v15 = vld [vmem:[%s14357_s2 + $0x1cc] sm:$0xf0]  ;;  %2360 = vmatpush.bf16.msra.mxu2 %v7584_v8  ;;  %v7312_v16 = vor.u32 %v9259_v13, %v7311_v11  ;;  %v7567_v18 = vld [vmem:[%s14357_s2 + $0x2c0] sm:$0xf]  ;;  %s330_s9 = scalar_lea.vmem %s14362_s7, %s15173_s30  ;;  %s6956_s16 = sshll.u32 %s15173_s30, 2 }
  0x1a   : > { %v7440_v17 = vor.u32 %v9291_v15, %v7439_v14  ;;  %v9323_v19 = vld [vmem:[%s14357_s2 + $0x2cc] sm:$0xf0]  ;;  %v7695_v20 = vld [vmem:[%s14357_s2 + $0x3c0] sm:$0xf]  ;;  %2409 = vmatpush.bf16.msra.mxu3 %v7712_v12  ;;  %s324_s20 = scalar_lea.vmem %s14360_s5, %s6956_s16 }
  0x1b   : > { %v7568_v21 = vor.u32 %v9323_v19, %v7567_v18  ;;  %v9355_v22 = vld [vmem:[%s14357_s2 + $0x3cc] sm:$0xf0]  ;;  %v7295_v23 = vld [vmem:[%s14357_s2 + $0xa0] sm:$0xf]  ;;  %2263 = vmatpush.bf16.msra.mxu0 %v7312_v16 }
  0x1c   : > { %v9255_v24 = vld [vmem:[%s14357_s2 + $0xac] sm:$0xf0]  ;;  %v7696_v25 = vor.u32 %v9355_v22, %v7695_v20  ;;  %v7423_v26 = vld [vmem:[%s14357_s2 + $0x1a0] sm:$0xf]  ;;  %2312 = vmatpush.bf16.msra.mxu1 %v7440_v17 }
  0x1d   : > { %v9287_v27 = vld [vmem:[%s14357_s2 + $0x1ac] sm:$0xf0]  ;;  %v7551_v28 = vld [vmem:[%s14357_s2 + $0x2a0] sm:$0xf]  ;;  %v7296_v29 = vor.u32 %v9255_v24, %v7295_v23  ;;  %2361 = vmatpush.bf16.msra.mxu2 %v7568_v21 }
  0x1e   : > { %v9319_v30 = vld [vmem:[%s14357_s2 + $0x2ac] sm:$0xf0]  ;;  %v7679_v31 = vld [vmem:[%s14357_s2 + $0x3a0] sm:$0xf]  ;;  %v7424_v33 = vor.u32 %v9287_v27, %v7423_v26  ;;  %2410 = vmatpush.bf16.msra.mxu3 %v7696_v25 }
  0x1f   : > { %v9351_v32 = vld [vmem:[%s14357_s2 + $0x3ac] sm:$0xf0]  ;;  %v7552_v34 = vor.u32 %v9319_v30, %v7551_v28  ;;  %v7279_v35 = vld [vmem:[%s14357_s2 + $0x80] sm:$0xf]  ;;  %2264 = vmatpush.bf16.msra.mxu0 %v7296_v29  ;;  %v9169_v30 = vld [vmem:[%s10228_s8 + $0x4] sm:$0xf] }
  0x20   : > { %v9251_v36 = vld [vmem:[%s14357_s2 + $0x8c] sm:$0xf0]  ;;  %v7407_v37 = vld [vmem:[%s14357_s2 + $0x180] sm:$0xf]  ;;  %v7680_v38 = vor.u32 %v9351_v32, %v7679_v31  ;;  %2313 = vmatpush.bf16.msra.mxu1 %v7424_v33  ;;  %v6961_v31 = vld [vmem:[%s10228_s8 + $0x20] sm:$0xf0] }
  0x21   : > { %v9283_v39 = vld [vmem:[%s14357_s2 + $0x18c] sm:$0xf0]  ;;  %v7535_v40 = vld [vmem:[%s14357_s2 + $0x280] sm:$0xf]  ;;  %v7280_v44 = vor.u32 %v9251_v36, %v7279_v35  ;;  %2362 = vmatpush.bf16.msra.mxu2 %v7552_v34  ;;  %v6967_v35 = vld [vmem:[%s10228_s8 + $0x8] sm:$0xf] }
  0x22   : > { %v9315_v41 = vld [vmem:[%s14357_s2 + $0x28c] sm:$0xf0]  ;;  %v7663_v42 = vld [vmem:[%s14357_s2 + $0x380] sm:$0xf]  ;;  %v7408_v45 = vor.u32 %v9283_v39, %v7407_v37  ;;  %2411 = vmatpush.bf16.msra.mxu3 %v7680_v38 }
  0x23   : > { %v9347_v43 = vld [vmem:[%s14357_s2 + $0x38c] sm:$0xf0]  ;;  %v7536_v46 = vor.u32 %v9315_v41, %v7535_v40  ;;  %v7263_v47 = vld [vmem:[%s14357_s2 + $0x60] sm:$0xf]  ;;  %2265 = vmatpush.bf16.msra.mxu0 %v7280_v44  ;;  %v9174_v40 = vld [vmem:[%s10228_s8 + $0x24] sm:$0xf0] }
  0x24   : > { %v9247_v48 = vld [vmem:[%s14357_s2 + $0x6c] sm:$0xf0]  ;;  %v7391_v49 = vld [vmem:[%s14357_s2 + $0x160] sm:$0xf]  ;;  %v7664_v50 = vor.u32 %v9347_v43, %v7663_v42  ;;  %2314 = vmatpush.bf16.msra.mxu1 %v7408_v45  ;;  %v9170_v41 = vld [vmem:[%s10228_s8 + $0xc] sm:$0xf] }
  0x25   : > { %v9279_v51 = vld [vmem:[%s14357_s2 + $0x16c] sm:$0xf0]  ;;  %v7519_v52 = vld [vmem:[%s14357_s2 + $0x260] sm:$0xf]  ;;  %v7264_v56 = vor.u32 %v9247_v48, %v7263_v47  ;;  %2363 = vmatpush.bf16.msra.mxu2 %v7536_v46  ;;  %v6969_v42 = vld [vmem:[%s10228_s8 + $0x28] sm:$0xf0] }
  0x26   : > { %v9311_v53 = vld [vmem:[%s14357_s2 + $0x26c] sm:$0xf0]  ;;  %v7647_v54 = vld [vmem:[%s14357_s2 + $0x360] sm:$0xf]  ;;  %v7392_v57 = vor.u32 %v9279_v51, %v7391_v49  ;;  %2412 = vmatpush.bf16.msra.mxu3 %v7664_v50 }
  0x27   : > { %v9343_v55 = vld [vmem:[%s14357_s2 + $0x36c] sm:$0xf0]  ;;  %v7520_v58 = vor.u32 %v9311_v53, %v7519_v52  ;;  %v7247_v59 = vld [vmem:[%s14357_s2 + $0x40] sm:$0xf]  ;;  %2266 = vmatpush.bf16.msra.mxu0 %v7264_v56  ;;  %v10291_v53 = vor.u32 %v9169_v30, %v6961_v31 }
  0x28   : > { %v9243_v60 = vld [vmem:[%s14357_s2 + $0x4c] sm:$0xf0]  ;;  %v7375_v61 = vld [vmem:[%s14357_s2 + $0x140] sm:$0xf]  ;;  %v7648_v62 = vor.u32 %v9343_v55, %v7647_v54  ;;  %2315 = vmatpush.bf16.msra.mxu1 %v7392_v57  ;;  %v10293_v54 = vor.u32 %v9174_v40, %v6967_v35  ;;  %v10301_v57 = vor.u32 %v9170_v41, %v6969_v42  ;;  %v9185_v42 = vld [vmem:[%s10228_s8 + $0x84] sm:$0xf] }
  0x29   : > { %v9275_v63 = vld [vmem:[%s14357_s2 + $0x14c] sm:$0xf0]  ;;  %v7503_v0 = vld [vmem:[%s14357_s2 + $0x240] sm:$0xf]  ;;  %v7248_v4 = vor.u32 %v9243_v60, %v7247_v59  ;;  %2364 = vmatpush.bf16.msra.mxu2 %v7520_v58 }
  0x2a   : > { %v9307_v1 = vld [vmem:[%s14357_s2 + $0x24c] sm:$0xf0]  ;;  %v7631_v2 = vld [vmem:[%s14357_s2 + $0x340] sm:$0xf]  ;;  %v7376_v5 = vor.u32 %v9275_v63, %v7375_v61  ;;  %2413 = vmatpush.bf16.msra.mxu3 %v7648_v62 }
  0x2b   : > { %v9339_v3 = vld [vmem:[%s14357_s2 + $0x34c] sm:$0xf0]  ;;  %v7504_v6 = vor.u32 %v9307_v1, %v7503_v0  ;;  %v7231_v7 = vld [vmem:[%s14357_s2 + $0x20] sm:$0xf]  ;;  %2267 = vmatpush.bf16.msra.mxu0 %v7248_v4 }
  0x2c   : > { %v9239_v8 = vld [vmem:[%s14357_s2 + $0x2c] sm:$0xf0]  ;;  %v7359_v9 = vld [vmem:[%s14357_s2 + $0x120] sm:$0xf]  ;;  %v7632_v10 = vor.u32 %v9339_v3, %v7631_v2  ;;  %2316 = vmatpush.bf16.msra.mxu1 %v7376_v5 }
  0x2d   : > { %v9271_v11 = vld [vmem:[%s14357_s2 + $0x12c] sm:$0xf0]  ;;  %v7487_v12 = vld [vmem:[%s14357_s2 + $0x220] sm:$0xf]  ;;  %v7232_v17 = vor.u32 %v9239_v8, %v7231_v7  ;;  %2365 = vmatpush.bf16.msra.mxu2 %v7504_v6 }
  0x2e   : > { %v9303_v13 = vld [vmem:[%s14357_s2 + $0x22c] sm:$0xf0]  ;;  %v7615_v14 = vld [vmem:[%s14357_s2 + $0x320] sm:$0xf]  ;;  %v7360_v21 = vor.u32 %v9271_v11, %v7359_v9  ;;  %2414 = vmatpush.bf16.msra.mxu3 %v7632_v10 }
  0x2f   : > { %v9335_v15 = vld [vmem:[%s14357_s2 + $0x32c] sm:$0xf0]  ;;  %v7215_v16 = vld [vmem:[%s14357_s2] sm:$0xf]  ;;  %v7488_v22 = vor.u32 %v9303_v13, %v7487_v12  ;;  %2268 = vmatpush.bf16.msra.mxu0 %v7232_v17 }
  0x30   : > { %v9235_v18 = vld [vmem:[%s14357_s2 + $0xc] sm:$0xf0]  ;;  %v7343_v19 = vld [vmem:[%s14357_s2 + $0x100] sm:$0xf]  ;;  %v7616_v26 = vor.u32 %v9335_v15, %v7615_v14  ;;  %2317 = vmatpush.bf16.msra.mxu1 %v7360_v21  ;;  %v9182_v21 = vld [vmem:[%s10228_s8 + $0x64] sm:$0xf0] }
  0x31   : > { %v9267_v20 = vld [vmem:[%s14357_s2 + $0x10c] sm:$0xf0]  ;;  %v7471_v23 = vld [vmem:[%s14357_s2 + $0x200] sm:$0xf]  ;;  %v7216_v34 = vor.u32 %v9235_v18, %v7215_v16  ;;  %2366 = vmatpush.bf16.msra.mxu2 %v7488_v22  ;;  %v9177_v18 = vld [vmem:[%s10228_s8 + $0x44] sm:$0xf] }
  0x32   : > { %v9299_v24 = vld [vmem:[%s14357_s2 + $0x20c] sm:$0xf0]  ;;  %v7599_v25 = vld [vmem:[%s14357_s2 + $0x300] sm:$0xf]  ;;  %v7344_v38 = vor.u32 %v9267_v20, %v7343_v19  ;;  %2415 = vmatpush.bf16.msra.mxu3 %v7616_v26  ;;  %v6993_v19 = vld [vmem:[%s10228_s8 + $0x60] sm:$0xf0] }
  0x33   : > { %v9331_v27 = vld [vmem:[%s14357_s2 + $0x30c] sm:$0xf0]  ;;  %v6959_v28 = vld [vmem:[%s10228_s8] sm:$0xf]  ;;  %v7472_v39 = vor.u32 %v9299_v24, %v7471_v23  ;;  %2269 = vmatpush.bf16.msra.mxu0 %v7216_v34  ;;  %v6999_v20 = vld [vmem:[%s10228_s8 + $0x48] sm:$0xf] }
  0x34   : > { %v9173_v29 = vld [vmem:[%s10228_s8 + $0x1c] sm:$0xf0]  ;;  %v9455_v33 = vld [vmem:[%s14357_s2 + $0x6ec] sm:$0xf0]  ;;  %v7600_v43 = vor.u32 %v9331_v27, %v7599_v25  ;;  %2318 = vmatpush.bf16.msra.mxu1 %v7344_v38  ;;  %v9178_v22 = vld [vmem:[%s10228_s8 + $0x4c] sm:$0xf]  ;;  %v10353_v25 = vor.u32 %v9177_v18, %v6993_v19  ;;  %v10355_v26 = vor.u32 %v9182_v21, %v6999_v20 }
  0x35   : > { %v8095_v32 = vld [vmem:[%s14357_s2 + $0x6e0] sm:$0xf]  ;;  %v9487_v37 = vld [vmem:[%s14357_s2 + $0x7ec] sm:$0xf0]  ;;  %v10280_v48 = vor.u32 %v9173_v29, %v6959_v28  ;;  %2367 = vmatpush.bf16.msra.mxu2 %v7472_v39  ;;  %v7001_v23 = vld [vmem:[%s10228_s8 + $0x68] sm:$0xf0] }
  0x36   : > { %v8223_v36 = vld [vmem:[%s14357_s2 + $0x7e0] sm:$0xf]  ;;  %v8096_v44 = vor.u32 %v9455_v33, %v8095_v32  ;;  %v9391_v46 = vld [vmem:[%s14357_s2 + $0x4ec] sm:$0xf0]  ;;  %2416 = vmatpush.bf16.msra.mxu3 %v7600_v43  ;;  %v10357_v27 = vor.u32 %v9178_v22, %v7001_v23  ;;  %v7025_v43 = vld [vmem:[%s10228_s8 + $0xa0] sm:$0xf0] }
  0x37   : > { %v7839_v45 = vld [vmem:[%s14357_s2 + $0x4e0] sm:$0xf]  ;;  %v8224_v49 = vor.u32 %v9487_v37, %v8223_v36  ;;  %v9423_v50 = vld [vmem:[%s14357_s2 + $0x5ec] sm:$0xf0]  ;;  %2270 = vmatmul.bf16.vlgmr.msra.gmra.mxu0 %v10280_v48  ;;  %2319 = vmatmul.bf16.vlgmr.msra.gmra.mxu1 %v10291_v53 }
  0x38   : > { %v7967_v47 = vld [vmem:[%s14357_s2 + $0x5e0] sm:$0xf]  ;;  %v9451_v52 = vld [vmem:[%s14357_s2 + $0x6cc] sm:$0xf0]  ;;  %v7840_v58 = vor.u32 %v9391_v46, %v7839_v45  ;;  %2368 = vmatmul.bf16.vlgmr.msra.gmra.mxu2 %v10293_v54  ;;  %v9190_v45 = vld [vmem:[%s10228_s8 + $0xa4] sm:$0xf0] }
  0x39   : > { %v8079_v51 = vld [vmem:[%s14357_s2 + $0x6c0] sm:$0xf]  ;;  %v9483_v56 = vld [vmem:[%s14357_s2 + $0x7cc] sm:$0xf0]  ;;  %2556 = vmatpush.bf16.msrb.mxu2 %v8096_v44  ;;  %v7968_v59 = vor.u32 %v9423_v50, %v7967_v47  ;;  %2417 = vmatmul.bf16.vlgmr.msra.gmra.mxu3 %v10301_v57  ;;  %v7031_v44 = vld [vmem:[%s10228_s8 + $0x88] sm:$0xf]  ;;  %v10397_v50 = vor.u32 %v9185_v42, %v7025_v43 }
  0x3a   : > { %v8207_v55 = vld [vmem:[%s14357_s2 + $0x7c0] sm:$0xf]  ;;  %v8080_v60 = vor.u32 %v9451_v52, %v8079_v51  ;;  %v9387_v62 = vld [vmem:[%s14357_s2 + $0x4cc] sm:$0xf0]  ;;  %2605 = vmatpush.bf16.msrb.mxu3 %v8224_v49  ;;  %2458 = vmatpush.bf16.msrb.mxu0 %v7840_v58  ;;  %v9186_v46 = vld [vmem:[%s10228_s8 + $0x8c] sm:$0xf]  ;;  %v10399_v51 = vor.u32 %v9190_v45, %v7031_v44 }
  0x3b   : > { %v7823_v61 = vld [vmem:[%s14357_s2 + $0x4c0] sm:$0xf]  ;;  %v8208_v63 = vor.u32 %v9483_v56, %v8207_v55  ;;  %v9419_v1 = vld [vmem:[%s14357_s2 + $0x5cc] sm:$0xf0]  ;;  %2507 = vmatpush.bf16.msrb.mxu1 %v7968_v59  ;;  %v7033_v47 = vld [vmem:[%s10228_s8 + $0xa8] sm:$0xf0] }
  0x3c   : > { %v7951_v0 = vld [vmem:[%s14357_s2 + $0x5c0] sm:$0xf]  ;;  %v7824_v2 = vor.u32 %v9387_v62, %v7823_v61  ;;  %v9447_v4 = vld [vmem:[%s14357_s2 + $0x6ac] sm:$0xf0]  ;;  %v10401_v52 = vor.u32 %v9186_v46, %v7033_v47 }
  0x3d   : > { %v8063_v3 = vld [vmem:[%s14357_s2 + $0x6a0] sm:$0xf]  ;;  %2557 = vmatpush.bf16.msrb.mxu2 %v8080_v60  ;;  %v7952_v6 = vor.u32 %v9419_v1, %v7951_v0  ;;  %v9383_v8 = vld [vmem:[%s14357_s2 + $0x4ac] sm:$0xf0] }
  0x3e   : > { %v7807_v5 = vld [vmem:[%s14357_s2 + $0x4a0] sm:$0xf]  ;;  %v8064_v7 = vor.u32 %v9447_v4, %v8063_v3  ;;  %v9479_v10 = vld [vmem:[%s14357_s2 + $0x7ac] sm:$0xf0]  ;;  %2606 = vmatpush.bf16.msrb.mxu3 %v8208_v63  ;;  %2459 = vmatpush.bf16.msrb.mxu0 %v7824_v2 }
  0x3f   : > { %v8191_v9 = vld [vmem:[%s14357_s2 + $0x7a0] sm:$0xf]  ;;  %v9415_v13 = vld [vmem:[%s14357_s2 + $0x5ac] sm:$0xf0]  ;;  %v7808_v14 = vor.u32 %v9383_v8, %v7807_v5  ;;  %2508 = vmatpush.bf16.msrb.mxu1 %v7952_v6  ;;  %v9193_v6 = vld [vmem:[%s10228_s8 + $0xc4] sm:$0xf] }
  0x40   : > { %v8192_v11 = vor.u32 %v9479_v10, %v8191_v9  ;;  %v7935_v12 = vld [vmem:[%s14357_s2 + $0x5a0] sm:$0xf]  ;;  %v9443_v29 = vld [vmem:[%s14357_s2 + $0x68c] sm:$0xf0]  ;;  %v7063_v8 = vld [vmem:[%s10228_s8 + $0xc8] sm:$0xf] }
  0x41   : > { %2558 = vmatpush.bf16.msrb.mxu2 %v8064_v7  ;;  %v7936_v15 = vor.u32 %v9415_v13, %v7935_v12  ;;  %v6991_v16 = vld [vmem:[%s10228_s8 + $0x40] sm:$0xf]  ;;  %v9379_v32 = vld [vmem:[%s14357_s2 + $0x48c] sm:$0xf0]  ;;  %v7057_v7 = vld [vmem:[%s10228_s8 + $0xe0] sm:$0xf0] }
  0x42   : > { %2607 = vmatpush.bf16.msrb.mxu3 %v8192_v11  ;;  %v9181_v17 = vld [vmem:[%s10228_s8 + $0x5c] sm:$0xf0]  ;;  %2460 = vmatpush.bf16.msrb.mxu0 %v7808_v14  ;;  %v9475_v34 = vld [vmem:[%s14357_s2 + $0x78c] sm:$0xf0]  ;;  %v9198_v9 = vld [vmem:[%s10228_s8 + $0xe4] sm:$0xf0]  ;;  %v10441_v13 = vor.u32 %v9193_v6, %v7057_v7 }
  0x43   : > { %2509 = vmatpush.bf16.msrb.mxu1 %v7936_v15  ;;  %v10351_v24 = vor.u32 %v9181_v17, %v6991_v16  ;;  %v8047_v28 = vld [vmem:[%s14357_s2 + $0x680] sm:$0xf]  ;;  %v9411_v38 = vld [vmem:[%s14357_s2 + $0x58c] sm:$0xf0]  ;;  %v9194_v10 = vld [vmem:[%s10228_s8 + $0xcc] sm:$0xf]  ;;  %v10443_v14 = vor.u32 %v9198_v9, %v7063_v8 }
  0x44   : > { %v7791_v30 = vld [vmem:[%s14357_s2 + $0x480] sm:$0xf]  ;;  %v8048_v31 = vor.u32 %v9443_v29, %v8047_v28  ;;  %v9439_v56 = vld [vmem:[%s14357_s2 + $0x66c] sm:$0xf0]  ;;  %v7065_v11 = vld [vmem:[%s10228_s8 + $0xe8] sm:$0xf0] }
  0x45   : > { %v8175_v33 = vld [vmem:[%s14357_s2 + $0x780] sm:$0xf]  ;;  %v7792_v35 = vor.u32 %v9379_v32, %v7791_v30  ;;  %v9375_v60 = vld [vmem:[%s14357_s2 + $0x46c] sm:$0xf0]  ;;  %v10445_v15 = vor.u32 %v9194_v10, %v7065_v11  ;;  %v9210_v6 = vld [vmem:[%s10228_s8 + $0x14c] sm:$0xf] }
  0x46   : > { %v8176_v36 = vor.u32 %v9475_v34, %v8175_v33  ;;  %v7919_v37 = vld [vmem:[%s14357_s2 + $0x580] sm:$0xf]  ;;  %2559 = vmatpush.bf16.msrb.mxu2 %v8048_v31  ;;  %v9471_v62 = vld [vmem:[%s14357_s2 + $0x76c] sm:$0xf0]  ;;  %v9201_v34 = vld [vmem:[%s10228_s8 + $0x104] sm:$0xf] }
  0x47   : > { %2275 = vmatmul.bf16.gmra.mxu0 %v10351_v24  ;;  %2324 = vmatmul.bf16.gmra.mxu1 %v10353_v25  ;;  %v7920_v39 = vor.u32 %v9411_v38, %v7919_v37  ;;  %v7023_v40 = vld [vmem:[%s10228_s8 + $0x80] sm:$0xf]  ;;  %v9407_v2 = vld [vmem:[%s14357_s2 + $0x56c] sm:$0xf0]  ;;  %v9206_v37 = vld [vmem:[%s10228_s8 + $0x124] sm:$0xf0] }
  0x48   : > { %2373 = vmatmul.bf16.gmra.mxu2 %v10355_v26  ;;  %2461 = vmatpush.bf16.msrb.mxu0 %v7792_v35  ;;  %v9189_v41 = vld [vmem:[%s10228_s8 + $0x9c] sm:$0xf0]  ;;  %v9435_v17 = vld [vmem:[%s14357_s2 + $0x64c] sm:$0xf0]  ;;  %v7089_v35 = vld [vmem:[%s10228_s8 + $0x120] sm:$0xf0] }
  0x49   : > { %2422 = vmatmul.bf16.gmra.mxu3 %v10357_v27  ;;  %2510 = vmatpush.bf16.msrb.mxu1 %v7920_v39  ;;  %v10395_v49 = vor.u32 %v9189_v41, %v7023_v40  ;;  %v8031_v55 = vld [vmem:[%s14357_s2 + $0x660] sm:$0xf]  ;;  %v9371_v20 = vld [vmem:[%s14357_s2 + $0x44c] sm:$0xf0]  ;;  %v9202_v38 = vld [vmem:[%s10228_s8 + $0x10c] sm:$0xf]  ;;  %v10485_v41 = vor.u32 %v9201_v34, %v7089_v35 }
  0x4a   : > { %2608 = vmatpush.bf16.msrb.mxu3 %v8176_v36  ;;  %v7775_v58 = vld [vmem:[%s14357_s2 + $0x460] sm:$0xf]  ;;  %v8032_v59 = vor.u32 %v9439_v56, %v8031_v55  ;;  %v9467_v22 = vld [vmem:[%s14357_s2 + $0x74c] sm:$0xf0]  ;;  %v7095_v36 = vld [vmem:[%s10228_s8 + $0x108] sm:$0xf] }
  0x4b   : > { %v8159_v61 = vld [vmem:[%s14357_s2 + $0x760] sm:$0xf]  ;;  %v7776_v63 = vor.u32 %v9375_v60, %v7775_v58  ;;  %v9403_v30 = vld [vmem:[%s14357_s2 + $0x54c] sm:$0xf0]  ;;  %v7097_v39 = vld [vmem:[%s10228_s8 + $0x128] sm:$0xf0]  ;;  %v10487_v42 = vor.u32 %v9206_v37, %v7095_v36 }
  0x4c   : > { %v8160_v0 = vor.u32 %v9471_v62, %v8159_v61  ;;  %v7903_v1 = vld [vmem:[%s14357_s2 + $0x560] sm:$0xf]  ;;  %2560 = vmatpush.bf16.msrb.mxu2 %v8032_v59  ;;  %v10489_v43 = vor.u32 %v9202_v38, %v7097_v39  ;;  %v9431_v45 = vld [vmem:[%s14357_s2 + $0x62c] sm:$0xf0]  ;;  %v7129_v7 = vld [vmem:[%s10228_s8 + $0x168] sm:$0xf0] }
  0x4d   : > { %v7904_v3 = vor.u32 %v9407_v2, %v7903_v1  ;;  %2462 = vmatpush.bf16.msrb.mxu0 %v7776_v63  ;;  %v7055_v4 = vld [vmem:[%s10228_s8 + $0xc0] sm:$0xf]  ;;  %v9367_v55 = vld [vmem:[%s14357_s2 + $0x42c] sm:$0xf0]  ;;  %v9209_v2 = vld [vmem:[%s10228_s8 + $0x144] sm:$0xf]  ;;  %v10533_v11 = vor.u32 %v9210_v6, %v7129_v7 }
  0x4e   : > { %2609 = vmatpush.bf16.msrb.mxu3 %v8160_v0  ;;  %v9197_v5 = vld [vmem:[%s10228_s8 + $0xdc] sm:$0xf0]  ;;  %v9463_v58 = vld [vmem:[%s14357_s2 + $0x72c] sm:$0xf0]  ;;  %v9217_v34 = vld [vmem:[%s10228_s8 + $0x184] sm:$0xf] }
  0x4f   : > { %2511 = vmatpush.bf16.msrb.mxu1 %v7904_v3  ;;  %v10439_v12 = vor.u32 %v9197_v5, %v7055_v4  ;;  %v8015_v16 = vld [vmem:[%s14357_s2 + $0x640] sm:$0xf]  ;;  %v9399_v62 = vld [vmem:[%s14357_s2 + $0x52c] sm:$0xf0]  ;;  %v7121_v3 = vld [vmem:[%s10228_s8 + $0x160] sm:$0xf0] }
  0x50   : > { %v7759_v18 = vld [vmem:[%s14357_s2 + $0x440] sm:$0xf]  ;;  %v8016_v19 = vor.u32 %v9435_v17, %v8015_v16  ;;  %v7127_v4 = vld [vmem:[%s10228_s8 + $0x148] sm:$0xf]  ;;  %v10529_v9 = vor.u32 %v9209_v2, %v7121_v3  ;;  %v9427_v17 = vld [vmem:[%s14357_s2 + $0x60c] sm:$0xf0] }
  0x51   : > { %v8143_v21 = vld [vmem:[%s14357_s2 + $0x740] sm:$0xf]  ;;  %v7760_v23 = vor.u32 %v9371_v20, %v7759_v18  ;;  %v9214_v5 = vld [vmem:[%s10228_s8 + $0x164] sm:$0xf0]  ;;  %v9363_v20 = vld [vmem:[%s14357_s2 + $0x40c] sm:$0xf0] }
  0x52   : > { %v8144_v28 = vor.u32 %v9467_v22, %v8143_v21  ;;  %v7887_v29 = vld [vmem:[%s14357_s2 + $0x540] sm:$0xf]  ;;  %2561 = vmatpush.bf16.msrb.mxu2 %v8016_v19  ;;  %v10531_v10 = vor.u32 %v9214_v5, %v7127_v4  ;;  %v9459_v22 = vld [vmem:[%s14357_s2 + $0x70c] sm:$0xf0]  ;;  %v7153_v35 = vld [vmem:[%s10228_s8 + $0x1a0] sm:$0xf0] }
  0x53   : > { %v7888_v31 = vor.u32 %v9403_v30, %v7887_v29  ;;  %2463 = vmatpush.bf16.msrb.mxu0 %v7760_v23  ;;  %v7087_v32 = vld [vmem:[%s10228_s8 + $0x100] sm:$0xf]  ;;  %v9395_v30 = vld [vmem:[%s14357_s2 + $0x50c] sm:$0xf0]  ;;  %v7159_v36 = vld [vmem:[%s10228_s8 + $0x188] sm:$0xf] }
  0x54   : > { %2610 = vmatpush.bf16.msrb.mxu3 %v8144_v28  ;;  %v9205_v33 = vld [vmem:[%s10228_s8 + $0x11c] sm:$0xf0]  ;;  %v9222_v37 = vld [vmem:[%s10228_s8 + $0x1a4] sm:$0xf0]  ;;  %v9218_v38 = vld [vmem:[%s10228_s8 + $0x18c] sm:$0xf] }
  0x55   : > { %2512 = vmatpush.bf16.msrb.mxu1 %v7888_v31  ;;  %v10483_v40 = vor.u32 %v9205_v33, %v7087_v32  ;;  %v7999_v44 = vld [vmem:[%s14357_s2 + $0x620] sm:$0xf]  ;;  %v7161_v39 = vld [vmem:[%s10228_s8 + $0x1a8] sm:$0xf0]  ;;  %v7457_v2 = vld [vmem:[%s14357_s2 + $0x1f0] sm:$0xf0] }
  0x56   : > { %v7743_v46 = vld [vmem:[%s14357_s2 + $0x420] sm:$0xf]  ;;  %v8000_v47 = vor.u32 %v9431_v45, %v7999_v44  ;;  %v10573_v45 = vor.u32 %v9217_v34, %v7153_v35  ;;  %v9225_v6 = vld [vmem:[%s10228_s8 + $0x1c4] sm:$0xf]  ;;  %v7697_v34 = vld [vmem:[%s14357_s2 + $0x3d0] sm:$0xf0] }
  0x57   : > { %2280 = vmatmul.bf16.gmra.mxu0 %v10395_v49  ;;  %2329 = vmatmul.bf16.gmra.mxu1 %v10397_v50  ;;  %v8127_v56 = vld [vmem:[%s14357_s2 + $0x720] sm:$0xf]  ;;  %v7744_v59 = vor.u32 %v9367_v55, %v7743_v46  ;;  %v10575_v46 = vor.u32 %v9222_v37, %v7159_v36  ;;  %v9325_v55 = vld [vmem:[%s14357_s2 + $0x2e4] sm:$0xf] }
  0x58   : > { %2378 = vmatmul.bf16.gmra.mxu2 %v10399_v51  ;;  %v8128_v60 = vor.u32 %v9463_v58, %v8127_v56  ;;  %v7871_v61 = vld [vmem:[%s14357_s2 + $0x520] sm:$0xf]  ;;  %v7585_v56 = vld [vmem:[%s14357_s2 + $0x2f0] sm:$0xf0]  ;;  %v9261_v58 = vld [vmem:[%s14357_s2 + $0xe4] sm:$0xf] }
  0x59   : > { %2427 = vmatmul.bf16.gmra.mxu3 %v10401_v52  ;;  %2562 = vmatpush.bf16.msrb.mxu2 %v8000_v47  ;;  %v7872_v63 = vor.u32 %v9399_v62, %v7871_v61  ;;  %v7119_v0 = vld [vmem:[%s10228_s8 + $0x140] sm:$0xf]  ;;  %14648 = vst [vmem:[#allocation10_spill] sm:$0xff] %v10575_v46  ;;  %v10577_v47 = vor.u32 %v9218_v38, %v7161_v39  ;;  %v9357_v61 = vld [vmem:[%s14357_s2 + $0x3e4] sm:$0xf] }
  0x5a   : > { %2464 = vmatpush.bf16.msrb.mxu0 %v7744_v59  ;;  %2611 = vmatpush.bf16.msrb.mxu3 %v8128_v60  ;;  %v9213_v1 = vld [vmem:[%s10228_s8 + $0x15c] sm:$0xf0]  ;;  %v7588_v59 = vor.u32 %v9325_v55, %v7585_v56  ;;  %v7329_v60 = vld [vmem:[%s14357_s2 + $0xf0] sm:$0xf0]  ;;  %v7185_v7 = vld [vmem:[%s10228_s8 + $0x1e0] sm:$0xf0] }
  0x5b   : > { %2513 = vmatpush.bf16.msrb.mxu1 %v7872_v63  ;;  %v10527_v8 = vor.u32 %v9213_v1, %v7119_v0  ;;  %v7983_v16 = vld [vmem:[%s14357_s2 + $0x600] sm:$0xf]  ;;  %14649 = vst [vmem:[#allocation11_spill] sm:$0xff] %v10577_v47  ;;  %v7713_v62 = vld [vmem:[%s14357_s2 + $0x3f0] sm:$0xf0]  ;;  %v7332_v63 = vor.u32 %v9261_v58, %v7329_v60 }
  0x5c   : > { %v7727_v18 = vld [vmem:[%s14357_s2 + $0x400] sm:$0xf]  ;;  %v7984_v19 = vor.u32 %v9427_v17, %v7983_v16  ;;  %v7716_v0 = vor.u32 %v9357_v61, %v7713_v62  ;;  %v9293_v1 = vld [vmem:[%s14357_s2 + $0x1e4] sm:$0xf]  ;;  %v7191_v16 = vld [vmem:[%s10228_s8 + $0x1c8] sm:$0xf] }
  0x5d   : > { %v8111_v21 = vld [vmem:[%s14357_s2 + $0x700] sm:$0xf]  ;;  %v7728_v23 = vor.u32 %v9363_v20, %v7727_v18  ;;  %v7460_v3 = vor.u32 %v9293_v1, %v7457_v2  ;;  %v9230_v17 = vld [vmem:[%s10228_s8 + $0x1e4] sm:$0xf0]  ;;  %v9226_v18 = vld [vmem:[%s10228_s8 + $0x1cc] sm:$0xf] }
  0x5e   : > { %v8112_v28 = vor.u32 %v9459_v22, %v8111_v21  ;;  %v7855_v29 = vld [vmem:[%s14357_s2 + $0x500] sm:$0xf]  ;;  %2563 = vmatpush.bf16.msrb.mxu2 %v7984_v19  ;;  %v7193_v19 = vld [vmem:[%s10228_s8 + $0x1e8] sm:$0xf0]  ;;  %v10617_v21 = vor.u32 %v9225_v6, %v7185_v7  ;;  %v10619_v22 = vor.u32 %v9230_v17, %v7191_v16  ;;  %v9289_v38 = vld [vmem:[%s14357_s2 + $0x1c4] sm:$0xf] }
  0x5f   : > { %v7856_v31 = vor.u32 %v9395_v30, %v7855_v29  ;;  %2465 = vmatpush.bf16.msrb.mxu0 %v7728_v23  ;;  %v7151_v32 = vld [vmem:[%s10228_s8 + $0x180] sm:$0xf]  ;;  %v10621_v23 = vor.u32 %v9226_v18, %v7193_v19  ;;  %v7569_v29 = vld [vmem:[%s14357_s2 + $0x2d0] sm:$0xf0]  ;;  %v9257_v30 = vld [vmem:[%s14357_s2 + $0xc4] sm:$0xf] }
  0x60   : > { %2612 = vmatpush.bf16.msrb.mxu3 %v8112_v28  ;;  %v9221_v33 = vld [vmem:[%s10228_s8 + $0x19c] sm:$0xf0]  ;;  %14651 = vst [vmem:[#allocation13_spill] sm:$0xff] %v10617_v21  ;;  %v9321_v28 = vld [vmem:[%s14357_s2 + $0x2c4] sm:$0xf] }
  0x61   : > { %2514 = vmatpush.bf16.msrb.mxu1 %v7856_v31  ;;  %v10571_v44 = vor.u32 %v9221_v33, %v7151_v32  ;;  %v7183_v4 = vld [vmem:[%s10228_s8 + $0x1c0] sm:$0xf]  ;;  %14652 = vst [vmem:[#allocation14_spill] sm:$0xff] %v10619_v22  ;;  %v7572_v31 = vor.u32 %v9321_v28, %v7569_v29  ;;  %v7313_v32 = vld [vmem:[%s14357_s2 + $0xd0] sm:$0xf0] }
  0x62   : > { %2752 = vmatpush.bf16.msra.mxu2 %v7588_v59  ;;  %v9229_v5 = vld [vmem:[%s10228_s8 + $0x1dc] sm:$0xf0]  ;;  %14653 = vst [vmem:[#allocation15_spill] sm:$0xff] %v10621_v23  ;;  %v9353_v33 = vld [vmem:[%s14357_s2 + $0x3c4] sm:$0xf]  ;;  %v7316_v35 = vor.u32 %v9257_v30, %v7313_v32 }
  0x63   : > { %2654 = vmatpush.bf16.msra.mxu0 %v7332_v63  ;;  %v10615_v20 = vor.u32 %v9229_v5, %v7183_v4  ;;  %v7700_v36 = vor.u32 %v9353_v33, %v7697_v34  ;;  %v396_v37 = vld [vmem:[#allocation6] sm:$0xf]  ;;  %v7441_v39 = vld [vmem:[%s14357_s2 + $0x1d0] sm:$0xf0]  ;;  %v6975_v58 = vld [vmem:[%s10228_s8 + $0x10] sm:$0xf] }
  0x64   : > { %2801 = vmatpush.bf16.msra.mxu3 %v7716_v0  ;;  %v10651_v55 = vperm.slane %v396_v37, 0  ;;  %v7444_v56 = vor.u32 %v9289_v38, %v7441_v39  ;;  %v9175_v59 = vld [vmem:[%s10228_s8 + $0x2c] sm:$0xf0]  ;;  %v9171_v60 = vld [vmem:[%s10228_s8 + $0x14] sm:$0xf] }
  0x65   : > { %2703 = vmatpush.bf16.msra.mxu1 %v7460_v3  ;;  %14650 = vst [vmem:[#allocation12_spill] sm:$0xff] %v10615_v20  ;;  %v6977_v61 = vld [vmem:[%s10228_s8 + $0x30] sm:$0xf0]  ;;  %v6983_v62 = vld [vmem:[%s10228_s8 + $0x18] sm:$0xf]  ;;  %v10661_v2 = vor.u32 %v9175_v59, %v6975_v58 }
  0x66   : > { %2753 = vmatpush.bf16.msra.mxu2 %v7572_v31  ;;  %v9176_v63 = vld [vmem:[%s10228_s8 + $0x34] sm:$0xf0]  ;;  %v9172_v0 = vld [vmem:[%s10228_s8 + $0x1c] sm:$0xf]  ;;  %v10663_v4 = vor.u32 %v9171_v60, %v6977_v61  ;;  %v9317_v18 = vld [vmem:[%s14357_s2 + $0x2a4] sm:$0xf] }
  0x67   : > { %2285 = vmatmul.bf16.gmra.mxu0 %v10439_v12  ;;  %2334 = vmatmul.bf16.gmra.mxu1 %v10441_v13  ;;  %v6985_v1 = vld [vmem:[%s10228_s8 + $0x38] sm:$0xf0]  ;;  %14654 = vst [vmem:[#allocation16_spill] sm:$0xff] %v10661_v2  ;;  %v10665_v5 = vor.u32 %v9176_v63, %v6983_v62  ;;  %v7553_v19 = vld [vmem:[%s14357_s2 + $0x2b0] sm:$0xf0] }
  0x68   : > { %2383 = vmatmul.bf16.gmra.mxu2 %v10443_v14  ;;  %2655 = vmatpush.bf16.msra.mxu0 %v7316_v35  ;;  %14655 = vst [vmem:[#allocation17_spill] sm:$0xff] %v10663_v4  ;;  %v10668_v16 = vor.u32 %v9172_v0, %v6985_v1  ;;  %v9253_v28 = vld [vmem:[%s14357_s2 + $0xa4] sm:$0xf]  ;;  %v7556_v29 = vor.u32 %v9317_v18, %v7553_v19  ;;  %v7297_v30 = vld [vmem:[%s14357_s2 + $0xb0] sm:$0xf0] }
  0x69   : > { %2432 = vmatmul.bf16.gmra.mxu3 %v10445_v15  ;;  %2704 = vmatpush.bf16.msra.mxu1 %v7444_v56  ;;  %14656 = vst [vmem:[#allocation18_spill] sm:$0xff] %v10665_v5  ;;  %v9349_v31 = vld [vmem:[%s14357_s2 + $0x3a4] sm:$0xf]  ;;  %v7681_v32 = vld [vmem:[%s14357_s2 + $0x3b0] sm:$0xf0]  ;;  %v7300_v34 = vor.u32 %v9253_v28, %v7297_v30 }
  0x6a   : > { %2802 = vmatpush.bf16.msra.mxu3 %v7700_v36  ;;  %14657 = vst [vmem:[#allocation19_spill] sm:$0xff] %v10668_v16  ;;  %v7684_v35 = vor.u32 %v9349_v31, %v7681_v32  ;;  %2754 = vmatpush.bf16.msra.mxu2 %v7556_v29  ;;  %v9285_v59 = vld [vmem:[%s14357_s2 + $0x1a4] sm:$0xf]  ;;  %v7425_v60 = vld [vmem:[%s14357_s2 + $0x1b0] sm:$0xf0] }
  0x6b   : > { %v7428_v62 = vor.u32 %v9285_v59, %v7425_v60  ;;  %v7007_v63 = vld [vmem:[%s10228_s8 + $0x50] sm:$0xf]  ;;  %v9179_v1 = vld [vmem:[%s10228_s8 + $0x54] sm:$0xf]  ;;  %v7017_v18 = vld [vmem:[%s10228_s8 + $0x78] sm:$0xf0] }
  0x6c   : > { %2656 = vmatpush.bf16.msra.mxu0 %v7300_v34  ;;  %v9183_v0 = vld [vmem:[%s10228_s8 + $0x6c] sm:$0xf0]  ;;  %v9249_v59 = vld [vmem:[%s14357_s2 + $0x84] sm:$0xf] }
  0x6d   : > { %2705 = vmatpush.bf16.msra.mxu1 %v7428_v62  ;;  %v10709_v28 = vor.u32 %v9183_v0, %v7007_v63  ;;  %v9345_v62 = vld [vmem:[%s14357_s2 + $0x384] sm:$0xf]  ;;  %v7665_v63 = vld [vmem:[%s14357_s2 + $0x390] sm:$0xf0] }
  0x6e   : > { %2803 = vmatpush.bf16.msra.mxu3 %v7684_v35 }
  0x6f   : > { %14658 = vst [vmem:[#allocation20_spill] sm:$0xff] %v10709_v28 }
  0x77   : > { %2290 = vmatmul.bf16.gmra.mxu0 %v10483_v40  ;;  %2339 = vmatmul.bf16.gmra.mxu1 %v10485_v41 }
  0x78   : > { %2388 = vmatmul.bf16.gmra.mxu2 %v10487_v42 }
  0x79   : > { %2437 = vmatmul.bf16.gmra.mxu3 %v10489_v43 }
  0x87   : > { %2295 = vmatmul.bf16.gmra.mxu0 %v10527_v8  ;;  %2344 = vmatmul.bf16.gmra.mxu1 %v10529_v9 }
  0x88   : > { %2393 = vmatmul.bf16.gmra.mxu2 %v10531_v10 }
  0x89   : > { %2442 = vmatmul.bf16.gmra.mxu3 %v10533_v11 }
  0x97   : > { %2300 = vmatmul.bf16.gmra.mxu0 %v10571_v44  ;;  %2349 = vmatmul.bf16.gmra.mxu1 %v10573_v45 }
  0x98   : > { %2398 = vmatmul.bf16.gmra.mxu2 %v10575_v46 }
  0x99   : > { %2447 = vmatmul.bf16.gmra.mxu3 %v10577_v47 }
  0xa7   : > { %2305 = vmatmul.bf16.gmra.mxu0 %v10615_v20  ;;  %2354 = vmatmul.bf16.gmra.mxu1 %v10617_v21 }
  0xa8   : > { %2403 = vmatmul.bf16.gmra.mxu2 %v10619_v22 }
  0xa9   : > { %2452 = vmatmul.bf16.gmra.mxu3 %v10621_v23 }
  0xb4   : > { %v2271_v3 = vpop.f32.mrf.mxu0  ;;  %v2320_v7 = vpop.f32.mrf.mxu1 }
  0xb5   : > { %v2272_v6 = vadd.f32 %v2271_v3, %v10651_v55  ;;  %v7009_v3 = vld [vmem:[%s10228_s8 + $0x70] sm:$0xf0] }
  0xb6   : > { %v10711_v32 = vor.u32 %v9179_v1, %v7009_v3  ;;  %v7668_v3 = vor.u32 %v9345_v62, %v7665_v63  ;;  %v9188_v62 = vld [vmem:[%s10228_s8 + $0x9c] sm:$0xf] }
  0xb7   : > { %v2321_v17 = vadd.f32 %v2320_v7, %v2272_v6  ;;  %2466 = vmatmul.bf16.vlgmr.msrb.gmra.mxu0 %v10661_v2  ;;  %2515 = vmatmul.bf16.vlgmr.msrb.gmra.mxu1 %v10663_v4  ;;  %v7015_v6 = vld [vmem:[%s10228_s8 + $0x58] sm:$0xf]  ;;  %v7049_v63 = vld [vmem:[%s10228_s8 + $0xb8] sm:$0xf0] }
  0xb8   : > { %2564 = vmatmul.bf16.vlgmr.msrb.gmra.mxu2 %v10665_v5  ;;  %v9184_v7 = vld [vmem:[%s10228_s8 + $0x74] sm:$0xf0]  ;;  %14659 = vst [vmem:[#allocation21_spill] sm:$0xff] %v10711_v32  ;;  %2804 = vmatpush.bf16.msra.mxu3 %v7668_v3 }
  0xb9   : > { %2613 = vmatmul.bf16.vlgmr.msrb.gmra.mxu3 %v10668_v16 }
  0xbb   : > { %v2369_v33 = vpop.f32.mrf.mxu2 }
  0xbc   : > { %v2370_v36 = vadd.f32 %v2369_v33, %v2321_v17  ;;  %v2418_v37 = vpop.f32.mrf.mxu3  ;;  %v2273_v38 = vpop.f32.mrf.mxu0  ;;  %v9180_v17 = vld [vmem:[%s10228_s8 + $0x5c] sm:$0xf]  ;;  %v10713_v33 = vor.u32 %v9184_v7, %v7015_v6 }
  0xbd   : > { %v2274_v39 = vadd.f32 %v2273_v38, %v10651_v55  ;;  %v2322_v56 = vpop.f32.mrf.mxu1 }
  0xbe   : > { %v10693_v58 = vadd.f32 %v2418_v37, %v2370_v36  ;;  %14660 = vst [vmem:[#allocation22_spill] sm:$0xff] %v10713_v33  ;;  %v10716_v36 = vor.u32 %v9180_v17, %v7017_v18 }
  0xbf   : > { %v2323_v61 = vadd.f32 %v2322_v56, %v2274_v39  ;;  %v9313_v39 = vld [vmem:[%s14357_s2 + $0x284] sm:$0xf]  ;;  %v7537_v56 = vld [vmem:[%s14357_s2 + $0x290] sm:$0xf0] }
  0xc0   : > { %14661 = vst [vmem:[#allocation23_spill] sm:$0xff] %v10716_v36  ;;  %v7540_v60 = vor.u32 %v9313_v39, %v7537_v56  ;;  %v9191_v39 = vld [vmem:[%s10228_s8 + $0xac] sm:$0xf0]  ;;  %v9187_v56 = vld [vmem:[%s10228_s8 + $0x94] sm:$0xf] }
  0xc2   : > { %2755 = vmatpush.bf16.msra.mxu2 %v7540_v60  ;;  %v7047_v60 = vld [vmem:[%s10228_s8 + $0x98] sm:$0xf] }
  0xc3   : > { %v2371_v19 = vpop.f32.mrf.mxu2 }
  0xc4   : > { %v2372_v29 = vadd.f32 %v2371_v19, %v2323_v61  ;;  %v2420_v30 = vpop.f32.mrf.mxu3  ;;  %v2276_v31 = vpop.f32.mrf.mxu0  ;;  %v7281_v61 = vld [vmem:[%s14357_s2 + $0x90] sm:$0xf0] }
  0xc5   : > { %v2277_v34 = vadd.f32 %v2276_v31, %v10651_v55  ;;  %v2325_v35 = vpop.f32.mrf.mxu1  ;;  %v7284_v1 = vor.u32 %v9249_v59, %v7281_v61  ;;  %v7409_v31 = vld [vmem:[%s14357_s2 + $0x190] sm:$0xf0]  ;;  %v9192_v61 = vld [vmem:[%s10228_s8 + $0xb4] sm:$0xf0] }
  0xc6   : > { %v10718_v37 = vadd.f32 %v2420_v30, %v2372_v29  ;;  %v9281_v30 = vld [vmem:[%s14357_s2 + $0x184] sm:$0xf]  ;;  %v7041_v59 = vld [vmem:[%s10228_s8 + $0xb0] sm:$0xf0] }
  0xc7   : > { %v2326_v38 = vadd.f32 %v2325_v35, %v2277_v34  ;;  %2471 = vmatmul.bf16.gmra.mxu0 %v10709_v28  ;;  %2520 = vmatmul.bf16.gmra.mxu1 %v10711_v32  ;;  %v7412_v35 = vor.u32 %v9281_v30, %v7409_v31  ;;  %v10766_v30 = vor.u32 %v9188_v62, %v7049_v63 }
  0xc8   : > { %2569 = vmatmul.bf16.gmra.mxu2 %v10713_v33  ;;  %2657 = vmatpush.bf16.msra.mxu0 %v7284_v1 }
  0xc9   : > { %2618 = vmatmul.bf16.gmra.mxu3 %v10716_v36  ;;  %2706 = vmatpush.bf16.msra.mxu1 %v7412_v35  ;;  %v10763_v36 = vor.u32 %v9192_v61, %v7047_v60  ;;  %14665 = vst [vmem:[#allocation27_spill] sm:$0xff] %v10766_v30  ;;  %v9341_v60 = vld [vmem:[%s14357_s2 + $0x364] sm:$0xf]  ;;  %v7649_v61 = vld [vmem:[%s14357_s2 + $0x370] sm:$0xf0] }
  0xcb   : > { %v2374_v0 = vpop.f32.mrf.mxu2  ;;  %14664 = vst [vmem:[#allocation26_spill] sm:$0xff] %v10763_v36 }
  0xcc   : > { %v2375_v6 = vadd.f32 %v2374_v0, %v2326_v38  ;;  %v2423_v7 = vpop.f32.mrf.mxu3  ;;  %v2278_v17 = vpop.f32.mrf.mxu0  ;;  %v7039_v38 = vld [vmem:[%s10228_s8 + $0x90] sm:$0xf] }
  0xcd   : > { %v2279_v18 = vadd.f32 %v2278_v17, %v10651_v55  ;;  %v2327_v19 = vpop.f32.mrf.mxu1  ;;  %v10759_v1 = vor.u32 %v9191_v39, %v7039_v38  ;;  %v10761_v17 = vor.u32 %v9187_v56, %v7041_v59  ;;  %v7521_v38 = vld [vmem:[%s14357_s2 + $0x270] sm:$0xf0]  ;;  %v9245_v39 = vld [vmem:[%s14357_s2 + $0x64] sm:$0xf] }
  0xce   : > { %v10743_v29 = vadd.f32 %v2423_v7, %v2375_v6  ;;  %v7265_v59 = vld [vmem:[%s14357_s2 + $0x70] sm:$0xf0] }
  0xcf   : > { %v2328_v34 = vadd.f32 %v2327_v19, %v2279_v18  ;;  %14662 = vst [vmem:[#allocation24_spill] sm:$0xff] %v10759_v1  ;;  %v7268_v63 = vor.u32 %v9245_v39, %v7265_v59 }
  0xd0   : > { %14663 = vst [vmem:[#allocation25_spill] sm:$0xff] %v10761_v17 }
  0xd1   : > { %2658 = vmatpush.bf16.msra.mxu0 %v7268_v63  ;;  %v9196_v63 = vld [vmem:[%s10228_s8 + $0xdc] sm:$0xf] }
  0xd3   : > { %v2376_v0 = vpop.f32.mrf.mxu2 }
  0xd4   : > { %v2377_v3 = vadd.f32 %v2376_v0, %v2328_v34  ;;  %v2425_v6 = vpop.f32.mrf.mxu3  ;;  %v2281_v7 = vpop.f32.mrf.mxu0  ;;  %v9309_v34 = vld [vmem:[%s14357_s2 + $0x264] sm:$0xf]  ;;  %v7652_v0 = vor.u32 %v9341_v60, %v7649_v61  ;;  %v9199_v60 = vld [vmem:[%s10228_s8 + $0xec] sm:$0xf0]  ;;  %v9195_v61 = vld [vmem:[%s10228_s8 + $0xd4] sm:$0xf] }
  0xd5   : > { %v2282_v18 = vadd.f32 %v2281_v7, %v10651_v55  ;;  %v2330_v19 = vpop.f32.mrf.mxu1  ;;  %v7524_v56 = vor.u32 %v9309_v34, %v7521_v38  ;;  %v9277_v38 = vld [vmem:[%s14357_s2 + $0x164] sm:$0xf] }
  0xd6   : > { %v10768_v31 = vadd.f32 %v2425_v6, %v2377_v3  ;;  %2805 = vmatpush.bf16.msra.mxu3 %v7652_v0  ;;  %v7081_v0 = vld [vmem:[%s10228_s8 + $0xf8] sm:$0xf0] }
  0xd7   : > { %v2331_v35 = vadd.f32 %v2330_v19, %v2282_v18  ;;  %2476 = vmatmul.bf16.gmra.mxu0 %v10759_v1  ;;  %2525 = vmatmul.bf16.gmra.mxu1 %v10761_v17 }
  0xd8   : > { %2574 = vmatmul.bf16.gmra.mxu2 %v10763_v36 }
  0xd9   : > { %2623 = vmatmul.bf16.gmra.mxu3 %v10766_v30  ;;  %2756 = vmatpush.bf16.msra.mxu2 %v7524_v56  ;;  %v7071_v56 = vld [vmem:[%s10228_s8 + $0xd0] sm:$0xf]  ;;  %v9200_v30 = vld [vmem:[%s10228_s8 + $0xf4] sm:$0xf0] }
  0xdb   : > { %v2379_v62 = vpop.f32.mrf.mxu2 }
  0xdc   : > { %v2380_v3 = vadd.f32 %v2379_v62, %v2331_v35  ;;  %v2428_v6 = vpop.f32.mrf.mxu3  ;;  %v2283_v7 = vpop.f32.mrf.mxu0  ;;  %v7393_v35 = vld [vmem:[%s14357_s2 + $0x170] sm:$0xf0] }
  0xdd   : > { %v2284_v18 = vadd.f32 %v2283_v7, %v10651_v55  ;;  %v2332_v19 = vpop.f32.mrf.mxu1  ;;  %v7396_v59 = vor.u32 %v9277_v38, %v7393_v35  ;;  %v7073_v62 = vld [vmem:[%s10228_s8 + $0xf0] sm:$0xf0]  ;;  %v7079_v7 = vld [vmem:[%s10228_s8 + $0xd8] sm:$0xf]  ;;  %v10816_v38 = vor.u32 %v9196_v63, %v7081_v0 }
  0xde   : > { %v10793_v34 = vadd.f32 %v2428_v6, %v2380_v3  ;;  %v10809_v6 = vor.u32 %v9199_v60, %v7071_v56  ;;  %v10811_v33 = vor.u32 %v9195_v61, %v7073_v62  ;;  %v10813_v32 = vor.u32 %v9200_v30, %v7079_v7  ;;  %v9305_v30 = vld [vmem:[%s14357_s2 + $0x244] sm:$0xf]  ;;  %v7633_v60 = vld [vmem:[%s14357_s2 + $0x350] sm:$0xf0] }
  0xdf   : > { %v2333_v39 = vadd.f32 %v2332_v19, %v2284_v18  ;;  %2707 = vmatpush.bf16.msra.mxu1 %v7396_v59  ;;  %14669 = vst [vmem:[#allocation31_spill] sm:$0xff] %v10816_v38  ;;  %v9337_v56 = vld [vmem:[%s14357_s2 + $0x344] sm:$0xf] }
  0xe0   : > { %14666 = vst [vmem:[#allocation28_spill] sm:$0xff] %v10809_v6  ;;  %v7636_v7 = vor.u32 %v9337_v56, %v7633_v60  ;;  %v9207_v56 = vld [vmem:[%s10228_s8 + $0x12c] sm:$0xf0]  ;;  %v9203_v60 = vld [vmem:[%s10228_s8 + $0x114] sm:$0xf] }
  0xe1   : > { %14667 = vst [vmem:[#allocation29_spill] sm:$0xff] %v10811_v33 }
  0xe2   : > { %14668 = vst [vmem:[#allocation30_spill] sm:$0xff] %v10813_v32  ;;  %2806 = vmatpush.bf16.msra.mxu3 %v7636_v7  ;;  %v7113_v7 = vld [vmem:[%s10228_s8 + $0x138] sm:$0xf0] }
  0xe3   : > { %v2381_v3 = vpop.f32.mrf.mxu2 }
  0xe4   : > { %v2382_v36 = vadd.f32 %v2381_v3, %v2333_v39  ;;  %v2430_v17 = vpop.f32.mrf.mxu3  ;;  %v2286_v1 = vpop.f32.mrf.mxu0  ;;  %v7249_v39 = vld [vmem:[%s14357_s2 + $0x50] sm:$0xf0] }
  0xe5   : > { %v2287_v18 = vadd.f32 %v2286_v1, %v10651_v55  ;;  %v2335_v19 = vpop.f32.mrf.mxu1  ;;  %v7505_v1 = vld [vmem:[%s14357_s2 + $0x250] sm:$0xf0] }
  0xe6   : > { %v10818_v35 = vadd.f32 %v2430_v17, %v2382_v36  ;;  %v9241_v36 = vld [vmem:[%s14357_s2 + $0x44] sm:$0xf]  ;;  %v7508_v17 = vor.u32 %v9305_v30, %v7505_v1 }
  0xe7   : > { %v2336_v59 = vadd.f32 %v2335_v19, %v2287_v18  ;;  %2481 = vmatmul.bf16.gmra.mxu0 %v10809_v6  ;;  %2530 = vmatmul.bf16.gmra.mxu1 %v10811_v33  ;;  %v7252_v62 = vor.u32 %v9241_v36, %v7249_v39  ;;  %v9273_v1 = vld [vmem:[%s14357_s2 + $0x144] sm:$0xf] }
  0xe8   : > { %2579 = vmatmul.bf16.gmra.mxu2 %v10813_v32 }
  0xe9   : > { %2628 = vmatmul.bf16.gmra.mxu3 %v10816_v38  ;;  %2757 = vmatpush.bf16.msra.mxu2 %v7508_v17  ;;  %v7103_v17 = vld [vmem:[%s10228_s8 + $0x110] sm:$0xf]  ;;  %v9208_v38 = vld [vmem:[%s10228_s8 + $0x134] sm:$0xf0] }
  0xea   : > { %2659 = vmatpush.bf16.msra.mxu0 %v7252_v62  ;;  %v9204_v62 = vld [vmem:[%s10228_s8 + $0x11c] sm:$0xf] }
  0xeb   : > { %v2384_v61 = vpop.f32.mrf.mxu2 }
  0xec   : > { %v2385_v63 = vadd.f32 %v2384_v61, %v2336_v59  ;;  %v2433_v0 = vpop.f32.mrf.mxu3  ;;  %v2288_v3 = vpop.f32.mrf.mxu0  ;;  %v7377_v59 = vld [vmem:[%s14357_s2 + $0x150] sm:$0xf0] }
  0xed   : > { %v2289_v18 = vadd.f32 %v2288_v3, %v10651_v55  ;;  %v2337_v19 = vpop.f32.mrf.mxu1  ;;  %v7380_v39 = vor.u32 %v9273_v1, %v7377_v59  ;;  %v7105_v61 = vld [vmem:[%s10228_s8 + $0x130] sm:$0xf0]  ;;  %v7111_v3 = vld [vmem:[%s10228_s8 + $0x118] sm:$0xf]  ;;  %v10866_v1 = vor.u32 %v9204_v62, %v7113_v7 }
  0xee   : > { %v10843_v30 = vadd.f32 %v2433_v0, %v2385_v63  ;;  %v10859_v0 = vor.u32 %v9207_v56, %v7103_v17  ;;  %v10861_v28 = vor.u32 %v9203_v60, %v7105_v61  ;;  %v10863_v16 = vor.u32 %v9208_v38, %v7111_v3  ;;  %v9301_v38 = vld [vmem:[%s14357_s2 + $0x224] sm:$0xf]  ;;  %v7617_v56 = vld [vmem:[%s14357_s2 + $0x330] sm:$0xf0] }
  0xef   : > { %v2338_v36 = vadd.f32 %v2337_v19, %v2289_v18  ;;  %2708 = vmatpush.bf16.msra.mxu1 %v7380_v39  ;;  %14673 = vst [vmem:[#allocation35_spill] sm:$0xff] %v10866_v1  ;;  %v9333_v17 = vld [vmem:[%s14357_s2 + $0x324] sm:$0xf] }
  0xf0   : > { %14670 = vst [vmem:[#allocation32_spill] sm:$0xff] %v10859_v0  ;;  %v7620_v3 = vor.u32 %v9333_v17, %v7617_v56  ;;  %v9215_v17 = vld [vmem:[%s10228_s8 + $0x16c] sm:$0xf0]  ;;  %v9211_v56 = vld [vmem:[%s10228_s8 + $0x154] sm:$0xf] }
  0xf1   : > { %14671 = vst [vmem:[#allocation33_spill] sm:$0xff] %v10861_v28 }
  0xf2   : > { %14672 = vst [vmem:[#allocation34_spill] sm:$0xff] %v10863_v16  ;;  %2807 = vmatpush.bf16.msra.mxu3 %v7620_v3  ;;  %v7145_v3 = vld [vmem:[%s10228_s8 + $0x178] sm:$0xf0] }
  0xf3   : > { %v2386_v63 = vpop.f32.mrf.mxu2 }
  0xf4   : > { %v2387_v32 = vadd.f32 %v2386_v63, %v2338_v36  ;;  %v2435_v33 = vpop.f32.mrf.mxu3  ;;  %v2291_v6 = vpop.f32.mrf.mxu0  ;;  %v7233_v36 = vld [vmem:[%s14357_s2 + $0x30] sm:$0xf0] }
  0xf5   : > { %v2292_v18 = vadd.f32 %v2291_v6, %v10651_v55  ;;  %v2340_v19 = vpop.f32.mrf.mxu1  ;;  %v7489_v6 = vld [vmem:[%s14357_s2 + $0x230] sm:$0xf0] }
  0xf6   : > { %v10868_v59 = vadd.f32 %v2435_v33, %v2387_v32  ;;  %v9237_v32 = vld [vmem:[%s14357_s2 + $0x24] sm:$0xf]  ;;  %v7492_v33 = vor.u32 %v9301_v38, %v7489_v6 }
  0xf7   : > { %v2341_v39 = vadd.f32 %v2340_v19, %v2292_v18  ;;  %2486 = vmatmul.bf16.gmra.mxu0 %v10859_v0  ;;  %2535 = vmatmul.bf16.gmra.mxu1 %v10861_v28  ;;  %v7236_v61 = vor.u32 %v9237_v32, %v7233_v36  ;;  %v9269_v6 = vld [vmem:[%s14357_s2 + $0x124] sm:$0xf] }
  0xf8   : > { %2584 = vmatmul.bf16.gmra.mxu2 %v10863_v16 }
  0xf9   : > { %2633 = vmatmul.bf16.gmra.mxu3 %v10866_v1  ;;  %2758 = vmatpush.bf16.msra.mxu2 %v7492_v33  ;;  %v7135_v33 = vld [vmem:[%s10228_s8 + $0x150] sm:$0xf]  ;;  %v9216_v1 = vld [vmem:[%s10228_s8 + $0x174] sm:$0xf0] }
  0xfa   : > { %2660 = vmatpush.bf16.msra.mxu0 %v7236_v61  ;;  %v9212_v61 = vld [vmem:[%s10228_s8 + $0x15c] sm:$0xf] }
  0xfb   : > { %v2389_v60 = vpop.f32.mrf.mxu2 }
  0xfc   : > { %v2390_v62 = vadd.f32 %v2389_v60, %v2341_v39  ;;  %v2438_v7 = vpop.f32.mrf.mxu3  ;;  %v2293_v63 = vpop.f32.mrf.mxu0  ;;  %v7361_v39 = vld [vmem:[%s14357_s2 + $0x130] sm:$0xf0] }
  0xfd   : > { %v2294_v18 = vadd.f32 %v2293_v63, %v10651_v55  ;;  %v2342_v19 = vpop.f32.mrf.mxu1  ;;  %v7364_v36 = vor.u32 %v9269_v6, %v7361_v39  ;;  %v7137_v60 = vld [vmem:[%s10228_s8 + $0x170] sm:$0xf0]  ;;  %v7143_v63 = vld [vmem:[%s10228_s8 + $0x158] sm:$0xf]  ;;  %v10916_v6 = vor.u32 %v9212_v61, %v7145_v3 }
  0xfe   : > { %v10893_v38 = vadd.f32 %v2438_v7, %v2390_v62  ;;  %v10909_v7 = vor.u32 %v9215_v17, %v7135_v33  ;;  %v10911_v5 = vor.u32 %v9211_v56, %v7137_v60  ;;  %v10913_v4 = vor.u32 %v9216_v1, %v7143_v63  ;;  %v9297_v1 = vld [vmem:[%s14357_s2 + $0x204] sm:$0xf]  ;;  %v7601_v17 = vld [vmem:[%s14357_s2 + $0x310] sm:$0xf0] }
  0xff   : > { %v2343_v32 = vadd.f32 %v2342_v19, %v2294_v18  ;;  %2709 = vmatpush.bf16.msra.mxu1 %v7364_v36  ;;  %14677 = vst [vmem:[#allocation39_spill] sm:$0xff] %v10916_v6  ;;  %v9329_v33 = vld [vmem:[%s14357_s2 + $0x304] sm:$0xf] }
 0x100   : > { %14674 = vst [vmem:[#allocation36_spill] sm:$0xff] %v10909_v7  ;;  %v7604_v63 = vor.u32 %v9329_v33, %v7601_v17  ;;  %v9223_v33 = vld [vmem:[%s10228_s8 + $0x1ac] sm:$0xf0]  ;;  %v9219_v17 = vld [vmem:[%s10228_s8 + $0x194] sm:$0xf] }
 0x101   : > { %14675 = vst [vmem:[#allocation37_spill] sm:$0xff] %v10911_v5 }
 0x102   : > { %14676 = vst [vmem:[#allocation38_spill] sm:$0xff] %v10913_v4  ;;  %2808 = vmatpush.bf16.msra.mxu3 %v7604_v63  ;;  %v7177_v63 = vld [vmem:[%s10228_s8 + $0x1b8] sm:$0xf0] }
 0x103   : > { %v2391_v62 = vpop.f32.mrf.mxu2 }
 0x104   : > { %v2392_v16 = vadd.f32 %v2391_v62, %v2343_v32  ;;  %v2440_v28 = vpop.f32.mrf.mxu3  ;;  %v2296_v0 = vpop.f32.mrf.mxu0  ;;  %v7217_v32 = vld [vmem:[%s14357_s2 + $0x10] sm:$0xf0] }
 0x105   : > { %v2297_v18 = vadd.f32 %v2296_v0, %v10651_v55  ;;  %v2345_v19 = vpop.f32.mrf.mxu1  ;;  %v7473_v0 = vld [vmem:[%s14357_s2 + $0x210] sm:$0xf0] }
 0x106   : > { %v10918_v39 = vadd.f32 %v2440_v28, %v2392_v16  ;;  %v9233_v16 = vld [vmem:[%s14357_s2 + $0x4] sm:$0xf]  ;;  %v7476_v28 = vor.u32 %v9297_v1, %v7473_v0 }
 0x107   : > { %v2346_v36 = vadd.f32 %v2345_v19, %v2297_v18  ;;  %2491 = vmatmul.bf16.gmra.mxu0 %v10909_v7  ;;  %2540 = vmatmul.bf16.gmra.mxu1 %v10911_v5  ;;  %v7220_v60 = vor.u32 %v9233_v16, %v7217_v32  ;;  %v9265_v0 = vld [vmem:[%s14357_s2 + $0x104] sm:$0xf] }
 0x108   : > { %2589 = vmatmul.bf16.gmra.mxu2 %v10913_v4 }
 0x109   : > { %2638 = vmatmul.bf16.gmra.mxu3 %v10916_v6  ;;  %2759 = vmatpush.bf16.msra.mxu2 %v7476_v28  ;;  %v7167_v28 = vld [vmem:[%s10228_s8 + $0x190] sm:$0xf]  ;;  %v9224_v6 = vld [vmem:[%s10228_s8 + $0x1b4] sm:$0xf0] }
 0x10a   : > { %2661 = vmatpush.bf16.msra.mxu0 %v7220_v60  ;;  %v9220_v60 = vld [vmem:[%s10228_s8 + $0x19c] sm:$0xf] }
 0x10b   : > { %v2394_v56 = vpop.f32.mrf.mxu2 }
 0x10c   : > { %v2395_v61 = vadd.f32 %v2394_v56, %v2346_v36  ;;  %v2443_v3 = vpop.f32.mrf.mxu3  ;;  %v2298_v62 = vpop.f32.mrf.mxu0  ;;  %v7345_v36 = vld [vmem:[%s14357_s2 + $0x110] sm:$0xf0] }
 0x10d   : > { %v2299_v18 = vadd.f32 %v2298_v62, %v10651_v55  ;;  %v2347_v19 = vpop.f32.mrf.mxu1  ;;  %v7348_v32 = vor.u32 %v9265_v0, %v7345_v36  ;;  %v7169_v56 = vld [vmem:[%s10228_s8 + $0x1b0] sm:$0xf0]  ;;  %v7175_v62 = vld [vmem:[%s10228_s8 + $0x198] sm:$0xf]  ;;  %v10966_v0 = vor.u32 %v9220_v60, %v7177_v63 }
 0x10e   : > { %v10943_v1 = vadd.f32 %v2443_v3, %v2395_v61  ;;  %v10959_v3 = vor.u32 %v9223_v33, %v7167_v28  ;;  %v10961_v2 = vor.u32 %v9219_v17, %v7169_v56  ;;  %v10963_v23 = vor.u32 %v9224_v6, %v7175_v62  ;;  %v9453_v6 = vld [vmem:[%s14357_s2 + $0x6e4] sm:$0xf]  ;;  %v8225_v33 = vld [vmem:[%s14357_s2 + $0x7f0] sm:$0xf0] }
 0x10f   : > { %v2348_v16 = vadd.f32 %v2347_v19, %v2299_v18  ;;  %2710 = vmatpush.bf16.msra.mxu1 %v7348_v32  ;;  %14681 = vst [vmem:[#allocation43_spill] sm:$0xff] %v10966_v0  ;;  %v9485_v28 = vld [vmem:[%s14357_s2 + $0x7e4] sm:$0xf] }
 0x110   : > { %14678 = vst [vmem:[#allocation40_spill] sm:$0xff] %v10959_v3  ;;  %v8228_v62 = vor.u32 %v9485_v28, %v8225_v33  ;;  %v7207_v28 = vld [vmem:[%s10228_s8 + $0x1d8] sm:$0xf] }
 0x111   : > { %14679 = vst [vmem:[#allocation41_spill] sm:$0xff] %v10961_v2  ;;  %v9232_v33 = vld [vmem:[%s10228_s8 + $0x1f4] sm:$0xf0] }
 0x112   : > { %14680 = vst [vmem:[#allocation42_spill] sm:$0xff] %v10963_v23  ;;  %2997 = vmatpush.bf16.msrb.mxu3 %v8228_v62 }
 0x113   : > { %v2396_v61 = vpop.f32.mrf.mxu2 }
 0x114   : > { %v2397_v4 = vadd.f32 %v2396_v61, %v2348_v16  ;;  %v2445_v5 = vpop.f32.mrf.mxu3  ;;  %v2301_v7 = vpop.f32.mrf.mxu0  ;;  %v7841_v16 = vld [vmem:[%s14357_s2 + $0x4f0] sm:$0xf0] }
 0x115   : > { %v2302_v18 = vadd.f32 %v2301_v7, %v10651_v55  ;;  %v2350_v19 = vpop.f32.mrf.mxu1  ;;  %v8097_v7 = vld [vmem:[%s14357_s2 + $0x6f0] sm:$0xf0] }
 0x116   : > { %v10968_v36 = vadd.f32 %v2445_v5, %v2397_v4  ;;  %v9389_v4 = vld [vmem:[%s14357_s2 + $0x4e4] sm:$0xf]  ;;  %v8100_v5 = vor.u32 %v9453_v6, %v8097_v7 }
 0x117   : > { %v2351_v32 = vadd.f32 %v2350_v19, %v2302_v18  ;;  %2496 = vmatmul.bf16.gmra.mxu0 %v10959_v3  ;;  %2545 = vmatmul.bf16.gmra.mxu1 %v10961_v2  ;;  %v7844_v56 = vor.u32 %v9389_v4, %v7841_v16  ;;  %v9227_v4 = vld [vmem:[%s10228_s8 + $0x1d4] sm:$0xf]  ;;  %v11013_v3 = vor.u32 %v9232_v33, %v7207_v28 }
 0x118   : > { %2594 = vmatmul.bf16.gmra.mxu2 %v10963_v23  ;;  %v9231_v23 = vld [vmem:[%s10228_s8 + $0x1ec] sm:$0xf0]  ;;  %v7201_v16 = vld [vmem:[%s10228_s8 + $0x1f0] sm:$0xf0] }
 0x119   : > { %2643 = vmatmul.bf16.gmra.mxu3 %v10966_v0  ;;  %2948 = vmatpush.bf16.msrb.mxu2 %v8100_v5  ;;  %v7199_v0 = vld [vmem:[%s10228_s8 + $0x1d0] sm:$0xf]  ;;  %v9421_v5 = vld [vmem:[%s14357_s2 + $0x5e4] sm:$0xf]  ;;  %v11011_v2 = vor.u32 %v9227_v4, %v7201_v16  ;;  %14684 = vst [vmem:[#allocation46_spill] sm:$0xff] %v11013_v3 }
 0x11a   : > { %2850 = vmatpush.bf16.msrb.mxu0 %v7844_v56  ;;  %v7969_v56 = vld [vmem:[%s14357_s2 + $0x5f0] sm:$0xf0]  ;;  %v9481_v16 = vld [vmem:[%s14357_s2 + $0x7c4] sm:$0xf] }
 0x11b   : > { %v2399_v17 = vpop.f32.mrf.mxu2  ;;  %14683 = vst [vmem:[#allocation45_spill] sm:$0xff] %v11011_v2  ;;  %v7825_v4 = vld [vmem:[%s14357_s2 + $0x4d0] sm:$0xf0] }
 0x11c   : > { %v2400_v60 = vadd.f32 %v2399_v17, %v2351_v32  ;;  %v2448_v63 = vpop.f32.mrf.mxu3  ;;  %v2303_v61 = vpop.f32.mrf.mxu0  ;;  %v9228_v32 = vld [vmem:[%s10228_s8 + $0x1dc] sm:$0xf] }
 0x11d   : > { %v2304_v18 = vadd.f32 %v2303_v61, %v10651_v55  ;;  %v2352_v19 = vpop.f32.mrf.mxu1  ;;  %v7209_v17 = vld [vmem:[%s10228_s8 + $0x1f8] sm:$0xf0] }
 0x11e   : > { %v10993_v6 = vadd.f32 %v2448_v63, %v2400_v60  ;;  %v11009_v60 = vor.u32 %v9231_v23, %v7199_v0  ;;  %v7972_v63 = vor.u32 %v9421_v5, %v7969_v56  ;;  %v11016_v20 = vor.u32 %v9228_v32, %v7209_v17  ;;  %v9449_v23 = vld [vmem:[%s14357_s2 + $0x6c4] sm:$0xf]  ;;  %v8081_v0 = vld [vmem:[%s14357_s2 + $0x6d0] sm:$0xf0] }
 0x11f   : > { %v2353_v7 = vadd.f32 %v2352_v19, %v2304_v18  ;;  %v8209_v5 = vld [vmem:[%s14357_s2 + $0x7d0] sm:$0xf0] }
 0x120   : > { %14682 = vst [vmem:[#allocation44_spill] sm:$0xff] %v11009_v60  ;;  %2899 = vmatpush.bf16.msrb.mxu1 %v7972_v63  ;;  %v8212_v63 = vor.u32 %v9481_v16, %v8209_v5 }
 0x121   : > { %14685 = vst [vmem:[#allocation47_spill] sm:$0xff] %v11016_v20 }
 0x122   : > { %2998 = vmatpush.bf16.msrb.mxu3 %v8212_v63 }
 0x123   : > { %v2401_v62 = vpop.f32.mrf.mxu2 }
 0x124   : > { %v2402_v61 = vadd.f32 %v2401_v62, %v2353_v7  ;;  %v2450_v18 = vpop.f32.mrf.mxu3  ;;  %v2306_v19 = vpop.f32.mrf.mxu0  ;;  %v8084_v7 = vor.u32 %v9449_v23, %v8081_v0 }
 0x125   : > { %v2307_v22 = vadd.f32 %v2306_v19, %v10651_v55  ;;  %v2355_v21 = vpop.f32.mrf.mxu1  ;;  %v7953_v19 = vld [vmem:[%s14357_s2 + $0x5d0] sm:$0xf0] }
 0x126   : > { %v11018_v47 = vadd.f32 %v2450_v18, %v2402_v61  ;;  %2949 = vmatpush.bf16.msrb.mxu2 %v8084_v7 }
 0x127   : > { %v2356_v46 = vadd.f32 %v2355_v21, %v2307_v22  ;;  %2501 = vmatmul.bf16.gmra.mxu0 %v11009_v60  ;;  %2550 = vmatmul.bf16.gmra.mxu1 %v11011_v2  ;;  %v9385_v21 = vld [vmem:[%s14357_s2 + $0x4c4] sm:$0xf] }
 0x128   : > { %2599 = vmatmul.bf16.gmra.mxu2 %v11013_v3  ;;  %v7828_v17 = vor.u32 %v9385_v21, %v7825_v4 }
 0x129   : > { %2648 = vmatmul.bf16.gmra.mxu3 %v11016_v20 }
 0x12a   : > { %2851 = vmatpush.bf16.msrb.mxu0 %v7828_v17 }
 0x12b   : > { %v2404_v22 = vpop.f32.mrf.mxu2 }
 0x12c   : > { %v2405_v28 = vadd.f32 %v2404_v22, %v2356_v46  ;;  %v2453_v33 = vpop.f32.mrf.mxu3  ;;  %v2308_v32 = vpop.f32.mrf.mxu0  ;;  %v9417_v46 = vld [vmem:[%s14357_s2 + $0x5c4] sm:$0xf] }
 0x12d   : > { %v2309_v56 = vadd.f32 %v2308_v32, %v10651_v55  ;;  %v2357_v62 = vpop.f32.mrf.mxu1  ;;  %v7956_v0 = vor.u32 %v9417_v46, %v7953_v19  ;;  %v9381_v32 = vld [vmem:[%s14357_s2 + $0x4a4] sm:$0xf] }
 0x12e   : > { %v11043_v61 = vadd.f32 %v2453_v33, %v2405_v28  ;;  %v9445_v33 = vld [vmem:[%s14357_s2 + $0x6a4] sm:$0xf] }
 0x12f   : > { %v2358_v18 = vadd.f32 %v2357_v62, %v2309_v56  ;;  %2900 = vmatpush.bf16.msrb.mxu1 %v7956_v0  ;;  %v7809_v56 = vld [vmem:[%s14357_s2 + $0x4b0] sm:$0xf0]  ;;  %v9477_v62 = vld [vmem:[%s14357_s2 + $0x7a4] sm:$0xf] }
 0x130   : > { %v7812_v19 = vor.u32 %v9381_v32, %v7809_v56 }
 0x132   : > { %2852 = vmatpush.bf16.msrb.mxu0 %v7812_v19  ;;  %v9441_v19 = vld [vmem:[%s14357_s2 + $0x684] sm:$0xf] }
 0x133   : > { %v2406_v23 = vpop.f32.mrf.mxu2 }
 0x134   : > { %v2407_v21 = vadd.f32 %v2406_v23, %v2358_v18  ;;  %v2455_v55 = vpop.f32.mrf.mxu3  ;;  %v2467_v22 = vpop.f32.mrf.mxu0  ;;  %v8193_v23 = vld [vmem:[%s14357_s2 + $0x7b0] sm:$0xf0] }
 0x135   : > { %v2468_v7 = vadd.f32 %v2467_v22, %v10693_v58  ;;  %v2516_v4 = vpop.f32.mrf.mxu1  ;;  %v8065_v58 = vld [vmem:[%s14357_s2 + $0x6b0] sm:$0xf0] }
 0x136   : > { %v11052_v16 = vadd.f32 %v2455_v55, %v2407_v21  ;;  %v8068_v5 = vor.u32 %v9445_v33, %v8065_v58  ;;  %v8196_v55 = vor.u32 %v9477_v62, %v8193_v23  ;;  %v8049_v23 = vld [vmem:[%s14357_s2 + $0x690] sm:$0xf0] }
 0x137   : > { %v2517_v28 = vadd.f32 %v2516_v4, %v2468_v7  ;;  %2662 = vmatmul.bf16.vlgmr.msra.gmra.mxu0 %v10280_v48  ;;  %2711 = vmatmul.bf16.vlgmr.msra.gmra.mxu1 %v10291_v53  ;;  %v9413_v4 = vld [vmem:[%s14357_s2 + $0x5a4] sm:$0xf] }
 0x138   : > { %2760 = vmatmul.bf16.vlgmr.msra.gmra.mxu2 %v10293_v54  ;;  %2999 = vmatpush.bf16.msrb.mxu3 %v8196_v55  ;;  %v9377_v55 = vld [vmem:[%s14357_s2 + $0x484] sm:$0xf] }
 0x139   : > { %2809 = vmatmul.bf16.vlgmr.msra.gmra.mxu3 %v10301_v57  ;;  %2950 = vmatpush.bf16.msrb.mxu2 %v8068_v5 }
 0x13b   : > { %v2565_v17 = vpop.f32.mrf.mxu2 }
 0x13c   : > { %v2566_v63 = vadd.f32 %v2565_v17, %v2517_v28  ;;  %v2614_v18 = vpop.f32.mrf.mxu3  ;;  %v2469_v46 = vpop.f32.mrf.mxu0  ;;  %v7937_v28 = vld [vmem:[%s14357_s2 + $0x5b0] sm:$0xf0] }
 0x13d   : > { %v2470_v0 = vadd.f32 %v2469_v46, %v10718_v37  ;;  %v2518_v21 = vpop.f32.mrf.mxu1  ;;  %v7940_v58 = vor.u32 %v9413_v4, %v7937_v28 }
 0x13e   : > { %v11077_v22 = vadd.f32 %v2614_v18, %v2566_v63 }
 0x13f   : > { %v2519_v7 = vadd.f32 %v2518_v21, %v2470_v0  ;;  %2901 = vmatpush.bf16.msrb.mxu1 %v7940_v58  ;;  %v8052_v21 = vor.u32 %v9441_v19, %v8049_v23  ;;  %v9409_v23 = vld [vmem:[%s14357_s2 + $0x584] sm:$0xf] }
 0x140   : > { %14686 = vst [vmem:[#allocation48_spill] sm:$0xff] %v11077_v22  ;;  %v14434_v18 = vmax.f32 %v11077_v22, 0.0 }
 0x141   : > { %2951 = vmatpush.bf16.msrb.mxu2 %v8052_v21 }
 0x143   : > { %v2567_v33 = vpop.f32.mrf.mxu2 }
 0x144   : > { %v2568_v32 = vadd.f32 %v2567_v33, %v2519_v7  ;;  %v2616_v37 = vpop.f32.mrf.mxu3  ;;  %v2472_v17 = vpop.f32.mrf.mxu0  ;;  %v7793_v7 = vld [vmem:[%s14357_s2 + $0x490] sm:$0xf0] }
 0x145   : > { %v2473_v5 = vadd.f32 %v2472_v17, %v10743_v29  ;;  %v2521_v56 = vpop.f32.mrf.mxu1  ;;  %v7796_v58 = vor.u32 %v9377_v55, %v7793_v7 }
 0x146   : > { %v11086_v62 = vadd.f32 %v2616_v37, %v2568_v32  ;;  %v9473_v32 = vld [vmem:[%s14357_s2 + $0x784] sm:$0xf]  ;;  %v8177_v37 = vld [vmem:[%s14357_s2 + $0x790] sm:$0xf0] }
 0x147   : > { %v2522_v63 = vadd.f32 %v2521_v56, %v2473_v5  ;;  %2667 = vmatmul.bf16.gmra.mxu0 %v10351_v24  ;;  %2716 = vmatmul.bf16.gmra.mxu1 %v10353_v25  ;;  %v8180_v56 = vor.u32 %v9473_v32, %v8177_v37 }
 0x148   : > { %14687 = vst [vmem:[#allocation49_spill] sm:$0xff] %v11086_v62  ;;  %v14431_v46 = vmax.f32 %v11086_v62, 0.0  ;;  %2765 = vmatmul.bf16.gmra.mxu2 %v10355_v26  ;;  %2853 = vmatpush.bf16.msrb.mxu0 %v7796_v58  ;;  %v9352_v62 = vld [vmem:[%s14357_s2 + $0x3b4] sm:$0xf0] }
 0x149   : > { %2814 = vmatmul.bf16.gmra.mxu3 %v10357_v27 }
 0x14a   : > { %v11098_v29 = vpack.c.bf16 %v14431_v46, %v14434_v18  ;;  %3000 = vmatpush.bf16.msrb.mxu3 %v8180_v56 }
 0x14b   : > { %v2570_v0 = vpop.f32.mrf.mxu2 }
 0x14c   : > { %14688 = vst [vmem:[#allocation50_spill] sm:$0xff] %v11098_v29  ;;  %v2571_v4 = vadd.f32 %v2570_v0, %v2522_v63  ;;  %v2619_v28 = vpop.f32.mrf.mxu3  ;;  %v2474_v33 = vpop.f32.mrf.mxu0  ;;  %v7921_v0 = vld [vmem:[%s14357_s2 + $0x590] sm:$0xf0]  ;;  %v14725_v29 = vld [vmem:[#allocation25_spill] sm:$0xff] }
 0x14d   : > { %v2475_v17 = vadd.f32 %v2474_v33, %v10768_v31  ;;  %v2523_v5 = vpop.f32.mrf.mxu1  ;;  %v7924_v7 = vor.u32 %v9409_v23, %v7921_v0  ;;  %v7777_v23 = vld [vmem:[%s14357_s2 + $0x470] sm:$0xf0] }
 0x14e   : > { %v11119_v19 = vadd.f32 %v2619_v28, %v2571_v4 }
 0x14f   : > { %v2524_v63 = vadd.f32 %v2523_v5, %v2475_v17  ;;  %2902 = vmatpush.bf16.msrb.mxu1 %v7924_v7  ;;  %v8033_v17 = vld [vmem:[%s14357_s2 + $0x670] sm:$0xf0] }
 0x150   : > { %14689 = vst [vmem:[#allocation51_spill] sm:$0xff] %v11119_v19  ;;  %v14433_v32 = vmax.f32 %v11119_v19, 0.0 }
 0x153   : > { %v2572_v55 = vpop.f32.mrf.mxu2 }
 0x154   : > { %v2573_v46 = vadd.f32 %v2572_v55, %v2524_v63  ;;  %v2621_v31 = vpop.f32.mrf.mxu3  ;;  %v2477_v33 = vpop.f32.mrf.mxu0  ;;  %v9373_v63 = vld [vmem:[%s14357_s2 + $0x464] sm:$0xf] }
 0x155   : > { %v2478_v21 = vadd.f32 %v2477_v33, %v10793_v34  ;;  %v2526_v4 = vpop.f32.mrf.mxu1  ;;  %v9469_v33 = vld [vmem:[%s14357_s2 + $0x764] sm:$0xf] }
 0x156   : > { %v11128_v28 = vadd.f32 %v2621_v31, %v2573_v46  ;;  %v9437_v46 = vld [vmem:[%s14357_s2 + $0x664] sm:$0xf]  ;;  %v7780_v31 = vor.u32 %v9373_v63, %v7777_v23  ;;  %v7905_v63 = vld [vmem:[%s14357_s2 + $0x570] sm:$0xf0] }
 0x157   : > { %v2527_v58 = vadd.f32 %v2526_v4, %v2478_v21  ;;  %2672 = vmatmul.bf16.gmra.mxu0 %v10395_v49  ;;  %2721 = vmatmul.bf16.gmra.mxu1 %v10397_v50  ;;  %v8036_v56 = vor.u32 %v9437_v46, %v8033_v17  ;;  %v8161_v21 = vld [vmem:[%s14357_s2 + $0x770] sm:$0xf0] }
 0x158   : > { %14690 = vst [vmem:[#allocation52_spill] sm:$0xff] %v11128_v28  ;;  %v14432_v37 = vmax.f32 %v11128_v28, 0.0  ;;  %2770 = vmatmul.bf16.gmra.mxu2 %v10399_v51  ;;  %v8164_v17 = vor.u32 %v9469_v33, %v8161_v21  ;;  %2854 = vmatpush.bf16.msrb.mxu0 %v7780_v31  ;;  %v14715_v28 = vld [vmem:[#allocation16_spill] sm:$0xff] }
 0x159   : > { %2819 = vmatmul.bf16.gmra.mxu3 %v10401_v52  ;;  %2952 = vmatpush.bf16.msrb.mxu2 %v8036_v56 }
 0x15a   : > { %v11140_v34 = vpack.c.bf16 %v14432_v37, %v14433_v32  ;;  %3001 = vmatpush.bf16.msrb.mxu3 %v8164_v17  ;;  %v9369_v17 = vld [vmem:[%s14357_s2 + $0x444] sm:$0xf] }
 0x15b   : > { %v2575_v5 = vpop.f32.mrf.mxu2 }
 0x15c   : > { %14691 = vst [vmem:[#allocation53_spill] sm:$0xff] %v11140_v34  ;;  %v2576_v0 = vadd.f32 %v2575_v5, %v2527_v58  ;;  %v2624_v55 = vpop.f32.mrf.mxu3  ;;  %v2479_v7 = vpop.f32.mrf.mxu0  ;;  %v9405_v5 = vld [vmem:[%s14357_s2 + $0x564] sm:$0xf]  ;;  %v7415_v34 = vld [vmem:[%s14357_s2 + $0x188] sm:$0xf] }
 0x15d   : > { %v2480_v4 = vadd.f32 %v2479_v7, %v10818_v35  ;;  %v2528_v46 = vpop.f32.mrf.mxu1  ;;  %v7908_v32 = vor.u32 %v9405_v5, %v7905_v63 }
 0x15e   : > { %v11161_v37 = vadd.f32 %v2624_v55, %v2576_v0 }
 0x15f   : > { %v2529_v58 = vadd.f32 %v2528_v46, %v2480_v4  ;;  %2903 = vmatpush.bf16.msrb.mxu1 %v7908_v32  ;;  %v8017_v32 = vld [vmem:[%s14357_s2 + $0x650] sm:$0xf0] }
 0x160   : > { %14692 = vst [vmem:[#allocation54_spill] sm:$0xff] %v11161_v37  ;;  %v14436_v33 = vmax.f32 %v11161_v37, 0.0  ;;  %v9877_v37 = vld [vmem:[#allocation6] sm:$0xf] }
 0x163   : > { %v2577_v23 = vpop.f32.mrf.mxu2 }
 0x164   : > { %v2578_v18 = vadd.f32 %v2577_v23, %v2529_v58  ;;  %v2626_v35 = vpop.f32.mrf.mxu3  ;;  %v2482_v7 = vpop.f32.mrf.mxu0  ;;  %v7761_v58 = vld [vmem:[%s14357_s2 + $0x450] sm:$0xf0] }
 0x165   : > { %v2483_v56 = vadd.f32 %v2482_v7, %v10843_v30  ;;  %v2531_v0 = vpop.f32.mrf.mxu1  ;;  %v9465_v7 = vld [vmem:[%s14357_s2 + $0x744] sm:$0xf] }
 0x166   : > { %v11170_v55 = vadd.f32 %v2626_v35, %v2578_v18  ;;  %v9433_v18 = vld [vmem:[%s14357_s2 + $0x644] sm:$0xf]  ;;  %v7764_v35 = vor.u32 %v9369_v17, %v7761_v58  ;;  %v7889_v17 = vld [vmem:[%s14357_s2 + $0x550] sm:$0xf0] }
 0x167   : > { %v2532_v31 = vadd.f32 %v2531_v0, %v2483_v56  ;;  %2677 = vmatmul.bf16.gmra.mxu0 %v10439_v12  ;;  %2726 = vmatmul.bf16.gmra.mxu1 %v10441_v13  ;;  %v8020_v46 = vor.u32 %v9433_v18, %v8017_v32  ;;  %v8145_v56 = vld [vmem:[%s14357_s2 + $0x750] sm:$0xf0] }
 0x168   : > { %14693 = vst [vmem:[#allocation55_spill] sm:$0xff] %v11170_v55  ;;  %v14435_v21 = vmax.f32 %v11170_v55, 0.0  ;;  %2775 = vmatmul.bf16.gmra.mxu2 %v10443_v14  ;;  %v8148_v32 = vor.u32 %v9465_v7, %v8145_v56  ;;  %2855 = vmatpush.bf16.msrb.mxu0 %v7764_v35 }
 0x169   : > { %2824 = vmatmul.bf16.gmra.mxu3 %v10445_v15  ;;  %2953 = vmatpush.bf16.msrb.mxu2 %v8020_v46 }
 0x16a   : > { %v11182_v30 = vpack.c.bf16 %v14435_v21, %v14436_v33  ;;  %3002 = vmatpush.bf16.msrb.mxu3 %v8148_v32  ;;  %v9365_v32 = vld [vmem:[%s14357_s2 + $0x424] sm:$0xf] }
 0x16b   : > { %v2580_v4 = vpop.f32.mrf.mxu2 }
 0x16c   : > { %14694 = vst [vmem:[#allocation56_spill] sm:$0xff] %v11182_v30  ;;  %v2581_v5 = vadd.f32 %v2580_v4, %v2532_v31  ;;  %v2629_v63 = vpop.f32.mrf.mxu3  ;;  %v2484_v23 = vpop.f32.mrf.mxu0  ;;  %v9401_v4 = vld [vmem:[%s14357_s2 + $0x544] sm:$0xf] }
 0x16d   : > { %v2485_v0 = vadd.f32 %v2484_v23, %v10868_v59  ;;  %v2533_v18 = vpop.f32.mrf.mxu1  ;;  %v7892_v33 = vor.u32 %v9401_v4, %v7889_v17 }
 0x16e   : > { %v11203_v21 = vadd.f32 %v2629_v63, %v2581_v5 }
 0x16f   : > { %v2534_v31 = vadd.f32 %v2533_v18, %v2485_v0  ;;  %2904 = vmatpush.bf16.msrb.mxu1 %v7892_v33  ;;  %v8001_v33 = vld [vmem:[%s14357_s2 + $0x630] sm:$0xf0] }
 0x170   : > { %14695 = vst [vmem:[#allocation57_spill] sm:$0xff] %v11203_v21  ;;  %v14439_v7 = vmax.f32 %v11203_v21, 0.0 }
 0x173   : > { %v2582_v58 = vpop.f32.mrf.mxu2 }
 0x174   : > { %v2583_v55 = vadd.f32 %v2582_v58, %v2534_v31  ;;  %v2631_v59 = vpop.f32.mrf.mxu3  ;;  %v2487_v23 = vpop.f32.mrf.mxu0  ;;  %v7745_v31 = vld [vmem:[%s14357_s2 + $0x430] sm:$0xf0] }
 0x175   : > { %v2488_v46 = vadd.f32 %v2487_v23, %v10893_v38  ;;  %v2536_v5 = vpop.f32.mrf.mxu1  ;;  %v9461_v23 = vld [vmem:[%s14357_s2 + $0x724] sm:$0xf] }
 0x176   : > { %v11212_v63 = vadd.f32 %v2631_v59, %v2583_v55  ;;  %v9429_v55 = vld [vmem:[%s14357_s2 + $0x624] sm:$0xf]  ;;  %v7748_v59 = vor.u32 %v9365_v32, %v7745_v31  ;;  %v7873_v32 = vld [vmem:[%s14357_s2 + $0x530] sm:$0xf0] }
 0x177   : > { %v2537_v35 = vadd.f32 %v2536_v5, %v2488_v46  ;;  %2682 = vmatmul.bf16.gmra.mxu0 %v10483_v40  ;;  %2731 = vmatmul.bf16.gmra.mxu1 %v10485_v41  ;;  %v8004_v18 = vor.u32 %v9429_v55, %v8001_v33  ;;  %v8129_v46 = vld [vmem:[%s14357_s2 + $0x730] sm:$0xf0] }
 0x178   : > { %14696 = vst [vmem:[#allocation58_spill] sm:$0xff] %v11212_v63  ;;  %v14438_v56 = vmax.f32 %v11212_v63, 0.0  ;;  %2780 = vmatmul.bf16.gmra.mxu2 %v10487_v42  ;;  %v8132_v33 = vor.u32 %v9461_v23, %v8129_v46  ;;  %2856 = vmatpush.bf16.msrb.mxu0 %v7748_v59 }
 0x179   : > { %2829 = vmatmul.bf16.gmra.mxu3 %v10489_v43  ;;  %2954 = vmatpush.bf16.msrb.mxu2 %v8004_v18 }
 0x17a   : > { %v11224_v38 = vpack.c.bf16 %v14438_v56, %v14439_v7  ;;  %3003 = vmatpush.bf16.msrb.mxu3 %v8132_v33  ;;  %v9361_v33 = vld [vmem:[%s14357_s2 + $0x404] sm:$0xf] }
 0x17b   : > { %v2585_v0 = vpop.f32.mrf.mxu2 }
 0x17c   : > { %14697 = vst [vmem:[#allocation59_spill] sm:$0xff] %v11224_v38  ;;  %v2586_v4 = vadd.f32 %v2585_v0, %v2537_v35  ;;  %v2634_v17 = vpop.f32.mrf.mxu3  ;;  %v2489_v58 = vpop.f32.mrf.mxu0  ;;  %v9397_v0 = vld [vmem:[%s14357_s2 + $0x524] sm:$0xf] }
 0x17d   : > { %v2490_v5 = vadd.f32 %v2489_v58, %v10918_v39  ;;  %v2538_v55 = vpop.f32.mrf.mxu1  ;;  %v7876_v7 = vor.u32 %v9397_v0, %v7873_v32 }
 0x17e   : > { %v11245_v56 = vadd.f32 %v2634_v17, %v2586_v4 }
 0x17f   : > { %v2539_v35 = vadd.f32 %v2538_v55, %v2490_v5  ;;  %2905 = vmatpush.bf16.msrb.mxu1 %v7876_v7  ;;  %v7985_v7 = vld [vmem:[%s14357_s2 + $0x610] sm:$0xf0] }
 0x180   : > { %14698 = vst [vmem:[#allocation60_spill] sm:$0xff] %v11245_v56  ;;  %v14442_v23 = vmax.f32 %v11245_v56, 0.0 }
 0x183   : > { %v2587_v31 = vpop.f32.mrf.mxu2 }
 0x184   : > { %v2588_v63 = vadd.f32 %v2587_v31, %v2539_v35  ;;  %v2636_v39 = vpop.f32.mrf.mxu3  ;;  %v2492_v58 = vpop.f32.mrf.mxu0  ;;  %v7729_v35 = vld [vmem:[%s14357_s2 + $0x410] sm:$0xf0] }
 0x185   : > { %v2493_v18 = vadd.f32 %v2492_v58, %v10943_v1  ;;  %v2541_v4 = vpop.f32.mrf.mxu1  ;;  %v9457_v58 = vld [vmem:[%s14357_s2 + $0x704] sm:$0xf] }
 0x186   : > { %v11254_v17 = vadd.f32 %v2636_v39, %v2588_v63  ;;  %v9425_v63 = vld [vmem:[%s14357_s2 + $0x604] sm:$0xf]  ;;  %v7732_v39 = vor.u32 %v9361_v33, %v7729_v35  ;;  %v7857_v33 = vld [vmem:[%s14357_s2 + $0x510] sm:$0xf0] }
 0x187   : > { %v2542_v59 = vadd.f32 %v2541_v4, %v2493_v18  ;;  %2687 = vmatmul.bf16.gmra.mxu0 %v10527_v8  ;;  %2736 = vmatmul.bf16.gmra.mxu1 %v10529_v9  ;;  %v7988_v55 = vor.u32 %v9425_v63, %v7985_v7  ;;  %v8113_v18 = vld [vmem:[%s14357_s2 + $0x710] sm:$0xf0] }
 0x188   : > { %14699 = vst [vmem:[#allocation61_spill] sm:$0xff] %v11254_v17  ;;  %v14441_v46 = vmax.f32 %v11254_v17, 0.0  ;;  %2785 = vmatmul.bf16.gmra.mxu2 %v10531_v10  ;;  %v8116_v7 = vor.u32 %v9457_v58, %v8113_v18  ;;  %2857 = vmatpush.bf16.msrb.mxu0 %v7732_v39 }
 0x189   : > { %2834 = vmatmul.bf16.gmra.mxu3 %v10533_v11  ;;  %2955 = vmatpush.bf16.msrb.mxu2 %v7988_v55 }
 0x18a   : > { %v11266_v1 = vpack.c.bf16 %v14441_v46, %v14442_v23  ;;  %3004 = vmatpush.bf16.msrb.mxu3 %v8116_v7 }
 0x18b   : > { %v2590_v5 = vpop.f32.mrf.mxu2 }
 0x18c   : > { %14700 = vst [vmem:[#allocation62_spill] sm:$0xff] %v11266_v1  ;;  %v2591_v0 = vadd.f32 %v2590_v5, %v2542_v59  ;;  %v2639_v32 = vpop.f32.mrf.mxu3  ;;  %v2494_v31 = vpop.f32.mrf.mxu0  ;;  %v9393_v5 = vld [vmem:[%s14357_s2 + $0x504] sm:$0xf]  ;;  %v14723_v1 = vld [vmem:[#allocation23_spill] sm:$0xff] }
 0x18d   : > { %v2495_v4 = vadd.f32 %v2494_v31, %v10968_v36  ;;  %v2543_v63 = vpop.f32.mrf.mxu1  ;;  %v7860_v23 = vor.u32 %v9393_v5, %v7857_v33  ;;  %v7335_v5 = vld [vmem:[%s14357_s2 + $0xe8] sm:$0xf]  ;;  %v9264_v33 = vld [vmem:[%s14357_s2 + $0xf4] sm:$0xf0] }
 0x18e   : > { %v11287_v46 = vadd.f32 %v2639_v32, %v2591_v0 }
 0x18f   : > { %v2544_v59 = vadd.f32 %v2543_v63, %v2495_v4  ;;  %2906 = vmatpush.bf16.msrb.mxu1 %v7860_v23  ;;  %v14703_v4 = vld [vmem:[#allocation10_spill] sm:$0xff]  ;;  %v14704_v63 = vld [vmem:[#allocation11_spill] sm:$0xff] }
 0x190   : > { %14701 = vst [vmem:[#allocation63_spill] sm:$0xff] %v11287_v46  ;;  %v14445_v58 = vmax.f32 %v11287_v46, 0.0  ;;  %v9328_v23 = vld [vmem:[%s14357_s2 + $0x2f4] sm:$0xf0] }
 0x193   : > { %v2592_v35 = vpop.f32.mrf.mxu2 }
 0x194   : > { %v2593_v17 = vadd.f32 %v2592_v35, %v2544_v59  ;;  %v2641_v36 = vpop.f32.mrf.mxu3  ;;  %v2497_v31 = vpop.f32.mrf.mxu0 }
 0x195   : > { %v2498_v55 = vadd.f32 %v2497_v31, %v10993_v6  ;;  %v2546_v0 = vpop.f32.mrf.mxu1 }
 0x196   : > { %v11296_v32 = vadd.f32 %v2641_v36, %v2593_v17  ;;  %v7591_v17 = vld [vmem:[%s14357_s2 + $0x2e8] sm:$0xf] }
 0x197   : > { %v2547_v39 = vadd.f32 %v2546_v0, %v2498_v55  ;;  %2692 = vmatmul.bf16.gmra.mxu0 %v10571_v44  ;;  %2741 = vmatmul.bf16.gmra.mxu1 %v10573_v45  ;;  %v7592_v59 = vor.u32 %v9328_v23, %v7591_v17  ;;  %v7336_v55 = vor.u32 %v9264_v33, %v7335_v5  ;;  %v7719_v0 = vld [vmem:[%s14357_s2 + $0x3e8] sm:$0xf]  ;;  %v9360_v17 = vld [vmem:[%s14357_s2 + $0x3f4] sm:$0xf0] }
 0x198   : > { %14702 = vst [vmem:[#allocation64_spill] sm:$0xff] %v11296_v32  ;;  %v14444_v18 = vmax.f32 %v11296_v32, 0.0  ;;  %2790 = vmatmul.bf16.gmra.mxu2 %v14703_v4 }
 0x199   : > { %2839 = vmatmul.bf16.gmra.mxu3 %v14704_v63  ;;  %3144 = vmatpush.bf16.msra.mxu2 %v7592_v59 }
 0x19a   : > { %v11308_v6 = vpack.c.bf16 %v14444_v18, %v14445_v58  ;;  %v7720_v58 = vor.u32 %v9360_v17, %v7719_v0  ;;  %3046 = vmatpush.bf16.msra.mxu0 %v7336_v55  ;;  %v14708_v17 = vld [vmem:[#allocation12_spill] sm:$0xff] }
 0x19b   : > { %v2595_v7 = vpop.f32.mrf.mxu2 }
 0x19c   : > { %14705 = vst [vmem:[#allocation10_spill] sm:$0xff] %v11308_v6  ;;  %v2596_v35 = vadd.f32 %v2595_v7, %v2547_v39  ;;  %v2644_v36 = vpop.f32.mrf.mxu3  ;;  %v2499_v31 = vpop.f32.mrf.mxu0  ;;  %v7463_v39 = vld [vmem:[%s14357_s2 + $0x1e8] sm:$0xf]  ;;  %v9296_v7 = vld [vmem:[%s14357_s2 + $0x1f4] sm:$0xf0]  ;;  %3193 = vmatpush.bf16.msra.mxu3 %v7720_v58  ;;  %v14710_v58 = vld [vmem:[#allocation14_spill] sm:$0xff] }
 0x19d   : > { %v2500_v23 = vadd.f32 %v2499_v31, %v11018_v47  ;;  %v2548_v18 = vpop.f32.mrf.mxu1  ;;  %v7464_v33 = vor.u32 %v9296_v7, %v7463_v39  ;;  %v7319_v39 = vld [vmem:[%s14357_s2 + $0xc8] sm:$0xf]  ;;  %v14722_v6 = vld [vmem:[#allocation22_spill] sm:$0xff] }
 0x19e   : > { %v11329_v32 = vadd.f32 %v2644_v36, %v2596_v35 }
 0x19f   : > { %v2549_v5 = vadd.f32 %v2548_v18, %v2500_v23  ;;  %3095 = vmatpush.bf16.msra.mxu1 %v7464_v33  ;;  %v14709_v18 = vld [vmem:[#allocation13_spill] sm:$0xff]  ;;  %v14711_v23 = vld [vmem:[#allocation15_spill] sm:$0xff] }
 0x1a0   : > { %14706 = vst [vmem:[#allocation11_spill] sm:$0xff] %v11329_v32  ;;  %v14453_v56 = vmax.f32 %v11329_v32, 0.0  ;;  %v9260_v33 = vld [vmem:[%s14357_s2 + $0xd4] sm:$0xf0] }
 0x1a3   : > { %v2597_v46 = vpop.f32.mrf.mxu2 }
 0x1a4   : > { %v2598_v47 = vadd.f32 %v2597_v46, %v2549_v5  ;;  %v2646_v31 = vpop.f32.mrf.mxu3  ;;  %v2502_v59 = vpop.f32.mrf.mxu0  ;;  %v9324_v46 = vld [vmem:[%s14357_s2 + $0x2d4] sm:$0xf0] }
 0x1a5   : > { %v2503_v35 = vadd.f32 %v2502_v59, %v11043_v61  ;;  %v2551_v36 = vpop.f32.mrf.mxu1  ;;  %v7575_v61 = vld [vmem:[%s14357_s2 + $0x2c8] sm:$0xf]  ;;  %v7320_v59 = vor.u32 %v9260_v33, %v7319_v39  ;;  %v9292_v33 = vld [vmem:[%s14357_s2 + $0x1d4] sm:$0xf0] }
 0x1a6   : > { %v11338_v55 = vadd.f32 %v2646_v31, %v2598_v47  ;;  %v7576_v5 = vor.u32 %v9324_v46, %v7575_v61  ;;  %v7703_v47 = vld [vmem:[%s14357_s2 + $0x3c8] sm:$0xf] }
 0x1a7   : > { %v2552_v0 = vadd.f32 %v2551_v36, %v2503_v35  ;;  %2697 = vmatmul.bf16.gmra.mxu0 %v14708_v17  ;;  %2746 = vmatmul.bf16.gmra.mxu1 %v14709_v18  ;;  %v9356_v35 = vld [vmem:[%s14357_s2 + $0x3d4] sm:$0xf0]  ;;  %v7447_v39 = vld [vmem:[%s14357_s2 + $0x1c8] sm:$0xf] }
 0x1a8   : > { %14707 = vst [vmem:[#allocation65_spill] sm:$0xff] %v11338_v55  ;;  %v14452_v21 = vmax.f32 %v11338_v55, 0.0  ;;  %2795 = vmatmul.bf16.gmra.mxu2 %v14710_v58  ;;  %3047 = vmatpush.bf16.msra.mxu0 %v7320_v59  ;;  %v14743_v58 = vld [vmem:[#allocation43_spill] sm:$0xff] }
 0x1a9   : > { %2844 = vmatmul.bf16.gmra.mxu3 %v14711_v23  ;;  %3145 = vmatpush.bf16.msra.mxu2 %v7576_v5  ;;  %v11379_v5 = vperm.slane %v9877_v37, 1  ;;  %v14717_v37 = vld [vmem:[#allocation18_spill] sm:$0xff] }
 0x1aa   : > { %v11359_v7 = vpack.c.bf16 %v14452_v21, %v14453_v56  ;;  %v7704_v21 = vor.u32 %v9356_v35, %v7703_v47  ;;  %v14742_v23 = vld [vmem:[#allocation42_spill] sm:$0xff] }
 0x1ab   : > { %v2600_v31 = vpop.f32.mrf.mxu2 }
 0x1ac   : > { %14712 = vst [vmem:[#allocation12_spill] sm:$0xff] %v11359_v7  ;;  %v2601_v36 = vadd.f32 %v2600_v31, %v2552_v0  ;;  %v2649_v32 = vpop.f32.mrf.mxu3  ;;  %v2504_v55 = vpop.f32.mrf.mxu0  ;;  %3194 = vmatpush.bf16.msra.mxu3 %v7704_v21  ;;  %v7448_v31 = vor.u32 %v9292_v33, %v7447_v39  ;;  %v14718_v39 = vld [vmem:[#allocation19_spill] sm:$0xff]  ;;  %v7559_v33 = vld [vmem:[%s14357_s2 + $0x2a8] sm:$0xf] }
 0x1ad   : > { %v2505_v61 = vadd.f32 %v2504_v55, %v11052_v16  ;;  %v2553_v46 = vpop.f32.mrf.mxu1  ;;  %v14721_v7 = vld [vmem:[#allocation21_spill] sm:$0xff] }
 0x1ae   : > { %v11371_v56 = vadd.f32 %v2649_v32, %v2601_v36  ;;  %3096 = vmatpush.bf16.msra.mxu1 %v7448_v31  ;;  %v7303_v31 = vld [vmem:[%s14357_s2 + $0xa8] sm:$0xf] }
 0x1af   : > { %v2554_v0 = vadd.f32 %v2553_v46, %v2505_v61  ;;  %v14716_v46 = vld [vmem:[#allocation17_spill] sm:$0xff] }
 0x1b0   : > { %14713 = vst [vmem:[#allocation13_spill] sm:$0xff] %v11371_v56  ;;  %v14462_v19 = vmax.f32 %v11371_v56, 0.0 }
 0x1b3   : > { %v2602_v16 = vpop.f32.mrf.mxu2 }
 0x1b4   : > { %v2603_v55 = vadd.f32 %v2602_v16, %v2554_v0  ;;  %v2651_v47 = vpop.f32.mrf.mxu3  ;;  %v2663_v32 = vpop.f32.mrf.mxu0  ;;  %v9320_v0 = vld [vmem:[%s14357_s2 + $0x2b4] sm:$0xf0] }
 0x1b5   : > { %v2664_v21 = vadd.f32 %v2663_v32, %v11379_v5  ;;  %v2712_v59 = vpop.f32.mrf.mxu1  ;;  %v7687_v32 = vld [vmem:[%s14357_s2 + $0x3a8] sm:$0xf] }
 0x1b6   : > { %v11382_v35 = vadd.f32 %v2651_v47, %v2603_v55  ;;  %v7560_v55 = vor.u32 %v9320_v0, %v7559_v33  ;;  %v9256_v47 = vld [vmem:[%s14357_s2 + $0xb4] sm:$0xf0] }
 0x1b7   : > { %v2713_v36 = vadd.f32 %v2712_v59, %v2664_v21  ;;  %2858 = vmatmul.bf16.vlgmr.msrb.gmra.mxu0 %v14715_v28  ;;  %2907 = vmatmul.bf16.vlgmr.msrb.gmra.mxu1 %v14716_v46  ;;  %v7304_v59 = vor.u32 %v9256_v47, %v7303_v31  ;;  %v7431_v31 = vld [vmem:[%s14357_s2 + $0x1a8] sm:$0xf]  ;;  %v9288_v47 = vld [vmem:[%s14357_s2 + $0x1b4] sm:$0xf0]  ;;  %v14738_v46 = vld [vmem:[#allocation38_spill] sm:$0xff] }
 0x1b8   : > { %14714 = vst [vmem:[#allocation66_spill] sm:$0xff] %v11382_v35  ;;  %v14461_v61 = vmax.f32 %v11382_v35, 0.0  ;;  %2956 = vmatmul.bf16.vlgmr.msrb.gmra.mxu2 %v14717_v37  ;;  %v14735_v37 = vld [vmem:[#allocation35_spill] sm:$0xff] }
 0x1b9   : > { %3005 = vmatmul.bf16.vlgmr.msrb.gmra.mxu3 %v14718_v39  ;;  %3146 = vmatpush.bf16.msra.mxu2 %v7560_v55  ;;  %v14734_v39 = vld [vmem:[#allocation34_spill] sm:$0xff]  ;;  %v14739_v28 = vld [vmem:[#allocation39_spill] sm:$0xff] }
 0x1ba   : > { %v11403_v16 = vpack.c.bf16 %v14461_v61, %v14462_v19  ;;  %v7688_v61 = vor.u32 %v9352_v62, %v7687_v32  ;;  %3048 = vmatpush.bf16.msra.mxu0 %v7304_v59 }
 0x1bb   : > { %v2761_v21 = vpop.f32.mrf.mxu2 }
 0x1bc   : > { %14719 = vst [vmem:[#allocation67_spill] sm:$0xff] %v11403_v16  ;;  %v2762_v56 = vadd.f32 %v2761_v21, %v2713_v36  ;;  %v2810_v22 = vpop.f32.mrf.mxu3  ;;  %v2665_v35 = vpop.f32.mrf.mxu0  ;;  %3195 = vmatpush.bf16.msra.mxu3 %v7688_v61  ;;  %v7432_v21 = vor.u32 %v9288_v47, %v7431_v31  ;;  %v14720_v16 = vld [vmem:[#allocation20_spill] sm:$0xff]  ;;  %v7287_v31 = vld [vmem:[%s14357_s2 + $0x88] sm:$0xf] }
 0x1bd   : > { %v2666_v33 = vadd.f32 %v2665_v35, %v11379_v5  ;;  %v2714_v0 = vpop.f32.mrf.mxu1 }
 0x1be   : > { %v11415_v19 = vadd.f32 %v2810_v22, %v2762_v56  ;;  %3097 = vmatpush.bf16.msra.mxu1 %v7432_v21  ;;  %v7671_v21 = vld [vmem:[%s14357_s2 + $0x388] sm:$0xf] }
 0x1bf   : > { %v2715_v36 = vadd.f32 %v2714_v0, %v2666_v33  ;;  %v7543_v33 = vld [vmem:[%s14357_s2 + $0x288] sm:$0xf]  ;;  %v9316_v0 = vld [vmem:[%s14357_s2 + $0x294] sm:$0xf0] }
 0x1c0   : > { %v7544_v47 = vor.u32 %v9316_v0, %v7543_v33 }
 0x1c2   : > { %3147 = vmatpush.bf16.msra.mxu2 %v7544_v47 }
 0x1c3   : > { %v2763_v55 = vpop.f32.mrf.mxu2 }
 0x1c4   : > { %v2764_v62 = vadd.f32 %v2763_v55, %v2715_v36  ;;  %v2812_v32 = vpop.f32.mrf.mxu3  ;;  %v2668_v35 = vpop.f32.mrf.mxu0  ;;  %v9252_v36 = vld [vmem:[%s14357_s2 + $0x94] sm:$0xf0] }
 0x1c5   : > { %v2669_v59 = vadd.f32 %v2668_v35, %v11379_v5  ;;  %v2717_v22 = vpop.f32.mrf.mxu1  ;;  %v9348_v55 = vld [vmem:[%s14357_s2 + $0x394] sm:$0xf0] }
 0x1c6   : > { %v11424_v56 = vadd.f32 %v2812_v32, %v2764_v62  ;;  %v7288_v32 = vor.u32 %v9252_v36, %v7287_v31  ;;  %v7672_v35 = vor.u32 %v9348_v55, %v7671_v21  ;;  %v9284_v31 = vld [vmem:[%s14357_s2 + $0x194] sm:$0xf0] }
 0x1c7   : > { %v2718_v61 = vadd.f32 %v2717_v22, %v2669_v59  ;;  %2863 = vmatmul.bf16.gmra.mxu0 %v14720_v16  ;;  %2912 = vmatmul.bf16.gmra.mxu1 %v14721_v7  ;;  %v14730_v7 = vld [vmem:[#allocation30_spill] sm:$0xff]  ;;  %v14731_v16 = vld [vmem:[#allocation31_spill] sm:$0xff] }
 0x1c8   : > { %2961 = vmatmul.bf16.gmra.mxu2 %v14722_v6  ;;  %3049 = vmatpush.bf16.msra.mxu0 %v7288_v32  ;;  %v14727_v6 = vld [vmem:[#allocation27_spill] sm:$0xff] }
 0x1c9   : > { %3010 = vmatmul.bf16.gmra.mxu3 %v14723_v1  ;;  %v14726_v1 = vld [vmem:[#allocation26_spill] sm:$0xff] }
 0x1ca   : > { %3196 = vmatpush.bf16.msra.mxu3 %v7672_v35 }
 0x1cb   : > { %v2766_v62 = vpop.f32.mrf.mxu2 }
 0x1cc   : > { %v2767_v59 = vadd.f32 %v2766_v62, %v2718_v61  ;;  %v2815_v22 = vpop.f32.mrf.mxu3  ;;  %v2670_v38 = vpop.f32.mrf.mxu0  ;;  %v7416_v61 = vor.u32 %v9284_v31, %v7415_v34  ;;  %v7527_v34 = vld [vmem:[%s14357_s2 + $0x268] sm:$0xf] }
 0x1cd   : > { %v2671_v33 = vadd.f32 %v2670_v38, %v11379_v5  ;;  %v2719_v0 = vpop.f32.mrf.mxu1 }
 0x1ce   : > { %v11449_v30 = vadd.f32 %v2815_v22, %v2767_v59  ;;  %3098 = vmatpush.bf16.msra.mxu1 %v7416_v61  ;;  %v14724_v22 = vld [vmem:[#allocation24_spill] sm:$0xff]  ;;  %v7655_v61 = vld [vmem:[%s14357_s2 + $0x368] sm:$0xf] }
 0x1cf   : > { %v2720_v36 = vadd.f32 %v2719_v0, %v2671_v33  ;;  %v9312_v33 = vld [vmem:[%s14357_s2 + $0x274] sm:$0xf0]  ;;  %v7271_v0 = vld [vmem:[%s14357_s2 + $0x68] sm:$0xf] }
 0x1d0   : > { %v7528_v31 = vor.u32 %v9312_v33, %v7527_v34 }
 0x1d2   : > { %3148 = vmatpush.bf16.msra.mxu2 %v7528_v31 }
 0x1d3   : > { %v2768_v21 = vpop.f32.mrf.mxu2 }
 0x1d4   : > { %v2769_v47 = vadd.f32 %v2768_v21, %v2720_v36  ;;  %v2817_v55 = vpop.f32.mrf.mxu3  ;;  %v2673_v38 = vpop.f32.mrf.mxu0  ;;  %v9248_v36 = vld [vmem:[%s14357_s2 + $0x74] sm:$0xf0] }
 0x1d5   : > { %v2674_v62 = vadd.f32 %v2673_v38, %v11379_v5  ;;  %v2722_v32 = vpop.f32.mrf.mxu1  ;;  %v9344_v21 = vld [vmem:[%s14357_s2 + $0x374] sm:$0xf0] }
 0x1d6   : > { %v11458_v35 = vadd.f32 %v2817_v55, %v2769_v47  ;;  %v7272_v55 = vor.u32 %v9248_v36, %v7271_v0  ;;  %v7656_v38 = vor.u32 %v9344_v21, %v7655_v61  ;;  %v9280_v0 = vld [vmem:[%s14357_s2 + $0x174] sm:$0xf0] }
 0x1d7   : > { %v2723_v59 = vadd.f32 %v2722_v32, %v2674_v62  ;;  %2868 = vmatmul.bf16.gmra.mxu0 %v14724_v22  ;;  %2917 = vmatmul.bf16.gmra.mxu1 %v14725_v29  ;;  %v7399_v29 = vld [vmem:[%s14357_s2 + $0x168] sm:$0xf] }
 0x1d8   : > { %2966 = vmatmul.bf16.gmra.mxu2 %v14726_v1  ;;  %3050 = vmatpush.bf16.msra.mxu0 %v7272_v55  ;;  %v14729_v22 = vld [vmem:[#allocation29_spill] sm:$0xff] }
 0x1d9   : > { %3015 = vmatmul.bf16.gmra.mxu3 %v14727_v6 }
 0x1da   : > { %3197 = vmatpush.bf16.msra.mxu3 %v7656_v38 }
 0x1db   : > { %v2771_v47 = vpop.f32.mrf.mxu2 }
 0x1dc   : > { %v2772_v62 = vadd.f32 %v2771_v47, %v2723_v59  ;;  %v2820_v32 = vpop.f32.mrf.mxu3  ;;  %v2675_v6 = vpop.f32.mrf.mxu0  ;;  %v7400_v59 = vor.u32 %v9280_v0, %v7399_v29  ;;  %v7511_v29 = vld [vmem:[%s14357_s2 + $0x248] sm:$0xf] }
 0x1dd   : > { %v2676_v34 = vadd.f32 %v2675_v6, %v11379_v5  ;;  %v2724_v33 = vpop.f32.mrf.mxu1 }
 0x1de   : > { %v11483_v1 = vadd.f32 %v2820_v32, %v2772_v62  ;;  %3099 = vmatpush.bf16.msra.mxu1 %v7400_v59  ;;  %v14728_v32 = vld [vmem:[#allocation28_spill] sm:$0xff]  ;;  %v7639_v59 = vld [vmem:[%s14357_s2 + $0x348] sm:$0xf] }
 0x1df   : > { %v2725_v36 = vadd.f32 %v2724_v33, %v2676_v34  ;;  %v9308_v34 = vld [vmem:[%s14357_s2 + $0x254] sm:$0xf0]  ;;  %v7255_v33 = vld [vmem:[%s14357_s2 + $0x48] sm:$0xf] }
 0x1e0   : > { %v7512_v0 = vor.u32 %v9308_v34, %v7511_v29 }
 0x1e2   : > { %3149 = vmatpush.bf16.msra.mxu2 %v7512_v0 }
 0x1e3   : > { %v2773_v61 = vpop.f32.mrf.mxu2 }
 0x1e4   : > { %v2774_v31 = vadd.f32 %v2773_v61, %v2725_v36  ;;  %v2822_v21 = vpop.f32.mrf.mxu3  ;;  %v2678_v6 = vpop.f32.mrf.mxu0  ;;  %v9244_v36 = vld [vmem:[%s14357_s2 + $0x54] sm:$0xf0] }
 0x1e5   : > { %v2679_v47 = vadd.f32 %v2678_v6, %v11379_v5  ;;  %v2727_v55 = vpop.f32.mrf.mxu1  ;;  %v9340_v61 = vld [vmem:[%s14357_s2 + $0x354] sm:$0xf0] }
 0x1e6   : > { %v11492_v38 = vadd.f32 %v2822_v21, %v2774_v31  ;;  %v7256_v21 = vor.u32 %v9244_v36, %v7255_v33  ;;  %v7640_v6 = vor.u32 %v9340_v61, %v7639_v59  ;;  %v9276_v33 = vld [vmem:[%s14357_s2 + $0x154] sm:$0xf0] }
 0x1e7   : > { %v2728_v62 = vadd.f32 %v2727_v55, %v2679_v47  ;;  %2873 = vmatmul.bf16.gmra.mxu0 %v14728_v32  ;;  %2922 = vmatmul.bf16.gmra.mxu1 %v14729_v22  ;;  %v7383_v22 = vld [vmem:[%s14357_s2 + $0x148] sm:$0xf] }
 0x1e8   : > { %2971 = vmatmul.bf16.gmra.mxu2 %v14730_v7  ;;  %3051 = vmatpush.bf16.msra.mxu0 %v7256_v21  ;;  %v14733_v32 = vld [vmem:[#allocation33_spill] sm:$0xff] }
 0x1e9   : > { %3020 = vmatmul.bf16.gmra.mxu3 %v14731_v16 }
 0x1ea   : > { %3198 = vmatpush.bf16.msra.mxu3 %v7640_v6 }
 0x1eb   : > { %v2776_v31 = vpop.f32.mrf.mxu2 }
 0x1ec   : > { %v2777_v47 = vadd.f32 %v2776_v31, %v2728_v62  ;;  %v2825_v55 = vpop.f32.mrf.mxu3  ;;  %v2680_v16 = vpop.f32.mrf.mxu0  ;;  %v7384_v62 = vor.u32 %v9276_v33, %v7383_v22  ;;  %v7495_v22 = vld [vmem:[%s14357_s2 + $0x228] sm:$0xf] }
 0x1ed   : > { %v2681_v29 = vadd.f32 %v2680_v16, %v11379_v5  ;;  %v2729_v34 = vpop.f32.mrf.mxu1 }
 0x1ee   : > { %v11517_v7 = vadd.f32 %v2825_v55, %v2777_v47  ;;  %3100 = vmatpush.bf16.msra.mxu1 %v7384_v62  ;;  %v14732_v55 = vld [vmem:[#allocation32_spill] sm:$0xff]  ;;  %v7623_v62 = vld [vmem:[%s14357_s2 + $0x328] sm:$0xf] }
 0x1ef   : > { %v2730_v36 = vadd.f32 %v2729_v34, %v2681_v29  ;;  %v9304_v29 = vld [vmem:[%s14357_s2 + $0x234] sm:$0xf0]  ;;  %v7239_v34 = vld [vmem:[%s14357_s2 + $0x28] sm:$0xf] }
 0x1f0   : > { %v7496_v33 = vor.u32 %v9304_v29, %v7495_v22 }
 0x1f2   : > { %3150 = vmatpush.bf16.msra.mxu2 %v7496_v33 }
 0x1f3   : > { %v2778_v59 = vpop.f32.mrf.mxu2 }
 0x1f4   : > { %v2779_v0 = vadd.f32 %v2778_v59, %v2730_v36  ;;  %v2827_v61 = vpop.f32.mrf.mxu3  ;;  %v2683_v16 = vpop.f32.mrf.mxu0  ;;  %v9240_v36 = vld [vmem:[%s14357_s2 + $0x34] sm:$0xf0] }
 0x1f5   : > { %v2684_v31 = vadd.f32 %v2683_v16, %v11379_v5  ;;  %v2732_v21 = vpop.f32.mrf.mxu1  ;;  %v9336_v59 = vld [vmem:[%s14357_s2 + $0x334] sm:$0xf0] }
 0x1f6   : > { %v11526_v6 = vadd.f32 %v2827_v61, %v2779_v0  ;;  %v7240_v61 = vor.u32 %v9240_v36, %v7239_v34  ;;  %v7624_v16 = vor.u32 %v9336_v59, %v7623_v62  ;;  %v9272_v34 = vld [vmem:[%s14357_s2 + $0x134] sm:$0xf0] }
 0x1f7   : > { %v2733_v47 = vadd.f32 %v2732_v21, %v2684_v31  ;;  %2878 = vmatmul.bf16.gmra.mxu0 %v14732_v55  ;;  %2927 = vmatmul.bf16.gmra.mxu1 %v14733_v32  ;;  %v7367_v32 = vld [vmem:[%s14357_s2 + $0x128] sm:$0xf] }
 0x1f8   : > { %2976 = vmatmul.bf16.gmra.mxu2 %v14734_v39  ;;  %3052 = vmatpush.bf16.msra.mxu0 %v7240_v61  ;;  %v14737_v55 = vld [vmem:[#allocation37_spill] sm:$0xff] }
 0x1f9   : > { %3025 = vmatmul.bf16.gmra.mxu3 %v14735_v37 }
 0x1fa   : > { %3199 = vmatpush.bf16.msra.mxu3 %v7624_v16 }
 0x1fb   : > { %v2781_v0 = vpop.f32.mrf.mxu2 }
 0x1fc   : > { %v2782_v31 = vadd.f32 %v2781_v0, %v2733_v47  ;;  %v2830_v21 = vpop.f32.mrf.mxu3  ;;  %v2685_v37 = vpop.f32.mrf.mxu0  ;;  %v7368_v47 = vor.u32 %v9272_v34, %v7367_v32  ;;  %v7479_v32 = vld [vmem:[%s14357_s2 + $0x208] sm:$0xf] }
 0x1fd   : > { %v2686_v22 = vadd.f32 %v2685_v37, %v11379_v5  ;;  %v2734_v29 = vpop.f32.mrf.mxu1 }
 0x1fe   : > { %v11551_v39 = vadd.f32 %v2830_v21, %v2782_v31  ;;  %3101 = vmatpush.bf16.msra.mxu1 %v7368_v47  ;;  %v14736_v21 = vld [vmem:[#allocation36_spill] sm:$0xff]  ;;  %v7607_v47 = vld [vmem:[%s14357_s2 + $0x308] sm:$0xf] }
 0x1ff   : > { %v2735_v36 = vadd.f32 %v2734_v29, %v2686_v22  ;;  %v9300_v22 = vld [vmem:[%s14357_s2 + $0x214] sm:$0xf0]  ;;  %v7223_v29 = vld [vmem:[%s14357_s2 + $0x8] sm:$0xf] }
 0x200   : > { %v7480_v34 = vor.u32 %v9300_v22, %v7479_v32 }
 0x202   : > { %3151 = vmatpush.bf16.msra.mxu2 %v7480_v34 }
 0x203   : > { %v2783_v62 = vpop.f32.mrf.mxu2 }
 0x204   : > { %v2784_v33 = vadd.f32 %v2783_v62, %v2735_v36  ;;  %v2832_v59 = vpop.f32.mrf.mxu3  ;;  %v2688_v37 = vpop.f32.mrf.mxu0  ;;  %v9236_v36 = vld [vmem:[%s14357_s2 + $0x14] sm:$0xf0] }
 0x205   : > { %v2689_v0 = vadd.f32 %v2688_v37, %v11379_v5  ;;  %v2737_v61 = vpop.f32.mrf.mxu1  ;;  %v9332_v62 = vld [vmem:[%s14357_s2 + $0x314] sm:$0xf0] }
 0x206   : > { %v11560_v16 = vadd.f32 %v2832_v59, %v2784_v33  ;;  %v7224_v59 = vor.u32 %v9236_v36, %v7223_v29  ;;  %v7608_v37 = vor.u32 %v9332_v62, %v7607_v47  ;;  %v9268_v29 = vld [vmem:[%s14357_s2 + $0x114] sm:$0xf0] }
 0x207   : > { %v2738_v31 = vadd.f32 %v2737_v61, %v2689_v0  ;;  %2883 = vmatmul.bf16.gmra.mxu0 %v14736_v21  ;;  %2932 = vmatmul.bf16.gmra.mxu1 %v14737_v55  ;;  %v7351_v55 = vld [vmem:[%s14357_s2 + $0x108] sm:$0xf] }
 0x208   : > { %2981 = vmatmul.bf16.gmra.mxu2 %v14738_v46  ;;  %3053 = vmatpush.bf16.msra.mxu0 %v7224_v59  ;;  %v14741_v21 = vld [vmem:[#allocation41_spill] sm:$0xff] }
 0x209   : > { %3030 = vmatmul.bf16.gmra.mxu3 %v14739_v28 }
 0x20a   : > { %3200 = vmatpush.bf16.msra.mxu3 %v7608_v37 }
 0x20b   : > { %v2786_v33 = vpop.f32.mrf.mxu2 }
 0x20c   : > { %v2787_v0 = vadd.f32 %v2786_v33, %v2738_v31  ;;  %v2835_v61 = vpop.f32.mrf.mxu3  ;;  %v2690_v28 = vpop.f32.mrf.mxu0  ;;  %v7352_v31 = vor.u32 %v9268_v29, %v7351_v55  ;;  %v8103_v55 = vld [vmem:[%s14357_s2 + $0x6e8] sm:$0xf] }
 0x20d   : > { %v2691_v32 = vadd.f32 %v2690_v28, %v11379_v5  ;;  %v2739_v22 = vpop.f32.mrf.mxu1 }
 0x20e   : > { %v11585_v46 = vadd.f32 %v2835_v61, %v2787_v0  ;;  %3102 = vmatpush.bf16.msra.mxu1 %v7352_v31  ;;  %v14740_v61 = vld [vmem:[#allocation40_spill] sm:$0xff]  ;;  %v8231_v31 = vld [vmem:[%s14357_s2 + $0x7e8] sm:$0xf] }
 0x20f   : > { %v2740_v36 = vadd.f32 %v2739_v22, %v2691_v32  ;;  %v9456_v32 = vld [vmem:[%s14357_s2 + $0x6f4] sm:$0xf0]  ;;  %v7847_v22 = vld [vmem:[%s14357_s2 + $0x4e8] sm:$0xf] }
 0x210   : > { %v8104_v29 = vor.u32 %v9456_v32, %v8103_v55 }
 0x212   : > { %3340 = vmatpush.bf16.msrb.mxu2 %v8104_v29 }
 0x213   : > { %v2788_v47 = vpop.f32.mrf.mxu2 }
 0x214   : > { %v2789_v34 = vadd.f32 %v2788_v47, %v2740_v36  ;;  %v2837_v62 = vpop.f32.mrf.mxu3  ;;  %v2693_v28 = vpop.f32.mrf.mxu0  ;;  %v9392_v36 = vld [vmem:[%s14357_s2 + $0x4f4] sm:$0xf0] }
 0x215   : > { %v2694_v33 = vadd.f32 %v2693_v28, %v11379_v5  ;;  %v2742_v59 = vpop.f32.mrf.mxu1  ;;  %v9488_v47 = vld [vmem:[%s14357_s2 + $0x7f4] sm:$0xf0] }
 0x216   : > { %v11594_v37 = vadd.f32 %v2837_v62, %v2789_v34  ;;  %v7848_v62 = vor.u32 %v9392_v36, %v7847_v22  ;;  %v8232_v28 = vor.u32 %v9488_v47, %v8231_v31  ;;  %v9424_v22 = vld [vmem:[%s14357_s2 + $0x5f4] sm:$0xf0] }
 0x217   : > { %v2743_v0 = vadd.f32 %v2742_v59, %v2694_v33  ;;  %2888 = vmatmul.bf16.gmra.mxu0 %v14740_v61  ;;  %2937 = vmatmul.bf16.gmra.mxu1 %v14741_v21  ;;  %v7975_v61 = vld [vmem:[%s14357_s2 + $0x5e8] sm:$0xf] }
 0x218   : > { %2986 = vmatmul.bf16.gmra.mxu2 %v14742_v23  ;;  %3242 = vmatpush.bf16.msrb.mxu0 %v7848_v62  ;;  %v7976_v36 = vor.u32 %v9424_v22, %v7975_v61  ;;  %v9452_v61 = vld [vmem:[%s14357_s2 + $0x6d4] sm:$0xf0]  ;;  %v8215_v22 = vld [vmem:[%s14357_s2 + $0x7c8] sm:$0xf] }
 0x219   : > { %3035 = vmatmul.bf16.gmra.mxu3 %v14743_v58 }
 0x21a   : > { %3389 = vmatpush.bf16.msrb.mxu3 %v8232_v28  ;;  %3291 = vmatpush.bf16.msrb.mxu1 %v7976_v36 }
 0x21b   : > { %v2791_v34 = vpop.f32.mrf.mxu2 }
 0x21c   : > { %v2792_v33 = vadd.f32 %v2791_v34, %v2743_v0  ;;  %v2840_v59 = vpop.f32.mrf.mxu3  ;;  %v2695_v58 = vpop.f32.mrf.mxu0 }
 0x21d   : > { %v2696_v55 = vadd.f32 %v2695_v58, %v11379_v5  ;;  %v2744_v32 = vpop.f32.mrf.mxu1 }
 0x21e   : > { %v11619_v23 = vadd.f32 %v2840_v59, %v2792_v33  ;;  %v7831_v33 = vld [vmem:[%s14357_s2 + $0x4c8] sm:$0xf] }
 0x21f   : > { %v2745_v21 = vadd.f32 %v2744_v32, %v2696_v55  ;;  %v9388_v32 = vld [vmem:[%s14357_s2 + $0x4d4] sm:$0xf0] }
 0x223   : > { %v2793_v0 = vpop.f32.mrf.mxu2 }
 0x224   : > { %v2794_v31 = vadd.f32 %v2793_v0, %v2745_v21  ;;  %v2842_v29 = vpop.f32.mrf.mxu3  ;;  %v2698_v47 = vpop.f32.mrf.mxu0  ;;  %v8087_v21 = vld [vmem:[%s14357_s2 + $0x6c8] sm:$0xf]  ;;  %v9484_v0 = vld [vmem:[%s14357_s2 + $0x7d4] sm:$0xf0] }
 0x225   : > { %v2699_v58 = vadd.f32 %v2698_v47, %v11379_v5  ;;  %v2747_v34 = vpop.f32.mrf.mxu1  ;;  %v8088_v55 = vor.u32 %v9452_v61, %v8087_v21  ;;  %v7832_v47 = vor.u32 %v9388_v32, %v7831_v33 }
 0x226   : > { %v11628_v62 = vadd.f32 %v2842_v29, %v2794_v31 }
 0x227   : > { %v2748_v28 = vadd.f32 %v2747_v34, %v2699_v58  ;;  %2893 = vmatmul.bf16.gmra.mxu0 %v11009_v60  ;;  %2942 = vmatmul.bf16.gmra.mxu1 %v11011_v2  ;;  %v8216_v58 = vor.u32 %v9484_v0, %v8215_v22 }
 0x228   : > { %2991 = vmatmul.bf16.gmra.mxu2 %v11013_v3  ;;  %3243 = vmatpush.bf16.msrb.mxu0 %v7832_v47  ;;  %v7959_v3 = vld [vmem:[%s14357_s2 + $0x5c8] sm:$0xf] }
 0x229   : > { %3040 = vmatmul.bf16.gmra.mxu3 %v11016_v20  ;;  %3341 = vmatpush.bf16.msrb.mxu2 %v8088_v55 }
 0x22a   : > { %3390 = vmatpush.bf16.msrb.mxu3 %v8216_v58  ;;  %v9384_v58 = vld [vmem:[%s14357_s2 + $0x4b4] sm:$0xf0] }
 0x22b   : > { %v2796_v59 = vpop.f32.mrf.mxu2 }
 0x22c   : > { %v2797_v36 = vadd.f32 %v2796_v59, %v2748_v28  ;;  %v2845_v31 = vpop.f32.mrf.mxu3  ;;  %v2700_v29 = vpop.f32.mrf.mxu0  ;;  %v9420_v28 = vld [vmem:[%s14357_s2 + $0x5d4] sm:$0xf0] }
 0x22d   : > { %v2701_v34 = vadd.f32 %v2700_v29, %v11379_v5  ;;  %v2749_v21 = vpop.f32.mrf.mxu1  ;;  %v7960_v33 = vor.u32 %v9420_v28, %v7959_v3  ;;  %v9448_v3 = vld [vmem:[%s14357_s2 + $0x6b4] sm:$0xf0] }
 0x22e   : > { %v11653_v61 = vadd.f32 %v2845_v31, %v2797_v36 }
 0x22f   : > { %v2750_v20 = vadd.f32 %v2749_v21, %v2701_v34  ;;  %3292 = vmatpush.bf16.msrb.mxu1 %v7960_v33  ;;  %v8199_v34 = vld [vmem:[%s14357_s2 + $0x7a8] sm:$0xf]  ;;  %v9480_v21 = vld [vmem:[%s14357_s2 + $0x7b4] sm:$0xf0] }
 0x233   : > { %v2798_v59 = vpop.f32.mrf.mxu2 }
 0x234   : > { %v2799_v32 = vadd.f32 %v2798_v59, %v2750_v20  ;;  %v2847_v22 = vpop.f32.mrf.mxu3  ;;  %v2859_v5 = vpop.f32.mrf.mxu0  ;;  %v8071_v20 = vld [vmem:[%s14357_s2 + $0x6a8] sm:$0xf] }
 0x235   : > { %v2860_v55 = vadd.f32 %v2859_v5, %v11415_v19  ;;  %v2908_v0 = vpop.f32.mrf.mxu1  ;;  %v7815_v19 = vld [vmem:[%s14357_s2 + $0x4a8] sm:$0xf]  ;;  %v8072_v47 = vor.u32 %v9448_v3, %v8071_v20 }
 0x236   : > { %v11662_v36 = vadd.f32 %v2847_v22, %v2799_v32  ;;  %v7816_v32 = vor.u32 %v9384_v58, %v7815_v19  ;;  %v8200_v22 = vor.u32 %v9480_v21, %v8199_v34  ;;  %v7943_v3 = vld [vmem:[%s14357_s2 + $0x5a8] sm:$0xf] }
 0x237   : > { %v2909_v31 = vadd.f32 %v2908_v0, %v2860_v55  ;;  %3054 = vmatmul.bf16.vlgmr.msra.gmra.mxu0 %v10280_v48  ;;  %3103 = vmatmul.bf16.vlgmr.msra.gmra.mxu1 %v10291_v53 }
 0x238   : > { %3152 = vmatmul.bf16.vlgmr.msra.gmra.mxu2 %v10293_v54  ;;  %3244 = vmatpush.bf16.msrb.mxu0 %v7816_v32 }
 0x239   : > { %3201 = vmatmul.bf16.vlgmr.msra.gmra.mxu3 %v10301_v57  ;;  %3342 = vmatpush.bf16.msrb.mxu2 %v8072_v47 }
 0x23a   : > { %3391 = vmatpush.bf16.msrb.mxu3 %v8200_v22  ;;  %v8055_v22 = vld [vmem:[%s14357_s2 + $0x688] sm:$0xf] }
 0x23b   : > { %v2957_v29 = vpop.f32.mrf.mxu2 }
 0x23c   : > { %v2958_v28 = vadd.f32 %v2957_v29, %v2909_v31  ;;  %v3006_v59 = vpop.f32.mrf.mxu3  ;;  %v2861_v33 = vpop.f32.mrf.mxu0  ;;  %v9416_v31 = vld [vmem:[%s14357_s2 + $0x5b4] sm:$0xf0] }
 0x23d   : > { %v2862_v5 = vadd.f32 %v2861_v33, %v11424_v56  ;;  %v2910_v55 = vpop.f32.mrf.mxu1  ;;  %v7944_v19 = vor.u32 %v9416_v31, %v7943_v3  ;;  %v7799_v3 = vld [vmem:[%s14357_s2 + $0x488] sm:$0xf]  ;;  %v9380_v31 = vld [vmem:[%s14357_s2 + $0x494] sm:$0xf0] }
 0x23e   : > { %v11687_v0 = vadd.f32 %v3006_v59, %v2958_v28 }
 0x23f   : > { %v2911_v20 = vadd.f32 %v2910_v55, %v2862_v5  ;;  %3293 = vmatpush.bf16.msrb.mxu1 %v7944_v19  ;;  %v9444_v5 = vld [vmem:[%s14357_s2 + $0x694] sm:$0xf0] }
 0x240   : > { %14744 = vst [vmem:[#allocation68_spill] sm:$0xff] %v11687_v0  ;;  %v14476_v33 = vmax.f32 %v11687_v0, 0.0  ;;  %v14775_v0 = vld [vmem:[#allocation21_spill] sm:$0xff] }
 0x243   : > { %v2959_v29 = vpop.f32.mrf.mxu2 }
 0x244   : > { %v2960_v58 = vadd.f32 %v2959_v29, %v2911_v20  ;;  %v3008_v34 = vpop.f32.mrf.mxu3  ;;  %v2864_v56 = vpop.f32.mrf.mxu0  ;;  %v8056_v20 = vor.u32 %v9444_v5, %v8055_v22  ;;  %v8183_v29 = vld [vmem:[%s14357_s2 + $0x788] sm:$0xf] }
 0x245   : > { %v2865_v47 = vadd.f32 %v2864_v56, %v11449_v30  ;;  %v2913_v21 = vpop.f32.mrf.mxu1  ;;  %v7800_v56 = vor.u32 %v9380_v31, %v7799_v3 }
 0x246   : > { %v11696_v28 = vadd.f32 %v3008_v34, %v2960_v58  ;;  %3343 = vmatpush.bf16.msrb.mxu2 %v8056_v20 }
 0x247   : > { %v2914_v59 = vadd.f32 %v2913_v21, %v2865_v47  ;;  %3059 = vmatmul.bf16.gmra.mxu0 %v10351_v24  ;;  %3108 = vmatmul.bf16.gmra.mxu1 %v10353_v25  ;;  %v9476_v47 = vld [vmem:[%s14357_s2 + $0x794] sm:$0xf0] }
 0x248   : > { %14745 = vst [vmem:[#allocation69_spill] sm:$0xff] %v11696_v28  ;;  %v14475_v32 = vmax.f32 %v11696_v28, 0.0  ;;  %3157 = vmatmul.bf16.gmra.mxu2 %v10355_v26  ;;  %v8184_v5 = vor.u32 %v9476_v47, %v8183_v29  ;;  %3245 = vmatpush.bf16.msrb.mxu0 %v7800_v56 }
 0x249   : > { %3206 = vmatmul.bf16.gmra.mxu3 %v10357_v27 }
 0x24a   : > { %v11708_v30 = vpack.c.bf16 %v14475_v32, %v14476_v33  ;;  %3392 = vmatpush.bf16.msrb.mxu3 %v8184_v5  ;;  %v7783_v5 = vld [vmem:[%s14357_s2 + $0x468] sm:$0xf] }
 0x24b   : > { %v2962_v55 = vpop.f32.mrf.mxu2 }
 0x24c   : > { %14746 = vst [vmem:[#allocation70_spill] sm:$0xff] %v11708_v30  ;;  %v2963_v19 = vadd.f32 %v2962_v55, %v2914_v59  ;;  %v3011_v58 = vpop.f32.mrf.mxu3  ;;  %v2866_v34 = vpop.f32.mrf.mxu0  ;;  %v7927_v59 = vld [vmem:[%s14357_s2 + $0x588] sm:$0xf]  ;;  %v9412_v55 = vld [vmem:[%s14357_s2 + $0x594] sm:$0xf0] }
 0x24d   : > { %v2867_v21 = vadd.f32 %v2866_v34, %v11458_v35  ;;  %v2915_v22 = vpop.f32.mrf.mxu1  ;;  %v7928_v31 = vor.u32 %v9412_v55, %v7927_v59  ;;  %v9376_v59 = vld [vmem:[%s14357_s2 + $0x474] sm:$0xf0]  ;;  %v8167_v55 = vld [vmem:[%s14357_s2 + $0x768] sm:$0xf] }
 0x24e   : > { %v11729_v32 = vadd.f32 %v3011_v58, %v2963_v19  ;;  %v14781_v30 = vld [vmem:[#allocation27_spill] sm:$0xff] }
 0x24f   : > { %v2916_v33 = vadd.f32 %v2915_v22, %v2867_v21  ;;  %3294 = vmatpush.bf16.msrb.mxu1 %v7928_v31 }
 0x250   : > { %14747 = vst [vmem:[#allocation71_spill] sm:$0xff] %v11729_v32  ;;  %v14479_v56 = vmax.f32 %v11729_v32, 0.0  ;;  %v14774_v32 = vld [vmem:[#allocation20_spill] sm:$0xff] }
 0x253   : > { %v2964_v3 = vpop.f32.mrf.mxu2 }
 0x254   : > { %v2965_v28 = vadd.f32 %v2964_v3, %v2916_v33  ;;  %v3013_v35 = vpop.f32.mrf.mxu3  ;;  %v2869_v34 = vpop.f32.mrf.mxu0  ;;  %v9440_v33 = vld [vmem:[%s14357_s2 + $0x674] sm:$0xf0] }
 0x255   : > { %v2870_v20 = vadd.f32 %v2869_v34, %v11483_v1  ;;  %v2918_v29 = vpop.f32.mrf.mxu1  ;;  %v7784_v34 = vor.u32 %v9376_v59, %v7783_v5 }
 0x256   : > { %v11738_v19 = vadd.f32 %v3013_v35, %v2965_v28  ;;  %v8039_v28 = vld [vmem:[%s14357_s2 + $0x668] sm:$0xf] }
 0x257   : > { %v2919_v58 = vadd.f32 %v2918_v29, %v2870_v20  ;;  %3064 = vmatmul.bf16.gmra.mxu0 %v10395_v49  ;;  %3113 = vmatmul.bf16.gmra.mxu1 %v10397_v50  ;;  %v8040_v22 = vor.u32 %v9440_v33, %v8039_v28  ;;  %v9472_v20 = vld [vmem:[%s14357_s2 + $0x774] sm:$0xf0] }
 0x258   : > { %14748 = vst [vmem:[#allocation72_spill] sm:$0xff] %v11738_v19  ;;  %v14478_v47 = vmax.f32 %v11738_v19, 0.0  ;;  %3162 = vmatmul.bf16.gmra.mxu2 %v10399_v51  ;;  %v8168_v33 = vor.u32 %v9472_v20, %v8167_v55  ;;  %3246 = vmatpush.bf16.msrb.mxu0 %v7784_v34 }
 0x259   : > { %3211 = vmatmul.bf16.gmra.mxu3 %v10401_v52  ;;  %3344 = vmatpush.bf16.msrb.mxu2 %v8040_v22 }
 0x25a   : > { %v11750_v1 = vpack.c.bf16 %v14478_v47, %v14479_v56  ;;  %3393 = vmatpush.bf16.msrb.mxu3 %v8168_v33  ;;  %v7767_v33 = vld [vmem:[%s14357_s2 + $0x448] sm:$0xf] }
 0x25b   : > { %v2967_v21 = vpop.f32.mrf.mxu2 }
 0x25c   : > { %14749 = vst [vmem:[#allocation73_spill] sm:$0xff] %v11750_v1  ;;  %v2968_v3 = vadd.f32 %v2967_v21, %v2919_v58  ;;  %v3016_v31 = vpop.f32.mrf.mxu3  ;;  %v2871_v35 = vpop.f32.mrf.mxu0  ;;  %v7911_v58 = vld [vmem:[%s14357_s2 + $0x568] sm:$0xf]  ;;  %v9408_v21 = vld [vmem:[%s14357_s2 + $0x574] sm:$0xf0]  ;;  %v14780_v1 = vld [vmem:[#allocation26_spill] sm:$0xff] }
 0x25d   : > { %v2872_v29 = vadd.f32 %v2871_v35, %v11492_v38  ;;  %v2920_v28 = vpop.f32.mrf.mxu1  ;;  %v7912_v59 = vor.u32 %v9408_v21, %v7911_v58  ;;  %v9372_v58 = vld [vmem:[%s14357_s2 + $0x454] sm:$0xf0]  ;;  %v8151_v21 = vld [vmem:[%s14357_s2 + $0x748] sm:$0xf] }
 0x25e   : > { %v11771_v47 = vadd.f32 %v3016_v31, %v2968_v3 }
 0x25f   : > { %v2921_v56 = vadd.f32 %v2920_v28, %v2872_v29  ;;  %3295 = vmatpush.bf16.msrb.mxu1 %v7912_v59 }
 0x260   : > { %14750 = vst [vmem:[#allocation74_spill] sm:$0xff] %v11771_v47  ;;  %v14482_v34 = vmax.f32 %v11771_v47, 0.0 }
 0x263   : > { %v2969_v5 = vpop.f32.mrf.mxu2 }
 0x264   : > { %v2970_v19 = vadd.f32 %v2969_v5, %v2921_v56  ;;  %v3018_v38 = vpop.f32.mrf.mxu3  ;;  %v2874_v35 = vpop.f32.mrf.mxu0  ;;  %v9436_v56 = vld [vmem:[%s14357_s2 + $0x654] sm:$0xf0] }
 0x265   : > { %v2875_v22 = vadd.f32 %v2874_v35, %v11517_v7  ;;  %v2923_v55 = vpop.f32.mrf.mxu1  ;;  %v7768_v35 = vor.u32 %v9372_v58, %v7767_v33 }
 0x266   : > { %v11780_v3 = vadd.f32 %v3018_v38, %v2970_v19  ;;  %v8023_v19 = vld [vmem:[%s14357_s2 + $0x648] sm:$0xf] }
 0x267   : > { %v2924_v31 = vadd.f32 %v2923_v55, %v2875_v22  ;;  %3069 = vmatmul.bf16.gmra.mxu0 %v10439_v12  ;;  %3118 = vmatmul.bf16.gmra.mxu1 %v10441_v13  ;;  %v8024_v28 = vor.u32 %v9436_v56, %v8023_v19  ;;  %v9468_v22 = vld [vmem:[%s14357_s2 + $0x754] sm:$0xf0] }
 0x268   : > { %14751 = vst [vmem:[#allocation75_spill] sm:$0xff] %v11780_v3  ;;  %v14481_v20 = vmax.f32 %v11780_v3, 0.0  ;;  %3167 = vmatmul.bf16.gmra.mxu2 %v10443_v14  ;;  %v8152_v56 = vor.u32 %v9468_v22, %v8151_v21  ;;  %3247 = vmatpush.bf16.msrb.mxu0 %v7768_v35 }
 0x269   : > { %3216 = vmatmul.bf16.gmra.mxu3 %v10445_v15  ;;  %3345 = vmatpush.bf16.msrb.mxu2 %v8024_v28 }
 0x26a   : > { %v11792_v7 = vpack.c.bf16 %v14481_v20, %v14482_v34  ;;  %3394 = vmatpush.bf16.msrb.mxu3 %v8152_v56  ;;  %v7751_v56 = vld [vmem:[%s14357_s2 + $0x428] sm:$0xf] }
 0x26b   : > { %v2972_v29 = vpop.f32.mrf.mxu2 }
 0x26c   : > { %14752 = vst [vmem:[#allocation76_spill] sm:$0xff] %v11792_v7  ;;  %v2973_v5 = vadd.f32 %v2972_v29, %v2924_v31  ;;  %v3021_v59 = vpop.f32.mrf.mxu3  ;;  %v2876_v38 = vpop.f32.mrf.mxu0  ;;  %v7895_v31 = vld [vmem:[%s14357_s2 + $0x548] sm:$0xf]  ;;  %v9404_v29 = vld [vmem:[%s14357_s2 + $0x554] sm:$0xf0] }
 0x26d   : > { %v2877_v55 = vadd.f32 %v2876_v38, %v11526_v6  ;;  %v2925_v19 = vpop.f32.mrf.mxu1  ;;  %v7896_v58 = vor.u32 %v9404_v29, %v7895_v31  ;;  %v9368_v31 = vld [vmem:[%s14357_s2 + $0x434] sm:$0xf0]  ;;  %v8135_v29 = vld [vmem:[%s14357_s2 + $0x728] sm:$0xf] }
 0x26e   : > { %v11813_v20 = vadd.f32 %v3021_v59, %v2973_v5  ;;  %v14779_v7 = vld [vmem:[#allocation25_spill] sm:$0xff] }
 0x26f   : > { %v2926_v34 = vadd.f32 %v2925_v19, %v2877_v55  ;;  %3296 = vmatpush.bf16.msrb.mxu1 %v7896_v58 }
 0x270   : > { %14753 = vst [vmem:[#allocation77_spill] sm:$0xff] %v11813_v20  ;;  %v14485_v35 = vmax.f32 %v11813_v20, 0.0  ;;  %v7689_v20 = vld [vmem:[%s14357_s2 + $0x3b8] sm:$0xf0] }
 0x273   : > { %v2974_v33 = vpop.f32.mrf.mxu2 }
 0x274   : > { %v2975_v3 = vadd.f32 %v2974_v33, %v2926_v34  ;;  %v3023_v6 = vpop.f32.mrf.mxu3  ;;  %v2879_v38 = vpop.f32.mrf.mxu0  ;;  %v9432_v34 = vld [vmem:[%s14357_s2 + $0x634] sm:$0xf0] }
 0x275   : > { %v2880_v28 = vadd.f32 %v2879_v38, %v11551_v39  ;;  %v2928_v21 = vpop.f32.mrf.mxu1  ;;  %v7752_v38 = vor.u32 %v9368_v31, %v7751_v56 }
 0x276   : > { %v11822_v5 = vadd.f32 %v3023_v6, %v2975_v3  ;;  %v8007_v3 = vld [vmem:[%s14357_s2 + $0x628] sm:$0xf] }
 0x277   : > { %v2929_v59 = vadd.f32 %v2928_v21, %v2880_v28  ;;  %3074 = vmatmul.bf16.gmra.mxu0 %v10483_v40  ;;  %3123 = vmatmul.bf16.gmra.mxu1 %v10485_v41  ;;  %v8008_v19 = vor.u32 %v9432_v34, %v8007_v3  ;;  %v9464_v28 = vld [vmem:[%s14357_s2 + $0x734] sm:$0xf0] }
 0x278   : > { %14754 = vst [vmem:[#allocation78_spill] sm:$0xff] %v11822_v5  ;;  %v14484_v22 = vmax.f32 %v11822_v5, 0.0  ;;  %3172 = vmatmul.bf16.gmra.mxu2 %v10487_v42  ;;  %v8136_v34 = vor.u32 %v9464_v28, %v8135_v29  ;;  %3248 = vmatpush.bf16.msrb.mxu0 %v7752_v38 }
 0x279   : > { %3221 = vmatmul.bf16.gmra.mxu3 %v10489_v43  ;;  %3346 = vmatpush.bf16.msrb.mxu2 %v8008_v19 }
 0x27a   : > { %v11834_v39 = vpack.c.bf16 %v14484_v22, %v14485_v35  ;;  %3395 = vmatpush.bf16.msrb.mxu3 %v8136_v34  ;;  %v7735_v34 = vld [vmem:[%s14357_s2 + $0x408] sm:$0xf] }
 0x27b   : > { %v2977_v55 = vpop.f32.mrf.mxu2 }
 0x27c   : > { %14755 = vst [vmem:[#allocation79_spill] sm:$0xff] %v11834_v39  ;;  %v2978_v33 = vadd.f32 %v2977_v55, %v2929_v59  ;;  %v3026_v58 = vpop.f32.mrf.mxu3  ;;  %v2881_v6 = vpop.f32.mrf.mxu0  ;;  %v7879_v59 = vld [vmem:[%s14357_s2 + $0x528] sm:$0xf]  ;;  %v9400_v55 = vld [vmem:[%s14357_s2 + $0x534] sm:$0xf0] }
 0x27d   : > { %v2882_v21 = vadd.f32 %v2881_v6, %v11560_v16  ;;  %v2930_v3 = vpop.f32.mrf.mxu1  ;;  %v7880_v31 = vor.u32 %v9400_v55, %v7879_v59  ;;  %v9364_v59 = vld [vmem:[%s14357_s2 + $0x414] sm:$0xf0]  ;;  %v8119_v55 = vld [vmem:[%s14357_s2 + $0x708] sm:$0xf]  ;;  %v9282_v39 = vld [vmem:[%s14357_s2 + $0x18c] sm:$0xf] }
 0x27e   : > { %v11855_v22 = vadd.f32 %v3026_v58, %v2978_v33 }
 0x27f   : > { %v2931_v35 = vadd.f32 %v2930_v3, %v2882_v21  ;;  %3297 = vmatpush.bf16.msrb.mxu1 %v7880_v31 }
 0x280   : > { %14756 = vst [vmem:[#allocation80_spill] sm:$0xff] %v11855_v22  ;;  %v14488_v38 = vmax.f32 %v11855_v22, 0.0 }
 0x283   : > { %v2979_v56 = vpop.f32.mrf.mxu2 }
 0x284   : > { %v2980_v5 = vadd.f32 %v2979_v56, %v2931_v35  ;;  %v3028_v16 = vpop.f32.mrf.mxu3  ;;  %v2884_v6 = vpop.f32.mrf.mxu0  ;;  %v9428_v35 = vld [vmem:[%s14357_s2 + $0x614] sm:$0xf0] }
 0x285   : > { %v2885_v19 = vadd.f32 %v2884_v6, %v11585_v46  ;;  %v2933_v29 = vpop.f32.mrf.mxu1  ;;  %v7736_v6 = vor.u32 %v9364_v59, %v7735_v34 }
 0x286   : > { %v11864_v33 = vadd.f32 %v3028_v16, %v2980_v5  ;;  %v7991_v5 = vld [vmem:[%s14357_s2 + $0x608] sm:$0xf] }
 0x287   : > { %v2934_v58 = vadd.f32 %v2933_v29, %v2885_v19  ;;  %3079 = vmatmul.bf16.gmra.mxu0 %v10527_v8  ;;  %3128 = vmatmul.bf16.gmra.mxu1 %v10529_v9  ;;  %v7992_v3 = vor.u32 %v9428_v35, %v7991_v5  ;;  %v9460_v19 = vld [vmem:[%s14357_s2 + $0x714] sm:$0xf0] }
 0x288   : > { %14757 = vst [vmem:[#allocation81_spill] sm:$0xff] %v11864_v33  ;;  %v14487_v28 = vmax.f32 %v11864_v33, 0.0  ;;  %3177 = vmatmul.bf16.gmra.mxu2 %v10531_v10  ;;  %v8120_v35 = vor.u32 %v9460_v19, %v8119_v55  ;;  %3249 = vmatpush.bf16.msrb.mxu0 %v7736_v6 }
 0x289   : > { %3226 = vmatmul.bf16.gmra.mxu3 %v10533_v11  ;;  %3347 = vmatpush.bf16.msrb.mxu2 %v7992_v3 }
 0x28a   : > { %v11876_v46 = vpack.c.bf16 %v14487_v28, %v14488_v38  ;;  %3396 = vmatpush.bf16.msrb.mxu3 %v8120_v35  ;;  %v9262_v35 = vld [vmem:[%s14357_s2 + $0xec] sm:$0xf] }
 0x28b   : > { %v2982_v21 = vpop.f32.mrf.mxu2 }
 0x28c   : > { %14758 = vst [vmem:[#allocation82_spill] sm:$0xff] %v11876_v46  ;;  %v2983_v56 = vadd.f32 %v2982_v21, %v2934_v58  ;;  %v3031_v31 = vpop.f32.mrf.mxu3  ;;  %v2886_v16 = vpop.f32.mrf.mxu0  ;;  %v7863_v58 = vld [vmem:[%s14357_s2 + $0x508] sm:$0xf]  ;;  %v9396_v21 = vld [vmem:[%s14357_s2 + $0x514] sm:$0xf0] }
 0x28d   : > { %v2887_v29 = vadd.f32 %v2886_v16, %v11594_v37  ;;  %v2935_v5 = vpop.f32.mrf.mxu1  ;;  %v7864_v59 = vor.u32 %v9396_v21, %v7863_v58  ;;  %v7337_v58 = vld [vmem:[%s14357_s2 + $0xf8] sm:$0xf0]  ;;  %v9358_v21 = vld [vmem:[%s14357_s2 + $0x3ec] sm:$0xf] }
 0x28e   : > { %v11897_v28 = vadd.f32 %v3031_v31, %v2983_v56 }
 0x28f   : > { %v2936_v38 = vadd.f32 %v2935_v5, %v2887_v29  ;;  %3298 = vmatpush.bf16.msrb.mxu1 %v7864_v59 }
 0x290   : > { %14759 = vst [vmem:[#allocation83_spill] sm:$0xff] %v11897_v28  ;;  %v14491_v6 = vmax.f32 %v11897_v28, 0.0  ;;  %v14769_v28 = vld [vmem:[#allocation16_spill] sm:$0xff] }
 0x293   : > { %v2984_v34 = vpop.f32.mrf.mxu2 }
 0x294   : > { %v2985_v33 = vadd.f32 %v2984_v34, %v2936_v38  ;;  %v3033_v37 = vpop.f32.mrf.mxu3  ;;  %v2889_v16 = vpop.f32.mrf.mxu0  ;;  %v7593_v38 = vld [vmem:[%s14357_s2 + $0x2f8] sm:$0xf0] }
 0x295   : > { %v2890_v3 = vadd.f32 %v2889_v16, %v11619_v23  ;;  %v2938_v55 = vpop.f32.mrf.mxu1  ;;  %v7340_v16 = vor.u32 %v9262_v35, %v7337_v58 }
 0x296   : > { %v11906_v56 = vadd.f32 %v3033_v37, %v2985_v33  ;;  %v9326_v33 = vld [vmem:[%s14357_s2 + $0x2ec] sm:$0xf] }
 0x297   : > { %v2939_v31 = vadd.f32 %v2938_v55, %v2890_v3  ;;  %3084 = vmatmul.bf16.gmra.mxu0 %v10571_v44  ;;  %3133 = vmatmul.bf16.gmra.mxu1 %v10573_v45  ;;  %v7596_v5 = vor.u32 %v9326_v33, %v7593_v38  ;;  %v7721_v3 = vld [vmem:[%s14357_s2 + $0x3f8] sm:$0xf0] }
 0x298   : > { %14760 = vst [vmem:[#allocation84_spill] sm:$0xff] %v11906_v56  ;;  %v14490_v19 = vmax.f32 %v11906_v56, 0.0  ;;  %3182 = vmatmul.bf16.gmra.mxu2 %v14703_v4  ;;  %v7724_v38 = vor.u32 %v9358_v21, %v7721_v3  ;;  %3438 = vmatpush.bf16.msra.mxu0 %v7340_v16 }
 0x299   : > { %3231 = vmatmul.bf16.gmra.mxu3 %v14704_v63  ;;  %3536 = vmatpush.bf16.msra.mxu2 %v7596_v5 }
 0x29a   : > { %v11918_v23 = vpack.c.bf16 %v14490_v19, %v14491_v6  ;;  %v9294_v6 = vld [vmem:[%s14357_s2 + $0x1ec] sm:$0xf]  ;;  %3585 = vmatpush.bf16.msra.mxu3 %v7724_v38 }
 0x29b   : > { %v2987_v29 = vpop.f32.mrf.mxu2  ;;  %v9258_v38 = vld [vmem:[%s14357_s2 + $0xcc] sm:$0xf] }
 0x29c   : > { %14761 = vst [vmem:[#allocation85_spill] sm:$0xff] %v11918_v23  ;;  %v2988_v34 = vadd.f32 %v2987_v29, %v2939_v31  ;;  %v3036_v59 = vpop.f32.mrf.mxu3  ;;  %v2891_v37 = vpop.f32.mrf.mxu0  ;;  %v7465_v31 = vld [vmem:[%s14357_s2 + $0x1f8] sm:$0xf0] }
 0x29d   : > { %v2892_v55 = vadd.f32 %v2891_v37, %v11628_v62  ;;  %v2940_v33 = vpop.f32.mrf.mxu1  ;;  %v7468_v35 = vor.u32 %v9294_v6, %v7465_v31  ;;  %v14764_v6 = vld [vmem:[#allocation14_spill] sm:$0xff] }
 0x29e   : > { %v11939_v19 = vadd.f32 %v3036_v59, %v2988_v34 }
 0x29f   : > { %v2941_v29 = vadd.f32 %v2940_v33, %v2892_v55  ;;  %3487 = vmatpush.bf16.msra.mxu1 %v7468_v35  ;;  %v14765_v55 = vld [vmem:[#allocation15_spill] sm:$0xff] }
 0x2a0   : > { %14762 = vst [vmem:[#allocation86_spill] sm:$0xff] %v11939_v19  ;;  %v14495_v3 = vmax.f32 %v11939_v19, 0.0  ;;  %v7577_v33 = vld [vmem:[%s14357_s2 + $0x2d8] sm:$0xf0]  ;;  %v9878_v19 = vld [vmem:[#allocation6] sm:$0xf] }
 0x2a1   : > { %v7321_v35 = vld [vmem:[%s14357_s2 + $0xd8] sm:$0xf0] }
 0x2a3   : > { %v2989_v58 = vpop.f32.mrf.mxu2 }
 0x2a4   : > { %v2990_v62 = vadd.f32 %v2989_v58, %v2941_v29  ;;  %v3038_v37 = vpop.f32.mrf.mxu3  ;;  %v2894_v5 = vpop.f32.mrf.mxu0  ;;  %v9354_v58 = vld [vmem:[%s14357_s2 + $0x3cc] sm:$0xf] }
 0x2a5   : > { %v2895_v21 = vadd.f32 %v2894_v5, %v11653_v61  ;;  %v2943_v34 = vpop.f32.mrf.mxu1  ;;  %v9322_v61 = vld [vmem:[%s14357_s2 + $0x2cc] sm:$0xf]  ;;  %v7705_v5 = vld [vmem:[%s14357_s2 + $0x3d8] sm:$0xf0] }
 0x2a6   : > { %v11948_v59 = vadd.f32 %v3038_v37, %v2990_v62  ;;  %v7580_v29 = vor.u32 %v9322_v61, %v7577_v33  ;;  %v7324_v37 = vor.u32 %v9258_v38, %v7321_v35  ;;  %v9290_v38 = vld [vmem:[%s14357_s2 + $0x1cc] sm:$0xf]  ;;  %v7449_v35 = vld [vmem:[%s14357_s2 + $0x1d8] sm:$0xf0] }
 0x2a7   : > { %v2944_v16 = vadd.f32 %v2943_v34, %v2895_v21  ;;  %3089 = vmatmul.bf16.gmra.mxu0 %v14708_v17  ;;  %3138 = vmatmul.bf16.gmra.mxu1 %v14709_v18 }
 0x2a8   : > { %14763 = vst [vmem:[#allocation87_spill] sm:$0xff] %v11948_v59  ;;  %v14494_v56 = vmax.f32 %v11948_v59, 0.0  ;;  %3187 = vmatmul.bf16.gmra.mxu2 %v14764_v6  ;;  %3439 = vmatpush.bf16.msra.mxu0 %v7324_v37 }
 0x2a9   : > { %3236 = vmatmul.bf16.gmra.mxu3 %v14765_v55  ;;  %3537 = vmatpush.bf16.msra.mxu2 %v7580_v29  ;;  %v11989_v29 = vperm.slane %v9878_v19, 2  ;;  %v14771_v19 = vld [vmem:[#allocation18_spill] sm:$0xff] }
 0x2aa   : > { %v11969_v31 = vpack.c.bf16 %v14494_v56, %v14495_v3  ;;  %v7708_v56 = vor.u32 %v9354_v58, %v7705_v5 }
 0x2ab   : > { %v2992_v62 = vpop.f32.mrf.mxu2 }
 0x2ac   : > { %14766 = vst [vmem:[#allocation14_spill] sm:$0xff] %v11969_v31  ;;  %v2993_v21 = vadd.f32 %v2992_v62, %v2944_v16  ;;  %v3041_v34 = vpop.f32.mrf.mxu3  ;;  %v2896_v59 = vpop.f32.mrf.mxu0  ;;  %3586 = vmatpush.bf16.msra.mxu3 %v7708_v56  ;;  %v7452_v62 = vor.u32 %v9290_v38, %v7449_v35  ;;  %v14772_v38 = vld [vmem:[#allocation19_spill] sm:$0xff]  ;;  %v9318_v35 = vld [vmem:[%s14357_s2 + $0x2ac] sm:$0xf] }
 0x2ad   : > { %v2897_v61 = vadd.f32 %v2896_v59, %v11662_v36  ;;  %v2945_v33 = vpop.f32.mrf.mxu1  ;;  %v14777_v31 = vld [vmem:[#allocation23_spill] sm:$0xff] }
 0x2ae   : > { %v11981_v3 = vadd.f32 %v3041_v34, %v2993_v21  ;;  %3488 = vmatpush.bf16.msra.mxu1 %v7452_v62  ;;  %v9254_v62 = vld [vmem:[%s14357_s2 + $0xac] sm:$0xf] }
 0x2af   : > { %v2946_v16 = vadd.f32 %v2945_v33, %v2897_v61  ;;  %v14770_v33 = vld [vmem:[#allocation17_spill] sm:$0xff] }
 0x2b0   : > { %14767 = vst [vmem:[#allocation15_spill] sm:$0xff] %v11981_v3  ;;  %v14504_v22 = vmax.f32 %v11981_v3, 0.0 }
 0x2b3   : > { %v2994_v36 = vpop.f32.mrf.mxu2 }
 0x2b4   : > { %v2995_v59 = vadd.f32 %v2994_v36, %v2946_v16  ;;  %v3043_v58 = vpop.f32.mrf.mxu3  ;;  %v3055_v37 = vpop.f32.mrf.mxu0  ;;  %v7561_v16 = vld [vmem:[%s14357_s2 + $0x2b8] sm:$0xf0] }
 0x2b5   : > { %v3056_v56 = vadd.f32 %v3055_v37, %v11989_v29  ;;  %v3104_v5 = vpop.f32.mrf.mxu1  ;;  %v9350_v37 = vld [vmem:[%s14357_s2 + $0x3ac] sm:$0xf] }
 0x2b6   : > { %v11992_v21 = vadd.f32 %v3043_v58, %v2995_v59  ;;  %v7564_v59 = vor.u32 %v9318_v35, %v7561_v16  ;;  %v7305_v58 = vld [vmem:[%s14357_s2 + $0xb8] sm:$0xf0] }
 0x2b7   : > { %v3105_v34 = vadd.f32 %v3104_v5, %v3056_v56  ;;  %3250 = vmatmul.bf16.vlgmr.msrb.gmra.mxu0 %v14769_v28  ;;  %3299 = vmatmul.bf16.vlgmr.msrb.gmra.mxu1 %v14770_v33  ;;  %v7308_v5 = vor.u32 %v9254_v62, %v7305_v58  ;;  %v9286_v62 = vld [vmem:[%s14357_s2 + $0x1ac] sm:$0xf]  ;;  %v7433_v58 = vld [vmem:[%s14357_s2 + $0x1b8] sm:$0xf0] }
 0x2b8   : > { %14768 = vst [vmem:[#allocation88_spill] sm:$0xff] %v11992_v21  ;;  %v14503_v61 = vmax.f32 %v11992_v21, 0.0  ;;  %3348 = vmatmul.bf16.vlgmr.msrb.gmra.mxu2 %v14771_v19  ;;  %v14793_v19 = vld [vmem:[#allocation39_spill] sm:$0xff]  ;;  %v14796_v33 = vld [vmem:[#allocation42_spill] sm:$0xff] }
 0x2b9   : > { %3397 = vmatmul.bf16.vlgmr.msrb.gmra.mxu3 %v14772_v38  ;;  %3538 = vmatpush.bf16.msra.mxu2 %v7564_v59  ;;  %v14792_v38 = vld [vmem:[#allocation38_spill] sm:$0xff]  ;;  %v14797_v28 = vld [vmem:[#allocation43_spill] sm:$0xff] }
 0x2ba   : > { %v12013_v36 = vpack.c.bf16 %v14503_v61, %v14504_v22  ;;  %v7692_v61 = vor.u32 %v9350_v37, %v7689_v20  ;;  %3440 = vmatpush.bf16.msra.mxu0 %v7308_v5 }
 0x2bb   : > { %v3153_v56 = vpop.f32.mrf.mxu2 }
 0x2bc   : > { %14773 = vst [vmem:[#allocation89_spill] sm:$0xff] %v12013_v36  ;;  %v3154_v3 = vadd.f32 %v3153_v56, %v3105_v34  ;;  %v3202_v47 = vpop.f32.mrf.mxu3  ;;  %v3057_v21 = vpop.f32.mrf.mxu0  ;;  %3587 = vmatpush.bf16.msra.mxu3 %v7692_v61  ;;  %v7436_v56 = vor.u32 %v9286_v62, %v7433_v58  ;;  %v14776_v36 = vld [vmem:[#allocation22_spill] sm:$0xff] }
 0x2bd   : > { %v3058_v35 = vadd.f32 %v3057_v21, %v11989_v29  ;;  %v3106_v16 = vpop.f32.mrf.mxu1  ;;  %v9250_v62 = vld [vmem:[%s14357_s2 + $0x8c] sm:$0xf] }
 0x2be   : > { %v12025_v22 = vadd.f32 %v3202_v47, %v3154_v3  ;;  %3489 = vmatpush.bf16.msra.mxu1 %v7436_v56  ;;  %v9346_v56 = vld [vmem:[%s14357_s2 + $0x38c] sm:$0xf] }
 0x2bf   : > { %v3107_v34 = vadd.f32 %v3106_v16, %v3058_v35  ;;  %v9314_v35 = vld [vmem:[%s14357_s2 + $0x28c] sm:$0xf]  ;;  %v7545_v16 = vld [vmem:[%s14357_s2 + $0x298] sm:$0xf0] }
 0x2c0   : > { %v7548_v58 = vor.u32 %v9314_v35, %v7545_v16 }
 0x2c2   : > { %3539 = vmatpush.bf16.msra.mxu2 %v7548_v58 }
 0x2c3   : > { %v3155_v59 = vpop.f32.mrf.mxu2 }
 0x2c4   : > { %v3156_v20 = vadd.f32 %v3155_v59, %v3107_v34  ;;  %v3204_v37 = vpop.f32.mrf.mxu3  ;;  %v3060_v21 = vpop.f32.mrf.mxu0  ;;  %v7289_v34 = vld [vmem:[%s14357_s2 + $0x98] sm:$0xf0] }
 0x2c5   : > { %v3061_v5 = vadd.f32 %v3060_v21, %v11989_v29  ;;  %v3109_v47 = vpop.f32.mrf.mxu1  ;;  %v7673_v59 = vld [vmem:[%s14357_s2 + $0x398] sm:$0xf0] }
 0x2c6   : > { %v12034_v3 = vadd.f32 %v3204_v37, %v3156_v20  ;;  %v7292_v37 = vor.u32 %v9250_v62, %v7289_v34  ;;  %v7676_v21 = vor.u32 %v9346_v56, %v7673_v59  ;;  %v7417_v62 = vld [vmem:[%s14357_s2 + $0x198] sm:$0xf0] }
 0x2c7   : > { %v3110_v61 = vadd.f32 %v3109_v47, %v3061_v5  ;;  %3255 = vmatmul.bf16.gmra.mxu0 %v14774_v32  ;;  %3304 = vmatmul.bf16.gmra.mxu1 %v14775_v0  ;;  %v14788_v0 = vld [vmem:[#allocation34_spill] sm:$0xff]  ;;  %v14789_v32 = vld [vmem:[#allocation35_spill] sm:$0xff] }
 0x2c8   : > { %3353 = vmatmul.bf16.gmra.mxu2 %v14776_v36  ;;  %3441 = vmatpush.bf16.msra.mxu0 %v7292_v37  ;;  %v14785_v36 = vld [vmem:[#allocation31_spill] sm:$0xff] }
 0x2c9   : > { %3402 = vmatmul.bf16.gmra.mxu3 %v14777_v31  ;;  %v14784_v31 = vld [vmem:[#allocation30_spill] sm:$0xff] }
 0x2ca   : > { %3588 = vmatpush.bf16.msra.mxu3 %v7676_v21 }
 0x2cb   : > { %v3158_v20 = vpop.f32.mrf.mxu2 }
 0x2cc   : > { %v3159_v5 = vadd.f32 %v3158_v20, %v3110_v61  ;;  %v3207_v47 = vpop.f32.mrf.mxu3  ;;  %v3062_v23 = vpop.f32.mrf.mxu0  ;;  %v7420_v61 = vor.u32 %v9282_v39, %v7417_v62  ;;  %v9310_v39 = vld [vmem:[%s14357_s2 + $0x26c] sm:$0xf] }
 0x2cd   : > { %v3063_v35 = vadd.f32 %v3062_v23, %v11989_v29  ;;  %v3111_v16 = vpop.f32.mrf.mxu1 }
 0x2ce   : > { %v12059_v46 = vadd.f32 %v3207_v47, %v3159_v5  ;;  %3490 = vmatpush.bf16.msra.mxu1 %v7420_v61  ;;  %v14778_v47 = vld [vmem:[#allocation24_spill] sm:$0xff]  ;;  %v9342_v61 = vld [vmem:[%s14357_s2 + $0x36c] sm:$0xf] }
 0x2cf   : > { %v3112_v34 = vadd.f32 %v3111_v16, %v3063_v35  ;;  %v7529_v35 = vld [vmem:[%s14357_s2 + $0x278] sm:$0xf0]  ;;  %v9246_v16 = vld [vmem:[%s14357_s2 + $0x6c] sm:$0xf] }
 0x2d0   : > { %v7532_v62 = vor.u32 %v9310_v39, %v7529_v35 }
 0x2d2   : > { %3540 = vmatpush.bf16.msra.mxu2 %v7532_v62 }
 0x2d3   : > { %v3160_v56 = vpop.f32.mrf.mxu2 }
 0x2d4   : > { %v3161_v58 = vadd.f32 %v3160_v56, %v3112_v34  ;;  %v3209_v59 = vpop.f32.mrf.mxu3  ;;  %v3065_v23 = vpop.f32.mrf.mxu0  ;;  %v7273_v34 = vld [vmem:[%s14357_s2 + $0x78] sm:$0xf0] }
 0x2d5   : > { %v3066_v20 = vadd.f32 %v3065_v23, %v11989_v29  ;;  %v3114_v37 = vpop.f32.mrf.mxu1  ;;  %v7657_v56 = vld [vmem:[%s14357_s2 + $0x378] sm:$0xf0] }
 0x2d6   : > { %v12068_v21 = vadd.f32 %v3209_v59, %v3161_v58  ;;  %v7276_v59 = vor.u32 %v9246_v16, %v7273_v34  ;;  %v7660_v23 = vor.u32 %v9342_v61, %v7657_v56  ;;  %v7401_v16 = vld [vmem:[%s14357_s2 + $0x178] sm:$0xf0] }
 0x2d7   : > { %v3115_v5 = vadd.f32 %v3114_v37, %v3066_v20  ;;  %3260 = vmatmul.bf16.gmra.mxu0 %v14778_v47  ;;  %3309 = vmatmul.bf16.gmra.mxu1 %v14779_v7  ;;  %v9278_v7 = vld [vmem:[%s14357_s2 + $0x16c] sm:$0xf] }
 0x2d8   : > { %3358 = vmatmul.bf16.gmra.mxu2 %v14780_v1  ;;  %3442 = vmatpush.bf16.msra.mxu0 %v7276_v59  ;;  %v14783_v47 = vld [vmem:[#allocation29_spill] sm:$0xff] }
 0x2d9   : > { %3407 = vmatmul.bf16.gmra.mxu3 %v14781_v30 }
 0x2da   : > { %3589 = vmatpush.bf16.msra.mxu3 %v7660_v23 }
 0x2db   : > { %v3163_v58 = vpop.f32.mrf.mxu2 }
 0x2dc   : > { %v3164_v20 = vadd.f32 %v3163_v58, %v3115_v5  ;;  %v3212_v37 = vpop.f32.mrf.mxu3  ;;  %v3067_v30 = vpop.f32.mrf.mxu0  ;;  %v7404_v5 = vor.u32 %v9278_v7, %v7401_v16  ;;  %v9306_v7 = vld [vmem:[%s14357_s2 + $0x24c] sm:$0xf] }
 0x2dd   : > { %v3068_v39 = vadd.f32 %v3067_v30, %v11989_v29  ;;  %v3116_v35 = vpop.f32.mrf.mxu1 }
 0x2de   : > { %v12093_v1 = vadd.f32 %v3212_v37, %v3164_v20  ;;  %3491 = vmatpush.bf16.msra.mxu1 %v7404_v5  ;;  %v14782_v37 = vld [vmem:[#allocation28_spill] sm:$0xff]  ;;  %v9338_v5 = vld [vmem:[%s14357_s2 + $0x34c] sm:$0xf] }
 0x2df   : > { %v3117_v34 = vadd.f32 %v3116_v35, %v3068_v39  ;;  %v7513_v39 = vld [vmem:[%s14357_s2 + $0x258] sm:$0xf0]  ;;  %v9242_v35 = vld [vmem:[%s14357_s2 + $0x4c] sm:$0xf] }
 0x2e0   : > { %v7516_v16 = vor.u32 %v9306_v7, %v7513_v39 }
 0x2e2   : > { %3541 = vmatpush.bf16.msra.mxu2 %v7516_v16 }
 0x2e3   : > { %v3165_v61 = vpop.f32.mrf.mxu2 }
 0x2e4   : > { %v3166_v62 = vadd.f32 %v3165_v61, %v3117_v34  ;;  %v3214_v56 = vpop.f32.mrf.mxu3  ;;  %v3070_v30 = vpop.f32.mrf.mxu0  ;;  %v7257_v34 = vld [vmem:[%s14357_s2 + $0x58] sm:$0xf0] }
 0x2e5   : > { %v3071_v58 = vadd.f32 %v3070_v30, %v11989_v29  ;;  %v3119_v59 = vpop.f32.mrf.mxu1  ;;  %v7641_v61 = vld [vmem:[%s14357_s2 + $0x358] sm:$0xf0] }
 0x2e6   : > { %v12102_v23 = vadd.f32 %v3214_v56, %v3166_v62  ;;  %v7260_v56 = vor.u32 %v9242_v35, %v7257_v34  ;;  %v7644_v30 = vor.u32 %v9338_v5, %v7641_v61  ;;  %v7385_v35 = vld [vmem:[%s14357_s2 + $0x158] sm:$0xf0] }
 0x2e7   : > { %v3120_v20 = vadd.f32 %v3119_v59, %v3071_v58  ;;  %3265 = vmatmul.bf16.gmra.mxu0 %v14782_v37  ;;  %3314 = vmatmul.bf16.gmra.mxu1 %v14783_v47  ;;  %v9274_v47 = vld [vmem:[%s14357_s2 + $0x14c] sm:$0xf] }
 0x2e8   : > { %3363 = vmatmul.bf16.gmra.mxu2 %v14784_v31  ;;  %3443 = vmatpush.bf16.msra.mxu0 %v7260_v56  ;;  %v14787_v37 = vld [vmem:[#allocation33_spill] sm:$0xff] }
 0x2e9   : > { %3412 = vmatmul.bf16.gmra.mxu3 %v14785_v36 }
 0x2ea   : > { %3590 = vmatpush.bf16.msra.mxu3 %v7644_v30 }
 0x2eb   : > { %v3168_v62 = vpop.f32.mrf.mxu2 }
 0x2ec   : > { %v3169_v58 = vadd.f32 %v3168_v62, %v3120_v20  ;;  %v3217_v59 = vpop.f32.mrf.mxu3  ;;  %v3072_v36 = vpop.f32.mrf.mxu0  ;;  %v7388_v20 = vor.u32 %v9274_v47, %v7385_v35  ;;  %v9302_v47 = vld [vmem:[%s14357_s2 + $0x22c] sm:$0xf] }
 0x2ed   : > { %v3073_v7 = vadd.f32 %v3072_v36, %v11989_v29  ;;  %v3121_v39 = vpop.f32.mrf.mxu1 }
 0x2ee   : > { %v12127_v31 = vadd.f32 %v3217_v59, %v3169_v58  ;;  %3492 = vmatpush.bf16.msra.mxu1 %v7388_v20  ;;  %v14786_v59 = vld [vmem:[#allocation32_spill] sm:$0xff]  ;;  %v9334_v20 = vld [vmem:[%s14357_s2 + $0x32c] sm:$0xf] }
 0x2ef   : > { %v3122_v34 = vadd.f32 %v3121_v39, %v3073_v7  ;;  %v7497_v7 = vld [vmem:[%s14357_s2 + $0x238] sm:$0xf0]  ;;  %v9238_v39 = vld [vmem:[%s14357_s2 + $0x2c] sm:$0xf] }
 0x2f0   : > { %v7500_v35 = vor.u32 %v9302_v47, %v7497_v7 }
 0x2f2   : > { %3542 = vmatpush.bf16.msra.mxu2 %v7500_v35 }
 0x2f3   : > { %v3170_v5 = vpop.f32.mrf.mxu2 }
 0x2f4   : > { %v3171_v16 = vadd.f32 %v3170_v5, %v3122_v34  ;;  %v3219_v61 = vpop.f32.mrf.mxu3  ;;  %v3075_v36 = vpop.f32.mrf.mxu0  ;;  %v7241_v34 = vld [vmem:[%s14357_s2 + $0x38] sm:$0xf0] }
 0x2f5   : > { %v3076_v62 = vadd.f32 %v3075_v36, %v11989_v29  ;;  %v3124_v56 = vpop.f32.mrf.mxu1  ;;  %v7625_v5 = vld [vmem:[%s14357_s2 + $0x338] sm:$0xf0] }
 0x2f6   : > { %v12136_v30 = vadd.f32 %v3219_v61, %v3171_v16  ;;  %v7244_v61 = vor.u32 %v9238_v39, %v7241_v34  ;;  %v7628_v36 = vor.u32 %v9334_v20, %v7625_v5  ;;  %v7369_v39 = vld [vmem:[%s14357_s2 + $0x138] sm:$0xf0] }
 0x2f7   : > { %v3125_v58 = vadd.f32 %v3124_v56, %v3076_v62  ;;  %3270 = vmatmul.bf16.gmra.mxu0 %v14786_v59  ;;  %3319 = vmatmul.bf16.gmra.mxu1 %v14787_v37  ;;  %v9270_v37 = vld [vmem:[%s14357_s2 + $0x12c] sm:$0xf] }
 0x2f8   : > { %3368 = vmatmul.bf16.gmra.mxu2 %v14788_v0  ;;  %3444 = vmatpush.bf16.msra.mxu0 %v7244_v61  ;;  %v14791_v59 = vld [vmem:[#allocation37_spill] sm:$0xff] }
 0x2f9   : > { %3417 = vmatmul.bf16.gmra.mxu3 %v14789_v32 }
 0x2fa   : > { %3591 = vmatpush.bf16.msra.mxu3 %v7628_v36 }
 0x2fb   : > { %v3173_v16 = vpop.f32.mrf.mxu2 }
 0x2fc   : > { %v3174_v62 = vadd.f32 %v3173_v16, %v3125_v58  ;;  %v3222_v56 = vpop.f32.mrf.mxu3  ;;  %v3077_v32 = vpop.f32.mrf.mxu0  ;;  %v7372_v58 = vor.u32 %v9270_v37, %v7369_v39  ;;  %v9298_v37 = vld [vmem:[%s14357_s2 + $0x20c] sm:$0xf] }
 0x2fd   : > { %v3078_v47 = vadd.f32 %v3077_v32, %v11989_v29  ;;  %v3126_v7 = vpop.f32.mrf.mxu1 }
 0x2fe   : > { %v12161_v0 = vadd.f32 %v3222_v56, %v3174_v62  ;;  %3493 = vmatpush.bf16.msra.mxu1 %v7372_v58  ;;  %v14790_v56 = vld [vmem:[#allocation36_spill] sm:$0xff]  ;;  %v9330_v58 = vld [vmem:[%s14357_s2 + $0x30c] sm:$0xf] }
 0x2ff   : > { %v3127_v34 = vadd.f32 %v3126_v7, %v3078_v47  ;;  %v7481_v47 = vld [vmem:[%s14357_s2 + $0x218] sm:$0xf0]  ;;  %v9234_v7 = vld [vmem:[%s14357_s2 + $0xc] sm:$0xf] }
 0x300   : > { %v7484_v39 = vor.u32 %v9298_v37, %v7481_v47 }
 0x302   : > { %3543 = vmatpush.bf16.msra.mxu2 %v7484_v39 }
 0x303   : > { %v3175_v20 = vpop.f32.mrf.mxu2 }
 0x304   : > { %v3176_v35 = vadd.f32 %v3175_v20, %v3127_v34  ;;  %v3224_v5 = vpop.f32.mrf.mxu3  ;;  %v3080_v32 = vpop.f32.mrf.mxu0  ;;  %v7225_v34 = vld [vmem:[%s14357_s2 + $0x18] sm:$0xf0] }
 0x305   : > { %v3081_v16 = vadd.f32 %v3080_v32, %v11989_v29  ;;  %v3129_v61 = vpop.f32.mrf.mxu1  ;;  %v7609_v20 = vld [vmem:[%s14357_s2 + $0x318] sm:$0xf0] }
 0x306   : > { %v12170_v36 = vadd.f32 %v3224_v5, %v3176_v35  ;;  %v7228_v5 = vor.u32 %v9234_v7, %v7225_v34  ;;  %v7612_v32 = vor.u32 %v9330_v58, %v7609_v20  ;;  %v7353_v7 = vld [vmem:[%s14357_s2 + $0x118] sm:$0xf0] }
 0x307   : > { %v3130_v62 = vadd.f32 %v3129_v61, %v3081_v16  ;;  %3275 = vmatmul.bf16.gmra.mxu0 %v14790_v56  ;;  %3324 = vmatmul.bf16.gmra.mxu1 %v14791_v59  ;;  %v9266_v59 = vld [vmem:[%s14357_s2 + $0x10c] sm:$0xf] }
 0x308   : > { %3373 = vmatmul.bf16.gmra.mxu2 %v14792_v38  ;;  %3445 = vmatpush.bf16.msra.mxu0 %v7228_v5  ;;  %v14795_v56 = vld [vmem:[#allocation41_spill] sm:$0xff] }
 0x309   : > { %3422 = vmatmul.bf16.gmra.mxu3 %v14793_v19 }
 0x30a   : > { %3592 = vmatpush.bf16.msra.mxu3 %v7612_v32 }
 0x30b   : > { %v3178_v35 = vpop.f32.mrf.mxu2 }
 0x30c   : > { %v3179_v16 = vadd.f32 %v3178_v35, %v3130_v62  ;;  %v3227_v61 = vpop.f32.mrf.mxu3  ;;  %v3082_v19 = vpop.f32.mrf.mxu0  ;;  %v7356_v62 = vor.u32 %v9266_v59, %v7353_v7  ;;  %v9454_v59 = vld [vmem:[%s14357_s2 + $0x6ec] sm:$0xf] }
 0x30d   : > { %v3083_v37 = vadd.f32 %v3082_v19, %v11989_v29  ;;  %v3131_v47 = vpop.f32.mrf.mxu1 }
 0x30e   : > { %v12195_v38 = vadd.f32 %v3227_v61, %v3179_v16  ;;  %3494 = vmatpush.bf16.msra.mxu1 %v7356_v62  ;;  %v14794_v61 = vld [vmem:[#allocation40_spill] sm:$0xff]  ;;  %v9486_v62 = vld [vmem:[%s14357_s2 + $0x7ec] sm:$0xf] }
 0x30f   : > { %v3132_v34 = vadd.f32 %v3131_v47, %v3083_v37  ;;  %v8105_v37 = vld [vmem:[%s14357_s2 + $0x6f8] sm:$0xf0]  ;;  %v9390_v47 = vld [vmem:[%s14357_s2 + $0x4ec] sm:$0xf] }
 0x310   : > { %v8108_v7 = vor.u32 %v9454_v59, %v8105_v37 }
 0x312   : > { %3732 = vmatpush.bf16.msrb.mxu2 %v8108_v7 }
 0x313   : > { %v3180_v58 = vpop.f32.mrf.mxu2 }
 0x314   : > { %v3181_v39 = vadd.f32 %v3180_v58, %v3132_v34  ;;  %v3229_v20 = vpop.f32.mrf.mxu3  ;;  %v3085_v19 = vpop.f32.mrf.mxu0  ;;  %v7849_v34 = vld [vmem:[%s14357_s2 + $0x4f8] sm:$0xf0] }
 0x315   : > { %v3086_v35 = vadd.f32 %v3085_v19, %v11989_v29  ;;  %v3134_v5 = vpop.f32.mrf.mxu1  ;;  %v8233_v58 = vld [vmem:[%s14357_s2 + $0x7f8] sm:$0xf0] }
 0x316   : > { %v12204_v32 = vadd.f32 %v3229_v20, %v3181_v39  ;;  %v7852_v20 = vor.u32 %v9390_v47, %v7849_v34  ;;  %v8236_v19 = vor.u32 %v9486_v62, %v8233_v58  ;;  %v7977_v47 = vld [vmem:[%s14357_s2 + $0x5f8] sm:$0xf0] }
 0x317   : > { %v3135_v16 = vadd.f32 %v3134_v5, %v3086_v35  ;;  %3280 = vmatmul.bf16.gmra.mxu0 %v14794_v61  ;;  %3329 = vmatmul.bf16.gmra.mxu1 %v14795_v56  ;;  %v9422_v61 = vld [vmem:[%s14357_s2 + $0x5ec] sm:$0xf] }
 0x318   : > { %3378 = vmatmul.bf16.gmra.mxu2 %v14796_v33  ;;  %3634 = vmatpush.bf16.msrb.mxu0 %v7852_v20  ;;  %v7980_v34 = vor.u32 %v9422_v61, %v7977_v47  ;;  %v8089_v61 = vld [vmem:[%s14357_s2 + $0x6d8] sm:$0xf0] }
 0x319   : > { %3427 = vmatmul.bf16.gmra.mxu3 %v14797_v28 }
 0x31a   : > { %3781 = vmatpush.bf16.msrb.mxu3 %v8236_v19  ;;  %3683 = vmatpush.bf16.msrb.mxu1 %v7980_v34  ;;  %v9482_v34 = vld [vmem:[%s14357_s2 + $0x7cc] sm:$0xf] }
 0x31b   : > { %v3183_v39 = vpop.f32.mrf.mxu2 }
 0x31c   : > { %v3184_v35 = vadd.f32 %v3183_v39, %v3135_v16  ;;  %v3232_v5 = vpop.f32.mrf.mxu3  ;;  %v3087_v28 = vpop.f32.mrf.mxu0 }
 0x31d   : > { %v3088_v59 = vadd.f32 %v3087_v28, %v11989_v29  ;;  %v3136_v37 = vpop.f32.mrf.mxu1 }
 0x31e   : > { %v12229_v33 = vadd.f32 %v3232_v5, %v3184_v35  ;;  %v14798_v35 = vld [vmem:[#allocation46_spill] sm:$0xff]  ;;  %v14799_v5 = vld [vmem:[#allocation47_spill] sm:$0xff] }
 0x31f   : > { %v3137_v56 = vadd.f32 %v3136_v37, %v3088_v59  ;;  %v9386_v59 = vld [vmem:[%s14357_s2 + $0x4cc] sm:$0xf] }
 0x323   : > { %v3185_v16 = vpop.f32.mrf.mxu2 }
 0x324   : > { %v3186_v62 = vadd.f32 %v3185_v16, %v3137_v56  ;;  %v3234_v7 = vpop.f32.mrf.mxu3  ;;  %v3090_v58 = vpop.f32.mrf.mxu0  ;;  %v9450_v56 = vld [vmem:[%s14357_s2 + $0x6cc] sm:$0xf]  ;;  %v7833_v16 = vld [vmem:[%s14357_s2 + $0x4d8] sm:$0xf0] }
 0x325   : > { %v3091_v28 = vadd.f32 %v3090_v58, %v11989_v29  ;;  %v3139_v39 = vpop.f32.mrf.mxu1  ;;  %v8092_v47 = vor.u32 %v9450_v56, %v8089_v61 }
 0x326   : > { %v12238_v20 = vadd.f32 %v3234_v7, %v3186_v62  ;;  %v8217_v62 = vld [vmem:[%s14357_s2 + $0x7d8] sm:$0xf0] }
 0x327   : > { %v3140_v19 = vadd.f32 %v3139_v39, %v3091_v28  ;;  %3285 = vmatmul.bf16.gmra.mxu0 %v11009_v60  ;;  %3334 = vmatmul.bf16.gmra.mxu1 %v11011_v2  ;;  %v7836_v39 = vor.u32 %v9386_v59, %v7833_v16  ;;  %v9418_v60 = vld [vmem:[%s14357_s2 + $0x5cc] sm:$0xf] }
 0x328   : > { %3383 = vmatmul.bf16.gmra.mxu2 %v14798_v35 }
 0x329   : > { %3432 = vmatmul.bf16.gmra.mxu3 %v14799_v5  ;;  %v8220_v5 = vor.u32 %v9482_v34, %v8217_v62  ;;  %3733 = vmatpush.bf16.msrb.mxu2 %v8092_v47 }
 0x32a   : > { %3635 = vmatpush.bf16.msrb.mxu0 %v7836_v39 }
 0x32b   : > { %v3188_v37 = vpop.f32.mrf.mxu2  ;;  %3782 = vmatpush.bf16.msrb.mxu3 %v8220_v5 }
 0x32c   : > { %v3189_v7 = vadd.f32 %v3188_v37, %v3140_v19  ;;  %v3237_v58 = vpop.f32.mrf.mxu3  ;;  %v3092_v28 = vpop.f32.mrf.mxu0  ;;  %v7961_v19 = vld [vmem:[%s14357_s2 + $0x5d8] sm:$0xf0] }
 0x32d   : > { %v3093_v35 = vadd.f32 %v3092_v28, %v11989_v29  ;;  %v3141_v56 = vpop.f32.mrf.mxu1  ;;  %v7964_v59 = vor.u32 %v9418_v60, %v7961_v19  ;;  %v8073_v60 = vld [vmem:[%s14357_s2 + $0x6b8] sm:$0xf0] }
 0x32e   : > { %v12263_v61 = vadd.f32 %v3237_v58, %v3189_v7 }
 0x32f   : > { %v3142_v2 = vadd.f32 %v3141_v56, %v3093_v35  ;;  %3684 = vmatpush.bf16.msrb.mxu1 %v7964_v59 }
 0x333   : > { %v3190_v37 = vpop.f32.mrf.mxu2 }
 0x334   : > { %v3191_v16 = vadd.f32 %v3190_v37, %v3142_v2  ;;  %v3239_v34 = vpop.f32.mrf.mxu3  ;;  %v3251_v29 = vpop.f32.mrf.mxu0  ;;  %v9446_v2 = vld [vmem:[%s14357_s2 + $0x6ac] sm:$0xf] }
 0x335   : > { %v3252_v47 = vadd.f32 %v3251_v29, %v12025_v22  ;;  %v3300_v62 = vpop.f32.mrf.mxu1  ;;  %v9382_v22 = vld [vmem:[%s14357_s2 + $0x4ac] sm:$0xf] }
 0x336   : > { %v12272_v7 = vadd.f32 %v3239_v34, %v3191_v16  ;;  %v9414_v29 = vld [vmem:[%s14357_s2 + $0x5ac] sm:$0xf] }
 0x337   : > { %v3301_v35 = vadd.f32 %v3300_v62, %v3252_v47  ;;  %3446 = vmatmul.bf16.vlgmr.msra.gmra.mxu0 %v10280_v48  ;;  %3495 = vmatmul.bf16.vlgmr.msra.gmra.mxu1 %v10291_v53  ;;  %v8076_v48 = vor.u32 %v9446_v2, %v8073_v60  ;;  %v7817_v53 = vld [vmem:[%s14357_s2 + $0x4b8] sm:$0xf0] }
 0x338   : > { %3544 = vmatmul.bf16.vlgmr.msra.gmra.mxu2 %v10293_v54  ;;  %v9478_v54 = vld [vmem:[%s14357_s2 + $0x7ac] sm:$0xf]  ;;  %v7820_v56 = vor.u32 %v9382_v22, %v7817_v53  ;;  %v7945_v47 = vld [vmem:[%s14357_s2 + $0x5b8] sm:$0xf0] }
 0x339   : > { %3593 = vmatmul.bf16.vlgmr.msra.gmra.mxu3 %v10301_v57  ;;  %v8201_v57 = vld [vmem:[%s14357_s2 + $0x7b8] sm:$0xf0]  ;;  %3734 = vmatpush.bf16.msrb.mxu2 %v8076_v48 }
 0x33a   : > { %v8204_v19 = vor.u32 %v9478_v54, %v8201_v57  ;;  %3636 = vmatpush.bf16.msrb.mxu0 %v7820_v56 }
 0x33b   : > { %v3349_v5 = vpop.f32.mrf.mxu2 }
 0x33c   : > { %v3350_v58 = vadd.f32 %v3349_v5, %v3301_v35  ;;  %v3398_v28 = vpop.f32.mrf.mxu3  ;;  %v3253_v39 = vpop.f32.mrf.mxu0  ;;  %3783 = vmatpush.bf16.msrb.mxu3 %v8204_v19  ;;  %v7948_v35 = vor.u32 %v9414_v29, %v7945_v47 }
 0x33d   : > { %v3254_v37 = vadd.f32 %v3253_v39, %v12034_v3  ;;  %v3302_v59 = vpop.f32.mrf.mxu1  ;;  %v9474_v39 = vld [vmem:[%s14357_s2 + $0x78c] sm:$0xf] }
 0x33e   : > { %v12297_v16 = vadd.f32 %v3398_v28, %v3350_v58  ;;  %3685 = vmatpush.bf16.msrb.mxu1 %v7948_v35  ;;  %v8057_v58 = vld [vmem:[%s14357_s2 + $0x698] sm:$0xf0] }
 0x33f   : > { %v3303_v34 = vadd.f32 %v3302_v59, %v3254_v37 }
 0x340   : > { %14800 = vst [vmem:[#allocation90_spill] sm:$0xff] %v12297_v16  ;;  %v14533_v54 = vmax.f32 %v12297_v16, 0.0 }
 0x343   : > { %v3351_v62 = vpop.f32.mrf.mxu2 }
 0x344   : > { %v3352_v2 = vadd.f32 %v3351_v62, %v3303_v34  ;;  %v3400_v60 = vpop.f32.mrf.mxu3  ;;  %v3256_v3 = vpop.f32.mrf.mxu0  ;;  %v8185_v34 = vld [vmem:[%s14357_s2 + $0x798] sm:$0xf0] }
 0x345   : > { %v3257_v22 = vadd.f32 %v3256_v3, %v12059_v46  ;;  %v3305_v5 = vpop.f32.mrf.mxu1  ;;  %v8188_v62 = vor.u32 %v9474_v39, %v8185_v34  ;;  %v7929_v3 = vld [vmem:[%s14357_s2 + $0x598] sm:$0xf0] }
 0x346   : > { %v12306_v48 = vadd.f32 %v3400_v60, %v3352_v2  ;;  %v9410_v60 = vld [vmem:[%s14357_s2 + $0x58c] sm:$0xf] }
 0x347   : > { %v3306_v53 = vadd.f32 %v3305_v5, %v3257_v22  ;;  %3451 = vmatmul.bf16.gmra.mxu0 %v10351_v24  ;;  %3500 = vmatmul.bf16.gmra.mxu1 %v10353_v25  ;;  %v9442_v24 = vld [vmem:[%s14357_s2 + $0x68c] sm:$0xf]  ;;  %v7932_v5 = vor.u32 %v9410_v60, %v7929_v3 }
 0x348   : > { %14801 = vst [vmem:[#allocation91_spill] sm:$0xff] %v12306_v48  ;;  %v14532_v57 = vmax.f32 %v12306_v48, 0.0  ;;  %3549 = vmatmul.bf16.gmra.mxu2 %v10355_v26  ;;  %v8060_v25 = vor.u32 %v9442_v24, %v8057_v58  ;;  %v9378_v26 = vld [vmem:[%s14357_s2 + $0x48c] sm:$0xf]  ;;  %3784 = vmatpush.bf16.msrb.mxu3 %v8188_v62  ;;  %v8169_v62 = vld [vmem:[%s14357_s2 + $0x778] sm:$0xf0] }
 0x349   : > { %3598 = vmatmul.bf16.gmra.mxu3 %v10357_v27  ;;  %v7801_v27 = vld [vmem:[%s14357_s2 + $0x498] sm:$0xf0]  ;;  %3686 = vmatpush.bf16.msrb.mxu1 %v7932_v5 }
 0x34a   : > { %v12318_v46 = vpack.c.bf16 %v14532_v57, %v14533_v54  ;;  %v7804_v59 = vor.u32 %v9378_v26, %v7801_v27  ;;  %3735 = vmatpush.bf16.msrb.mxu2 %v8060_v25  ;;  %v14893_v48 = vld [vmem:[#allocation59_spill] sm:$0xff] }
 0x34b   : > { %v3354_v28 = vpop.f32.mrf.mxu2 }
 0x34c   : > { %v3355_v56 = vadd.f32 %v3354_v28, %v3306_v53  ;;  %v3403_v19 = vpop.f32.mrf.mxu3  ;;  %v3258_v37 = vpop.f32.mrf.mxu0  ;;  %3637 = vmatpush.bf16.msrb.mxu0 %v7804_v59 }
 0x34d   : > { %v3259_v29 = vadd.f32 %v3258_v37, %v12068_v21  ;;  %v3307_v47 = vpop.f32.mrf.mxu1  ;;  %v9470_v37 = vld [vmem:[%s14357_s2 + $0x76c] sm:$0xf] }
 0x34e   : > { %v12339_v35 = vadd.f32 %v3403_v19, %v3355_v56  ;;  %v8041_v56 = vld [vmem:[%s14357_s2 + $0x678] sm:$0xf0]  ;;  %v8172_v3 = vor.u32 %v9470_v37, %v8169_v62 }
 0x34f   : > { %v3308_v2 = vadd.f32 %v3307_v47, %v3259_v29  ;;  %v8025_v37 = vld [vmem:[%s14357_s2 + $0x658] sm:$0xf0] }
 0x350   : > { %14802 = vst [vmem:[#allocation92_spill] sm:$0xff] %v12339_v35  ;;  %v14531_v27 = vmax.f32 %v12339_v35, 0.0  ;;  %3785 = vmatpush.bf16.msrb.mxu3 %v8172_v3  ;;  %v8306_v35 = vld [vmem:[#allocation4 + $0x90] sm:$0xf0] }
 0x353   : > { %v3356_v22 = vpop.f32.mrf.mxu2 }
 0x354   : > { %v3357_v53 = vadd.f32 %v3356_v22, %v3308_v2  ;;  %v3405_v21 = vpop.f32.mrf.mxu3  ;;  %v3261_v24 = vpop.f32.mrf.mxu0 }
 0x355   : > { %v3262_v58 = vadd.f32 %v3261_v24, %v12093_v1  ;;  %v3310_v28 = vpop.f32.mrf.mxu1 }
 0x356   : > { %v12348_v25 = vadd.f32 %v3405_v21, %v3357_v53  ;;  %v9406_v53 = vld [vmem:[%s14357_s2 + $0x56c] sm:$0xf]  ;;  %v7913_v21 = vld [vmem:[%s14357_s2 + $0x578] sm:$0xf0] }
 0x357   : > { %v3311_v26 = vadd.f32 %v3310_v28, %v3262_v58  ;;  %3456 = vmatmul.bf16.gmra.mxu0 %v10395_v49  ;;  %3505 = vmatmul.bf16.gmra.mxu1 %v10397_v50  ;;  %v9438_v49 = vld [vmem:[%s14357_s2 + $0x66c] sm:$0xf]  ;;  %v7916_v58 = vor.u32 %v9406_v53, %v7913_v21 }
 0x358   : > { %14803 = vst [vmem:[#allocation93_spill] sm:$0xff] %v12348_v25  ;;  %v14530_v39 = vmax.f32 %v12348_v25, 0.0  ;;  %3554 = vmatmul.bf16.gmra.mxu2 %v10399_v51  ;;  %v8044_v50 = vor.u32 %v9438_v49, %v8041_v56  ;;  %v9374_v51 = vld [vmem:[%s14357_s2 + $0x46c] sm:$0xf]  ;;  %v14881_v25 = vld [vmem:[#allocation56_spill] sm:$0xff] }
 0x359   : > { %3603 = vmatmul.bf16.gmra.mxu3 %v10401_v52  ;;  %v7785_v52 = vld [vmem:[%s14357_s2 + $0x478] sm:$0xf0]  ;;  %3687 = vmatpush.bf16.msrb.mxu1 %v7916_v58  ;;  %v9402_v58 = vld [vmem:[%s14357_s2 + $0x54c] sm:$0xf] }
 0x35a   : > { %v12360_v1 = vpack.c.bf16 %v14530_v39, %v14531_v27  ;;  %v7788_v47 = vor.u32 %v9374_v51, %v7785_v52  ;;  %3736 = vmatpush.bf16.msrb.mxu2 %v8044_v50  ;;  %v9613_v39 = vld [vmem:[#allocation4 + $0x3e4] sm:$0xf] }
 0x35b   : > { %v3359_v19 = vpop.f32.mrf.mxu2 }
 0x35c   : > { %v3360_v59 = vadd.f32 %v3359_v19, %v3311_v26  ;;  %v3408_v34 = vpop.f32.mrf.mxu3  ;;  %v3263_v29 = vpop.f32.mrf.mxu0  ;;  %3638 = vmatpush.bf16.msrb.mxu0 %v7788_v47 }
 0x35d   : > { %v3264_v2 = vadd.f32 %v3263_v29, %v12102_v23  ;;  %v3312_v60 = vpop.f32.mrf.mxu1 }
 0x35e   : > { %v12381_v22 = vadd.f32 %v3408_v34, %v3360_v59  ;;  %v9466_v34 = vld [vmem:[%s14357_s2 + $0x74c] sm:$0xf] }
 0x35f   : > { %v3313_v5 = vadd.f32 %v3312_v60, %v3264_v2  ;;  %v8153_v60 = vld [vmem:[%s14357_s2 + $0x758] sm:$0xf0] }
 0x360   : > { %14804 = vst [vmem:[#allocation94_spill] sm:$0xff] %v12381_v22  ;;  %v14529_v51 = vmax.f32 %v12381_v22, 0.0  ;;  %v8156_v53 = vor.u32 %v9466_v34, %v8153_v60  ;;  %v8322_v22 = vld [vmem:[#allocation4 + $0xb0] sm:$0xf0] }
 0x362   : > { %3786 = vmatpush.bf16.msrb.mxu3 %v8156_v53 }
 0x363   : > { %v3361_v24 = vpop.f32.mrf.mxu2 }
 0x364   : > { %v3362_v28 = vadd.f32 %v3361_v24, %v3313_v5  ;;  %v3410_v23 = vpop.f32.mrf.mxu3  ;;  %v3266_v26 = vpop.f32.mrf.mxu0 }
 0x365   : > { %v3267_v49 = vadd.f32 %v3266_v26, %v12127_v31  ;;  %v3315_v56 = vpop.f32.mrf.mxu1 }
 0x366   : > { %v12390_v19 = vadd.f32 %v3410_v23, %v3362_v28  ;;  %v7897_v28 = vld [vmem:[%s14357_s2 + $0x558] sm:$0xf0] }
 0x367   : > { %v3316_v50 = vadd.f32 %v3315_v56, %v3267_v49  ;;  %3461 = vmatmul.bf16.gmra.mxu0 %v10439_v12  ;;  %3510 = vmatmul.bf16.gmra.mxu1 %v10441_v13  ;;  %v9434_v12 = vld [vmem:[%s14357_s2 + $0x64c] sm:$0xf]  ;;  %v7900_v26 = vor.u32 %v9402_v58, %v7897_v28 }
 0x368   : > { %14805 = vst [vmem:[#allocation95_spill] sm:$0xff] %v12390_v19  ;;  %v14528_v52 = vmax.f32 %v12390_v19, 0.0  ;;  %3559 = vmatmul.bf16.gmra.mxu2 %v10443_v14  ;;  %v8028_v13 = vor.u32 %v9434_v12, %v8025_v37  ;;  %v9370_v14 = vld [vmem:[%s14357_s2 + $0x44c] sm:$0xf]  ;;  %v9509_v19 = vld [vmem:[#allocation4 + $0xa4] sm:$0xf] }
 0x369   : > { %3608 = vmatmul.bf16.gmra.mxu3 %v10445_v15  ;;  %v7769_v15 = vld [vmem:[%s14357_s2 + $0x458] sm:$0xf0]  ;;  %3688 = vmatpush.bf16.msrb.mxu1 %v7900_v26 }
 0x36a   : > { %v12402_v31 = vpack.c.bf16 %v14528_v52, %v14529_v51  ;;  %v7772_v2 = vor.u32 %v9370_v14, %v7769_v15  ;;  %3737 = vmatpush.bf16.msrb.mxu2 %v8028_v13  ;;  %v8009_v15 = vld [vmem:[%s14357_s2 + $0x638] sm:$0xf0]  ;;  %v12657_v51 = vstv %s331_s0 }
 0x36b   : > { %v3364_v59 = vpop.f32.mrf.mxu2  ;;  %v7881_v26 = vld [vmem:[%s14357_s2 + $0x538] sm:$0xf0] }
 0x36c   : > { %v3365_v29 = vadd.f32 %v3364_v59, %v3316_v50  ;;  %v3413_v47 = vpop.f32.mrf.mxu3  ;;  %v3268_v62 = vpop.f32.mrf.mxu0  ;;  %3639 = vmatpush.bf16.msrb.mxu0 %v7772_v2 }
 0x36d   : > { %v3269_v3 = vadd.f32 %v3268_v62, %v12136_v30  ;;  %v3317_v5 = vpop.f32.mrf.mxu1 }
 0x36e   : > { %v12423_v21 = vadd.f32 %v3413_v47, %v3365_v29  ;;  %v9462_v29 = vld [vmem:[%s14357_s2 + $0x72c] sm:$0xf] }
 0x36f   : > { %v3318_v24 = vadd.f32 %v3317_v5, %v3269_v3  ;;  %v8137_v3 = vld [vmem:[%s14357_s2 + $0x738] sm:$0xf0] }
 0x370   : > { %14806 = vst [vmem:[#allocation96_spill] sm:$0xff] %v12423_v21  ;;  %v14526_v13 = vmax.f32 %v12423_v21, 0.0 }
 0x373   : > { %v3366_v23 = vpop.f32.mrf.mxu2 }
 0x374   : > { %v3367_v49 = vadd.f32 %v3366_v23, %v3318_v24  ;;  %v3415_v30 = vpop.f32.mrf.mxu3  ;;  %v3271_v56 = vpop.f32.mrf.mxu0  ;;  %v8140_v24 = vor.u32 %v9462_v29, %v8137_v3  ;;  %v9398_v23 = vld [vmem:[%s14357_s2 + $0x52c] sm:$0xf]  ;;  %v8121_v3 = vld [vmem:[%s14357_s2 + $0x718] sm:$0xf0] }
 0x375   : > { %v3272_v50 = vadd.f32 %v3271_v56, %v12161_v0  ;;  %v3320_v12 = vpop.f32.mrf.mxu1  ;;  %v9458_v29 = vld [vmem:[%s14357_s2 + $0x70c] sm:$0xf] }
 0x376   : > { %v12432_v37 = vadd.f32 %v3415_v30, %v3367_v49  ;;  %3787 = vmatpush.bf16.msrb.mxu3 %v8140_v24  ;;  %v7884_v30 = vor.u32 %v9398_v23, %v7881_v26  ;;  %v8124_v24 = vor.u32 %v9458_v29, %v8121_v3  ;;  %v9394_v26 = vld [vmem:[%s14357_s2 + $0x50c] sm:$0xf] }
 0x377   : > { %v3321_v59 = vadd.f32 %v3320_v12, %v3272_v50  ;;  %3466 = vmatmul.bf16.gmra.mxu0 %v10483_v40  ;;  %3515 = vmatmul.bf16.gmra.mxu1 %v10485_v41  ;;  %v9430_v40 = vld [vmem:[%s14357_s2 + $0x62c] sm:$0xf] }
 0x378   : > { %14807 = vst [vmem:[#allocation97_spill] sm:$0xff] %v12432_v37  ;;  %v14525_v14 = vmax.f32 %v12432_v37, 0.0  ;;  %3564 = vmatmul.bf16.gmra.mxu2 %v10487_v42  ;;  %v8012_v41 = vor.u32 %v9430_v40, %v8009_v15  ;;  %v9366_v42 = vld [vmem:[%s14357_s2 + $0x42c] sm:$0xf]  ;;  %3689 = vmatpush.bf16.msrb.mxu1 %v7884_v30 }
 0x379   : > { %3613 = vmatmul.bf16.gmra.mxu3 %v10489_v43  ;;  %v7753_v43 = vld [vmem:[%s14357_s2 + $0x438] sm:$0xf0] }
 0x37a   : > { %v12444_v0 = vpack.c.bf16 %v14525_v14, %v14526_v13  ;;  %v7756_v60 = vor.u32 %v9366_v42, %v7753_v43  ;;  %3738 = vmatpush.bf16.msrb.mxu2 %v8012_v41  ;;  %v7993_v42 = vld [vmem:[%s14357_s2 + $0x618] sm:$0xf0]  ;;  %3788 = vmatpush.bf16.msrb.mxu3 %v8124_v24 }
 0x37b   : > { %v3369_v34 = vpop.f32.mrf.mxu2 }
 0x37c   : > { %v3370_v47 = vadd.f32 %v3369_v34, %v3321_v59  ;;  %v3418_v62 = vpop.f32.mrf.mxu3  ;;  %v3273_v2 = vpop.f32.mrf.mxu0  ;;  %3640 = vmatpush.bf16.msrb.mxu0 %v7756_v60 }
 0x37d   : > { %v3274_v5 = vadd.f32 %v3273_v2, %v12170_v36  ;;  %v3322_v53 = vpop.f32.mrf.mxu1 }
 0x37e   : > { %v12465_v58 = vadd.f32 %v3418_v62, %v3370_v47 }
 0x37f   : > { %v3323_v28 = vadd.f32 %v3322_v53, %v3274_v5 }
 0x380   : > { %14808 = vst [vmem:[#allocation98_spill] sm:$0xff] %v12465_v58  ;;  %v14524_v34 = vmax.f32 %v12465_v58, 0.0 }
 0x383   : > { %v3371_v49 = vpop.f32.mrf.mxu2 }
 0x384   : > { %v3372_v56 = vadd.f32 %v3371_v49, %v3323_v28  ;;  %v3420_v36 = vpop.f32.mrf.mxu3  ;;  %v3276_v50 = vpop.f32.mrf.mxu0  ;;  %v7865_v49 = vld [vmem:[%s14357_s2 + $0x518] sm:$0xf0] }
 0x385   : > { %v3277_v12 = vadd.f32 %v3276_v50, %v12195_v38  ;;  %v3325_v59 = vpop.f32.mrf.mxu1 }
 0x386   : > { %v12474_v40 = vadd.f32 %v3420_v36, %v3372_v56  ;;  %v7868_v56 = vor.u32 %v9394_v26, %v7865_v49  ;;  %v8608_v26 = vld [vmem:[#allocation4 + $0x2e0] sm:$0xf]  ;;  %v9583_v49 = vld [vmem:[#allocation4 + $0x2ec] sm:$0xf0] }
 0x387   : > { %v3326_v15 = vadd.f32 %v3325_v59, %v3277_v12  ;;  %3471 = vmatmul.bf16.gmra.mxu0 %v10527_v8  ;;  %3520 = vmatmul.bf16.gmra.mxu1 %v10529_v9  ;;  %v9426_v8 = vld [vmem:[%s14357_s2 + $0x60c] sm:$0xf] }
 0x388   : > { %14809 = vst [vmem:[#allocation99_spill] sm:$0xff] %v12474_v40  ;;  %v14523_v41 = vmax.f32 %v12474_v40, 0.0  ;;  %3569 = vmatmul.bf16.gmra.mxu2 %v10531_v10  ;;  %v7996_v9 = vor.u32 %v9426_v8, %v7993_v42  ;;  %v9362_v10 = vld [vmem:[%s14357_s2 + $0x40c] sm:$0xf]  ;;  %3690 = vmatpush.bf16.msrb.mxu1 %v7868_v56  ;;  %v14858_v40 = vmov 0 }
 0x389   : > { %3618 = vmatmul.bf16.gmra.mxu3 %v10533_v11  ;;  %v7737_v11 = vld [vmem:[%s14357_s2 + $0x418] sm:$0xf0] }
 0x38a   : > { %v12486_v38 = vpack.c.bf16 %v14523_v41, %v14524_v34  ;;  %v7740_v60 = vor.u32 %v9362_v10, %v7737_v11  ;;  %3739 = vmatpush.bf16.msrb.mxu2 %v7996_v9  ;;  %v9527_v41 = vld [vmem:[#allocation4 + $0x12c] sm:$0xf0] }
 0x38b   : > { %v3374_v43 = vpop.f32.mrf.mxu2 }
 0x38c   : > { %v3375_v47 = vadd.f32 %v3374_v43, %v3326_v15  ;;  %v3423_v62 = vpop.f32.mrf.mxu3  ;;  %v3278_v2 = vpop.f32.mrf.mxu0  ;;  %3641 = vmatpush.bf16.msrb.mxu0 %v7740_v60 }
 0x38d   : > { %v3279_v5 = vadd.f32 %v3278_v2, %v12204_v32  ;;  %v3327_v53 = vpop.f32.mrf.mxu1 }
 0x38e   : > { %v12507_v28 = vadd.f32 %v3423_v62, %v3375_v47 }
 0x38f   : > { %v3328_v23 = vadd.f32 %v3327_v53, %v3279_v5 }
 0x390   : > { %14810 = vst [vmem:[#allocation100_spill] sm:$0xff] %v12507_v28  ;;  %v14522_v42 = vmax.f32 %v12507_v28, 0.0  ;;  %v8338_v28 = vld [vmem:[#allocation4 + $0xd0] sm:$0xf0] }
 0x393   : > { %v3376_v30 = vpop.f32.mrf.mxu2 }
 0x394   : > { %v3377_v36 = vadd.f32 %v3376_v30, %v3328_v23  ;;  %v3425_v32 = vpop.f32.mrf.mxu3  ;;  %v3281_v50 = vpop.f32.mrf.mxu0  ;;  %v8609_v30 = vor.u32 %v9583_v49, %v8608_v26  ;;  %v14816_v49 = vld [vmem:[#allocation16_spill] sm:$0xff] }
 0x395   : > { %v3282_v12 = vadd.f32 %v3281_v50, %v12229_v33  ;;  %v3330_v59 = vpop.f32.mrf.mxu1 }
 0x396   : > { %v12516_v15 = vadd.f32 %v3425_v32, %v3377_v36  ;;  %4950 = vmatpush.bf16.msra.mxu2 %v8609_v30 }
 0x397   : > { %v3331_v8 = vadd.f32 %v3330_v59, %v3282_v12  ;;  %3476 = vmatmul.bf16.gmra.mxu0 %v10571_v44  ;;  %3525 = vmatmul.bf16.gmra.mxu1 %v10573_v45  ;;  %v9519_v12 = vld [vmem:[#allocation4 + $0xec] sm:$0xf0]  ;;  %v8736_v59 = vld [vmem:[#allocation4 + $0x3e0] sm:$0xf] }
 0x398   : > { %14811 = vst [vmem:[#allocation101_spill] sm:$0xff] %v12516_v15  ;;  %v14521_v43 = vmax.f32 %v12516_v15, 0.0  ;;  %3574 = vmatmul.bf16.gmra.mxu2 %v14703_v4  ;;  %v9513_v15 = vld [vmem:[#allocation4 + $0xc4] sm:$0xf] }
 0x399   : > { %3623 = vmatmul.bf16.gmra.mxu3 %v14704_v63 }
 0x39a   : > { %v12528_v33 = vpack.c.bf16 %v14521_v43, %v14522_v42  ;;  %v9591_v42 = vld [vmem:[#allocation4 + $0x32c] sm:$0xf0] }
 0x39b   : > { %v3379_v9 = vpop.f32.mrf.mxu2 }
 0x39c   : > { %v3380_v10 = vadd.f32 %v3379_v9, %v3331_v8  ;;  %v3428_v11 = vpop.f32.mrf.mxu3  ;;  %v3283_v44 = vpop.f32.mrf.mxu0 }
 0x39d   : > { %v3284_v29 = vadd.f32 %v3283_v44, %v12238_v20  ;;  %v3332_v47 = vpop.f32.mrf.mxu1  ;;  %v9551_v44 = vld [vmem:[#allocation4 + $0x1ec] sm:$0xf0] }
 0x39e   : > { %v12531_v62 = vadd.f32 %v3428_v11, %v3380_v10  ;;  %v9615_v10 = vld [vmem:[#allocation4 + $0x3ec] sm:$0xf0]  ;;  %v8480_v11 = vld [vmem:[#allocation4 + $0x1e0] sm:$0xf] }
 0x39f   : > { %v3333_v45 = vadd.f32 %v3332_v47, %v3284_v29  ;;  %v8737_v29 = vor.u32 %v9615_v10, %v8736_v59  ;;  %v8481_v47 = vor.u32 %v9551_v44, %v8480_v11 }
 0x3a0   : > { %14812 = vst [vmem:[#allocation102_spill] sm:$0xff] %v12531_v62  ;;  %v14520_v23 = vmax.f32 %v12531_v62, 0.0 }
 0x3a1   : > { %4999 = vmatpush.bf16.msra.mxu3 %v8737_v29  ;;  %4901 = vmatpush.bf16.msra.mxu1 %v8481_v47  ;;  %v8336_v47 = vld [vmem:[#allocation4 + $0xc0] sm:$0xf] }
 0x3a3   : > { %v3381_v2 = vpop.f32.mrf.mxu2 }
 0x3a4   : > { %v3382_v4 = vadd.f32 %v3381_v2, %v3333_v45  ;;  %v3430_v60 = vpop.f32.mrf.mxu3  ;;  %v3286_v63 = vpop.f32.mrf.mxu0  ;;  %v9879_v45 = vld [vmem:[#allocation6] sm:$0xf] }
 0x3a5   : > { %v3287_v3 = vadd.f32 %v3286_v63, %v12263_v61  ;;  %v3335_v5 = vpop.f32.mrf.mxu1  ;;  %v12551_v2 = vperm.slane %v9879_v45, 3  ;;  %v9515_v45 = vld [vmem:[#allocation4 + $0xcc] sm:$0xf0] }
 0x3a6   : > { %v12534_v53 = vadd.f32 %v3430_v60, %v3382_v4 }
 0x3a7   : > { %v3336_v24 = vadd.f32 %v3335_v5, %v3287_v3  ;;  %3481 = vmatmul.bf16.gmra.mxu0 %v14708_v17  ;;  %3530 = vmatmul.bf16.gmra.mxu1 %v14709_v18 }
 0x3a8   : > { %14813 = vst [vmem:[#allocation103_spill] sm:$0xff] %v12534_v53  ;;  %v14519_v20 = vmax.f32 %v12534_v53, 0.0  ;;  %3579 = vmatmul.bf16.gmra.mxu2 %v14764_v6 }
 0x3a9   : > { %3628 = vmatmul.bf16.gmra.mxu3 %v14765_v55  ;;  %v8352_v55 = vld [vmem:[#allocation4 + $0xe0] sm:$0xf] }
 0x3aa   : > { %v12546_v61 = vpack.c.bf16 %v14519_v20, %v14520_v23  ;;  %v8353_v9 = vor.u32 %v9519_v12, %v8352_v55 }
 0x3ab   : > { %v3384_v17 = vpop.f32.mrf.mxu2 }
 0x3ac   : > { %v3385_v56 = vadd.f32 %v3384_v17, %v3336_v24  ;;  %v3433_v36 = vpop.f32.mrf.mxu3  ;;  %v3288_v32 = vpop.f32.mrf.mxu0  ;;  %4852 = vmatpush.bf16.msra.mxu0 %v8353_v9 }
 0x3ad   : > { %v3289_v18 = vadd.f32 %v3288_v32, %v12272_v7  ;;  %v3337_v50 = vpop.f32.mrf.mxu1  ;;  %v14819_v32 = vld [vmem:[#allocation19_spill] sm:$0xff] }
 0x3ae   : > { %v12549_v6 = vadd.f32 %v3433_v36, %v3385_v56  ;;  %v14817_v56 = vld [vmem:[#allocation17_spill] sm:$0xff]  ;;  %v14818_v36 = vld [vmem:[#allocation18_spill] sm:$0xff] }
 0x3af   : > { %v3338_v8 = vadd.f32 %v3337_v50, %v3289_v18  ;;  %v8592_v18 = vld [vmem:[#allocation4 + $0x2c0] sm:$0xf]  ;;  %v9579_v50 = vld [vmem:[#allocation4 + $0x2cc] sm:$0xf0] }
 0x3b0   : > { %14814 = vst [vmem:[#allocation104_spill] sm:$0xff] %v12549_v6  ;;  %v14518_v30 = vmax.f32 %v12549_v6, 0.0  ;;  %v8593_v12 = vor.u32 %v9579_v50, %v8592_v18 }
 0x3b2   : > { %4951 = vmatpush.bf16.msra.mxu2 %v8593_v12 }
 0x3b3   : > { %v3386_v7 = vpop.f32.mrf.mxu2 }
 0x3b4   : > { %v3387_v4 = vadd.f32 %v3386_v7, %v3338_v8  ;;  %v3435_v60 = vpop.f32.mrf.mxu3  ;;  %v3447_v63 = vpop.f32.mrf.mxu0  ;;  %v8720_v7 = vld [vmem:[#allocation4 + $0x3c0] sm:$0xf] }
 0x3b5   : > { %v3448_v3 = vadd.f32 %v3447_v63, %v12551_v2  ;;  %v3496_v5 = vpop.f32.mrf.mxu1  ;;  %v9611_v63 = vld [vmem:[#allocation4 + $0x3cc] sm:$0xf0] }
 0x3b6   : > { %v12554_v24 = vadd.f32 %v3435_v60, %v3387_v4  ;;  %v8337_v60 = vor.u32 %v9515_v45, %v8336_v47  ;;  %v8576_v47 = vld [vmem:[#allocation4 + $0x2a0] sm:$0xf]  ;;  %v9575_v45 = vld [vmem:[#allocation4 + $0x2ac] sm:$0xf0] }
 0x3b7   : > { %v3497_v26 = vadd.f32 %v3496_v5, %v3448_v3  ;;  %3642 = vmatmul.bf16.vlgmr.msrb.gmra.mxu0 %v14816_v49  ;;  %3691 = vmatmul.bf16.vlgmr.msrb.gmra.mxu1 %v14817_v56  ;;  %v8464_v3 = vld [vmem:[#allocation4 + $0x1c0] sm:$0xf]  ;;  %v9547_v5 = vld [vmem:[#allocation4 + $0x1cc] sm:$0xf0]  ;;  %v8721_v49 = vor.u32 %v9611_v63, %v8720_v7  ;;  %v8577_v7 = vor.u32 %v9575_v45, %v8576_v47 }
 0x3b8   : > { %14815 = vst [vmem:[#allocation105_spill] sm:$0xff] %v12554_v24  ;;  %v14517_v17 = vmax.f32 %v12554_v24, 0.0  ;;  %3740 = vmatmul.bf16.vlgmr.msrb.gmra.mxu2 %v14818_v36  ;;  %v8465_v56 = vor.u32 %v9547_v5, %v8464_v3  ;;  %4853 = vmatpush.bf16.msra.mxu0 %v8337_v60 }
 0x3b9   : > { %3789 = vmatmul.bf16.vlgmr.msrb.gmra.mxu3 %v14819_v32  ;;  %4952 = vmatpush.bf16.msra.mxu2 %v8577_v7 }
 0x3ba   : > { %v12566_v55 = vpack.c.bf16 %v14517_v17, %v14518_v30  ;;  %5000 = vmatpush.bf16.msra.mxu3 %v8721_v49  ;;  %4902 = vmatpush.bf16.msra.mxu1 %v8465_v56 }
 0x3bb   : > { %v3545_v59 = vpop.f32.mrf.mxu2 }
 0x3bc   : > { %v3546_v8 = vadd.f32 %v3545_v59, %v3497_v26  ;;  %v3594_v9 = vpop.f32.mrf.mxu3  ;;  %v3449_v10 = vpop.f32.mrf.mxu0 }
 0x3bd   : > { %v3450_v11 = vadd.f32 %v3449_v10, %v12551_v2  ;;  %v3498_v44 = vpop.f32.mrf.mxu1  ;;  %v14821_v10 = vld [vmem:[#allocation21_spill] sm:$0xff] }
 0x3be   : > { %v12569_v29 = vadd.f32 %v3594_v9, %v3546_v8  ;;  %v14820_v9 = vld [vmem:[#allocation20_spill] sm:$0xff] }
 0x3bf   : > { %v3499_v4 = vadd.f32 %v3498_v44, %v3450_v11  ;;  %v14822_v11 = vld [vmem:[#allocation22_spill] sm:$0xff]  ;;  %v14823_v44 = vld [vmem:[#allocation23_spill] sm:$0xff] }
 0x3c3   : > { %v3547_v26 = vpop.f32.mrf.mxu2 }
 0x3c4   : > { %v3548_v36 = vadd.f32 %v3547_v26, %v3499_v4  ;;  %v3596_v32 = vpop.f32.mrf.mxu3  ;;  %v3452_v18 = vpop.f32.mrf.mxu0  ;;  %v8320_v26 = vld [vmem:[#allocation4 + $0xa0] sm:$0xf] }
 0x3c5   : > { %v3453_v50 = vadd.f32 %v3452_v18, %v12551_v2  ;;  %v3501_v12 = vpop.f32.mrf.mxu1 }
 0x3c6   : > { %v12572_v59 = vadd.f32 %v3596_v32, %v3548_v36  ;;  %v9511_v36 = vld [vmem:[#allocation4 + $0xac] sm:$0xf0]  ;;  %v8704_v32 = vld [vmem:[#allocation4 + $0x3a0] sm:$0xf] }
 0x3c7   : > { %v3502_v8 = vadd.f32 %v3501_v12, %v3453_v50  ;;  %3647 = vmatmul.bf16.gmra.mxu0 %v14820_v9  ;;  %3696 = vmatmul.bf16.gmra.mxu1 %v14821_v10  ;;  %v8321_v50 = vor.u32 %v9511_v36, %v8320_v26  ;;  %v9607_v12 = vld [vmem:[#allocation4 + $0x3ac] sm:$0xf0]  ;;  %v8448_v9 = vld [vmem:[#allocation4 + $0x1a0] sm:$0xf]  ;;  %v14827_v36 = vld [vmem:[#allocation27_spill] sm:$0xff] }
 0x3c8   : > { %3745 = vmatmul.bf16.gmra.mxu2 %v14822_v11  ;;  %v9543_v10 = vld [vmem:[#allocation4 + $0x1ac] sm:$0xf0]  ;;  %v8705_v11 = vor.u32 %v9607_v12, %v8704_v32  ;;  %v8560_v32 = vld [vmem:[#allocation4 + $0x280] sm:$0xf] }
 0x3c9   : > { %3794 = vmatmul.bf16.gmra.mxu3 %v14823_v44  ;;  %v8449_v44 = vor.u32 %v9543_v10, %v8448_v9  ;;  %4854 = vmatpush.bf16.msra.mxu0 %v8321_v50  ;;  %v14826_v26 = vld [vmem:[#allocation26_spill] sm:$0xff] }
 0x3ca   : > { %5001 = vmatpush.bf16.msra.mxu3 %v8705_v11  ;;  %v9571_v50 = vld [vmem:[#allocation4 + $0x28c] sm:$0xf0] }
 0x3cb   : > { %v3550_v4 = vpop.f32.mrf.mxu2  ;;  %4903 = vmatpush.bf16.msra.mxu1 %v8449_v44  ;;  %v8561_v12 = vor.u32 %v9571_v50, %v8560_v32 }
 0x3cc   : > { %v3551_v60 = vadd.f32 %v3550_v4, %v3502_v8  ;;  %v3599_v63 = vpop.f32.mrf.mxu3  ;;  %v3454_v3 = vpop.f32.mrf.mxu0 }
 0x3cd   : > { %v3455_v5 = vadd.f32 %v3454_v3, %v12551_v2  ;;  %v3503_v49 = vpop.f32.mrf.mxu1  ;;  %4953 = vmatpush.bf16.msra.mxu2 %v8561_v12 }
 0x3ce   : > { %v12579_v56 = vadd.f32 %v3599_v63, %v3551_v60 }
 0x3cf   : > { %v3504_v18 = vadd.f32 %v3503_v49, %v3455_v5  ;;  %v14824_v5 = vld [vmem:[#allocation24_spill] sm:$0xff]  ;;  %v14825_v49 = vld [vmem:[#allocation25_spill] sm:$0xff] }
 0x3d3   : > { %v3552_v8 = vpop.f32.mrf.mxu2 }
 0x3d4   : > { %v3553_v47 = vadd.f32 %v3552_v8, %v3504_v18  ;;  %v3601_v45 = vpop.f32.mrf.mxu3  ;;  %v3457_v7 = vpop.f32.mrf.mxu0 }
 0x3d5   : > { %v3458_v4 = vadd.f32 %v3457_v7, %v12551_v2  ;;  %v3506_v60 = vpop.f32.mrf.mxu1  ;;  %v9507_v7 = vld [vmem:[#allocation4 + $0x8c] sm:$0xf0] }
 0x3d6   : > { %v12582_v63 = vadd.f32 %v3601_v45, %v3553_v47  ;;  %v8304_v45 = vld [vmem:[#allocation4 + $0x80] sm:$0xf] }
 0x3d7   : > { %v3507_v3 = vadd.f32 %v3506_v60, %v3458_v4  ;;  %3652 = vmatmul.bf16.gmra.mxu0 %v14824_v5  ;;  %3701 = vmatmul.bf16.gmra.mxu1 %v14825_v49  ;;  %v8688_v4 = vld [vmem:[#allocation4 + $0x380] sm:$0xf]  ;;  %v8305_v5 = vor.u32 %v9507_v7, %v8304_v45  ;;  %v9603_v49 = vld [vmem:[#allocation4 + $0x38c] sm:$0xf0]  ;;  %v14831_v7 = vld [vmem:[#allocation31_spill] sm:$0xff] }
 0x3d8   : > { %3750 = vmatmul.bf16.gmra.mxu2 %v14826_v26  ;;  %v8432_v26 = vld [vmem:[#allocation4 + $0x180] sm:$0xf]  ;;  %v8689_v17 = vor.u32 %v9603_v49, %v8688_v4  ;;  %v14830_v45 = vld [vmem:[#allocation30_spill] sm:$0xff] }
 0x3d9   : > { %3799 = vmatmul.bf16.gmra.mxu3 %v14827_v36  ;;  %v9539_v36 = vld [vmem:[#allocation4 + $0x18c] sm:$0xf0]  ;;  %4855 = vmatpush.bf16.msra.mxu0 %v8305_v5 }
 0x3da   : > { %v8433_v32 = vor.u32 %v9539_v36, %v8432_v26  ;;  %5002 = vmatpush.bf16.msra.mxu3 %v8689_v17  ;;  %v8544_v17 = vld [vmem:[#allocation4 + $0x260] sm:$0xf]  ;;  %v9567_v4 = vld [vmem:[#allocation4 + $0x26c] sm:$0xf0] }
 0x3db   : > { %v3555_v18 = vpop.f32.mrf.mxu2  ;;  %v8545_v5 = vor.u32 %v9567_v4, %v8544_v17 }
 0x3dc   : > { %v3556_v9 = vadd.f32 %v3555_v18, %v3507_v3  ;;  %v3604_v10 = vpop.f32.mrf.mxu3  ;;  %v3459_v11 = vpop.f32.mrf.mxu0  ;;  %4904 = vmatpush.bf16.msra.mxu1 %v8433_v32 }
 0x3dd   : > { %v3460_v44 = vadd.f32 %v3459_v11, %v12551_v2  ;;  %v3508_v8 = vpop.f32.mrf.mxu1  ;;  %4954 = vmatpush.bf16.msra.mxu2 %v8545_v5 }
 0x3de   : > { %v12589_v47 = vadd.f32 %v3604_v10, %v3556_v9 }
 0x3df   : > { %v3509_v60 = vadd.f32 %v3508_v8, %v3460_v44  ;;  %v14828_v44 = vld [vmem:[#allocation28_spill] sm:$0xff]  ;;  %v14829_v8 = vld [vmem:[#allocation29_spill] sm:$0xff] }
 0x3e3   : > { %v3557_v3 = vpop.f32.mrf.mxu2 }
 0x3e4   : > { %v3558_v50 = vadd.f32 %v3557_v3, %v3509_v60  ;;  %v3606_v12 = vpop.f32.mrf.mxu3  ;;  %v3462_v18 = vpop.f32.mrf.mxu0 }
 0x3e5   : > { %v3463_v9 = vadd.f32 %v3462_v18, %v12551_v2  ;;  %v3511_v10 = vpop.f32.mrf.mxu1  ;;  %v9503_v18 = vld [vmem:[#allocation4 + $0x6c] sm:$0xf0] }
 0x3e6   : > { %v12592_v11 = vadd.f32 %v3606_v12, %v3558_v50  ;;  %v8288_v12 = vld [vmem:[#allocation4 + $0x60] sm:$0xf] }
 0x3e7   : > { %v3512_v30 = vadd.f32 %v3511_v10, %v3463_v9  ;;  %3657 = vmatmul.bf16.gmra.mxu0 %v14828_v44  ;;  %3706 = vmatmul.bf16.gmra.mxu1 %v14829_v8  ;;  %v8672_v9 = vld [vmem:[#allocation4 + $0x360] sm:$0xf]  ;;  %v8289_v44 = vor.u32 %v9503_v18, %v8288_v12  ;;  %v9599_v8 = vld [vmem:[#allocation4 + $0x36c] sm:$0xf0]  ;;  %v14835_v18 = vld [vmem:[#allocation35_spill] sm:$0xff] }
 0x3e8   : > { %3755 = vmatmul.bf16.gmra.mxu2 %v14830_v45  ;;  %v8416_v45 = vld [vmem:[#allocation4 + $0x160] sm:$0xf]  ;;  %v8673_v20 = vor.u32 %v9599_v8, %v8672_v9  ;;  %v14834_v12 = vld [vmem:[#allocation34_spill] sm:$0xff] }
 0x3e9   : > { %3804 = vmatmul.bf16.gmra.mxu3 %v14831_v7  ;;  %v9535_v7 = vld [vmem:[#allocation4 + $0x16c] sm:$0xf0]  ;;  %4856 = vmatpush.bf16.msra.mxu0 %v8289_v44 }
 0x3ea   : > { %v8417_v17 = vor.u32 %v9535_v7, %v8416_v45  ;;  %5003 = vmatpush.bf16.msra.mxu3 %v8673_v20  ;;  %v8528_v20 = vld [vmem:[#allocation4 + $0x240] sm:$0xf]  ;;  %v9563_v9 = vld [vmem:[#allocation4 + $0x24c] sm:$0xf0] }
 0x3eb   : > { %v3560_v60 = vpop.f32.mrf.mxu2  ;;  %v8529_v44 = vor.u32 %v9563_v9, %v8528_v20 }
 0x3ec   : > { %v3561_v49 = vadd.f32 %v3560_v60, %v3512_v30  ;;  %v3609_v26 = vpop.f32.mrf.mxu3  ;;  %v3464_v36 = vpop.f32.mrf.mxu0  ;;  %4905 = vmatpush.bf16.msra.mxu1 %v8417_v17 }
 0x3ed   : > { %v3465_v32 = vadd.f32 %v3464_v36, %v12551_v2  ;;  %v3513_v3 = vpop.f32.mrf.mxu1  ;;  %4955 = vmatpush.bf16.msra.mxu2 %v8529_v44 }
 0x3ee   : > { %v12599_v50 = vadd.f32 %v3609_v26, %v3561_v49 }
 0x3ef   : > { %v3514_v10 = vadd.f32 %v3513_v3, %v3465_v32  ;;  %v14832_v32 = vld [vmem:[#allocation32_spill] sm:$0xff]  ;;  %v14833_v3 = vld [vmem:[#allocation33_spill] sm:$0xff] }
 0x3f3   : > { %v3562_v30 = vpop.f32.mrf.mxu2 }
 0x3f4   : > { %v3563_v4 = vadd.f32 %v3562_v30, %v3514_v10  ;;  %v3611_v5 = vpop.f32.mrf.mxu3  ;;  %v3467_v60 = vpop.f32.mrf.mxu0 }
 0x3f5   : > { %v3468_v49 = vadd.f32 %v3467_v60, %v12551_v2  ;;  %v3516_v26 = vpop.f32.mrf.mxu1  ;;  %v9499_v60 = vld [vmem:[#allocation4 + $0x4c] sm:$0xf0] }
 0x3f6   : > { %v12602_v36 = vadd.f32 %v3611_v5, %v3563_v4  ;;  %v8272_v5 = vld [vmem:[#allocation4 + $0x40] sm:$0xf] }
 0x3f7   : > { %v3517_v23 = vadd.f32 %v3516_v26, %v3468_v49  ;;  %3662 = vmatmul.bf16.gmra.mxu0 %v14832_v32  ;;  %3711 = vmatmul.bf16.gmra.mxu1 %v14833_v3  ;;  %v8656_v49 = vld [vmem:[#allocation4 + $0x340] sm:$0xf]  ;;  %v8273_v32 = vor.u32 %v9499_v60, %v8272_v5  ;;  %v9595_v3 = vld [vmem:[#allocation4 + $0x34c] sm:$0xf0]  ;;  %v14839_v60 = vld [vmem:[#allocation39_spill] sm:$0xff] }
 0x3f8   : > { %3760 = vmatmul.bf16.gmra.mxu2 %v14834_v12  ;;  %v8400_v12 = vld [vmem:[#allocation4 + $0x140] sm:$0xf]  ;;  %v8657_v43 = vor.u32 %v9595_v3, %v8656_v49  ;;  %v14838_v5 = vld [vmem:[#allocation38_spill] sm:$0xff] }
 0x3f9   : > { %3809 = vmatmul.bf16.gmra.mxu3 %v14835_v18  ;;  %v9531_v18 = vld [vmem:[#allocation4 + $0x14c] sm:$0xf0]  ;;  %4857 = vmatpush.bf16.msra.mxu0 %v8273_v32 }
 0x3fa   : > { %v8401_v20 = vor.u32 %v9531_v18, %v8400_v12  ;;  %5004 = vmatpush.bf16.msra.mxu3 %v8657_v43  ;;  %v8512_v43 = vld [vmem:[#allocation4 + $0x220] sm:$0xf]  ;;  %v9559_v49 = vld [vmem:[#allocation4 + $0x22c] sm:$0xf0] }
 0x3fb   : > { %v3565_v10 = vpop.f32.mrf.mxu2  ;;  %v8513_v32 = vor.u32 %v9559_v49, %v8512_v43  ;;  %v8240_v49 = vld [vmem:[#allocation4] sm:$0xf] }
 0x3fc   : > { %v3566_v8 = vadd.f32 %v3565_v10, %v3517_v23  ;;  %v3614_v45 = vpop.f32.mrf.mxu3  ;;  %v3469_v7 = vpop.f32.mrf.mxu0  ;;  %4906 = vmatpush.bf16.msra.mxu1 %v8401_v20 }
 0x3fd   : > { %v3470_v17 = vadd.f32 %v3469_v7, %v12551_v2  ;;  %v3518_v30 = vpop.f32.mrf.mxu1  ;;  %4956 = vmatpush.bf16.msra.mxu2 %v8513_v32  ;;  %v9491_v32 = vld [vmem:[#allocation4 + $0xc] sm:$0xf0] }
 0x3fe   : > { %v12609_v4 = vadd.f32 %v3614_v45, %v3566_v8  ;;  %v8241_v14 = vor.u32 %v9491_v32, %v8240_v49 }
 0x3ff   : > { %v3519_v26 = vadd.f32 %v3518_v30, %v3470_v17  ;;  %v14836_v17 = vld [vmem:[#allocation36_spill] sm:$0xff]  ;;  %v14837_v30 = vld [vmem:[#allocation37_spill] sm:$0xff] }
 0x403   : > { %v3567_v23 = vpop.f32.mrf.mxu2 }
 0x404   : > { %v12611_v9 = vadd.f32 %v3567_v23, %v3519_v26  ;;  %v12613_v44 = vpop.f32.mrf.mxu3  ;;  %v3472_v10 = vpop.f32.mrf.mxu0 }
 0x405   : > { %v3473_v8 = vadd.f32 %v3472_v10, %v12551_v2  ;;  %v3521_v45 = vpop.f32.mrf.mxu1 }
 0x407   : > { %v3522_v7 = vadd.f32 %v3521_v45, %v3473_v8  ;;  %3667 = vmatmul.bf16.gmra.mxu0 %v14836_v17  ;;  %3716 = vmatmul.bf16.gmra.mxu1 %v14837_v30  ;;  %v8256_v8 = vld [vmem:[#allocation4 + $0x20] sm:$0xf]  ;;  %v9495_v45 = vld [vmem:[#allocation4 + $0x2c] sm:$0xf0] }
 0x408   : > { %3765 = vmatmul.bf16.gmra.mxu2 %v14838_v5  ;;  %v8640_v17 = vld [vmem:[#allocation4 + $0x320] sm:$0xf]  ;;  %v8257_v5 = vor.u32 %v9495_v45, %v8256_v8  ;;  %v9555_v8 = vld [vmem:[#allocation4 + $0x20c] sm:$0xf0] }
 0x409   : > { %3814 = vmatmul.bf16.gmra.mxu3 %v14839_v60  ;;  %v8384_v60 = vld [vmem:[#allocation4 + $0x120] sm:$0xf]  ;;  %v8641_v34 = vor.u32 %v9591_v42, %v8640_v17 }
 0x40a   : > { %v8385_v43 = vor.u32 %v9527_v41, %v8384_v60  ;;  %4858 = vmatpush.bf16.msra.mxu0 %v8257_v5  ;;  %v14840_v5 = vld [vmem:[#allocation40_spill] sm:$0xff]  ;;  %v14841_v60 = vld [vmem:[#allocation41_spill] sm:$0xff] }
 0x40b   : > { %v3570_v26 = vpop.f32.mrf.mxu2  ;;  %5005 = vmatpush.bf16.msra.mxu3 %v8641_v34 }
 0x40c   : > { %v3571_v3 = vadd.f32 %v3570_v26, %v3522_v7  ;;  %v3619_v12 = vpop.f32.mrf.mxu3  ;;  %v3474_v18 = vpop.f32.mrf.mxu0  ;;  %4907 = vmatpush.bf16.msra.mxu1 %v8385_v43  ;;  %v8368_v26 = vld [vmem:[#allocation4 + $0x100] sm:$0xf]  ;;  %v14843_v43 = vld [vmem:[#allocation43_spill] sm:$0xff] }
 0x40d   : > { %v3475_v20 = vadd.f32 %v3474_v18, %v12551_v2  ;;  %v3523_v23 = vpop.f32.mrf.mxu1 }
 0x40e   : > { %v12621_v10 = vadd.f32 %v3619_v12, %v3571_v3  ;;  %4859 = vmatpush.bf16.msra.mxu0 %v8241_v14 }
 0x40f   : > { %v3524_v30 = vadd.f32 %v3523_v23, %v3475_v20  ;;  %v9523_v20 = vld [vmem:[#allocation4 + $0x10c] sm:$0xf0]  ;;  %v8496_v23 = vld [vmem:[#allocation4 + $0x200] sm:$0xf] }
 0x410   : > { %v8369_v41 = vor.u32 %v9523_v20, %v8368_v26  ;;  %v8497_v17 = vor.u32 %v9555_v8, %v8496_v23  ;;  %v8624_v23 = vld [vmem:[#allocation4 + $0x300] sm:$0xf]  ;;  %v9587_v8 = vld [vmem:[#allocation4 + $0x30c] sm:$0xf0] }
 0x412   : > { %4908 = vmatpush.bf16.msra.mxu1 %v8369_v41  ;;  %4957 = vmatpush.bf16.msra.mxu2 %v8497_v17 }
 0x413   : > { %v3572_v7 = vpop.f32.mrf.mxu2 }
 0x414   : > { %v12623_v18 = vadd.f32 %v3572_v7, %v3524_v30  ;;  %v12625_v3 = vpop.f32.mrf.mxu3  ;;  %v3477_v12 = vpop.f32.mrf.mxu0  ;;  %v14842_v30 = vld [vmem:[#allocation42_spill] sm:$0xff] }
 0x415   : > { %v3478_v45 = vadd.f32 %v3477_v12, %v12551_v2  ;;  %v3526_v42 = vpop.f32.mrf.mxu1 }
 0x417   : > { %v3527_v34 = vadd.f32 %v3526_v42, %v3478_v45  ;;  %3672 = vmatmul.bf16.gmra.mxu0 %v14840_v5  ;;  %3721 = vmatmul.bf16.gmra.mxu1 %v14841_v60  ;;  %v8625_v42 = vor.u32 %v9587_v8, %v8624_v23  ;;  %v14527_v60 = vlaneseq }
 0x418   : > { %3770 = vmatmul.bf16.gmra.mxu2 %v14842_v30 }
 0x419   : > { %3819 = vmatmul.bf16.gmra.mxu3 %v14843_v43  ;;  %v14844_v43 = vld [vmem:[#allocation44_spill] sm:$0xff] }
 0x41a   : > { %5006 = vmatpush.bf16.msra.mxu3 %v8625_v42  ;;  %v12649_v42 = vstv %s8237_s10 }
 0x41b   : > { %v3575_v7 = vpop.f32.mrf.mxu2 }
 0x41c   : > { %v3576_v49 = vadd.f32 %v3575_v7, %v3527_v34  ;;  %v3624_v32 = vpop.f32.mrf.mxu3  ;;  %v3479_v13 = vpop.f32.mrf.mxu0  ;;  %v14845_v7 = vld [vmem:[#allocation45_spill] sm:$0xff] }
 0x41d   : > { %v3480_v12 = vadd.f32 %v3479_v13, %v12551_v2  ;;  %v3528_v26 = vpop.f32.mrf.mxu1 }
 0x41e   : > { %v12633_v20 = vadd.f32 %v3624_v32, %v3576_v49  ;;  %v14846_v49 = vld [vmem:[#allocation46_spill] sm:$0xff]  ;;  %v12645_v32 = vshrl.u32 %v14527_v60, 7 }
 0x41f   : > { %v3529_v14 = vadd.f32 %v3528_v26, %v3480_v12  ;;  %v14847_v12 = vld [vmem:[#allocation47_spill] sm:$0xff]  ;;  %v9581_v26 = vld [vmem:[#allocation4 + $0x2e4] sm:$0xf] }
 0x420   : > { %v3897_v23 = vadd.s32 8, %v12645_v32 }
 0x422   : > { %v3914_v60 = vadd.s32 %v12649_v42, %v3897_v23  ;;  %v9549_v23 = vld [vmem:[#allocation4 + $0x1e4] sm:$0xf] }
 0x423   : > { %v3577_v45 = vpop.f32.mrf.mxu2 }
 0x424   : > { %v12635_v41 = vadd.f32 %v3577_v45, %v3529_v14  ;;  %v12637_v5 = vpop.f32.mrf.mxu3  ;;  %v3482_v17 = vpop.f32.mrf.mxu0  ;;  %v8610_v14 = vld [vmem:[#allocation4 + $0x2f0] sm:$0xf0]  ;;  %vm12665_vm1 = vcmp.lt.s32.totalorder %v3914_v60, %v12657_v51 }
 0x425   : > { %v3483_v34 = vadd.f32 %v3482_v17, %v12551_v2  ;;  %v3531_v30 = vpop.f32.mrf.mxu1  ;;  %v8613_v45 = vor.u32 %v9581_v26, %v8610_v14  ;;  %v9517_v26 = vld [vmem:[#allocation4 + $0xe4] sm:$0xf]  ;;  %v8354_v14 = vld [vmem:[#allocation4 + $0xf0] sm:$0xf0] }
 0x427   : > { %v3532_v13 = vadd.f32 %v3531_v30, %v3483_v34  ;;  %3677 = vmatmul.bf16.gmra.mxu0 %v14844_v43  ;;  %3726 = vmatmul.bf16.gmra.mxu1 %v14845_v7 }
 0x428   : > { %3775 = vmatmul.bf16.gmra.mxu2 %v14846_v49 }
 0x429   : > { %3824 = vmatmul.bf16.gmra.mxu3 %v14847_v12  ;;  %5146 = vmatpush.bf16.msrb.mxu2 %v8613_v45  ;;  %v3913_v12 = vadd.s32 %v12649_v42, %v12645_v32  ;;  %v8357_v45 = vor.u32 %v9517_v26, %v8354_v14  ;;  %v14856_v26 = vld [vmem:[#allocation50_spill] sm:$0xff] }
 0x42a   : > { %v14857_v14 = vld [vmem:[#allocation70_spill] sm:$0xff] }
 0x42b   : > { %v3580_v8 = vpop.f32.mrf.mxu2  ;;  %vm12660_vm0 = vcmp.lt.s32.totalorder %v3913_v12, %v12657_v51  ;;  %5048 = vmatpush.bf16.msrb.mxu0 %v8357_v45  ;;  %v3898_v45 = vadd.s32 16, %v12645_v32 }
 0x42c   : > { %v3581_v17 = vadd.f32 %v3580_v8, %v3532_v13  ;;  %v3629_v34 = vpop.f32.mrf.mxu3  ;;  %v3484_v30 = vpop.f32.mrf.mxu0  ;;  %v14848_v13 = vmov 0  ;;  %vm12673_vm2 = vmpackc.low %vm12665_vm1, %vm12660_vm0 }
 0x42d   : > { %v3485_v43 = vadd.f32 %v3484_v30, %v12551_v2  ;;  %v3533_v7 = vpop.f32.mrf.mxu1  ;;  %v14849_v13 = vsel %vm12660_vm0, 4294967295, %v14848_v13  ;;  %v14851_v2 = vmov 0  ;;  %v3915_v53 = vadd.s32 %v12649_v42, %v3898_v45  ;;  %v9545_v45 = vld [vmem:[#allocation4 + $0x1c4] sm:$0xf] }
 0x42e   : > { %v12652_v49 = vadd.f32 %v3629_v34, %v3581_v17  ;;  %14850 = vst [vmem:[#allocation16_spill] sm:$0xff] %v14849_v13  ;;  %v14852_v2 = vsel %vm12665_vm1, 4294967295, %v14851_v2  ;;  %v8738_v17 = vld [vmem:[#allocation4 + $0x3f0] sm:$0xf0] }
 0x42f   : > { %v3534_v52 = vadd.f32 %v3533_v7, %v3485_v43  ;;  %14853 = vst [vmem:[#allocation17_spill] sm:$0xff] %v14852_v2  ;;  %v8482_v34 = vld [vmem:[#allocation4 + $0x1f0] sm:$0xf0]  ;;  %v8741_v12 = vor.u32 %v9613_v39, %v8738_v17  ;;  %v9577_v39 = vld [vmem:[#allocation4 + $0x2c4] sm:$0xf]  ;;  %vm12697_vm3 = vcmp.lt.s32.totalorder %v3915_v53, %v12657_v51 }
 0x430   : > { %v8485_v27 = vor.u32 %v9549_v23, %v8482_v34  ;;  %v14859_v40 = vsel %vm12697_vm3, 4294967295, %v14858_v40  ;;  %v9589_v2 = vld [vmem:[#allocation4 + $0x324] sm:$0xf]  ;;  %v8642_v13 = vld [vmem:[#allocation4 + $0x330] sm:$0xf0] }
 0x431   : > { %5195 = vmatpush.bf16.msrb.mxu3 %v8741_v12  ;;  %14860 = vst [vmem:[#allocation18_spill] sm:$0xff] %v14859_v40 }
 0x432   : > { %5097 = vmatpush.bf16.msrb.mxu1 %v8485_v27  ;;  %v3899_v27 = vadd.s32 24, %v12645_v32 }
 0x433   : > { %v3582_v8 = vpop.f32.mrf.mxu2 }
 0x434   : > { %v12677_v43 = vadd.f32 %v3582_v8, %v3534_v52  ;;  %v12679_v7 = vpop.f32.mrf.mxu3  ;;  %v3643_v60 = vpop.f32.mrf.mxu0  ;;  %v8594_v8 = vld [vmem:[#allocation4 + $0x2d0] sm:$0xf0]  ;;  %v3916_v62 = vadd.s32 %v12649_v42, %v3899_v27 }
 0x435   : > { %v3692_v57 = vpop.f32.mrf.mxu1  ;;  %v3644_v52 = vadd.f32 %v3643_v60, %v12569_v29  ;;  %v8597_v23 = vor.u32 %v9577_v39, %v8594_v8  ;;  %v14861_v39 = vmov 0  ;;  %v8722_v8 = vld [vmem:[#allocation4 + $0x3d0] sm:$0xf0] }
 0x436   : > { %vm12702_vm4 = vcmp.lt.s32.totalorder %v3916_v62, %v12657_v51 }
 0x437   : > { %8752 = vmatmul.msk.bf16.vlgmr.msra.gmra.mxu0 %vm12673_vm2, %v14856_v26  ;;  %8776 = vmatmul.msk.bf16.vlgmr.msra.gmra.mxu1 %vm12673_vm2, %v14857_v14  ;;  %v3693_v24 = vadd.f32 %v3692_v57, %v3644_v52  ;;  %v14862_v39 = vsel %vm12702_vm4, 4294967295, %v14861_v39  ;;  %v9609_v52 = vld [vmem:[#allocation4 + $0x3c4] sm:$0xf]  ;;  %vm12710_vm5 = vmpackc.low %vm12702_vm4, %vm12697_vm3 }
 0x438   : > { %8800 = vmatmul.msk.bf16.vlgmr.msra.gmra.mxu2 %vm12673_vm2, %v12318_v46  ;;  %14863 = vst [vmem:[#allocation19_spill] sm:$0xff] %v14862_v39  ;;  %v8725_v27 = vor.u32 %v9609_v52, %v8722_v8  ;;  %v8578_v52 = vld [vmem:[#allocation4 + $0x2b0] sm:$0xf0]  ;;  %v3900_v8 = vadd.s32 32, %v12645_v32 }
 0x439   : > { %5147 = vmatpush.bf16.msrb.mxu2 %v8597_v23 }
 0x43a   : > { %5196 = vmatpush.bf16.msrb.mxu3 %v8725_v27 }
 0x43b   : > { %v3741_v17 = vpop.f32.mrf.mxu2 }
 0x43c   : > { %v3790_v34 = vpop.f32.mrf.mxu3  ;;  %v3645_v12 = vpop.f32.mrf.mxu0  ;;  %v3742_v29 = vadd.f32 %v3741_v17, %v3693_v24  ;;  %v8466_v17 = vld [vmem:[#allocation4 + $0x1d0] sm:$0xf0] }
 0x43d   : > { %v3694_v54 = vpop.f32.mrf.mxu1  ;;  %v3646_v6 = vadd.f32 %v3645_v12, %v12572_v59  ;;  %v8341_v59 = vor.u32 %v9513_v15, %v8338_v28  ;;  %v8469_v28 = vor.u32 %v9545_v45, %v8466_v17  ;;  %v14868_v12 = vld [vmem:[#allocation53_spill] sm:$0xff]  ;;  %v3901_v45 = vadd.s32 40, %v12645_v32 }
 0x43e   : > { %v12714_v53 = vadd.f32 %v3790_v34, %v3742_v29  ;;  %v14869_v29 = vld [vmem:[#allocation73_spill] sm:$0xff] }
 0x43f   : > { %v3695_v60 = vadd.f32 %v3694_v54, %v3646_v6  ;;  %5049 = vmatpush.bf16.msrb.mxu0 %v8341_v59  ;;  %5098 = vmatpush.bf16.msrb.mxu1 %v8469_v28  ;;  %v9573_v59 = vld [vmem:[#allocation4 + $0x2a4] sm:$0xf] }
 0x440   : > { %14866 = vst [vmem:[#allocation20_spill] sm:$0xff] %v12714_v53  ;;  %v14543_v58 = vmax.f32 %v12714_v53, 0.0  ;;  %v9505_v53 = vld [vmem:[#allocation4 + $0x84] sm:$0xf] }
 0x443   : > { %v3743_v57 = vpop.f32.mrf.mxu2 }
 0x444   : > { %v3744_v6 = vadd.f32 %v3743_v57, %v3695_v60  ;;  %v3792_v62 = vpop.f32.mrf.mxu3  ;;  %v3648_v24 = vpop.f32.mrf.mxu0 }
 0x445   : > { %v3697_v23 = vpop.f32.mrf.mxu1  ;;  %v3649_v57 = vadd.f32 %v3648_v24, %v12579_v56  ;;  %v3917_v56 = vadd.s32 %v12649_v42, %v3900_v8  ;;  %v3918_v24 = vadd.s32 %v12649_v42, %v3901_v45  ;;  %v8706_v8 = vld [vmem:[#allocation4 + $0x3b0] sm:$0xf0] }
 0x446   : > { %v12716_v15 = vadd.f32 %v3792_v62, %v3744_v6  ;;  %v8581_v62 = vor.u32 %v9573_v59, %v8578_v52  ;;  %v14871_v59 = vmov 0  ;;  %v14874_v52 = vmov 0 }
 0x447   : > { %8755 = vmatmul.msk.bf16.gmra.mxu0 %vm12710_vm5, %v14868_v12  ;;  %8779 = vmatmul.msk.bf16.gmra.mxu1 %vm12710_vm5, %v14869_v29  ;;  %vm12745_vm6 = vcmp.lt.s32.totalorder %v3917_v56, %v12657_v51  ;;  %vm12750_vm7 = vcmp.lt.s32.totalorder %v3918_v24, %v12657_v51  ;;  %v8450_v56 = vld [vmem:[#allocation4 + $0x1b0] sm:$0xf0] }
 0x448   : > { %14867 = vst [vmem:[#allocation21_spill] sm:$0xff] %v12716_v15  ;;  %v14542_v34 = vmax.f32 %v12716_v15, 0.0  ;;  %8803 = vmatmul.msk.bf16.gmra.mxu2 %vm12710_vm5, %v12360_v1  ;;  %v14872_v59 = vsel %vm12745_vm6, 4294967295, %v14871_v59  ;;  %v14875_v52 = vsel %vm12750_vm7, 4294967295, %v14874_v52  ;;  %vm12758_vm8 = vmpackc.low %vm12750_vm7, %vm12745_vm6 }
 0x449   : > { %5148 = vmatpush.bf16.msrb.mxu2 %v8581_v62  ;;  %14873 = vst [vmem:[#allocation23_spill] sm:$0xff] %v14872_v59  ;;  %v9541_v62 = vld [vmem:[#allocation4 + $0x1a4] sm:$0xf] }
 0x44a   : > { %v12733_v60 = vpack.c.bf16 %v14542_v34, %v14543_v58  ;;  %v3698_v34 = vadd.f32 %v3697_v23, %v3649_v57  ;;  %14876 = vst [vmem:[#allocation24_spill] sm:$0xff] %v14875_v52  ;;  %v9605_v57 = vld [vmem:[#allocation4 + $0x3a4] sm:$0xf]  ;;  %v8258_v52 = vld [vmem:[#allocation4 + $0x30] sm:$0xf0] }
 0x44b   : > { %v3746_v6 = vpop.f32.mrf.mxu2 }
 0x44c   : > { %14870 = vst [vmem:[#allocation22_spill] sm:$0xff] %v12733_v60  ;;  %v3795_v27 = vpop.f32.mrf.mxu3  ;;  %8824 = vmatmul.msk.bf16.vlgmr.msra.gmra.mxu3 %vm12673_vm2, %v12733_v60  ;;  %v3650_v17 = vpop.f32.mrf.mxu0  ;;  %v3747_v37 = vadd.f32 %v3746_v6, %v3698_v34 }
 0x44d   : > { %v3699_v28 = vpop.f32.mrf.mxu1  ;;  %v3651_v58 = vadd.f32 %v3650_v17, %v12582_v63  ;;  %v8325_v63 = vor.u32 %v9509_v19, %v8322_v22  ;;  %v8453_v22 = vor.u32 %v9541_v62, %v8450_v56  ;;  %v3903_v62 = vadd.s32 56, %v12645_v32 }
 0x44e   : > { %v12762_v34 = vadd.f32 %v3795_v27, %v3747_v37 }
 0x44f   : > { %v3700_v21 = vadd.f32 %v3699_v28, %v3651_v58  ;;  %v8709_v28 = vor.u32 %v9605_v57, %v8706_v8  ;;  %5050 = vmatpush.bf16.msrb.mxu0 %v8325_v63  ;;  %5099 = vmatpush.bf16.msrb.mxu1 %v8453_v22  ;;  %v9569_v63 = vld [vmem:[#allocation4 + $0x284] sm:$0xf]  ;;  %v8562_v57 = vld [vmem:[#allocation4 + $0x290] sm:$0xf0]  ;;  %v3902_v8 = vadd.s32 48, %v12645_v32 }
 0x450   : > { %14879 = vst [vmem:[#allocation25_spill] sm:$0xff] %v12762_v34  ;;  %v14551_v15 = vmax.f32 %v12762_v34, 0.0 }
 0x451   : > { %5197 = vmatpush.bf16.msrb.mxu3 %v8709_v28 }
 0x453   : > { %v3748_v23 = vpop.f32.mrf.mxu2 }
 0x454   : > { %v3749_v45 = vadd.f32 %v3748_v23, %v3700_v21  ;;  %v3797_v6 = vpop.f32.mrf.mxu3  ;;  %v3653_v17 = vpop.f32.mrf.mxu0  ;;  %v14882_v21 = vld [vmem:[#allocation76_spill] sm:$0xff] }
 0x455   : > { %v3702_v24 = vpop.f32.mrf.mxu1  ;;  %v3654_v23 = vadd.f32 %v3653_v17, %v12589_v47  ;;  %v3919_v47 = vadd.s32 %v12649_v42, %v3902_v8  ;;  %v3920_v17 = vadd.s32 %v12649_v42, %v3903_v62  ;;  %v8690_v8 = vld [vmem:[#allocation4 + $0x390] sm:$0xf0] }
 0x456   : > { %v12764_v19 = vadd.f32 %v3797_v6, %v3749_v45  ;;  %v8565_v6 = vor.u32 %v9569_v63, %v8562_v57  ;;  %v14883_v63 = vmov 0  ;;  %v14886_v57 = vmov 0 }
 0x457   : > { %8758 = vmatmul.msk.bf16.gmra.mxu0 %vm12758_vm8, %v14881_v25  ;;  %8782 = vmatmul.msk.bf16.gmra.mxu1 %vm12758_vm8, %v14882_v21  ;;  %vm12793_vm9 = vcmp.lt.s32.totalorder %v3919_v47, %v12657_v51  ;;  %vm12798_vm10 = vcmp.lt.s32.totalorder %v3920_v17, %v12657_v51  ;;  %v8434_v47 = vld [vmem:[#allocation4 + $0x190] sm:$0xf0] }
 0x458   : > { %14880 = vst [vmem:[#allocation26_spill] sm:$0xff] %v12764_v19  ;;  %v14550_v37 = vmax.f32 %v12764_v19, 0.0  ;;  %8806 = vmatmul.msk.bf16.gmra.mxu2 %vm12758_vm8, %v12402_v31  ;;  %v14884_v63 = vsel %vm12793_vm9, 4294967295, %v14883_v63  ;;  %v14887_v57 = vsel %vm12798_vm10, 4294967295, %v14886_v57  ;;  %vm12806_vm11 = vmpackc.low %vm12798_vm10, %vm12793_vm9 }
 0x459   : > { %5149 = vmatpush.bf16.msrb.mxu2 %v8565_v6  ;;  %14885 = vst [vmem:[#allocation27_spill] sm:$0xff] %v14884_v63  ;;  %v9537_v6 = vld [vmem:[#allocation4 + $0x184] sm:$0xf]  ;;  %v8290_v63 = vld [vmem:[#allocation4 + $0x70] sm:$0xf0] }
 0x45a   : > { %v12781_v27 = vpack.c.bf16 %v14550_v37, %v14551_v15  ;;  %v3703_v37 = vadd.f32 %v3702_v24, %v3654_v23  ;;  %14888 = vst [vmem:[#allocation28_spill] sm:$0xff] %v14887_v57  ;;  %v9601_v23 = vld [vmem:[#allocation4 + $0x384] sm:$0xf] }
 0x45b   : > { %v3751_v45 = vpop.f32.mrf.mxu2  ;;  %v9501_v57 = vld [vmem:[#allocation4 + $0x64] sm:$0xf] }
 0x45c   : > { %v3800_v28 = vpop.f32.mrf.mxu3  ;;  %8827 = vmatmul.msk.bf16.gmra.mxu3 %vm12710_vm5, %v12781_v27  ;;  %v3655_v56 = vpop.f32.mrf.mxu0  ;;  %v3752_v19 = vadd.f32 %v3751_v45, %v3703_v37 }
 0x45d   : > { %v3704_v22 = vpop.f32.mrf.mxu1  ;;  %v3656_v15 = vadd.f32 %v3655_v56, %v12592_v11  ;;  %v8309_v11 = vor.u32 %v9505_v53, %v8306_v35  ;;  %v8437_v35 = vor.u32 %v9537_v6, %v8434_v47  ;;  %v3905_v6 = vadd.s32 72, %v12645_v32 }
 0x45e   : > { %v12810_v37 = vadd.f32 %v3800_v28, %v3752_v19 }
 0x45f   : > { %v3705_v34 = vadd.f32 %v3704_v22, %v3656_v15  ;;  %v8693_v22 = vor.u32 %v9601_v23, %v8690_v8  ;;  %5051 = vmatpush.bf16.msrb.mxu0 %v8309_v11  ;;  %5100 = vmatpush.bf16.msrb.mxu1 %v8437_v35  ;;  %v9565_v11 = vld [vmem:[#allocation4 + $0x264] sm:$0xf]  ;;  %v8546_v23 = vld [vmem:[#allocation4 + $0x270] sm:$0xf0]  ;;  %v3904_v8 = vadd.s32 64, %v12645_v32 }
 0x460   : > { %14891 = vst [vmem:[#allocation29_spill] sm:$0xff] %v12810_v37  ;;  %v14559_v16 = vmax.f32 %v12810_v37, 0.0 }
 0x461   : > { %5198 = vmatpush.bf16.msrb.mxu3 %v8693_v22 }
 0x463   : > { %v3753_v24 = vpop.f32.mrf.mxu2 }
 0x464   : > { %v3754_v62 = vadd.f32 %v3753_v24, %v3705_v34  ;;  %v3802_v45 = vpop.f32.mrf.mxu3  ;;  %v3658_v56 = vpop.f32.mrf.mxu0  ;;  %v14894_v34 = vld [vmem:[#allocation79_spill] sm:$0xff] }
 0x465   : > { %v3707_v17 = vpop.f32.mrf.mxu1  ;;  %v3659_v24 = vadd.f32 %v3658_v56, %v12599_v50  ;;  %v3921_v50 = vadd.s32 %v12649_v42, %v3904_v8  ;;  %v3922_v56 = vadd.s32 %v12649_v42, %v3905_v6  ;;  %v8674_v8 = vld [vmem:[#allocation4 + $0x370] sm:$0xf0] }
 0x466   : > { %v12812_v53 = vadd.f32 %v3802_v45, %v3754_v62  ;;  %v8549_v45 = vor.u32 %v9565_v11, %v8546_v23  ;;  %v14895_v11 = vmov 0  ;;  %v14898_v23 = vmov 0 }
 0x467   : > { %8761 = vmatmul.msk.bf16.gmra.mxu0 %vm12806_vm11, %v14893_v48  ;;  %8785 = vmatmul.msk.bf16.gmra.mxu1 %vm12806_vm11, %v14894_v34  ;;  %vm12841_vm12 = vcmp.lt.s32.totalorder %v3921_v50, %v12657_v51  ;;  %vm12846_vm13 = vcmp.lt.s32.totalorder %v3922_v56, %v12657_v51  ;;  %v8418_v50 = vld [vmem:[#allocation4 + $0x170] sm:$0xf0] }
 0x468   : > { %14892 = vst [vmem:[#allocation30_spill] sm:$0xff] %v12812_v53  ;;  %v14558_v19 = vmax.f32 %v12812_v53, 0.0  ;;  %8809 = vmatmul.msk.bf16.gmra.mxu2 %vm12806_vm11, %v12444_v0  ;;  %v14896_v11 = vsel %vm12841_vm12, 4294967295, %v14895_v11  ;;  %v14899_v23 = vsel %vm12846_vm13, 4294967295, %v14898_v23  ;;  %vm12854_vm14 = vmpackc.low %vm12846_vm13, %vm12841_vm12 }
 0x469   : > { %5150 = vmatpush.bf16.msrb.mxu2 %v8549_v45  ;;  %14897 = vst [vmem:[#allocation31_spill] sm:$0xff] %v14896_v11  ;;  %v9533_v45 = vld [vmem:[#allocation4 + $0x164] sm:$0xf]  ;;  %v14905_v11 = vld [vmem:[#allocation62_spill] sm:$0xff] }
 0x46a   : > { %v12829_v28 = vpack.c.bf16 %v14558_v19, %v14559_v16  ;;  %v3708_v19 = vadd.f32 %v3707_v17, %v3659_v24  ;;  %14900 = vst [vmem:[#allocation32_spill] sm:$0xff] %v14899_v23  ;;  %v9597_v24 = vld [vmem:[#allocation4 + $0x364] sm:$0xf] }
 0x46b   : > { %v3756_v62 = vpop.f32.mrf.mxu2 }
 0x46c   : > { %v3805_v22 = vpop.f32.mrf.mxu3  ;;  %8830 = vmatmul.msk.bf16.gmra.mxu3 %vm12758_vm8, %v12829_v28  ;;  %v3660_v47 = vpop.f32.mrf.mxu0  ;;  %v3757_v53 = vadd.f32 %v3756_v62, %v3708_v19 }
 0x46d   : > { %v3709_v35 = vpop.f32.mrf.mxu1  ;;  %v3661_v16 = vadd.f32 %v3660_v47, %v12602_v36  ;;  %v8293_v36 = vor.u32 %v9501_v57, %v8290_v63  ;;  %v8421_v63 = vor.u32 %v9533_v45, %v8418_v50  ;;  %v3907_v45 = vadd.s32 88, %v12645_v32 }
 0x46e   : > { %v12858_v19 = vadd.f32 %v3805_v22, %v3757_v53 }
 0x46f   : > { %v3710_v37 = vadd.f32 %v3709_v35, %v3661_v16  ;;  %v8677_v35 = vor.u32 %v9597_v24, %v8674_v8  ;;  %5052 = vmatpush.bf16.msrb.mxu0 %v8293_v36  ;;  %5101 = vmatpush.bf16.msrb.mxu1 %v8421_v63  ;;  %v9561_v36 = vld [vmem:[#allocation4 + $0x244] sm:$0xf]  ;;  %v8530_v24 = vld [vmem:[#allocation4 + $0x250] sm:$0xf0]  ;;  %v3906_v8 = vadd.s32 80, %v12645_v32 }
 0x470   : > { %14903 = vst [vmem:[#allocation33_spill] sm:$0xff] %v12858_v19  ;;  %v14571_v23 = vmax.f32 %v12858_v19, 0.0 }
 0x471   : > { %5199 = vmatpush.bf16.msrb.mxu3 %v8677_v35  ;;  %v3617_v35 = vadd.f32 %v12613_v44, %v12611_v9  ;;  %v14907_v9 = vmov 0  ;;  %v14910_v44 = vmov 0 }
 0x473   : > { %v3758_v17 = vpop.f32.mrf.mxu2 }
 0x474   : > { %v3759_v6 = vadd.f32 %v3758_v17, %v3710_v37  ;;  %v3807_v62 = vpop.f32.mrf.mxu3  ;;  %v3663_v47 = vpop.f32.mrf.mxu0  ;;  %v14906_v37 = vld [vmem:[#allocation82_spill] sm:$0xff] }
 0x475   : > { %v3712_v56 = vpop.f32.mrf.mxu1  ;;  %v3664_v17 = vadd.f32 %v3663_v47, %v12609_v4 }
 0x476   : > { %v12860_v57 = vadd.f32 %v3807_v62, %v3759_v6  ;;  %v8533_v62 = vor.u32 %v9561_v36, %v8530_v24  ;;  %v9497_v36 = vld [vmem:[#allocation4 + $0x44] sm:$0xf]  ;;  %v8274_v24 = vld [vmem:[#allocation4 + $0x50] sm:$0xf0] }
 0x477   : > { %8764 = vmatmul.msk.bf16.gmra.mxu0 %vm12854_vm14, %v14905_v11  ;;  %8788 = vmatmul.msk.bf16.gmra.mxu1 %vm12854_vm14, %v14906_v37  ;;  %v3713_v4 = vadd.f32 %v3712_v56, %v3664_v17  ;;  %v8277_v17 = vor.u32 %v9497_v36, %v8274_v24 }
 0x478   : > { %14904 = vst [vmem:[#allocation34_spill] sm:$0xff] %v12860_v57  ;;  %v14570_v53 = vmax.f32 %v12860_v57, 0.0  ;;  %8812 = vmatmul.msk.bf16.gmra.mxu2 %vm12854_vm14, %v12486_v38  ;;  %v3924_v57 = vadd.s32 %v12649_v42, %v3907_v45 }
 0x479   : > { %5151 = vmatpush.bf16.msrb.mxu2 %v8533_v62  ;;  %v9593_v62 = vld [vmem:[#allocation4 + $0x344] sm:$0xf]  ;;  %5053 = vmatpush.bf16.msrb.mxu0 %v8277_v17 }
 0x47a   : > { %v12877_v22 = vpack.c.bf16 %v14570_v53, %v14571_v23  ;;  %v3923_v23 = vadd.s32 %v12649_v42, %v3906_v8  ;;  %vm12895_vm12 = vcmp.lt.s32.totalorder %v3924_v57, %v12657_v51  ;;  %v8658_v8 = vld [vmem:[#allocation4 + $0x350] sm:$0xf0]  ;;  %v9557_v17 = vld [vmem:[#allocation4 + $0x224] sm:$0xf] }
 0x47b   : > { %v3761_v6 = vpop.f32.mrf.mxu2  ;;  %v14911_v44 = vsel %vm12895_vm12, 4294967295, %v14910_v44 }
 0x47c   : > { %v3810_v50 = vpop.f32.mrf.mxu3  ;;  %8833 = vmatmul.msk.bf16.gmra.mxu3 %vm12806_vm11, %v12877_v22  ;;  %v3665_v63 = vpop.f32.mrf.mxu0  ;;  %v3762_v19 = vadd.f32 %v3761_v6, %v3713_v4  ;;  %vm12890_vm15 = vcmp.lt.s32.totalorder %v3923_v23, %v12657_v51  ;;  %14912 = vst [vmem:[#allocation36_spill] sm:$0xff] %v14911_v44  ;;  %v8402_v4 = vld [vmem:[#allocation4 + $0x150] sm:$0xf0] }
 0x47d   : > { %v3714_v53 = vpop.f32.mrf.mxu1  ;;  %v3666_v47 = vadd.f32 %v3665_v63, %v3617_v35  ;;  %v14908_v9 = vsel %vm12890_vm15, 4294967295, %v14907_v9  ;;  %v9529_v35 = vld [vmem:[#allocation4 + $0x144] sm:$0xf]  ;;  %vm12903_vm13 = vmpackc.low %vm12895_vm12, %vm12890_vm15  ;;  %v8661_v63 = vor.u32 %v9593_v62, %v8658_v8  ;;  %v8514_v62 = vld [vmem:[#allocation4 + $0x230] sm:$0xf0]  ;;  %v3908_v8 = vadd.s32 96, %v12645_v32 }
 0x47e   : > { %14909 = vst [vmem:[#allocation35_spill] sm:$0xff] %v14908_v9  ;;  %v12907_v23 = vadd.f32 %v3810_v50, %v3762_v19  ;;  %v8405_v36 = vor.u32 %v9529_v35, %v8402_v4  ;;  %v14917_v9 = vld [vmem:[#allocation10_spill] sm:$0xff]  ;;  %v3909_v35 = vadd.s32 104, %v12645_v32 }
 0x47f   : > { %v3715_v39 = vadd.f32 %v3714_v53, %v3666_v47  ;;  %5200 = vmatpush.bf16.msrb.mxu3 %v8661_v63  ;;  %v3622_v63 = vadd.f32 %v12625_v3, %v12623_v18  ;;  %v8386_v18 = vld [vmem:[#allocation4 + $0x130] sm:$0xf0] }
 0x480   : > { %14915 = vst [vmem:[#allocation37_spill] sm:$0xff] %v12907_v23  ;;  %5102 = vmatpush.bf16.msrb.mxu1 %v8405_v36  ;;  %v14585_v44 = vmax.f32 %v12907_v23, 0.0  ;;  %v9493_v23 = vld [vmem:[#allocation4 + $0x24] sm:$0xf] }
 0x481   : > { %v8261_v59 = vor.u32 %v9493_v23, %v8258_v52  ;;  %v9489_v52 = vld [vmem:[#allocation4 + $0x4] sm:$0xf]  ;;  %v8242_v23 = vld [vmem:[#allocation4 + $0x10] sm:$0xf0] }
 0x483   : > { %v3763_v56 = vpop.f32.mrf.mxu2  ;;  %5054 = vmatpush.bf16.msrb.mxu0 %v8261_v59 }
 0x484   : > { %v3764_v45 = vadd.f32 %v3763_v56, %v3715_v39  ;;  %v3812_v57 = vpop.f32.mrf.mxu3  ;;  %v3668_v6 = vpop.f32.mrf.mxu0  ;;  %v14918_v39 = vld [vmem:[#allocation85_spill] sm:$0xff] }
 0x485   : > { %v3717_v47 = vpop.f32.mrf.mxu1  ;;  %v3669_v56 = vadd.f32 %v3668_v6, %v12621_v10 }
 0x486   : > { %v12909_v24 = vadd.f32 %v3812_v57, %v3764_v45  ;;  %v8517_v57 = vor.u32 %v9557_v17, %v8514_v62  ;;  %v9525_v17 = vld [vmem:[#allocation4 + $0x124] sm:$0xf] }
 0x487   : > { %8767 = vmatmul.msk.bf16.gmra.mxu0 %vm12903_vm13, %v14917_v9  ;;  %8791 = vmatmul.msk.bf16.gmra.mxu1 %vm12903_vm13, %v14918_v39  ;;  %v3718_v10 = vadd.f32 %v3717_v47, %v3669_v56  ;;  %v8389_v3 = vor.u32 %v9525_v17, %v8386_v18  ;;  %v14923_v47 = vmov 0 }
 0x488   : > { %14916 = vst [vmem:[#allocation38_spill] sm:$0xff] %v12909_v24  ;;  %v14584_v19 = vmax.f32 %v12909_v24, 0.0  ;;  %8815 = vmatmul.msk.bf16.gmra.mxu2 %vm12903_vm13, %v12528_v33  ;;  %v3926_v24 = vadd.s32 %v12649_v42, %v3909_v35  ;;  %v9521_v35 = vld [vmem:[#allocation4 + $0x104] sm:$0xf] }
 0x489   : > { %5152 = vmatpush.bf16.msrb.mxu2 %v8517_v57  ;;  %v14920_v57 = vmov 0  ;;  %5103 = vmatpush.bf16.msrb.mxu1 %v8389_v3  ;;  %v14930_v3 = vld [vmem:[#allocation12_spill] sm:$0xff] }
 0x48a   : > { %v12926_v50 = vpack.c.bf16 %v14584_v19, %v14585_v44  ;;  %v3925_v44 = vadd.s32 %v12649_v42, %v3908_v8  ;;  %vm12944_vm15 = vcmp.lt.s32.totalorder %v3926_v24, %v12657_v51  ;;  %v8645_v8 = vor.u32 %v9589_v2, %v8642_v13  ;;  %v9553_v13 = vld [vmem:[#allocation4 + $0x204] sm:$0xf] }
 0x48b   : > { %v3766_v45 = vpop.f32.mrf.mxu2  ;;  %v14924_v47 = vsel %vm12944_vm15, 4294967295, %v14923_v47 }
 0x48c   : > { %14919 = vst [vmem:[#allocation39_spill] sm:$0xff] %v12926_v50  ;;  %v3815_v4 = vpop.f32.mrf.mxu3  ;;  %8836 = vmatmul.msk.bf16.gmra.mxu3 %vm12854_vm14, %v12926_v50  ;;  %v3670_v36 = vpop.f32.mrf.mxu0  ;;  %v3767_v62 = vadd.f32 %v3766_v45, %v3718_v10  ;;  %vm12939_vm12 = vcmp.lt.s32.totalorder %v3925_v44, %v12657_v51 }
 0x48d   : > { %v3719_v19 = vpop.f32.mrf.mxu1  ;;  %v3671_v6 = vadd.f32 %v3670_v36, %v3622_v63  ;;  %v14921_v57 = vsel %vm12939_vm12, 4294967295, %v14920_v57  ;;  %14925 = vst [vmem:[#allocation41_spill] sm:$0xff] %v14924_v47  ;;  %vm12952_vm10 = vmpackc.low %vm12944_vm15, %vm12939_vm12  ;;  %v8245_v63 = vor.u32 %v9489_v52, %v8242_v23  ;;  %v8370_v36 = vld [vmem:[#allocation4 + $0x110] sm:$0xf0]  ;;  %5201 = vmatpush.bf16.msrb.mxu3 %v8645_v8  ;;  %v3910_v52 = vadd.s32 112, %v12645_v32 }
 0x48e   : > { %14922 = vst [vmem:[#allocation40_spill] sm:$0xff] %v14921_v57  ;;  %v12956_v44 = vadd.f32 %v3815_v4, %v3767_v62  ;;  %v8373_v10 = vor.u32 %v9521_v35, %v8370_v36  ;;  %v14931_v62 = vld [vmem:[#allocation14_spill] sm:$0xff]  ;;  %v3911_v23 = vadd.s32 120, %v12645_v32  ;;  %v9585_v36 = vld [vmem:[#allocation4 + $0x304] sm:$0xf] }
 0x48f   : > { %v3720_v40 = vadd.f32 %v3719_v19, %v3671_v6  ;;  %v8498_v6 = vld [vmem:[#allocation4 + $0x210] sm:$0xf0]  ;;  %5055 = vmatpush.bf16.msrb.mxu0 %v8245_v63 }
 0x490   : > { %14928 = vst [vmem:[#allocation42_spill] sm:$0xff] %v12956_v44  ;;  %v8501_v18 = vor.u32 %v9553_v13, %v8498_v6  ;;  %5104 = vmatpush.bf16.msrb.mxu1 %v8373_v10  ;;  %v8626_v13 = vld [vmem:[#allocation4 + $0x310] sm:$0xf0]  ;;  %v3928_v32 = vadd.s32 %v12649_v42, %v3911_v23 }
 0x491   : > { %v8629_v6 = vor.u32 %v9585_v36, %v8626_v13 }
 0x492   : > { %5153 = vmatpush.bf16.msrb.mxu2 %v8501_v18  ;;  %vm12993_vm15 = vcmp.lt.s32.totalorder %v3928_v32, %v12657_v51 }
 0x493   : > { %v3768_v56 = vpop.f32.mrf.mxu2  ;;  %5202 = vmatpush.bf16.msrb.mxu3 %v8629_v6 }
 0x494   : > { %v3769_v24 = vadd.f32 %v3768_v56, %v3720_v40  ;;  %v3817_v19 = vpop.f32.mrf.mxu3  ;;  %v3673_v45 = vpop.f32.mrf.mxu0  ;;  %v14605_v40 = vmax.f32 %v12956_v44, 0.0 }
 0x495   : > { %v3722_v2 = vpop.f32.mrf.mxu1  ;;  %v3674_v8 = vadd.f32 %v3673_v45, %v12633_v20  ;;  %v3927_v45 = vadd.s32 %v12649_v42, %v3910_v52 }
 0x496   : > { %v12958_v17 = vadd.f32 %v3817_v19, %v3769_v24  ;;  %v3627_v24 = vadd.f32 %v12637_v5, %v12635_v41  ;;  %v14932_v41 = vmov 0  ;;  %v14935_v5 = vmov 0 }
 0x497   : > { %8770 = vmatmul.msk.bf16.gmra.mxu0 %vm12952_vm10, %v14930_v3  ;;  %8794 = vmatmul.msk.bf16.gmra.mxu1 %vm12952_vm10, %v14931_v62  ;;  %v3723_v18 = vadd.f32 %v3722_v2, %v3674_v8  ;;  %vm12988_vm12 = vcmp.lt.s32.totalorder %v3927_v45, %v12657_v51  ;;  %v14936_v5 = vsel %vm12993_vm15, 4294967295, %v14935_v5  ;;  %v14942_v51 = vld [vmem:[#allocation67_spill] sm:$0xff]  ;;  %v3632_v45 = vadd.f32 %v12679_v7, %v12677_v43 }
 0x498   : > { %14929 = vst [vmem:[#allocation43_spill] sm:$0xff] %v12958_v17  ;;  %v14604_v4 = vmax.f32 %v12958_v17, 0.0  ;;  %8818 = vmatmul.msk.bf16.gmra.mxu2 %vm12952_vm10, %v12546_v61  ;;  %v14933_v41 = vsel %vm12988_vm12, 4294967295, %v14932_v41  ;;  %vm13001_vm9 = vmpackc.low %vm12993_vm15, %vm12988_vm12  ;;  %v9552_v43 = vld [vmem:[#allocation4 + $0x1f4] sm:$0xf0] }
 0x499   : > { %14934 = vst [vmem:[#allocation44_spill] sm:$0xff] %v14933_v41 }
 0x49a   : > { %v12975_v56 = vpack.c.bf16 %v14604_v4, %v14605_v40  ;;  %14937 = vst [vmem:[#allocation45_spill] sm:$0xff] %v14936_v5 }
 0x49b   : > { %v3771_v35 = vpop.f32.mrf.mxu2 }
 0x49c   : > { %v3820_v19 = vpop.f32.mrf.mxu3  ;;  %8839 = vmatmul.msk.bf16.gmra.mxu3 %vm12903_vm13, %v12975_v56  ;;  %v3675_v63 = vpop.f32.mrf.mxu0  ;;  %v3772_v4 = vadd.f32 %v3771_v35, %v3723_v18 }
 0x49d   : > { %v3724_v10 = vpop.f32.mrf.mxu1  ;;  %v3676_v20 = vadd.f32 %v3675_v63, %v3627_v24 }
 0x49e   : > { %v13005_v2 = vadd.f32 %v3820_v19, %v3772_v4  ;;  %v9584_v4 = vld [vmem:[#allocation4 + $0x2f4] sm:$0xf0] }
 0x49f   : > { %v3725_v40 = vadd.f32 %v3724_v10, %v3676_v20  ;;  %v14943_v10 = vld [vmem:[#allocation89_spill] sm:$0xff] }
 0x4a0   : > { %14940 = vst [vmem:[#allocation46_spill] sm:$0xff] %v13005_v2  ;;  %v14614_v63 = vmax.f32 %v13005_v2, 0.0 }
 0x4a3   : > { %v3773_v36 = vpop.f32.mrf.mxu2 }
 0x4a4   : > { %v3774_v8 = vadd.f32 %v3773_v36, %v3725_v40  ;;  %v3822_v52 = vpop.f32.mrf.mxu3  ;;  %v3678_v23 = vpop.f32.mrf.mxu0  ;;  %v8616_v40 = vld [vmem:[#allocation4 + $0x2e8] sm:$0xf] }
 0x4a5   : > { %v3727_v35 = vpop.f32.mrf.mxu1  ;;  %v8617_v19 = vor.u32 %v9584_v4, %v8616_v40  ;;  %v3679_v18 = vadd.f32 %v3678_v23, %v12652_v49  ;;  %v8744_v40 = vld [vmem:[#allocation4 + $0x3e8] sm:$0xf]  ;;  %v13032_v49 = vld [vmem:[#allocation6 + $0x4] sm:$0xf] }
 0x4a6   : > { %v13007_v24 = vadd.f32 %v3822_v52, %v3774_v8  ;;  %v8360_v8 = vld [vmem:[#allocation4 + $0xe8] sm:$0xf]  ;;  %v9520_v52 = vld [vmem:[#allocation4 + $0xf4] sm:$0xf0]  ;;  %v13035_v44 = vperm.slane %v13032_v49, 0 }
 0x4a7   : > { %8773 = vmatmul.msk.bf16.gmra.mxu0 %vm13001_vm9, %v14942_v51  ;;  %8797 = vmatmul.msk.bf16.gmra.mxu1 %vm13001_vm9, %v14943_v10 }
 0x4a8   : > { %14941 = vst [vmem:[#allocation47_spill] sm:$0xff] %v13007_v24  ;;  %v14613_v13 = vmax.f32 %v13007_v24, 0.0  ;;  %8821 = vmatmul.msk.bf16.gmra.mxu2 %vm13001_vm9, %v12566_v55  ;;  %v8361_v24 = vor.u32 %v9520_v52, %v8360_v8 }
 0x4a9   : > { %5342 = vmatpush.bf16.msra.mxu2 %v8617_v19  ;;  %v8488_v19 = vld [vmem:[#allocation4 + $0x1e8] sm:$0xf] }
 0x4aa   : > { %v13024_v6 = vpack.c.bf16 %v14613_v13, %v14614_v63  ;;  %v9616_v13 = vld [vmem:[#allocation4 + $0x3f4] sm:$0xf0]  ;;  %v3728_v63 = vadd.f32 %v3727_v35, %v3679_v18  ;;  %5244 = vmatpush.bf16.msra.mxu0 %v8361_v24  ;;  %v8489_v17 = vor.u32 %v9552_v43, %v8488_v19  ;;  %v8728_v19 = vld [vmem:[#allocation4 + $0x3c8] sm:$0xf] }
 0x4ab   : > { %v3776_v20 = vpop.f32.mrf.mxu2  ;;  %v8745_v23 = vor.u32 %v9616_v13, %v8744_v40 }
 0x4ac   : > { %v3825_v32 = vpop.f32.mrf.mxu3  ;;  %8842 = vmatmul.msk.bf16.gmra.mxu3 %vm12952_vm10, %v13024_v6  ;;  %v3680_v36 = vpop.f32.mrf.mxu0  ;;  %v3777_v7 = vadd.f32 %v3776_v20, %v3728_v63  ;;  %5293 = vmatpush.bf16.msra.mxu1 %v8489_v17 }
 0x4ad   : > { %v3729_v4 = vpop.f32.mrf.mxu1  ;;  %v3681_v2 = vadd.f32 %v3680_v36, %v3632_v45  ;;  %5391 = vmatpush.bf16.msra.mxu3 %v8745_v23  ;;  %v9516_v23 = vld [vmem:[#allocation4 + $0xd4] sm:$0xf0] }
 0x4ae   : > { %v13037_v57 = vadd.f32 %v3825_v32, %v3777_v7 }
 0x4af   : > { %v3730_v5 = vadd.f32 %v3729_v4, %v3681_v2  ;;  %v9580_v2 = vld [vmem:[#allocation4 + $0x2d4] sm:$0xf0]  ;;  %v8344_v4 = vld [vmem:[#allocation4 + $0xc8] sm:$0xf] }
 0x4b0   : > { %14944 = vst [vmem:[#allocation50_spill] sm:$0xff] %v13037_v57  ;;  %v14625_v63 = vmax.f32 %v13037_v57, 0.0 }
 0x4b3   : > { %v3778_v41 = vpop.f32.mrf.mxu2 }
 0x4b4   : > { %v3779_v8 = vadd.f32 %v3778_v41, %v3730_v5  ;;  %v4861_v35 = vpop.f32.mrf.mxu0  ;;  %v3827_v18 = vpop.f32.mrf.mxu3  ;;  %v8600_v5 = vld [vmem:[#allocation4 + $0x2c8] sm:$0xf] }
 0x4b5   : > { %v4862_v45 = vadd.f32 %v4861_v35, %v13035_v44  ;;  %v4910_v13 = vpop.f32.mrf.mxu1  ;;  %v8601_v32 = vor.u32 %v9580_v2, %v8600_v5  ;;  %v9612_v35 = vld [vmem:[#allocation4 + $0x3d4] sm:$0xf0] }
 0x4b6   : > { %v13040_v24 = vadd.f32 %v3827_v18, %v3779_v8  ;;  %v8345_v8 = vor.u32 %v9516_v23, %v8344_v4  ;;  %v8729_v18 = vor.u32 %v9612_v35, %v8728_v19  ;;  %v9548_v5 = vld [vmem:[#allocation4 + $0x1d4] sm:$0xf0] }
 0x4b7   : > { %v4911_v36 = vadd.f32 %v4910_v13, %v4862_v45  ;;  %8848 = vmatmul.msk.bf16.vlgmr.msrb.gmra.mxu0 %vm12673_vm2, %v14856_v26  ;;  %8872 = vmatmul.msk.bf16.vlgmr.msrb.gmra.mxu1 %vm12673_vm2, %v14857_v14  ;;  %v8472_v13 = vld [vmem:[#allocation4 + $0x1c8] sm:$0xf] }
 0x4b8   : > { %14945 = vst [vmem:[#allocation70_spill] sm:$0xff] %v13040_v24  ;;  %v14624_v17 = vmax.f32 %v13040_v24, 0.0  ;;  %8896 = vmatmul.msk.bf16.vlgmr.msrb.gmra.mxu2 %vm12673_vm2, %v12318_v46  ;;  %5245 = vmatpush.bf16.msra.mxu0 %v8345_v8 }
 0x4b9   : > { %5343 = vmatpush.bf16.msra.mxu2 %v8601_v32  ;;  %5392 = vmatpush.bf16.msra.mxu3 %v8729_v18  ;;  %v8584_v32 = vld [vmem:[#allocation4 + $0x2a8] sm:$0xf]  ;;  %v9608_v18 = vld [vmem:[#allocation4 + $0x3b4] sm:$0xf0] }
 0x4ba   : > { %v13057_v41 = vpack.c.bf16 %v14624_v17, %v14625_v63 }
 0x4bb   : > { %v4959_v20 = vpop.f32.mrf.mxu2 }
 0x4bc   : > { %v4960_v52 = vadd.f32 %v4959_v20, %v4911_v36  ;;  %8845 = vmatmul.msk.bf16.gmra.mxu3 %vm13001_vm9, %v13057_v41  ;;  %v4863_v40 = vpop.f32.mrf.mxu0  ;;  %v8473_v36 = vor.u32 %v9548_v5, %v8472_v13 }
 0x4bd   : > { %v4864_v43 = vadd.f32 %v4863_v40, %v13035_v44  ;;  %v4912_v7 = vpop.f32.mrf.mxu1  ;;  %v9576_v40 = vld [vmem:[#allocation4 + $0x2b4] sm:$0xf0] }
 0x4be   : > { %5294 = vmatpush.bf16.msra.mxu1 %v8473_v36  ;;  %v8585_v23 = vor.u32 %v9576_v40, %v8584_v32  ;;  %v8456_v36 = vld [vmem:[#allocation4 + $0x1a8] sm:$0xf] }
 0x4bf   : > { %v4913_v45 = vadd.f32 %v4912_v7, %v4864_v43  ;;  %v8712_v43 = vld [vmem:[#allocation4 + $0x3a8] sm:$0xf] }
 0x4c0   : > { %5344 = vmatpush.bf16.msra.mxu2 %v8585_v23 }
 0x4c3   : > { %v4961_v2 = vpop.f32.mrf.mxu2 }
 0x4c4   : > { %v4962_v20 = vadd.f32 %v4961_v2, %v4913_v45  ;;  %v4866_v17 = vpop.f32.mrf.mxu0  ;;  %v8713_v45 = vor.u32 %v9608_v18, %v8712_v43  ;;  %v9572_v43 = vld [vmem:[#allocation4 + $0x294] sm:$0xf0]  ;;  %v8696_v18 = vld [vmem:[#allocation4 + $0x388] sm:$0xf] }
 0x4c5   : > { %v4867_v63 = vadd.f32 %v4866_v17, %v13035_v44  ;;  %v4915_v24 = vpop.f32.mrf.mxu1  ;;  %v9512_v17 = vld [vmem:[#allocation4 + $0xb4] sm:$0xf0] }
 0x4c6   : > { %5393 = vmatpush.bf16.msra.mxu3 %v8713_v45 }
 0x4c7   : > { %v4916_v57 = vadd.f32 %v4915_v24, %v4867_v63  ;;  %8851 = vmatmul.msk.bf16.gmra.mxu0 %vm12710_vm5, %v14868_v12  ;;  %8875 = vmatmul.msk.bf16.gmra.mxu1 %vm12710_vm5, %v14869_v29  ;;  %v8328_v63 = vld [vmem:[#allocation4 + $0xa8] sm:$0xf] }
 0x4c8   : > { %8899 = vmatmul.msk.bf16.gmra.mxu2 %vm12710_vm5, %v12360_v1  ;;  %v8329_v35 = vor.u32 %v9512_v17, %v8328_v63 }
 0x4ca   : > { %5246 = vmatpush.bf16.msra.mxu0 %v8329_v35  ;;  %v9508_v35 = vld [vmem:[#allocation4 + $0x94] sm:$0xf0] }
 0x4cb   : > { %v4964_v4 = vpop.f32.mrf.mxu2 }
 0x4cc   : > { %v4965_v19 = vadd.f32 %v4964_v4, %v4916_v57  ;;  %8920 = vmatmul.msk.bf16.vlgmr.msrb.gmra.mxu3 %vm12673_vm2, %v12733_v60  ;;  %v4868_v24 = vpop.f32.mrf.mxu0  ;;  %v9544_v57 = vld [vmem:[#allocation4 + $0x1b4] sm:$0xf0] }
 0x4cd   : > { %v4869_v7 = vadd.f32 %v4868_v24, %v13035_v44  ;;  %v4917_v8 = vpop.f32.mrf.mxu1  ;;  %v8457_v32 = vor.u32 %v9544_v57, %v8456_v36  ;;  %v9604_v36 = vld [vmem:[#allocation4 + $0x394] sm:$0xf0] }
 0x4ce   : > { %v8697_v57 = vor.u32 %v9604_v36, %v8696_v18  ;;  %v9568_v18 = vld [vmem:[#allocation4 + $0x274] sm:$0xf0]  ;;  %v8680_v36 = vld [vmem:[#allocation4 + $0x368] sm:$0xf] }
 0x4cf   : > { %v4918_v13 = vadd.f32 %v4917_v8, %v4869_v7  ;;  %v5008_v5 = vpop.f32.mrf.mxu3  ;;  %5295 = vmatpush.bf16.msra.mxu1 %v8457_v32 }
 0x4d0   : > { %v13077_v2 = vadd.f32 %v5008_v5, %v4960_v52  ;;  %v8568_v52 = vld [vmem:[#allocation4 + $0x288] sm:$0xf]  ;;  %5394 = vmatpush.bf16.msra.mxu3 %v8697_v57 }
 0x4d1   : > { %v8569_v7 = vor.u32 %v9572_v43, %v8568_v52 }
 0x4d2   : > { %14946 = vst [vmem:[#allocation53_spill] sm:$0xff] %v13077_v2 }
 0x4d3   : > { %v4966_v40 = vpop.f32.mrf.mxu2  ;;  %5345 = vmatpush.bf16.msra.mxu2 %v8569_v7 }
 0x4d4   : > { %v4967_v4 = vadd.f32 %v4966_v40, %v4918_v13  ;;  %v4871_v47 = vpop.f32.mrf.mxu0 }
 0x4d5   : > { %v4872_v24 = vadd.f32 %v4871_v47, %v13035_v44  ;;  %v4920_v60 = vpop.f32.mrf.mxu1 }
 0x4d7   : > { %v4921_v23 = vadd.f32 %v4920_v60, %v4872_v24  ;;  %v5010_v63 = vpop.f32.mrf.mxu3  ;;  %8854 = vmatmul.msk.bf16.gmra.mxu0 %vm12758_vm8, %v14881_v25  ;;  %8878 = vmatmul.msk.bf16.gmra.mxu1 %vm12758_vm8, %v14882_v21  ;;  %v8440_v24 = vld [vmem:[#allocation4 + $0x188] sm:$0xf] }
 0x4d8   : > { %v13083_v17 = vadd.f32 %v5010_v63, %v4962_v20  ;;  %8902 = vmatmul.msk.bf16.gmra.mxu2 %vm12758_vm8, %v12402_v31  ;;  %v8312_v20 = vld [vmem:[#allocation4 + $0x88] sm:$0xf] }
 0x4d9   : > { %v8313_v5 = vor.u32 %v9508_v35, %v8312_v20 }
 0x4da   : > { %14947 = vst [vmem:[#allocation73_spill] sm:$0xff] %v13083_v17 }
 0x4db   : > { %v4969_v47 = vpop.f32.mrf.mxu2  ;;  %5247 = vmatpush.bf16.msra.mxu0 %v8313_v5  ;;  %v9504_v5 = vld [vmem:[#allocation4 + $0x74] sm:$0xf0] }
 0x4dc   : > { %v4970_v60 = vadd.f32 %v4969_v47, %v4921_v23  ;;  %8923 = vmatmul.msk.bf16.gmra.mxu3 %vm12710_vm5, %v12781_v27  ;;  %v4873_v8 = vpop.f32.mrf.mxu0  ;;  %v9540_v23 = vld [vmem:[#allocation4 + $0x194] sm:$0xf0] }
 0x4dd   : > { %v4874_v45 = vadd.f32 %v4873_v8, %v13035_v44  ;;  %v4922_v13 = vpop.f32.mrf.mxu1  ;;  %v8441_v52 = vor.u32 %v9540_v23, %v8440_v24  ;;  %v9600_v24 = vld [vmem:[#allocation4 + $0x374] sm:$0xf0] }
 0x4de   : > { %v8681_v23 = vor.u32 %v9600_v24, %v8680_v36  ;;  %v9564_v36 = vld [vmem:[#allocation4 + $0x254] sm:$0xf0]  ;;  %v8664_v24 = vld [vmem:[#allocation4 + $0x348] sm:$0xf] }
 0x4df   : > { %v4923_v32 = vadd.f32 %v4922_v13, %v4874_v45  ;;  %v5013_v40 = vpop.f32.mrf.mxu3  ;;  %5296 = vmatpush.bf16.msra.mxu1 %v8441_v52 }
 0x4e0   : > { %v13095_v63 = vadd.f32 %v5013_v40, %v4965_v19  ;;  %v8552_v19 = vld [vmem:[#allocation4 + $0x268] sm:$0xf]  ;;  %5395 = vmatpush.bf16.msra.mxu3 %v8681_v23 }
 0x4e1   : > { %v8553_v45 = vor.u32 %v9568_v18, %v8552_v19 }
 0x4e2   : > { %14948 = vst [vmem:[#allocation56_spill] sm:$0xff] %v13095_v63 }
 0x4e3   : > { %v4971_v43 = vpop.f32.mrf.mxu2  ;;  %5346 = vmatpush.bf16.msra.mxu2 %v8553_v45 }
 0x4e4   : > { %v4972_v47 = vadd.f32 %v4971_v43, %v4923_v32  ;;  %v4876_v17 = vpop.f32.mrf.mxu0 }
 0x4e5   : > { %v4877_v8 = vadd.f32 %v4876_v17, %v13035_v44  ;;  %v4925_v2 = vpop.f32.mrf.mxu1 }
 0x4e7   : > { %v4926_v7 = vadd.f32 %v4925_v2, %v4877_v8  ;;  %v5015_v20 = vpop.f32.mrf.mxu3  ;;  %8857 = vmatmul.msk.bf16.gmra.mxu0 %vm12806_vm11, %v14893_v48  ;;  %8881 = vmatmul.msk.bf16.gmra.mxu1 %vm12806_vm11, %v14894_v34  ;;  %v8424_v8 = vld [vmem:[#allocation4 + $0x168] sm:$0xf] }
 0x4e8   : > { %v13101_v35 = vadd.f32 %v5015_v20, %v4967_v4  ;;  %8905 = vmatmul.msk.bf16.gmra.mxu2 %vm12806_vm11, %v12444_v0  ;;  %v8296_v4 = vld [vmem:[#allocation4 + $0x68] sm:$0xf] }
 0x4e9   : > { %v8297_v40 = vor.u32 %v9504_v5, %v8296_v4 }
 0x4ea   : > { %14949 = vst [vmem:[#allocation76_spill] sm:$0xff] %v13101_v35 }
 0x4eb   : > { %v4974_v17 = vpop.f32.mrf.mxu2  ;;  %5248 = vmatpush.bf16.msra.mxu0 %v8297_v40  ;;  %v9500_v40 = vld [vmem:[#allocation4 + $0x54] sm:$0xf0] }
 0x4ec   : > { %v4975_v2 = vadd.f32 %v4974_v17, %v4926_v7  ;;  %8926 = vmatmul.msk.bf16.gmra.mxu3 %vm12758_vm8, %v12829_v28  ;;  %v4878_v13 = vpop.f32.mrf.mxu0  ;;  %v9536_v7 = vld [vmem:[#allocation4 + $0x174] sm:$0xf0] }
 0x4ed   : > { %v4879_v57 = vadd.f32 %v4878_v13, %v13035_v44  ;;  %v4927_v32 = vpop.f32.mrf.mxu1  ;;  %v8425_v19 = vor.u32 %v9536_v7, %v8424_v8  ;;  %v9596_v8 = vld [vmem:[#allocation4 + $0x354] sm:$0xf0] }
 0x4ee   : > { %v8665_v7 = vor.u32 %v9596_v8, %v8664_v24  ;;  %v9560_v24 = vld [vmem:[#allocation4 + $0x234] sm:$0xf0]  ;;  %v8648_v8 = vld [vmem:[#allocation4 + $0x328] sm:$0xf] }
 0x4ef   : > { %v4928_v52 = vadd.f32 %v4927_v32, %v4879_v57  ;;  %v5018_v43 = vpop.f32.mrf.mxu3  ;;  %5297 = vmatpush.bf16.msra.mxu1 %v8425_v19 }
 0x4f0   : > { %v13113_v20 = vadd.f32 %v5018_v43, %v4970_v60  ;;  %v8536_v60 = vld [vmem:[#allocation4 + $0x248] sm:$0xf]  ;;  %5396 = vmatpush.bf16.msra.mxu3 %v8665_v7 }
 0x4f1   : > { %v8537_v57 = vor.u32 %v9564_v36, %v8536_v60 }
 0x4f2   : > { %14950 = vst [vmem:[#allocation59_spill] sm:$0xff] %v13113_v20 }
 0x4f3   : > { %v4976_v18 = vpop.f32.mrf.mxu2  ;;  %5347 = vmatpush.bf16.msra.mxu2 %v8537_v57 }
 0x4f4   : > { %v4977_v17 = vadd.f32 %v4976_v18, %v4928_v52  ;;  %v4881_v35 = vpop.f32.mrf.mxu0 }
 0x4f5   : > { %v4882_v13 = vadd.f32 %v4881_v35, %v13035_v44  ;;  %v4930_v63 = vpop.f32.mrf.mxu1 }
 0x4f7   : > { %v4931_v45 = vadd.f32 %v4930_v63, %v4882_v13  ;;  %v5020_v4 = vpop.f32.mrf.mxu3  ;;  %8860 = vmatmul.msk.bf16.gmra.mxu0 %vm12854_vm14, %v14905_v11  ;;  %8884 = vmatmul.msk.bf16.gmra.mxu1 %vm12854_vm14, %v14906_v37  ;;  %v8408_v13 = vld [vmem:[#allocation4 + $0x148] sm:$0xf] }
 0x4f8   : > { %v13119_v5 = vadd.f32 %v5020_v4, %v4972_v47  ;;  %8908 = vmatmul.msk.bf16.gmra.mxu2 %vm12854_vm14, %v12486_v38  ;;  %v8280_v47 = vld [vmem:[#allocation4 + $0x48] sm:$0xf] }
 0x4f9   : > { %v8281_v43 = vor.u32 %v9500_v40, %v8280_v47 }
 0x4fa   : > { %14951 = vst [vmem:[#allocation79_spill] sm:$0xff] %v13119_v5 }
 0x4fb   : > { %v4979_v35 = vpop.f32.mrf.mxu2  ;;  %5249 = vmatpush.bf16.msra.mxu0 %v8281_v43  ;;  %v9496_v43 = vld [vmem:[#allocation4 + $0x34] sm:$0xf0] }
 0x4fc   : > { %v4980_v63 = vadd.f32 %v4979_v35, %v4931_v45  ;;  %8929 = vmatmul.msk.bf16.gmra.mxu3 %vm12806_vm11, %v12877_v22  ;;  %v4883_v32 = vpop.f32.mrf.mxu0  ;;  %v9532_v45 = vld [vmem:[#allocation4 + $0x154] sm:$0xf0] }
 0x4fd   : > { %v4884_v23 = vadd.f32 %v4883_v32, %v13035_v44  ;;  %v4932_v52 = vpop.f32.mrf.mxu1  ;;  %v8409_v60 = vor.u32 %v9532_v45, %v8408_v13  ;;  %v9592_v13 = vld [vmem:[#allocation4 + $0x334] sm:$0xf0] }
 0x4fe   : > { %v8649_v45 = vor.u32 %v9592_v13, %v8648_v8 }
 0x4ff   : > { %v4933_v19 = vadd.f32 %v4932_v52, %v4884_v23  ;;  %v5023_v18 = vpop.f32.mrf.mxu3  ;;  %5298 = vmatpush.bf16.msra.mxu1 %v8409_v60 }
 0x500   : > { %v13131_v4 = vadd.f32 %v5023_v18, %v4975_v2  ;;  %v8520_v2 = vld [vmem:[#allocation4 + $0x228] sm:$0xf]  ;;  %5397 = vmatpush.bf16.msra.mxu3 %v8649_v45 }
 0x501   : > { %v8521_v23 = vor.u32 %v9560_v24, %v8520_v2 }
 0x502   : > { %14952 = vst [vmem:[#allocation62_spill] sm:$0xff] %v13131_v4  ;;  %v8376_v4 = vld [vmem:[#allocation4 + $0x108] sm:$0xf] }
 0x503   : > { %v4981_v36 = vpop.f32.mrf.mxu2  ;;  %5348 = vmatpush.bf16.msra.mxu2 %v8521_v23 }
 0x504   : > { %v4982_v35 = vadd.f32 %v4981_v36, %v4933_v19  ;;  %v4886_v5 = vpop.f32.mrf.mxu0 }
 0x505   : > { %v4887_v32 = vadd.f32 %v4886_v5, %v13035_v44  ;;  %v4935_v20 = vpop.f32.mrf.mxu1 }
 0x507   : > { %v4936_v57 = vadd.f32 %v4935_v20, %v4887_v32  ;;  %v5025_v47 = vpop.f32.mrf.mxu3  ;;  %8863 = vmatmul.msk.bf16.gmra.mxu0 %vm12903_vm13, %v14917_v9  ;;  %8887 = vmatmul.msk.bf16.gmra.mxu1 %vm12903_vm13, %v14918_v39  ;;  %v8392_v32 = vld [vmem:[#allocation4 + $0x128] sm:$0xf] }
 0x508   : > { %v13137_v40 = vadd.f32 %v5025_v47, %v4977_v17  ;;  %8911 = vmatmul.msk.bf16.gmra.mxu2 %vm12903_vm13, %v12528_v33  ;;  %v8264_v17 = vld [vmem:[#allocation4 + $0x28] sm:$0xf] }
 0x509   : > { %v8265_v18 = vor.u32 %v9496_v43, %v8264_v17  ;;  %v9524_v17 = vld [vmem:[#allocation4 + $0x114] sm:$0xf0]  ;;  %v8504_v43 = vld [vmem:[#allocation4 + $0x208] sm:$0xf] }
 0x50a   : > { %14953 = vst [vmem:[#allocation82_spill] sm:$0xff] %v13137_v40  ;;  %v9492_v40 = vld [vmem:[#allocation4 + $0x14] sm:$0xf0] }
 0x50b   : > { %v4984_v5 = vpop.f32.mrf.mxu2  ;;  %5250 = vmatpush.bf16.msra.mxu0 %v8265_v18  ;;  %v9556_v18 = vld [vmem:[#allocation4 + $0x214] sm:$0xf0] }
 0x50c   : > { %v4985_v20 = vadd.f32 %v4984_v5, %v4936_v57  ;;  %8932 = vmatmul.msk.bf16.gmra.mxu3 %vm12854_vm14, %v12926_v50  ;;  %v4888_v52 = vpop.f32.mrf.mxu0  ;;  %v9528_v57 = vld [vmem:[#allocation4 + $0x134] sm:$0xf0]  ;;  %v8248_v5 = vld [vmem:[#allocation4 + $0x8] sm:$0xf] }
 0x50d   : > { %v4889_v7 = vadd.f32 %v4888_v52, %v13035_v44  ;;  %v4937_v19 = vpop.f32.mrf.mxu1  ;;  %v8393_v2 = vor.u32 %v9528_v57, %v8392_v32  ;;  %v8249_v23 = vor.u32 %v9492_v40, %v8248_v5  ;;  %v9588_v32 = vld [vmem:[#allocation4 + $0x314] sm:$0xf0] }
 0x50f   : > { %v4938_v60 = vadd.f32 %v4937_v19, %v4889_v7  ;;  %v5028_v36 = vpop.f32.mrf.mxu3  ;;  %5299 = vmatpush.bf16.msra.mxu1 %v8393_v2  ;;  %v8377_v19 = vor.u32 %v9524_v17, %v8376_v4  ;;  %5251 = vmatpush.bf16.msra.mxu0 %v8249_v23 }
 0x510   : > { %v13149_v47 = vadd.f32 %v5028_v36, %v4980_v63  ;;  %v8505_v63 = vor.u32 %v9556_v18, %v8504_v43 }
 0x512   : > { %14954 = vst [vmem:[#allocation10_spill] sm:$0xff] %v13149_v47  ;;  %5349 = vmatpush.bf16.msra.mxu2 %v8505_v63  ;;  %v9522_v47 = vld [vmem:[#allocation4 + $0x10c] sm:$0xf] }
 0x513   : > { %v4986_v24 = vpop.f32.mrf.mxu2  ;;  %5300 = vmatpush.bf16.msra.mxu1 %v8377_v19 }
 0x514   : > { %v4987_v52 = vadd.f32 %v4986_v24, %v4938_v60  ;;  %v4891_v50 = vpop.f32.mrf.mxu0  ;;  %v8632_v60 = vld [vmem:[#allocation4 + $0x308] sm:$0xf] }
 0x515   : > { %v4892_v8 = vadd.f32 %v4891_v50, %v13035_v44  ;;  %v4940_v7 = vpop.f32.mrf.mxu1  ;;  %v8633_v2 = vor.u32 %v9588_v32, %v8632_v60 }
 0x517   : > { %v4941_v13 = vadd.f32 %v4940_v7, %v4892_v8  ;;  %v5030_v45 = vpop.f32.mrf.mxu3  ;;  %8866 = vmatmul.msk.bf16.gmra.mxu0 %vm12952_vm10, %v14930_v3  ;;  %8890 = vmatmul.msk.bf16.gmra.mxu1 %vm12952_vm10, %v14931_v62 }
 0x518   : > { %v13155_v36 = vadd.f32 %v5030_v45, %v4982_v35  ;;  %8914 = vmatmul.msk.bf16.gmra.mxu2 %vm12952_vm10, %v12546_v61  ;;  %5398 = vmatpush.bf16.msra.mxu3 %v8633_v2  ;;  %v8618_v45 = vld [vmem:[#allocation4 + $0x2f8] sm:$0xf0] }
 0x51a   : > { %14955 = vst [vmem:[#allocation85_spill] sm:$0xff] %v13155_v36 }
 0x51b   : > { %v4989_v50 = vpop.f32.mrf.mxu2 }
 0x51c   : > { %v4990_v4 = vadd.f32 %v4989_v50, %v4941_v13  ;;  %8935 = vmatmul.msk.bf16.gmra.mxu3 %vm12903_vm13, %v12975_v56  ;;  %v4893_v40 = vpop.f32.mrf.mxu0 }
 0x51d   : > { %v4894_v35 = vadd.f32 %v4893_v40, %v13035_v44  ;;  %v4942_v57 = vpop.f32.mrf.mxu1 }
 0x51f   : > { %v4943_v24 = vadd.f32 %v4942_v57, %v4894_v35  ;;  %v5033_v5 = vpop.f32.mrf.mxu3  ;;  %v8362_v35 = vld [vmem:[#allocation4 + $0xf8] sm:$0xf0]  ;;  %v9614_v57 = vld [vmem:[#allocation4 + $0x3ec] sm:$0xf] }
 0x520   : > { %v13167_v23 = vadd.f32 %v5033_v5, %v4985_v20  ;;  %v9582_v20 = vld [vmem:[#allocation4 + $0x2ec] sm:$0xf] }
 0x521   : > { %v8621_v40 = vor.u32 %v9582_v20, %v8618_v45 }
 0x522   : > { %14956 = vst [vmem:[#allocation12_spill] sm:$0xff] %v13167_v23 }
 0x523   : > { %v4991_v17 = vpop.f32.mrf.mxu2  ;;  %5538 = vmatpush.bf16.msrb.mxu2 %v8621_v40 }
 0x524   : > { %v4992_v43 = vadd.f32 %v4991_v17, %v4943_v24  ;;  %v4896_v8 = vpop.f32.mrf.mxu0  ;;  %v8746_v17 = vld [vmem:[#allocation4 + $0x3f8] sm:$0xf0] }
 0x525   : > { %v4897_v7 = vadd.f32 %v4896_v8, %v13035_v44  ;;  %v4945_v19 = vpop.f32.mrf.mxu1  ;;  %v8749_v8 = vor.u32 %v9614_v57, %v8746_v17 }
 0x527   : > { %v4946_v18 = vadd.f32 %v4945_v19, %v4897_v7  ;;  %v5035_v63 = vpop.f32.mrf.mxu3  ;;  %8869 = vmatmul.msk.bf16.gmra.mxu0 %vm13001_vm9, %v14942_v51  ;;  %8893 = vmatmul.msk.bf16.gmra.mxu1 %vm13001_vm9, %v14943_v10 }
 0x528   : > { %v13173_v13 = vadd.f32 %v5035_v63, %v4987_v52  ;;  %8917 = vmatmul.msk.bf16.gmra.mxu2 %vm13001_vm9, %v12566_v55  ;;  %v9518_v52 = vld [vmem:[#allocation4 + $0xec] sm:$0xf]  ;;  %5587 = vmatpush.bf16.msrb.mxu3 %v8749_v8  ;;  %v8346_v8 = vld [vmem:[#allocation4 + $0xd8] sm:$0xf0] }
 0x529   : > { %v8365_v5 = vor.u32 %v9518_v52, %v8362_v35  ;;  %v9550_v63 = vld [vmem:[#allocation4 + $0x1ec] sm:$0xf] }
 0x52a   : > { %14957 = vst [vmem:[#allocation14_spill] sm:$0xff] %v13173_v13 }
 0x52b   : > { %v4994_v50 = vpop.f32.mrf.mxu2  ;;  %5440 = vmatpush.bf16.msrb.mxu0 %v8365_v5 }
 0x52c   : > { %v4995_v60 = vadd.f32 %v4994_v50, %v4946_v18  ;;  %8938 = vmatmul.msk.bf16.gmra.mxu3 %vm12952_vm10, %v13024_v6  ;;  %v4898_v32 = vpop.f32.mrf.mxu0  ;;  %v8490_v18 = vld [vmem:[#allocation4 + $0x1f8] sm:$0xf0]  ;;  %v13188_v50 = vperm.slane %v13032_v49, 1  ;;  %v9578_v49 = vld [vmem:[#allocation4 + $0x2cc] sm:$0xf] }
 0x52d   : > { %v4899_v2 = vadd.f32 %v4898_v32, %v13035_v44  ;;  %v4947_v24 = vpop.f32.mrf.mxu1  ;;  %v8493_v45 = vor.u32 %v9550_v63, %v8490_v18 }
 0x52f   : > { %v4948_v7 = vadd.f32 %v4947_v24, %v4899_v2  ;;  %v5038_v19 = vpop.f32.mrf.mxu3  ;;  %5489 = vmatpush.bf16.msrb.mxu1 %v8493_v45  ;;  %v8730_v45 = vld [vmem:[#allocation4 + $0x3d8] sm:$0xf0] }
 0x530   : > { %v13185_v20 = vadd.f32 %v5038_v19, %v4990_v4 }
 0x532   : > { %14958 = vst [vmem:[#allocation67_spill] sm:$0xff] %v13185_v20 }
 0x533   : > { %v4996_v13 = vpop.f32.mrf.mxu2 }
 0x534   : > { %v4997_v44 = vadd.f32 %v4996_v13, %v4948_v7  ;;  %v5057_v32 = vpop.f32.mrf.mxu0  ;;  %v8602_v13 = vld [vmem:[#allocation4 + $0x2d8] sm:$0xf0]  ;;  %v9610_v7 = vld [vmem:[#allocation4 + $0x3cc] sm:$0xf] }
 0x535   : > { %v5058_v40 = vadd.f32 %v5057_v32, %v13188_v50  ;;  %v5106_v52 = vpop.f32.mrf.mxu1  ;;  %v8605_v24 = vor.u32 %v9578_v49, %v8602_v13  ;;  %v8733_v32 = vor.u32 %v9610_v7, %v8730_v45  ;;  %v8586_v7 = vld [vmem:[#allocation4 + $0x2b8] sm:$0xf0] }
 0x536   : > { %v8330_v45 = vld [vmem:[#allocation4 + $0xb8] sm:$0xf0] }
 0x537   : > { %v5107_v35 = vadd.f32 %v5106_v52, %v5058_v40  ;;  %v5040_v57 = vpop.f32.mrf.mxu3  ;;  %8944 = vmatmul.msk.bf16.vlgmr.msra.gmra.mxu0 %vm12673_vm2, %v14856_v26  ;;  %8968 = vmatmul.msk.bf16.vlgmr.msra.gmra.mxu1 %vm12673_vm2, %v14857_v14 }
 0x538   : > { %v13194_v4 = vadd.f32 %v5040_v57, %v4992_v43  ;;  %8992 = vmatmul.msk.bf16.vlgmr.msra.gmra.mxu2 %vm12673_vm2, %v12318_v46  ;;  %v9514_v43 = vld [vmem:[#allocation4 + $0xcc] sm:$0xf]  ;;  %5588 = vmatpush.bf16.msrb.mxu3 %v8733_v32 }
 0x539   : > { %5539 = vmatpush.bf16.msrb.mxu2 %v8605_v24  ;;  %v8349_v18 = vor.u32 %v9514_v43, %v8346_v8  ;;  %v9546_v57 = vld [vmem:[#allocation4 + $0x1cc] sm:$0xf] }
 0x53a   : > { %14959 = vst [vmem:[#allocation89_spill] sm:$0xff] %v13194_v4  ;;  %v9606_v32 = vld [vmem:[#allocation4 + $0x3ac] sm:$0xf] }
 0x53b   : > { %v5155_v2 = vpop.f32.mrf.mxu2  ;;  %5441 = vmatpush.bf16.msrb.mxu0 %v8349_v18 }
 0x53c   : > { %v5156_v5 = vadd.f32 %v5155_v2, %v5107_v35  ;;  %8941 = vmatmul.msk.bf16.gmra.mxu3 %vm13001_vm9, %v13057_v41  ;;  %v5059_v17 = vpop.f32.mrf.mxu0  ;;  %v8474_v35 = vld [vmem:[#allocation4 + $0x1d8] sm:$0xf0] }
 0x53d   : > { %v5060_v19 = vadd.f32 %v5059_v17, %v13188_v50  ;;  %v5108_v63 = vpop.f32.mrf.mxu1  ;;  %v8477_v13 = vor.u32 %v9546_v57, %v8474_v35  ;;  %v8714_v35 = vld [vmem:[#allocation4 + $0x3b8] sm:$0xf0] }
 0x53f   : > { %v5109_v40 = vadd.f32 %v5108_v63, %v5060_v19  ;;  %v5043_v52 = vpop.f32.mrf.mxu3  ;;  %5490 = vmatpush.bf16.msrb.mxu1 %v8477_v13  ;;  %v14962_v63 = vld [vmem:[#allocation22_spill] sm:$0xff]  ;;  %v8717_v13 = vor.u32 %v9606_v32, %v8714_v35  ;;  %v8570_v32 = vld [vmem:[#allocation4 + $0x298] sm:$0xf0] }
 0x540   : > { %v13206_v49 = vadd.f32 %v5043_v52, %v4995_v60  ;;  %v9574_v60 = vld [vmem:[#allocation4 + $0x2ac] sm:$0xf] }
 0x541   : > { %v8589_v19 = vor.u32 %v9574_v60, %v8586_v7  ;;  %5589 = vmatpush.bf16.msrb.mxu3 %v8717_v13  ;;  %v9602_v35 = vld [vmem:[#allocation4 + $0x38c] sm:$0xf] }
 0x542   : > { %14960 = vst [vmem:[#allocation106_spill] sm:$0xff] %v13206_v49 }
 0x543   : > { %v5157_v2 = vpop.f32.mrf.mxu2  ;;  %5540 = vmatpush.bf16.msrb.mxu2 %v8589_v19 }
 0x544   : > { %v5158_v4 = vadd.f32 %v5157_v2, %v5109_v40  ;;  %v5062_v20 = vpop.f32.mrf.mxu0 }
 0x545   : > { %v5063_v17 = vadd.f32 %v5062_v20, %v13188_v50  ;;  %v5111_v23 = vpop.f32.mrf.mxu1 }
 0x547   : > { %v5112_v24 = vadd.f32 %v5111_v23, %v5063_v17  ;;  %v5045_v43 = vpop.f32.mrf.mxu3  ;;  %8947 = vmatmul.msk.bf16.gmra.mxu0 %vm12710_vm5, %v14868_v12  ;;  %8971 = vmatmul.msk.bf16.gmra.mxu1 %vm12710_vm5, %v14869_v29 }
 0x548   : > { %v13212_v8 = vadd.f32 %v5045_v43, %v4997_v44  ;;  %8995 = vmatmul.msk.bf16.gmra.mxu2 %vm12710_vm5, %v12360_v1  ;;  %v9510_v44 = vld [vmem:[#allocation4 + $0xac] sm:$0xf] }
 0x549   : > { %v8333_v57 = vor.u32 %v9510_v44, %v8330_v45  ;;  %v9542_v43 = vld [vmem:[#allocation4 + $0x1ac] sm:$0xf] }
 0x54a   : > { %14961 = vst [vmem:[#allocation107_spill] sm:$0xff] %v13212_v8 }
 0x54b   : > { %v5160_v20 = vpop.f32.mrf.mxu2  ;;  %5442 = vmatpush.bf16.msrb.mxu0 %v8333_v57  ;;  %v8314_v57 = vld [vmem:[#allocation4 + $0x98] sm:$0xf0] }
 0x54c   : > { %v5161_v23 = vadd.f32 %v5160_v20, %v5112_v24  ;;  %9016 = vmatmul.msk.bf16.vlgmr.msra.gmra.mxu3 %vm12673_vm2, %v14962_v63  ;;  %v5064_v18 = vpop.f32.mrf.mxu0  ;;  %v8458_v24 = vld [vmem:[#allocation4 + $0x1b8] sm:$0xf0] }
 0x54d   : > { %v5065_v40 = vadd.f32 %v5064_v18, %v13188_v50  ;;  %v5113_v52 = vpop.f32.mrf.mxu1  ;;  %v8461_v7 = vor.u32 %v9542_v43, %v8458_v24  ;;  %v8698_v43 = vld [vmem:[#allocation4 + $0x398] sm:$0xf0] }
 0x54e   : > { %v8701_v24 = vor.u32 %v9602_v35, %v8698_v43  ;;  %v8554_v35 = vld [vmem:[#allocation4 + $0x278] sm:$0xf0]  ;;  %v9598_v43 = vld [vmem:[#allocation4 + $0x36c] sm:$0xf] }
 0x54f   : > { %v5114_v2 = vadd.f32 %v5113_v52, %v5065_v40  ;;  %v5204_v17 = vpop.f32.mrf.mxu3  ;;  %5491 = vmatpush.bf16.msrb.mxu1 %v8461_v7 }
 0x550   : > { %v13224_v60 = vadd.f32 %v5204_v17, %v5156_v5  ;;  %v9570_v5 = vld [vmem:[#allocation4 + $0x28c] sm:$0xf]  ;;  %5590 = vmatpush.bf16.msrb.mxu3 %v8701_v24 }
 0x551   : > { %v8573_v40 = vor.u32 %v9570_v5, %v8570_v32 }
 0x552   : > { %14963 = vst [vmem:[#allocation22_spill] sm:$0xff] %v13224_v60 }
 0x553   : > { %v5162_v20 = vpop.f32.mrf.mxu2  ;;  %5541 = vmatpush.bf16.msrb.mxu2 %v8573_v40 }
 0x554   : > { %v5163_v8 = vadd.f32 %v5162_v20, %v5114_v2  ;;  %v5067_v49 = vpop.f32.mrf.mxu0 }
 0x555   : > { %v5068_v18 = vadd.f32 %v5067_v49, %v13188_v50  ;;  %v5116_v36 = vpop.f32.mrf.mxu1 }
 0x557   : > { %v5117_v19 = vadd.f32 %v5116_v36, %v5068_v18  ;;  %v5206_v44 = vpop.f32.mrf.mxu3  ;;  %8950 = vmatmul.msk.bf16.gmra.mxu0 %vm12758_vm8, %v14881_v25  ;;  %8974 = vmatmul.msk.bf16.gmra.mxu1 %vm12758_vm8, %v14882_v21  ;;  %v9538_v18 = vld [vmem:[#allocation4 + $0x18c] sm:$0xf] }
 0x558   : > { %v13230_v45 = vadd.f32 %v5206_v44, %v5158_v4  ;;  %8998 = vmatmul.msk.bf16.gmra.mxu2 %vm12758_vm8, %v12402_v31  ;;  %v9506_v4 = vld [vmem:[#allocation4 + $0x8c] sm:$0xf] }
 0x559   : > { %v8317_v17 = vor.u32 %v9506_v4, %v8314_v57 }
 0x55a   : > { %14964 = vst [vmem:[#allocation108_spill] sm:$0xff] %v13230_v45 }
 0x55b   : > { %v5165_v49 = vpop.f32.mrf.mxu2  ;;  %5443 = vmatpush.bf16.msrb.mxu0 %v8317_v17  ;;  %v8298_v17 = vld [vmem:[#allocation4 + $0x78] sm:$0xf0] }
 0x55c   : > { %v5166_v36 = vadd.f32 %v5165_v49, %v5117_v19  ;;  %9019 = vmatmul.msk.bf16.gmra.mxu3 %vm12710_vm5, %v12781_v27  ;;  %v5069_v52 = vpop.f32.mrf.mxu0  ;;  %v8442_v19 = vld [vmem:[#allocation4 + $0x198] sm:$0xf0] }
 0x55d   : > { %v5070_v13 = vadd.f32 %v5069_v52, %v13188_v50  ;;  %v5118_v2 = vpop.f32.mrf.mxu1  ;;  %v8445_v5 = vor.u32 %v9538_v18, %v8442_v19  ;;  %v8682_v18 = vld [vmem:[#allocation4 + $0x378] sm:$0xf0] }
 0x55e   : > { %v8685_v19 = vor.u32 %v9598_v43, %v8682_v18  ;;  %v8538_v43 = vld [vmem:[#allocation4 + $0x258] sm:$0xf0]  ;;  %v9594_v18 = vld [vmem:[#allocation4 + $0x34c] sm:$0xf] }
 0x55f   : > { %v5119_v7 = vadd.f32 %v5118_v2, %v5070_v13  ;;  %v5209_v20 = vpop.f32.mrf.mxu3  ;;  %5492 = vmatpush.bf16.msrb.mxu1 %v8445_v5 }
 0x560   : > { %v13242_v44 = vadd.f32 %v5209_v20, %v5161_v23  ;;  %v9566_v23 = vld [vmem:[#allocation4 + $0x26c] sm:$0xf]  ;;  %5591 = vmatpush.bf16.msrb.mxu3 %v8685_v19 }
 0x561   : > { %v8557_v13 = vor.u32 %v9566_v23, %v8554_v35 }
 0x562   : > { %14965 = vst [vmem:[#allocation109_spill] sm:$0xff] %v13242_v44 }
 0x563   : > { %v5167_v32 = vpop.f32.mrf.mxu2  ;;  %5542 = vmatpush.bf16.msrb.mxu2 %v8557_v13 }
 0x564   : > { %v5168_v49 = vadd.f32 %v5167_v32, %v5119_v7  ;;  %v5072_v45 = vpop.f32.mrf.mxu0 }
 0x565   : > { %v5073_v52 = vadd.f32 %v5072_v45, %v13188_v50  ;;  %v5121_v60 = vpop.f32.mrf.mxu1 }
 0x567   : > { %v5122_v40 = vadd.f32 %v5121_v60, %v5073_v52  ;;  %v5211_v4 = vpop.f32.mrf.mxu3  ;;  %8953 = vmatmul.msk.bf16.gmra.mxu0 %vm12806_vm11, %v14893_v48  ;;  %8977 = vmatmul.msk.bf16.gmra.mxu1 %vm12806_vm11, %v14894_v34  ;;  %v9534_v52 = vld [vmem:[#allocation4 + $0x16c] sm:$0xf] }
 0x568   : > { %v13248_v57 = vadd.f32 %v5211_v4, %v5163_v8  ;;  %9001 = vmatmul.msk.bf16.gmra.mxu2 %vm12806_vm11, %v12444_v0  ;;  %v9502_v8 = vld [vmem:[#allocation4 + $0x6c] sm:$0xf] }
 0x569   : > { %v8301_v20 = vor.u32 %v9502_v8, %v8298_v17 }
 0x56a   : > { %14966 = vst [vmem:[#allocation110_spill] sm:$0xff] %v13248_v57 }
 0x56b   : > { %v5170_v45 = vpop.f32.mrf.mxu2  ;;  %5444 = vmatpush.bf16.msrb.mxu0 %v8301_v20  ;;  %v8282_v20 = vld [vmem:[#allocation4 + $0x58] sm:$0xf0] }
 0x56c   : > { %v5171_v60 = vadd.f32 %v5170_v45, %v5122_v40  ;;  %9022 = vmatmul.msk.bf16.gmra.mxu3 %vm12758_vm8, %v12829_v28  ;;  %v5074_v2 = vpop.f32.mrf.mxu0  ;;  %v8426_v40 = vld [vmem:[#allocation4 + $0x178] sm:$0xf0] }
 0x56d   : > { %v5075_v24 = vadd.f32 %v5074_v2, %v13188_v50  ;;  %v5123_v7 = vpop.f32.mrf.mxu1  ;;  %v8429_v23 = vor.u32 %v9534_v52, %v8426_v40  ;;  %v8666_v52 = vld [vmem:[#allocation4 + $0x358] sm:$0xf0] }
 0x56e   : > { %v8669_v40 = vor.u32 %v9594_v18, %v8666_v52  ;;  %v8522_v18 = vld [vmem:[#allocation4 + $0x238] sm:$0xf0] }
 0x56f   : > { %v5124_v5 = vadd.f32 %v5123_v7, %v5075_v24  ;;  %v5214_v32 = vpop.f32.mrf.mxu3  ;;  %5493 = vmatpush.bf16.msrb.mxu1 %v8429_v23  ;;  %v8266_v52 = vld [vmem:[#allocation4 + $0x38] sm:$0xf0] }
 0x570   : > { %v13260_v4 = vadd.f32 %v5214_v32, %v5166_v36  ;;  %v9562_v36 = vld [vmem:[#allocation4 + $0x24c] sm:$0xf]  ;;  %5592 = vmatpush.bf16.msrb.mxu3 %v8669_v40 }
 0x571   : > { %v8541_v24 = vor.u32 %v9562_v36, %v8538_v43  ;;  %v9590_v40 = vld [vmem:[#allocation4 + $0x32c] sm:$0xf] }
 0x572   : > { %14967 = vst [vmem:[#allocation111_spill] sm:$0xff] %v13260_v4 }
 0x573   : > { %v5172_v35 = vpop.f32.mrf.mxu2  ;;  %5543 = vmatpush.bf16.msrb.mxu2 %v8541_v24 }
 0x574   : > { %v5173_v45 = vadd.f32 %v5172_v35, %v5124_v5  ;;  %v5077_v57 = vpop.f32.mrf.mxu0 }
 0x575   : > { %v5078_v2 = vadd.f32 %v5077_v57, %v13188_v50  ;;  %v5126_v44 = vpop.f32.mrf.mxu1 }
 0x577   : > { %v5127_v13 = vadd.f32 %v5126_v44, %v5078_v2  ;;  %v5216_v8 = vpop.f32.mrf.mxu3  ;;  %8956 = vmatmul.msk.bf16.gmra.mxu0 %vm12854_vm14, %v14905_v11  ;;  %8980 = vmatmul.msk.bf16.gmra.mxu1 %vm12854_vm14, %v14906_v37  ;;  %v9530_v2 = vld [vmem:[#allocation4 + $0x14c] sm:$0xf] }
 0x578   : > { %v13266_v17 = vadd.f32 %v5216_v8, %v5168_v49  ;;  %9004 = vmatmul.msk.bf16.gmra.mxu2 %vm12854_vm14, %v12486_v38  ;;  %v9498_v49 = vld [vmem:[#allocation4 + $0x4c] sm:$0xf] }
 0x579   : > { %v8285_v32 = vor.u32 %v9498_v49, %v8282_v20 }
 0x57a   : > { %14968 = vst [vmem:[#allocation112_spill] sm:$0xff] %v13266_v17 }
 0x57b   : > { %v5175_v57 = vpop.f32.mrf.mxu2  ;;  %5445 = vmatpush.bf16.msrb.mxu0 %v8285_v32 }
 0x57c   : > { %v5176_v44 = vadd.f32 %v5175_v57, %v5127_v13  ;;  %9025 = vmatmul.msk.bf16.gmra.mxu3 %vm12806_vm11, %v12877_v22  ;;  %v5079_v7 = vpop.f32.mrf.mxu0  ;;  %v8410_v13 = vld [vmem:[#allocation4 + $0x158] sm:$0xf0] }
 0x57d   : > { %v5080_v19 = vadd.f32 %v5079_v7, %v13188_v50  ;;  %v5128_v5 = vpop.f32.mrf.mxu1  ;;  %v8413_v36 = vor.u32 %v9530_v2, %v8410_v13  ;;  %v8650_v13 = vld [vmem:[#allocation4 + $0x338] sm:$0xf0] }
 0x57f   : > { %v5129_v23 = vadd.f32 %v5128_v5, %v5080_v19  ;;  %v5219_v35 = vpop.f32.mrf.mxu3  ;;  %5494 = vmatpush.bf16.msrb.mxu1 %v8413_v36  ;;  %v14971_v5 = vld [vmem:[#allocation39_spill] sm:$0xff]  ;;  %v8653_v36 = vor.u32 %v9590_v40, %v8650_v13 }
 0x580   : > { %v13278_v8 = vadd.f32 %v5219_v35, %v5171_v60  ;;  %v9558_v60 = vld [vmem:[#allocation4 + $0x22c] sm:$0xf] }
 0x581   : > { %v8525_v19 = vor.u32 %v9558_v60, %v8522_v18  ;;  %5593 = vmatpush.bf16.msrb.mxu3 %v8653_v36 }
 0x582   : > { %14969 = vst [vmem:[#allocation113_spill] sm:$0xff] %v13278_v8  ;;  %v8250_v8 = vld [vmem:[#allocation4 + $0x18] sm:$0xf0] }
 0x583   : > { %v5177_v43 = vpop.f32.mrf.mxu2  ;;  %5544 = vmatpush.bf16.msrb.mxu2 %v8525_v19 }
 0x584   : > { %v5178_v57 = vadd.f32 %v5177_v43, %v5129_v23  ;;  %v5082_v17 = vpop.f32.mrf.mxu0 }
 0x585   : > { %v5083_v7 = vadd.f32 %v5082_v17, %v13188_v50  ;;  %v5131_v4 = vpop.f32.mrf.mxu1 }
 0x587   : > { %v5132_v24 = vadd.f32 %v5131_v4, %v5083_v7  ;;  %v5221_v49 = vpop.f32.mrf.mxu3  ;;  %8959 = vmatmul.msk.bf16.gmra.mxu0 %vm12903_vm13, %v14917_v9  ;;  %8983 = vmatmul.msk.bf16.gmra.mxu1 %vm12903_vm13, %v14918_v39 }
 0x588   : > { %v13284_v20 = vadd.f32 %v5221_v49, %v5173_v45  ;;  %9007 = vmatmul.msk.bf16.gmra.mxu2 %vm12903_vm13, %v12528_v33  ;;  %v9494_v45 = vld [vmem:[#allocation4 + $0x2c] sm:$0xf] }
 0x589   : > { %v8269_v2 = vor.u32 %v9494_v45, %v8266_v52  ;;  %v9526_v49 = vld [vmem:[#allocation4 + $0x12c] sm:$0xf]  ;;  %v8378_v45 = vld [vmem:[#allocation4 + $0x118] sm:$0xf0] }
 0x58a   : > { %14970 = vst [vmem:[#allocation114_spill] sm:$0xff] %v13284_v20  ;;  %v9490_v20 = vld [vmem:[#allocation4 + $0xc] sm:$0xf] }
 0x58b   : > { %v5180_v17 = vpop.f32.mrf.mxu2  ;;  %5446 = vmatpush.bf16.msrb.mxu0 %v8269_v2  ;;  %v8253_v19 = vor.u32 %v9490_v20, %v8250_v8  ;;  %v9554_v52 = vld [vmem:[#allocation4 + $0x20c] sm:$0xf]  ;;  %v8506_v2 = vld [vmem:[#allocation4 + $0x218] sm:$0xf0] }
 0x58c   : > { %v5181_v4 = vadd.f32 %v5180_v17, %v5132_v24  ;;  %9028 = vmatmul.msk.bf16.gmra.mxu3 %vm12854_vm14, %v14971_v5  ;;  %v5084_v32 = vpop.f32.mrf.mxu0  ;;  %v8394_v24 = vld [vmem:[#allocation4 + $0x138] sm:$0xf0] }
 0x58d   : > { %v5085_v23 = vadd.f32 %v5084_v32, %v13188_v50  ;;  %v5133_v35 = vpop.f32.mrf.mxu1  ;;  %v8397_v18 = vor.u32 %v9526_v49, %v8394_v24 }
 0x58f   : > { %v5134_v43 = vadd.f32 %v5133_v35, %v5085_v23  ;;  %v5224_v7 = vpop.f32.mrf.mxu3  ;;  %5495 = vmatpush.bf16.msrb.mxu1 %v8397_v18  ;;  %v8381_v35 = vor.u32 %v9522_v47, %v8378_v45  ;;  %5447 = vmatpush.bf16.msrb.mxu0 %v8253_v19 }
 0x590   : > { %v13296_v60 = vadd.f32 %v5224_v7, %v5176_v44  ;;  %v8509_v44 = vor.u32 %v9554_v52, %v8506_v2 }
 0x592   : > { %5545 = vmatpush.bf16.msrb.mxu2 %v8509_v44 }
 0x593   : > { %v5182_v17 = vpop.f32.mrf.mxu2  ;;  %5496 = vmatpush.bf16.msrb.mxu1 %v8381_v35 }
 0x594   : > { %v5183_v32 = vadd.f32 %v5182_v17, %v5134_v43  ;;  %v5087_v5 = vpop.f32.mrf.mxu0  ;;  %v8634_v43 = vld [vmem:[#allocation4 + $0x318] sm:$0xf0] }
 0x595   : > { %v5088_v40 = vadd.f32 %v5087_v5, %v13188_v50  ;;  %v5136_v23 = vpop.f32.mrf.mxu1  ;;  %v9586_v5 = vld [vmem:[#allocation4 + $0x30c] sm:$0xf] }
 0x596   : > { %v8637_v24 = vor.u32 %v9586_v5, %v8634_v43 }
 0x597   : > { %v5137_v13 = vadd.f32 %v5136_v23, %v5088_v40  ;;  %v5226_v36 = vpop.f32.mrf.mxu3  ;;  %8962 = vmatmul.msk.bf16.gmra.mxu0 %vm12952_vm10, %v14930_v3  ;;  %8986 = vmatmul.msk.bf16.gmra.mxu1 %vm12952_vm10, %v14931_v62 }
 0x598   : > { %v13302_v7 = vadd.f32 %v5226_v36, %v5178_v57  ;;  %9010 = vmatmul.msk.bf16.gmra.mxu2 %vm12952_vm10, %v12546_v61  ;;  %5594 = vmatpush.bf16.msrb.mxu3 %v8637_v24 }
 0x59b   : > { %v5185_v47 = vpop.f32.mrf.mxu2 }
 0x59c   : > { %v5186_v8 = vadd.f32 %v5185_v47, %v5137_v13  ;;  %9031 = vmatmul.msk.bf16.gmra.mxu3 %vm12903_vm13, %v12975_v56  ;;  %v5089_v20 = vpop.f32.mrf.mxu0 }
 0x59d   : > { %v5090_v57 = vadd.f32 %v5089_v20, %v13188_v50  ;;  %v5138_v49 = vpop.f32.mrf.mxu1 }
 0x59f   : > { %v5139_v18 = vadd.f32 %v5138_v49, %v5090_v57  ;;  %v5229_v17 = vpop.f32.mrf.mxu3  ;;  %v13334_v49 = vld [vmem:[#allocation6 + $0x4] sm:$0xf] }
 0x5a0   : > { %v13314_v19 = vadd.f32 %v5229_v17, %v5181_v4  ;;  %v13337_v24 = vperm.slane %v13334_v49, 2 }
 0x5a3   : > { %v5187_v45 = vpop.f32.mrf.mxu2 }
 0x5a4   : > { %v5188_v52 = vadd.f32 %v5187_v45, %v5139_v18  ;;  %v5092_v40 = vpop.f32.mrf.mxu0 }
 0x5a5   : > { %v5093_v23 = vadd.f32 %v5092_v40, %v13188_v50  ;;  %v5141_v35 = vpop.f32.mrf.mxu1 }
 0x5a7   : > { %v5142_v2 = vadd.f32 %v5141_v35, %v5093_v23  ;;  %v5231_v44 = vpop.f32.mrf.mxu3  ;;  %8965 = vmatmul.msk.bf16.gmra.mxu0 %vm13001_vm9, %v14942_v51  ;;  %8989 = vmatmul.msk.bf16.gmra.mxu1 %vm13001_vm9, %v14943_v10 }
 0x5a8   : > { %v13320_v13 = vadd.f32 %v5231_v44, %v5183_v32  ;;  %9013 = vmatmul.msk.bf16.gmra.mxu2 %vm13001_vm9, %v12566_v55 }
 0x5ab   : > { %v5190_v4 = vpop.f32.mrf.mxu2 }
 0x5ac   : > { %v5191_v36 = vadd.f32 %v5190_v4, %v5142_v2  ;;  %9034 = vmatmul.msk.bf16.gmra.mxu3 %vm12952_vm10, %v13024_v6  ;;  %v5094_v47 = vpop.f32.mrf.mxu0 }
 0x5ad   : > { %v5095_v20 = vadd.f32 %v5094_v47, %v13188_v50  ;;  %v5143_v5 = vpop.f32.mrf.mxu1 }
 0x5af   : > { %v5144_v32 = vadd.f32 %v5143_v5, %v5095_v20  ;;  %v5234_v43 = vpop.f32.mrf.mxu3 }
 0x5b0   : > { %v13332_v57 = vadd.f32 %v5234_v43, %v5186_v8 }
 0x5b3   : > { %v5192_v18 = vpop.f32.mrf.mxu2 }
 0x5b4   : > { %v5193_v17 = vadd.f32 %v5192_v18, %v5144_v32  ;;  %v5253_v45 = vpop.f32.mrf.mxu0 }
 0x5b5   : > { %v5254_v40 = vadd.f32 %v5253_v45, %v13337_v24  ;;  %v5302_v23 = vpop.f32.mrf.mxu1 }
 0x5b7   : > { %v5303_v35 = vadd.f32 %v5302_v23, %v5254_v40  ;;  %v5236_v2 = vpop.f32.mrf.mxu3  ;;  %9040 = vmatmul.msk.bf16.vlgmr.msrb.gmra.mxu0 %vm12673_vm2, %v14856_v26  ;;  %9064 = vmatmul.msk.bf16.vlgmr.msrb.gmra.mxu1 %vm12673_vm2, %v14857_v14 }
 0x5b8   : > { %v13343_v50 = vadd.f32 %v5236_v2, %v5188_v52  ;;  %9088 = vmatmul.msk.bf16.vlgmr.msrb.gmra.mxu2 %vm12673_vm2, %v12318_v46 }
 0x5bb   : > { %v5351_v8 = vpop.f32.mrf.mxu2 }
 0x5bc   : > { %v5352_v44 = vadd.f32 %v5351_v8, %v5303_v35  ;;  %9037 = vmatmul.msk.bf16.gmra.mxu3 %vm13001_vm9, %v13057_v41  ;;  %v5255_v4 = vpop.f32.mrf.mxu0 }
 0x5bd   : > { %v5256_v47 = vadd.f32 %v5255_v4, %v13337_v24  ;;  %v5304_v26 = vpop.f32.mrf.mxu1 }
 0x5bf   : > { %v5305_v52 = vadd.f32 %v5304_v26, %v5256_v47  ;;  %v5239_v20 = vpop.f32.mrf.mxu3 }
 0x5c0   : > { %v13355_v5 = vadd.f32 %v5239_v20, %v5191_v36 }
 0x5c3   : > { %v5353_v32 = vpop.f32.mrf.mxu2 }
 0x5c4   : > { %v5354_v14 = vadd.f32 %v5353_v32, %v5305_v52  ;;  %v5258_v43 = vpop.f32.mrf.mxu0 }
 0x5c5   : > { %v5259_v18 = vadd.f32 %v5258_v43, %v13337_v24  ;;  %v5307_v46 = vpop.f32.mrf.mxu1 }
 0x5c7   : > { %v5308_v45 = vadd.f32 %v5307_v46, %v5259_v18  ;;  %v5241_v40 = vpop.f32.mrf.mxu3  ;;  %9043 = vmatmul.msk.bf16.gmra.mxu0 %vm12710_vm5, %v14868_v12  ;;  %9067 = vmatmul.msk.bf16.gmra.mxu1 %vm12710_vm5, %v14869_v29 }
 0x5c8   : > { %v13361_v23 = vadd.f32 %v5241_v40, %v5193_v17  ;;  %9091 = vmatmul.msk.bf16.gmra.mxu2 %vm12710_vm5, %v12360_v1 }
 0x5cb   : > { %v5356_v36 = vpop.f32.mrf.mxu2 }
 0x5cc   : > { %v5357_v35 = vadd.f32 %v5356_v36, %v5308_v45  ;;  %9112 = vmatmul.msk.bf16.vlgmr.msrb.gmra.mxu3 %vm12673_vm2, %v14962_v63  ;;  %v5260_v2 = vpop.f32.mrf.mxu0 }
 0x5cd   : > { %v5261_v8 = vadd.f32 %v5260_v2, %v13337_v24  ;;  %v5309_v12 = vpop.f32.mrf.mxu1 }
 0x5cf   : > { %v5310_v17 = vadd.f32 %v5309_v12, %v5261_v8  ;;  %v5400_v4 = vpop.f32.mrf.mxu3 }
 0x5d0   : > { %v5401_v47 = vadd.f32 %v5400_v4, %v5352_v44 }
 0x5d2   : > { %v9134_v26 = vmul.f32 -1.442695, %v5401_v47 }
 0x5d3   : > { %v5358_v52 = vpop.f32.mrf.mxu2 }
 0x5d4   : > { %9653 = vpow2.f32 %v9134_v26  ;;  %v5359_v29 = vadd.f32 %v5358_v52, %v5310_v17  ;;  %v5263_v20 = vpop.f32.mrf.mxu0 }
 0x5d5   : > { %v5264_v1 = vadd.f32 %v5263_v20, %v13337_v24  ;;  %v5312_v32 = vpop.f32.mrf.mxu1 }
 0x5d7   : > { %v5313_v43 = vadd.f32 %v5312_v32, %v5264_v1  ;;  %v5402_v18 = vpop.f32.mrf.mxu3  ;;  %9046 = vmatmul.msk.bf16.gmra.mxu0 %vm12758_vm8, %v14881_v25  ;;  %9070 = vmatmul.msk.bf16.gmra.mxu1 %vm12758_vm8, %v14882_v21  ;;  %v14972_v32 = vld [vmem:[#allocation53_spill] sm:$0xff] }
 0x5d8   : > { %v5403_v30 = vadd.f32 %v5402_v18, %v5354_v14  ;;  %9094 = vmatmul.msk.bf16.gmra.mxu2 %vm12758_vm8, %v12402_v31 }
 0x5da   : > { %v9654_v63 = vpop.eup %9653  ;;  %v9136_v44 = vmul.f32 -1.442695, %v5403_v30 }
 0x5db   : > { %v5764_v46 = vadd.f32 1.0, %v9654_v63  ;;  %v5361_v45 = vpop.f32.mrf.mxu2 }
 0x5dc   : > { %9655 = vpow2.f32 %v9136_v44  ;;  %v5362_v40 = vadd.f32 %v5361_v45, %v5313_v43  ;;  %9115 = vmatmul.msk.bf16.gmra.mxu3 %vm12710_vm5, %v12781_v27  ;;  %v5265_v25 = vpop.f32.mrf.mxu0 }
 0x5dd   : > { %9657 = vrcp.f32 %v5764_v46  ;;  %v5266_v14 = vadd.f32 %v5265_v25, %v13337_v24  ;;  %v5314_v36 = vpop.f32.mrf.mxu1  ;;  %v5807_v30 = vand.u32 2147483648, %v5764_v46  ;;  %vm5801_vm5 = vweird.f32 %v5764_v46 }
 0x5df   : > { %v5315_v21 = vadd.f32 %v5314_v36, %v5266_v14  ;;  %v5405_v2 = vpop.f32.mrf.mxu3 }
 0x5e0   : > { %v5406_v8 = vadd.f32 %v5405_v2, %v5357_v35  ;;  %v5805_v35 = vand.u32 2147483647, %v5764_v46 }
 0x5e2   : > { %v9656_v12 = vpop.eup %9655  ;;  %v9138_v31 = vmul.f32 -1.442695, %v5406_v8  ;;  %vm5806_vm12 = vcmp.eq.f32.partialorder %v5805_v35, 8.507059e+37 }
 0x5e3   : > { %v9658_v17 = vpop.eup %9657  ;;  %v5766_v4 = vadd.f32 1.0, %v9656_v12  ;;  %v5363_v47 = vpop.f32.mrf.mxu2 }
 0x5e4   : > { %v5797_v26 = vmul.f32 %v9658_v17, %v5764_v46  ;;  %9659 = vpow2.f32 %v9138_v31  ;;  %v13387_v52 = vadd.f32 %v5363_v47, %v5315_v21  ;;  %v5268_v20 = vpop.f32.mrf.mxu0  ;;  %vm5802_vm2 = vweird.f32 %v9658_v17 }
 0x5e5   : > { %9661 = vrcp.f32 %v5766_v4  ;;  %v5269_v54 = vadd.f32 %v5268_v20, %v13337_v24  ;;  %v5317_v27 = vpop.f32.mrf.mxu1  ;;  %vm5803_vm15 = vmor %vm5801_vm5, %vm5802_vm2 }
 0x5e6   : > { %v5798_v1 = vsub.f32 1.0, %v5797_v26  ;;  %9663 = vtanh.f32 %v14972_v32  ;;  %v5835_v32 = vand.u32 2147483647, %v5766_v4 }
 0x5e7   : > { %v5318_v43 = vadd.f32 %v5317_v27, %v5269_v54  ;;  %v5407_v18 = vpop.f32.mrf.mxu3  ;;  %9049 = vmatmul.msk.bf16.gmra.mxu0 %vm12806_vm11, %v14893_v48  ;;  %9073 = vmatmul.msk.bf16.gmra.mxu1 %vm12806_vm11, %v14894_v34  ;;  %v14973_v54 = vld [vmem:[#allocation73_spill] sm:$0xff] }
 0x5e8   : > { %v5408_v63 = vadd.f32 %v5407_v18, %v5359_v29  ;;  %9097 = vmatmul.msk.bf16.gmra.mxu2 %vm12806_vm11, %v12444_v0  ;;  %v5799_v44 = vmul.f32 %v9658_v17, %v5798_v1  ;;  %v5808_v29 = vor.u32 1.1754944e-38, %v5807_v30  ;;  %vm5836_vm2 = vcmp.eq.f32.partialorder %v5835_v32, 8.507059e+37 }
 0x5ea   : > { %v9660_v45 = vpop.eup %9659  ;;  %v9140_v25 = vmul.f32 -1.442695, %v5408_v63  ;;  %v5800_v14 = vadd.f32 %v9658_v17, %v5799_v44 }
 0x5eb   : > { %v9662_v36 = vpop.eup %9661  ;;  %v13400_v21 = vadd.f32 1.0, %v9660_v45  ;;  %v5366_v48 = vpop.f32.mrf.mxu2 }
 0x5ec   : > { %v5827_v2 = vmul.f32 %v9662_v36, %v5766_v4  ;;  %9665 = vpow2.f32 %v9140_v25  ;;  %v13402_v34 = vadd.f32 %v5366_v48, %v5318_v43  ;;  %9118 = vmatmul.msk.bf16.gmra.mxu3 %vm12758_vm8, %v12829_v28  ;;  %v5270_v0 = vpop.f32.mrf.mxu0  ;;  %v5804_v8 = vsel %vm5803_vm15, %v9658_v17, %v5800_v14  ;;  %v9664_v12 = vpop.eup %9663 }
 0x5ed   : > { %9667 = vrcp.f32 %v13400_v21  ;;  %v5271_v46 = vadd.f32 %v5270_v0, %v13337_v24  ;;  %v5319_v31 = vpop.f32.mrf.mxu1  ;;  %v5809_v47 = vsel %vm5806_vm12, %v5808_v29, %v5804_v8  ;;  %v5837_v43 = vand.u32 2147483648, %v5766_v4 }
 0x5ee   : > { %v13409_v26 = vmul.f32 %v9664_v12, %v5809_v47  ;;  %v5828_v20 = vsub.f32 1.0, %v5827_v2  ;;  %9669 = vtanh.f32 %v14973_v54  ;;  %vm5832_vm8 = vweird.f32 %v9662_v36 }
 0x5ef   : > { %v5320_v27 = vadd.f32 %v5319_v31, %v5271_v46  ;;  %v5410_v1 = vpop.f32.mrf.mxu3  ;;  %vm5831_vm15 = vweird.f32 %v5766_v4  ;;  %v5838_v45 = vor.u32 1.1754944e-38, %v5837_v43  ;;  %v14974_v46 = vld [vmem:[#allocation56_spill] sm:$0xff] }
 0x5f0   : > { %v5411_v58 = vadd.f32 %v5410_v1, %v5362_v40  ;;  %v5829_v28 = vmul.f32 %v9662_v36, %v5828_v20  ;;  %vm5833_vm12 = vmor %vm5831_vm15, %vm5832_vm8  ;;  %v5867_v20 = vand.u32 2147483648, %v13400_v21  ;;  %vm5861_vm8 = vweird.f32 %v13400_v21 }
 0x5f2   : > { %v9666_v17 = vpop.eup %9665  ;;  %v9142_v18 = vmul.f32 -1.442695, %v5411_v58  ;;  %v5830_v35 = vadd.f32 %v9662_v36, %v5829_v28 }
 0x5f3   : > { %v9668_v30 = vpop.eup %9667  ;;  %v13412_v63 = vadd.f32 1.0, %v9666_v17  ;;  %v5368_v44 = vpop.f32.mrf.mxu2 }
 0x5f4   : > { %v5857_v25 = vmul.f32 %v9668_v30, %v13400_v21  ;;  %9671 = vpow2.f32 %v9142_v18  ;;  %v13415_v14 = vadd.f32 %v5368_v44, %v5320_v27  ;;  %v5273_v48 = vpop.f32.mrf.mxu0  ;;  %v5834_v40 = vsel %vm5833_vm12, %v9662_v36, %v5830_v35  ;;  %v9670_v29 = vpop.eup %9669 }
 0x5f5   : > { %9673 = vrcp.f32 %v13412_v63  ;;  %v5274_v2 = vadd.f32 %v5273_v48, %v13337_v24  ;;  %v5322_v4 = vpop.f32.mrf.mxu1  ;;  %v5839_v0 = vsel %vm5836_vm2, %v5838_v45, %v5834_v40  ;;  %v5865_v36 = vand.u32 2147483647, %v13400_v21  ;;  %v14975_v40 = vld [vmem:[#allocation76_spill] sm:$0xff] }
 0x5f6   : > { %v13419_v8 = vmul.f32 %v9670_v29, %v5839_v0  ;;  %v5858_v12 = vsub.f32 1.0, %v5857_v25  ;;  %9675 = vtanh.f32 %v14974_v46  ;;  %vm5862_vm5 = vweird.f32 %v9668_v30 }
 0x5f7   : > { %v5323_v31 = vadd.f32 %v5322_v4, %v5274_v2  ;;  %v5412_v47 = vpop.f32.mrf.mxu3  ;;  %9052 = vmatmul.msk.bf16.gmra.mxu0 %vm12854_vm14, %v14905_v11  ;;  %9076 = vmatmul.msk.bf16.gmra.mxu1 %vm12854_vm14, %v14906_v37  ;;  %vm5863_vm15 = vmor %vm5861_vm8, %vm5862_vm5  ;;  %vm5866_vm12 = vcmp.eq.f32.partialorder %v5865_v36, 8.507059e+37  ;;  %v5895_v4 = vand.u32 2147483647, %v13412_v63  ;;  %v5897_v15 = vand.u32 2147483648, %v13412_v63 }
 0x5f8   : > { %v5413_v54 = vadd.f32 %v5412_v47, %v13387_v52  ;;  %9100 = vmatmul.msk.bf16.gmra.mxu2 %vm12854_vm14, %v12486_v38  ;;  %v5859_v27 = vmul.f32 %v9668_v30, %v5858_v12  ;;  %v5868_v52 = vor.u32 1.1754944e-38, %v5867_v20  ;;  %vm5891_vm2 = vweird.f32 %v13412_v63 }
 0x5f9   : > { %vm5896_vm8 = vcmp.eq.f32.partialorder %v5895_v4, 8.507059e+37  ;;  %v5898_v20 = vor.u32 1.1754944e-38, %v5897_v15 }
 0x5fa   : > { %v9672_v1 = vpop.eup %9671  ;;  %v9144_v32 = vmul.f32 -1.442695, %v5413_v54  ;;  %v5860_v43 = vadd.f32 %v9668_v30, %v5859_v27 }
 0x5fb   : > { %v9674_v11 = vpop.eup %9673  ;;  %v13435_v58 = vadd.f32 1.0, %v9672_v1  ;;  %v5371_v28 = vpop.f32.mrf.mxu2 }
 0x5fc   : > { %v5887_v37 = vmul.f32 %v9674_v11, %v13412_v63  ;;  %9677 = vpow2.f32 %v9144_v32  ;;  %v13438_v17 = vadd.f32 %v5371_v28, %v5323_v31  ;;  %9121 = vmatmul.msk.bf16.gmra.mxu3 %vm12806_vm11, %v12877_v22  ;;  %v5275_v38 = vpop.f32.mrf.mxu0  ;;  %v5864_v18 = vsel %vm5863_vm15, %v9668_v30, %v5860_v43  ;;  %v9676_v35 = vpop.eup %9675 }
 0x5fd   : > { %9679 = vrcp.f32 %v13435_v58  ;;  %v5276_v21 = vadd.f32 %v5275_v38, %v13337_v24  ;;  %v5324_v44 = vpop.f32.mrf.mxu1  ;;  %v5869_v45 = vsel %vm5866_vm12, %v5868_v52, %v5864_v18  ;;  %vm5892_vm11 = vweird.f32 %v9674_v11  ;;  %v14976_v38 = vld [vmem:[#allocation59_spill] sm:$0xff] }
 0x5fe   : > { %v13445_v25 = vmul.f32 %v9676_v35, %v5869_v45  ;;  %v5888_v48 = vsub.f32 1.0, %v5887_v37  ;;  %9681 = vtanh.f32 %v14975_v40  ;;  %vm5893_vm5 = vmor %vm5891_vm2, %vm5892_vm11  ;;  %vm5921_vm12 = vweird.f32 %v13435_v58 }
 0x5ff   : > { %v5325_v29 = vadd.f32 %v5324_v44, %v5276_v21  ;;  %v5415_v2 = vpop.f32.mrf.mxu3  ;;  %v5927_v21 = vand.u32 2147483648, %v13435_v58 }
 0x600   : > { %v5416_v22 = vadd.f32 %v5415_v2, %v13402_v34  ;;  %v5889_v30 = vmul.f32 %v9674_v11, %v5888_v48 }
 0x602   : > { %v9678_v0 = vpop.eup %9677  ;;  %v9146_v12 = vmul.f32 -1.442695, %v5416_v22  ;;  %v5890_v46 = vadd.f32 %v9674_v11, %v5889_v30 }
 0x603   : > { %v9680_v31 = vpop.eup %9679  ;;  %v13452_v47 = vadd.f32 1.0, %v9678_v0  ;;  %v5373_v36 = vpop.f32.mrf.mxu2 }
 0x604   : > { %v5917_v54 = vmul.f32 %v9680_v31, %v13435_v58  ;;  %9683 = vpow2.f32 %v9146_v12  ;;  %v13455_v27 = vadd.f32 %v5373_v36, %v5325_v29  ;;  %v5278_v34 = vpop.f32.mrf.mxu0  ;;  %v5894_v1 = vsel %vm5893_vm5, %v9674_v11, %v5890_v46  ;;  %v9682_v32 = vpop.eup %9681 }
 0x605   : > { %9685 = vrcp.f32 %v13452_v47  ;;  %v5279_v43 = vadd.f32 %v5278_v34, %v13337_v24  ;;  %v5327_v63 = vpop.f32.mrf.mxu1  ;;  %v5899_v28 = vsel %vm5896_vm8, %v5898_v20, %v5894_v1  ;;  %v5925_v11 = vand.u32 2147483647, %v13435_v58 }
 0x606   : > { %v13459_v52 = vmul.f32 %v9682_v32, %v5899_v28  ;;  %v5918_v37 = vsub.f32 1.0, %v5917_v54  ;;  %9687 = vtanh.f32 %v14976_v38  ;;  %vm5922_vm15 = vweird.f32 %v9680_v31  ;;  %v14978_v54 = vld [vmem:[#allocation79_spill] sm:$0xff] }
 0x607   : > { %v5328_v18 = vadd.f32 %v5327_v63, %v5279_v43  ;;  %v5417_v35 = vpop.f32.mrf.mxu3  ;;  %9055 = vmatmul.msk.bf16.gmra.mxu0 %vm12903_vm13, %v14917_v9  ;;  %9079 = vmatmul.msk.bf16.gmra.mxu1 %vm12903_vm13, %v14918_v39  ;;  %vm5923_vm11 = vmor %vm5921_vm12, %vm5922_vm15  ;;  %vm5926_vm2 = vcmp.eq.f32.partialorder %v5925_v11, 8.507059e+37  ;;  %v5955_v32 = vand.u32 2147483647, %v13452_v47  ;;  %v5957_v16 = vand.u32 2147483648, %v13452_v47 }
 0x608   : > { %v5418_v44 = vadd.f32 %v5417_v35, %v13415_v14  ;;  %9103 = vmatmul.msk.bf16.gmra.mxu2 %vm12903_vm13, %v12528_v33  ;;  %v5919_v45 = vmul.f32 %v9680_v31, %v5918_v37  ;;  %v5928_v14 = vor.u32 1.1754944e-38, %v5927_v21  ;;  %v14977_v33 = vld [vmem:[#allocation39_spill] sm:$0xff]  ;;  %vm5951_vm5 = vweird.f32 %v13452_v47 }
 0x609   : > { %vm5956_vm15 = vcmp.eq.f32.partialorder %v5955_v32, 8.507059e+37  ;;  %v5958_v11 = vor.u32 1.1754944e-38, %v5957_v16 }
 0x60a   : > { %v9684_v48 = vpop.eup %9683  ;;  %v9148_v40 = vmul.f32 -1.442695, %v5418_v44  ;;  %v5920_v29 = vadd.f32 %v9680_v31, %v5919_v45 }
 0x60b   : > { %v9686_v9 = vpop.eup %9685  ;;  %v13475_v2 = vadd.f32 1.0, %v9684_v48  ;;  %v5376_v4 = vpop.f32.mrf.mxu2 }
 0x60c   : > { %v5947_v39 = vmul.f32 %v9686_v9, %v13452_v47  ;;  %9689 = vpow2.f32 %v9148_v40  ;;  %v13478_v15 = vadd.f32 %v5376_v4, %v5328_v18  ;;  %9124 = vmatmul.msk.bf16.gmra.mxu3 %vm12854_vm14, %v14977_v33  ;;  %v5280_v22 = vpop.f32.mrf.mxu0  ;;  %v5924_v30 = vsel %vm5923_vm11, %v9680_v31, %v5920_v29  ;;  %v9688_v0 = vpop.eup %9687 }
 0x60d   : > { %9691 = vrcp.f32 %v13475_v2  ;;  %v5281_v58 = vadd.f32 %v5280_v22, %v13337_v24  ;;  %v5329_v12 = vpop.f32.mrf.mxu1  ;;  %v5929_v46 = vsel %vm5926_vm2, %v5928_v14, %v5924_v30  ;;  %vm5952_vm14 = vweird.f32 %v9686_v9 }
 0x60e   : > { %v13485_v36 = vmul.f32 %v9688_v0, %v5929_v46  ;;  %v5948_v20 = vsub.f32 1.0, %v5947_v39  ;;  %9693 = vtanh.f32 %v14978_v54  ;;  %vm5953_vm8 = vmor %vm5951_vm5, %vm5952_vm14  ;;  %v14979_v39 = vld [vmem:[#allocation62_spill] sm:$0xff]  ;;  %v5987_v30 = vand.u32 2147483648, %v13475_v2 }
 0x60f   : > { %v5330_v34 = vadd.f32 %v5329_v12, %v5281_v58  ;;  %v5420_v1 = vpop.f32.mrf.mxu3  ;;  %vm5981_vm11 = vweird.f32 %v13475_v2 }
 0x610   : > { %v5421_v31 = vadd.f32 %v5420_v1, %v13438_v17  ;;  %v5949_v43 = vmul.f32 %v9686_v9, %v5948_v20 }
 0x612   : > { %v9690_v63 = vpop.eup %9689  ;;  %v9150_v28 = vmul.f32 -1.442695, %v5421_v31  ;;  %v5950_v37 = vadd.f32 %v9686_v9, %v5949_v43 }
 0x613   : > { %v9692_v38 = vpop.eup %9691  ;;  %v13492_v18 = vadd.f32 1.0, %v9690_v63  ;;  %v5378_v35 = vpop.f32.mrf.mxu2 }
 0x614   : > { %v5977_v21 = vmul.f32 %v9692_v38, %v13475_v2  ;;  %9695 = vpow2.f32 %v9150_v28  ;;  %v13495_v44 = vadd.f32 %v5378_v35, %v5330_v34  ;;  %v5283_v17 = vpop.f32.mrf.mxu0  ;;  %v5954_v45 = vsel %vm5953_vm8, %v9686_v9, %v5950_v37  ;;  %v9694_v48 = vpop.eup %9693  ;;  %v14980_v37 = vld [vmem:[#allocation82_spill] sm:$0xff] }
 0x615   : > { %9697 = vrcp.f32 %v13492_v18  ;;  %v5284_v40 = vadd.f32 %v5283_v17, %v13337_v24  ;;  %v5332_v47 = vpop.f32.mrf.mxu1  ;;  %v5959_v29 = vsel %vm5956_vm15, %v5958_v11, %v5954_v45  ;;  %v5985_v9 = vand.u32 2147483647, %v13475_v2 }
 0x616   : > { %v5978_v4 = vsub.f32 1.0, %v5977_v21  ;;  %v13499_v14 = vmul.f32 %v9694_v48, %v5959_v29  ;;  %9699 = vtanh.f32 %v14979_v39  ;;  %vm5982_vm12 = vweird.f32 %v9692_v38 }
 0x617   : > { %v5333_v33 = vadd.f32 %v5332_v47, %v5284_v40  ;;  %v5422_v22 = vpop.f32.mrf.mxu3  ;;  %9058 = vmatmul.msk.bf16.gmra.mxu0 %vm12952_vm10, %v14930_v3  ;;  %9082 = vmatmul.msk.bf16.gmra.mxu1 %vm12952_vm10, %v14931_v62  ;;  %vm5983_vm2 = vmor %vm5981_vm11, %vm5982_vm12  ;;  %vm5986_vm14 = vcmp.eq.f32.partialorder %v5985_v9, 8.507059e+37  ;;  %v6015_v21 = vand.u32 2147483647, %v13492_v18  ;;  %v6017_v53 = vand.u32 2147483648, %v13492_v18 }
 0x618   : > { %v5423_v0 = vadd.f32 %v5422_v22, %v13455_v27  ;;  %9106 = vmatmul.msk.bf16.gmra.mxu2 %vm12952_vm10, %v12546_v61  ;;  %v5979_v58 = vmul.f32 %v9692_v38, %v5978_v4  ;;  %v5988_v27 = vor.u32 1.1754944e-38, %v5987_v30  ;;  %vm6011_vm5 = vweird.f32 %v13492_v18 }
 0x619   : > { %vm6016_vm15 = vcmp.eq.f32.partialorder %v6015_v21, 8.507059e+37  ;;  %v6018_v4 = vor.u32 1.1754944e-38, %v6017_v53 }
 0x61a   : > { %v9696_v12 = vpop.eup %9695  ;;  %v9152_v46 = vmul.f32 -1.442695, %v5423_v0  ;;  %v5980_v20 = vadd.f32 %v9692_v38, %v5979_v58 }
 0x61b   : > { %v9698_v3 = vpop.eup %9697  ;;  %v13515_v54 = vadd.f32 1.0, %v9696_v12  ;;  %v5381_v34 = vpop.f32.mrf.mxu2 }
 0x61c   : > { %v6007_v62 = vmul.f32 %v9698_v3, %v13492_v18  ;;  %9701 = vpow2.f32 %v9152_v46  ;;  %v13518_v1 = vadd.f32 %v5381_v34, %v5333_v33  ;;  %9127 = vmatmul.msk.bf16.gmra.mxu3 %vm12903_vm13, %v12975_v56  ;;  %v5285_v61 = vpop.f32.mrf.mxu0  ;;  %v5984_v32 = vsel %vm5983_vm2, %v9692_v38, %v5980_v20  ;;  %v9700_v16 = vpop.eup %9699  ;;  %v14981_v46 = vld [vmem:[#allocation10_spill] sm:$0xff] }
 0x61d   : > { %9703 = vrcp.f32 %v13515_v54  ;;  %v5286_v2 = vadd.f32 %v5285_v61, %v13337_v24  ;;  %v5334_v31 = vpop.f32.mrf.mxu1  ;;  %v5989_v43 = vsel %vm5986_vm14, %v5988_v27, %v5984_v32  ;;  %vm6012_vm13 = vweird.f32 %v9698_v3 }
 0x61e   : > { %v13525_v63 = vmul.f32 %v9700_v16, %v5989_v43  ;;  %v6008_v28 = vsub.f32 1.0, %v6007_v62  ;;  %9705 = vtanh.f32 %v14980_v37  ;;  %vm6013_vm8 = vmor %vm6011_vm5, %vm6012_vm13  ;;  %v6047_v27 = vand.u32 2147483648, %v13515_v54 }
 0x61f   : > { %v5335_v35 = vadd.f32 %v5334_v31, %v5286_v2  ;;  %v5425_v11 = vpop.f32.mrf.mxu3  ;;  %vm6041_vm11 = vweird.f32 %v13515_v54 }
 0x620   : > { %v5426_v56 = vadd.f32 %v5425_v11, %v13478_v15  ;;  %v6009_v38 = vmul.f32 %v9698_v3, %v6008_v28 }
 0x622   : > { %v9702_v17 = vpop.eup %9701  ;;  %v9154_v45 = vmul.f32 -1.442695, %v5426_v56  ;;  %v6010_v48 = vadd.f32 %v9698_v3, %v6009_v38  ;;  %v14982_v38 = vld [vmem:[#allocation85_spill] sm:$0xff] }
 0x623   : > { %v9704_v40 = vpop.eup %9703  ;;  %v13532_v47 = vadd.f32 1.0, %v9702_v17  ;;  %v5383_v29 = vpop.f32.mrf.mxu2 }
 0x624   : > { %v6037_v39 = vmul.f32 %v9704_v40, %v13515_v54  ;;  %9707 = vpow2.f32 %v9154_v45  ;;  %v13535_v33 = vadd.f32 %v5383_v29, %v5335_v35  ;;  %v5288_v15 = vpop.f32.mrf.mxu0  ;;  %v6014_v22 = vsel %vm6013_vm8, %v9698_v3, %v6010_v48  ;;  %v9706_v9 = vpop.eup %9705 }
 0x625   : > { %9709 = vrcp.f32 %v13532_v47  ;;  %v5289_v30 = vadd.f32 %v5288_v15, %v13337_v24  ;;  %v5337_v18 = vpop.f32.mrf.mxu1  ;;  %v6019_v0 = vsel %vm6016_vm15, %v6018_v4, %v6014_v22  ;;  %v6045_v3 = vand.u32 2147483647, %v13515_v54 }
 0x626   : > { %v6038_v58 = vsub.f32 1.0, %v6037_v39  ;;  %v13539_v12 = vmul.f32 %v9706_v9, %v6019_v0  ;;  %9711 = vtanh.f32 %v14981_v46  ;;  %vm6042_vm12 = vweird.f32 %v9704_v40 }
 0x627   : > { %v5338_v20 = vadd.f32 %v5337_v18, %v5289_v30  ;;  %v5427_v34 = vpop.f32.mrf.mxu3  ;;  %9061 = vmatmul.msk.bf16.gmra.mxu0 %vm13001_vm9, %v14942_v51  ;;  %9085 = vmatmul.msk.bf16.gmra.mxu1 %vm13001_vm9, %v14943_v10  ;;  %vm6043_vm2 = vmor %vm6041_vm11, %vm6042_vm12  ;;  %vm6046_vm14 = vcmp.eq.f32.partialorder %v6045_v3, 8.507059e+37  ;;  %v6075_v48 = vand.u32 2147483647, %v13532_v47  ;;  %v6077_v59 = vand.u32 2147483648, %v13532_v47  ;;  %v14983_v3 = vld [vmem:[#allocation12_spill] sm:$0xff] }
 0x628   : > { %v5428_v62 = vadd.f32 %v5427_v34, %v13495_v44  ;;  %9109 = vmatmul.msk.bf16.gmra.mxu2 %vm13001_vm9, %v12566_v55  ;;  %v6039_v61 = vmul.f32 %v9704_v40, %v6038_v58  ;;  %v6048_v44 = vor.u32 1.1754944e-38, %v6047_v27  ;;  %vm6071_vm13 = vweird.f32 %v13532_v47 }
 0x629   : > { %vm6076_vm8 = vcmp.eq.f32.partialorder %v6075_v48, 8.507059e+37  ;;  %v6078_v9 = vor.u32 1.1754944e-38, %v6077_v59 }
 0x62a   : > { %v9708_v32 = vpop.eup %9707  ;;  %v9156_v16 = vmul.f32 -1.442695, %v5428_v62  ;;  %v6040_v2 = vadd.f32 %v9704_v40, %v6039_v61 }
 0x62b   : > { %v9710_v51 = vpop.eup %9709  ;;  %v13555_v31 = vadd.f32 1.0, %v9708_v32  ;;  %v5386_v43 = vpop.f32.mrf.mxu2 }
 0x62c   : > { %v6067_v10 = vmul.f32 %v9710_v51, %v13532_v47  ;;  %9713 = vpow2.f32 %v9156_v16  ;;  %v13558_v28 = vadd.f32 %v5386_v43, %v5338_v20  ;;  %9130 = vmatmul.msk.bf16.gmra.mxu3 %vm12952_vm10, %v13024_v6  ;;  %v5290_v55 = vpop.f32.mrf.mxu0  ;;  %v6044_v37 = vsel %vm6043_vm2, %v9704_v40, %v6040_v2  ;;  %v9712_v35 = vpop.eup %9711 }
 0x62d   : > { %9715 = vrcp.f32 %v13555_v31  ;;  %v5291_v54 = vadd.f32 %v5290_v55, %v13337_v24  ;;  %v5339_v11 = vpop.f32.mrf.mxu1  ;;  %v6049_v21 = vsel %vm6046_vm14, %v6048_v44, %v6044_v37  ;;  %vm6072_vm10 = vweird.f32 %v9710_v51 }
 0x62e   : > { %v6068_v53 = vsub.f32 1.0, %v6067_v10  ;;  %v13565_v56 = vmul.f32 %v9712_v35, %v6049_v21  ;;  %9717 = vtanh.f32 %v14982_v38  ;;  %vm6073_vm5 = vmor %vm6071_vm13, %vm6072_vm10  ;;  %v6107_v62 = vand.u32 2147483648, %v13555_v31 }
 0x62f   : > { %v5340_v17 = vadd.f32 %v5339_v11, %v5291_v54  ;;  %v5430_v45 = vpop.f32.mrf.mxu3  ;;  %v6105_v16 = vand.u32 2147483647, %v13555_v31  ;;  %vm6101_vm12 = vweird.f32 %v13555_v31 }
 0x630   : > { %v5431_v6 = vadd.f32 %v5430_v45, %v13518_v1  ;;  %v6069_v40 = vmul.f32 %v9710_v51, %v6068_v53  ;;  %v6108_v37 = vor.u32 1.1754944e-38, %v6107_v62 }
 0x631   : > { %vm6106_vm2 = vcmp.eq.f32.partialorder %v6105_v16, 8.507059e+37 }
 0x632   : > { %v9714_v29 = vpop.eup %9713  ;;  %v9158_v4 = vmul.f32 -1.442695, %v5431_v6  ;;  %v6070_v24 = vadd.f32 %v9710_v51, %v6069_v40 }
 0x633   : > { %v9716_v39 = vpop.eup %9715  ;;  %v13572_v15 = vadd.f32 1.0, %v9714_v29  ;;  %v5388_v22 = vpop.f32.mrf.mxu2 }
 0x634   : > { %v6097_v30 = vmul.f32 %v9716_v39, %v13555_v31  ;;  %9719 = vpow2.f32 %v9158_v4  ;;  %v13575_v18 = vadd.f32 %v5388_v22, %v5340_v17  ;;  %v13577_v1 = vpop.f32.mrf.mxu0  ;;  %v6074_v0 = vsel %vm6073_vm5, %v9710_v51, %v6070_v24  ;;  %v9718_v58 = vpop.eup %9717  ;;  %v14984_v17 = vld [vmem:[#allocation14_spill] sm:$0xff] }
 0x635   : > { %9721 = vrcp.f32 %v13572_v15  ;;  %v13580_v46 = vpop.f32.mrf.mxu1  ;;  %v6079_v47 = vsel %vm6076_vm8, %v6078_v9, %v6074_v0  ;;  %vm6102_vm15 = vweird.f32 %v9716_v39  ;;  %v6137_v48 = vand.u32 2147483648, %v13572_v15 }
 0x636   : > { %v6098_v20 = vsub.f32 1.0, %v6097_v30  ;;  %v13582_v34 = vmul.f32 %v9718_v58, %v6079_v47  ;;  %9723 = vtanh.f32 %v14983_v3  ;;  %vm6103_vm11 = vmor %vm6101_vm12, %vm6102_vm15  ;;  %v6135_v59 = vand.u32 2147483647, %v13572_v15  ;;  %v14985_v3 = vld [vmem:[#allocation67_spill] sm:$0xff] }
 0x637   : > { %v5432_v27 = vpop.f32.mrf.mxu3  ;;  %vm6131_vm14 = vweird.f32 %v13572_v15  ;;  %v13610_v24 = vperm.slane %v13334_v49, 3  ;;  %v6138_v9 = vor.u32 1.1754944e-38, %v6137_v48 }
 0x638   : > { %v5433_v61 = vadd.f32 %v5432_v27, %v13535_v33  ;;  %v6099_v32 = vmul.f32 %v9716_v39, %v6098_v20  ;;  %vm6136_vm13 = vcmp.eq.f32.partialorder %v6135_v59, 8.507059e+37 }
 0x639   : > { %v5450_v27 = vadd.f32 %v13577_v1, %v13610_v24 }
 0x63a   : > { %v9720_v2 = vpop.eup %9719  ;;  %v9160_v51 = vmul.f32 -1.442695, %v5433_v61  ;;  %v6100_v43 = vadd.f32 %v9716_v39, %v6099_v32 }
 0x63b   : > { %v9722_v44 = vpop.eup %9721  ;;  %v13589_v10 = vadd.f32 1.0, %v9720_v2  ;;  %v13591_v55 = vpop.f32.mrf.mxu2 }
 0x63c   : > { %v6127_v35 = vmul.f32 %v9722_v44, %v13572_v15  ;;  %9725 = vpow2.f32 %v9160_v51  ;;  %9133 = vmatmul.msk.bf16.gmra.mxu3 %vm13001_vm9, %v13057_v41  ;;  %v13597_v33 = vpop.f32.mrf.mxu0  ;;  %v6104_v54 = vsel %vm6103_vm11, %v9716_v39, %v6100_v43  ;;  %v9724_v11 = vpop.eup %9723  ;;  %vm6132_vm9 = vweird.f32 %v9722_v44 }
 0x63d   : > { %9727 = vrcp.f32 %v13589_v10  ;;  %v13600_v31 = vpop.f32.mrf.mxu1  ;;  %v6109_v21 = vsel %vm6106_vm2, %v6108_v37, %v6104_v54  ;;  %vm6133_vm10 = vmor %vm6131_vm14, %vm6132_vm9  ;;  %v6167_v61 = vand.u32 2147483648, %v13589_v10  ;;  %v6165_v2 = vand.u32 2147483647, %v13589_v10 }
 0x63e   : > { %v6128_v53 = vsub.f32 1.0, %v6127_v35  ;;  %v13602_v38 = vmul.f32 %v9724_v11, %v6109_v21  ;;  %9729 = vtanh.f32 %v14984_v17  ;;  %vm6161_vm8 = vweird.f32 %v13589_v10 }
 0x63f   : > { %v5435_v45 = vpop.f32.mrf.mxu3  ;;  %v5499_v35 = vadd.f32 %v13580_v46, %v5450_v27  ;;  %v6168_v11 = vor.u32 1.1754944e-38, %v6167_v61  ;;  %vm6166_vm12 = vcmp.eq.f32.partialorder %v6165_v2, 8.507059e+37  ;;  %v5452_v59 = vadd.f32 %v13597_v33, %v13610_v24 }
 0x640   : > { %v5436_v42 = vadd.f32 %v5435_v45, %v13558_v28  ;;  %v6129_v41 = vmul.f32 %v9722_v44, %v6128_v53 }
 0x641   : > { %v5548_v48 = vadd.f32 %v13591_v55, %v5499_v35 }
 0x642   : > { %v9726_v6 = vpop.eup %9725  ;;  %v9162_v40 = vmul.f32 -1.442695, %v5436_v42  ;;  %v6130_v29 = vadd.f32 %v9722_v44, %v6129_v41  ;;  %v14986_v41 = vld [vmem:[#allocation89_spill] sm:$0xff] }
 0x643   : > { %v9728_v4 = vpop.eup %9727  ;;  %v13612_v39 = vadd.f32 1.0, %v9726_v6  ;;  %v13614_v22 = vpop.f32.mrf.mxu2 }
 0x644   : > { %v6157_v28 = vmul.f32 %v9728_v4, %v13589_v10  ;;  %9731 = vpow2.f32 %v9162_v40  ;;  %v13617_v30 = vpop.f32.mrf.mxu0  ;;  %v6134_v0 = vsel %vm6133_vm10, %v9722_v44, %v6130_v29  ;;  %v9730_v58 = vpop.eup %9729  ;;  %vm6162_vm5 = vweird.f32 %v9728_v4 }
 0x645   : > { %9733 = vrcp.f32 %v13612_v39  ;;  %v13620_v15 = vpop.f32.mrf.mxu1  ;;  %v6139_v49 = vsel %vm6136_vm13, %v6138_v9, %v6134_v0  ;;  %vm6163_vm15 = vmor %vm6161_vm8, %vm6162_vm5  ;;  %v6197_v40 = vand.u32 2147483648, %v13612_v39  ;;  %v6195_v9 = vand.u32 2147483647, %v13612_v39 }
 0x646   : > { %v6158_v47 = vsub.f32 1.0, %v6157_v28  ;;  %v13622_v20 = vmul.f32 %v9730_v58, %v6139_v49  ;;  %9735 = vtanh.f32 %v14985_v3  ;;  %vm6191_vm2 = vweird.f32 %v13612_v39 }
 0x647   : > { %v5437_v62 = vpop.f32.mrf.mxu3  ;;  %v5501_v49 = vadd.f32 %v13600_v31, %v5452_v59  ;;  %v6198_v33 = vor.u32 1.1754944e-38, %v6197_v40  ;;  %vm6196_vm14 = vcmp.eq.f32.partialorder %v6195_v9, 8.507059e+37 }
 0x648   : > { %v5438_v32 = vadd.f32 %v5437_v62, %v13575_v18  ;;  %v6159_v16 = vmul.f32 %v9728_v4, %v6158_v47 }
 0x649   : > { %v5550_v2 = vadd.f32 %v13614_v22, %v5501_v49 }
 0x64a   : > { %v9732_v51 = vpop.eup %9731  ;;  %v9164_v43 = vmul.f32 -1.442695, %v5438_v32  ;;  %v6160_v44 = vadd.f32 %v9728_v4, %v6159_v16 }
 0x64b   : > { %v9734_v37 = vpop.eup %9733  ;;  %v13632_v54 = vadd.f32 1.0, %v9732_v51  ;;  %v13634_v1 = vpop.f32.mrf.mxu2 }
 0x64c   : > { %v6187_v18 = vmul.f32 %v9734_v37, %v13612_v39  ;;  %9737 = vpow2.f32 %v9164_v43  ;;  %v13637_v21 = vpop.f32.mrf.mxu0  ;;  %v6164_v53 = vsel %vm6163_vm15, %v9728_v4, %v6160_v44  ;;  %v9736_v17 = vpop.eup %9735  ;;  %vm6192_vm11 = vweird.f32 %v9734_v37  ;;  %v14987_v43 = vld [vmem:[#allocation106_spill] sm:$0xff] }
 0x64d   : > { %9739 = vrcp.f32 %v13632_v54  ;;  %v13640_v10 = vpop.f32.mrf.mxu1  ;;  %v6169_v45 = vsel %vm6166_vm12, %v6168_v11, %v6164_v53  ;;  %vm6193_vm9 = vmor %vm6191_vm2, %vm6192_vm11  ;;  %v5455_v44 = vadd.f32 %v13617_v30, %v13610_v24  ;;  %v6225_v53 = vand.u32 2147483647, %v13632_v54 }
 0x64e   : > { %v6188_v46 = vsub.f32 1.0, %v6187_v18  ;;  %v13643_v42 = vmul.f32 %v9736_v17, %v6169_v45  ;;  %9741 = vtanh.f32 %v14986_v41  ;;  %v6227_v18 = vand.u32 2147483648, %v13632_v54 }
 0x64f   : > { %v5596_v6 = vpop.f32.mrf.mxu3  ;;  %vm6221_vm13 = vweird.f32 %v13632_v54  ;;  %vm6226_vm8 = vcmp.eq.f32.partialorder %v6225_v53, 8.507059e+37  ;;  %v5457_v49 = vadd.f32 %v13637_v21, %v13610_v24 }
 0x650   : > { %v5597_v29 = vadd.f32 %v5596_v6, %v5548_v48  ;;  %v6189_v4 = vmul.f32 %v9734_v37, %v6188_v46  ;;  %v5504_v48 = vadd.f32 %v13620_v15, %v5455_v44 }
 0x651   : > { %v5506_v21 = vadd.f32 %v13640_v10, %v5457_v49 }
 0x652   : > { %v9738_v28 = vpop.eup %9737  ;;  %v9135_v0 = vmul.f32 -1.442695, %v5597_v29  ;;  %v6190_v58 = vadd.f32 %v9734_v37, %v6189_v4  ;;  %v6228_v29 = vor.u32 1.1754944e-38, %v6227_v18  ;;  %v5553_v9 = vadd.f32 %v13634_v1, %v5504_v48 }
 0x653   : > { %v9740_v55 = vpop.eup %9739  ;;  %v13652_v47 = vadd.f32 1.0, %v9738_v28  ;;  %v13654_v3 = vpop.f32.mrf.mxu2 }
 0x654   : > { %v6217_v27 = vmul.f32 %v9740_v55, %v13632_v54  ;;  %9743 = vpow2.f32 %v9135_v0  ;;  %v13657_v62 = vpop.f32.mrf.mxu0  ;;  %v6194_v61 = vsel %vm6193_vm9, %v9734_v37, %v6190_v58  ;;  %v9742_v32 = vpop.eup %9741  ;;  %vm6222_vm10 = vweird.f32 %v9740_v55 }
 0x655   : > { %9745 = vrcp.f32 %v13652_v47  ;;  %v13660_v39 = vpop.f32.mrf.mxu1  ;;  %v6199_v16 = vsel %vm6196_vm14, %v6198_v33, %v6194_v61  ;;  %vm6223_vm5 = vmor %vm6221_vm13, %vm6222_vm10  ;;  %v6257_v61 = vand.u32 2147483648, %v13652_v47  ;;  %v6255_v1 = vand.u32 2147483647, %v13652_v47 }
 0x656   : > { %v6218_v31 = vsub.f32 1.0, %v6217_v27  ;;  %v13663_v51 = vmul.f32 %v9742_v32, %v6199_v16  ;;  %9747 = vtanh.f32 %v14987_v43  ;;  %v14989_v43 = vld [vmem:[#allocation22_spill] sm:$0xff]  ;;  %vm6251_vm12 = vweird.f32 %v13652_v47 }
 0x657   : > { %v5598_v35 = vpop.f32.mrf.mxu3  ;;  %v6258_v18 = vor.u32 1.1754944e-38, %v6257_v61  ;;  %v5555_v53 = vadd.f32 %v13654_v3, %v5506_v21  ;;  %vm6256_vm2 = vcmp.eq.f32.partialorder %v6255_v1, 8.507059e+37  ;;  %v5460_v10 = vadd.f32 %v13657_v62, %v13610_v24  ;;  %v14990_v21 = vld [vmem:[#allocation108_spill] sm:$0xff] }
 0x658   : > { %v5599_v11 = vadd.f32 %v5598_v35, %v5550_v2  ;;  %v6219_v37 = vmul.f32 %v9740_v55, %v6218_v31 }
 0x65a   : > { %v9744_v17 = vpop.eup %9743  ;;  %v9137_v45 = vmul.f32 -1.442695, %v5599_v11  ;;  %v6220_v46 = vadd.f32 %v9740_v55, %v6219_v37 }
 0x65b   : > { %v9746_v22 = vpop.eup %9745  ;;  %v13672_v41 = vadd.f32 1.0, %v9744_v17  ;;  %v13674_v59 = vpop.f32.mrf.mxu2 }
 0x65c   : > { %v6247_v30 = vmul.f32 %v9746_v22, %v13652_v47  ;;  %9749 = vpow2.f32 %v9137_v45  ;;  %v13677_v6 = vpop.f32.mrf.mxu0  ;;  %v6224_v40 = vsel %vm6223_vm5, %v9740_v55, %v6220_v46  ;;  %v9748_v4 = vpop.eup %9747  ;;  %v14988_v55 = vld [vmem:[#allocation107_spill] sm:$0xff]  ;;  %vm6252_vm15 = vweird.f32 %v9746_v22 }
 0x65d   : > { %9751 = vrcp.f32 %v13672_v41  ;;  %v13681_v15 = vpop.f32.mrf.mxu1  ;;  %v6229_v28 = vsel %vm6226_vm8, %v6228_v29, %v6224_v40  ;;  %vm6253_vm11 = vmor %vm6251_vm12, %vm6252_vm15  ;;  %v5822_v40 = vand.u32 2147483648, %v13672_v41  ;;  %v6276_v29 = vld [vmem:[#allocation6 + $0xa] sm:$0x3]  ;;  %vm5816_vm14 = vweird.f32 %v13672_v41 }
 0x65e   : > { %v6248_v54 = vsub.f32 1.0, %v6247_v30  ;;  %v13683_v58 = vmul.f32 %v9748_v4, %v6229_v28  ;;  %9753 = vtanh.f32 %v14988_v55  ;;  %v5820_v30 = vand.u32 2147483647, %v13672_v41 }
 0x65f   : > { %v5601_v0 = vpop.f32.mrf.mxu3  ;;  %9755 = vtanh.f32 %v14989_v43  ;;  %v13711_v62 = vperm.slane %v6276_v29, 0 }
 0x660   : > { %v5602_v33 = vadd.f32 %v5601_v0, %v5553_v9  ;;  %v6249_v27 = vmul.f32 %v9746_v22, %v6248_v54  ;;  %vm5821_vm13 = vcmp.eq.f32.partialorder %v5820_v30, 8.507059e+37 }
 0x662   : > { %v9750_v32 = vpop.eup %9749  ;;  %v9139_v16 = vmul.f32 -1.442695, %v5602_v33  ;;  %v6250_v31 = vadd.f32 %v9746_v22, %v6249_v27  ;;  %v5509_v27 = vadd.f32 %v13660_v39, %v5460_v10 }
 0x663   : > { %v9752_v2 = vpop.eup %9751  ;;  %v13691_v44 = vadd.f32 1.0, %v9750_v32  ;;  %v13693_v35 = vpop.f32.mrf.mxu2  ;;  %v5823_v32 = vor.u32 1.1754944e-38, %v5822_v40 }
 0x664   : > { %v5812_v11 = vmul.f32 %v9752_v2, %v13672_v41  ;;  %9757 = vpow2.f32 %v9139_v16  ;;  %v13697_v37 = vpop.f32.mrf.mxu0  ;;  %v6254_v45 = vsel %vm6253_vm11, %v9746_v22, %v6250_v31  ;;  %v9754_v46 = vpop.eup %9753  ;;  %vm5817_vm9 = vweird.f32 %v9752_v2 }
 0x665   : > { %9759 = vrcp.f32 %v13691_v44  ;;  %v6259_v47 = vsel %vm6256_vm2, %v6258_v18, %v6254_v45  ;;  %v13706_v4 = vpop.f32.mrf.mxu1  ;;  %v9756_v22 = vpop.eup %9755  ;;  %vm5818_vm10 = vmor %vm5816_vm14, %vm5817_vm9  ;;  %v13718_v16 = vperm.slane %v6276_v29, 1  ;;  %v6315_v45 = vmul.f32 %v13711_v62, %v13409_v26 }
 0x666   : > { %v5813_v17 = vsub.f32 1.0, %v5812_v11  ;;  %v13708_v3 = vmul.f32 %v9754_v46, %v6259_v47  ;;  %v5558_v11 = vadd.f32 %v13674_v59, %v5509_v27  ;;  %v5850_v46 = vand.u32 2147483647, %v13691_v44 }
 0x667   : > { %v5603_v48 = vpop.f32.mrf.mxu3  ;;  %vm5846_vm8 = vweird.f32 %v13691_v44 }
 0x668   : > { %v5604_v54 = vadd.f32 %v5603_v48, %v5555_v53  ;;  %v5814_v9 = vmul.f32 %v9752_v2, %v5813_v17  ;;  %v5462_v53 = vadd.f32 %v13677_v6, %v13610_v24  ;;  %vm5851_vm12 = vcmp.eq.f32.partialorder %v5850_v46, 8.507059e+37 }
 0x66a   : > { %v9758_v28 = vpop.eup %9757  ;;  %v9141_v0 = vmul.f32 -1.442695, %v5604_v54  ;;  %v5815_v49 = vadd.f32 %v9752_v2, %v5814_v9  ;;  %v5511_v26 = vadd.f32 %v13681_v15, %v5462_v53 }
 0x66b   : > { %v9760_v33 = vpop.eup %9759  ;;  %v13714_v55 = vadd.f32 1.0, %v9758_v28  ;;  %v13716_v61 = vpop.f32.mrf.mxu2 }
 0x66c   : > { %v5842_v31 = vmul.f32 %v9760_v33, %v13691_v44  ;;  %9761 = vpow2.f32 %v9141_v0  ;;  %v13721_v1 = vpop.f32.mrf.mxu0  ;;  %v5819_v43 = vsel %vm5818_vm10, %v9752_v2, %v5815_v49  ;;  %v5852_v2 = vand.u32 2147483648, %v13691_v44  ;;  %v14991_v44 = vld [vmem:[#allocation109_spill] sm:$0xff] }
 0x66d   : > { %9763 = vrcp.f32 %v13714_v55  ;;  %v5824_v41 = vsel %vm5821_vm13, %v5823_v32, %v5819_v43  ;;  %vm5847_vm5 = vweird.f32 %v9760_v33  ;;  %v13733_v29 = vpop.f32.mrf.mxu1  ;;  %v5560_v15 = vadd.f32 %v13693_v35, %v5511_v26 }
 0x66e   : > { %9765 = vtanh.f32 %v14990_v21  ;;  %v5843_v39 = vsub.f32 1.0, %v5842_v31  ;;  %v6279_v18 = vmul.f32 %v9756_v22, %v5824_v41  ;;  %vm5848_vm15 = vmor %vm5846_vm8, %vm5847_vm5  ;;  %v5853_v28 = vor.u32 1.1754944e-38, %v5852_v2 }
 0x66f   : > { %v5606_v17 = vpop.f32.mrf.mxu3  ;;  %v5465_v21 = vadd.f32 %v13697_v37, %v13610_v24  ;;  %vm5876_vm2 = vweird.f32 %v13714_v55 }
 0x670   : > { %v5607_v10 = vadd.f32 %v5606_v17, %v5558_v11  ;;  %v6316_v48 = vmul.f32 %v13718_v16, %v6279_v18  ;;  %v5844_v30 = vmul.f32 %v9760_v33, %v5843_v39  ;;  %v6317_v11 = vmul.f32 %v13711_v62, %v13419_v8 }
 0x671   : > { %v5882_v18 = vand.u32 2147483648, %v13714_v55 }
 0x672   : > { %v9762_v40 = vpop.eup %9761  ;;  %v9143_v59 = vmul.f32 -1.442695, %v5607_v10  ;;  %v6347_v47 = vadd.f32 %v6316_v48, %v6315_v45  ;;  %v5845_v54 = vadd.f32 %v9760_v33, %v5844_v30  ;;  %v5514_v48 = vadd.f32 %v13706_v4, %v5465_v21 }
 0x673   : > { %v9764_v6 = vpop.eup %9763  ;;  %v13737_v9 = vadd.f32 1.0, %v9762_v40  ;;  %v13739_v22 = vpop.f32.mrf.mxu2  ;;  %v5883_v8 = vor.u32 1.1754944e-38, %v5882_v18 }
 0x674   : > { %v9766_v0 = vpop.eup %9765  ;;  %v5872_v49 = vmul.f32 %v9764_v6, %v13714_v55  ;;  %9767 = vpow2.f32 %v9143_v59  ;;  %6348 = vadd.xlane.f32.xlu0 %v6347_v47  ;;  %v5849_v27 = vsel %vm5848_vm15, %v9760_v33, %v5845_v54  ;;  %v13745_v31 = vpop.f32.mrf.mxu0  ;;  %v5880_v33 = vand.u32 2147483647, %v13714_v55 }
 0x675   : > { %9769 = vrcp.f32 %v13737_v9  ;;  %v5854_v32 = vsel %vm5851_vm12, %v5853_v28, %v5849_v27  ;;  %vm5877_vm11 = vweird.f32 %v9764_v6  ;;  %v5518_v47 = vpop.f32.mrf.mxu1  ;;  %v14992_v28 = vld [vmem:[#allocation110_spill] sm:$0xff]  ;;  %v5467_v27 = vadd.f32 %v13721_v1, %v13610_v24 }
 0x676   : > { %9771 = vtanh.f32 %v14991_v44  ;;  %v6281_v43 = vmul.f32 %v9766_v0, %v5854_v32  ;;  %v5873_v41 = vsub.f32 1.0, %v5872_v49  ;;  %vm5878_vm9 = vmor %vm5876_vm2, %vm5877_vm11  ;;  %vm5881_vm14 = vcmp.eq.f32.partialorder %v5880_v33, 8.507059e+37 }
 0x677   : > { %v5608_v39 = vpop.f32.mrf.mxu3  ;;  %v5563_v0 = vadd.f32 %v13716_v61, %v5514_v48  ;;  %v6319_v44 = vmul.f32 %v13711_v62, %v13445_v25  ;;  %vm5906_vm13 = vweird.f32 %v13737_v9 }
 0x678   : > { %v5609_v53 = vadd.f32 %v5608_v39, %v5560_v15  ;;  %v6318_v17 = vmul.f32 %v13718_v16, %v6281_v43  ;;  %v5874_v45 = vmul.f32 %v9764_v6, %v5873_v41  ;;  %v5912_v15 = vand.u32 2147483648, %v13737_v9 }
 0x67a   : > { %v9768_v35 = vpop.eup %9767  ;;  %v9145_v46 = vmul.f32 -1.442695, %v5609_v53  ;;  %v6350_v2 = vadd.f32 %v6318_v17, %v6317_v11  ;;  %v5875_v10 = vadd.f32 %v9764_v6, %v5874_v45  ;;  %v5516_v53 = vadd.f32 %v13733_v29, %v5467_v27 }
 0x67b   : > { %v9770_v37 = vpop.eup %9769  ;;  %v13756_v30 = vadd.f32 1.0, %v9768_v35  ;;  %v13760_v26 = vpop.f32.mrf.mxu2  ;;  %v5913_v17 = vor.u32 1.1754944e-38, %v5912_v15 }
 0x67c   : > { %v9772_v40 = vpop.eup %9771  ;;  %v5902_v59 = vmul.f32 %v9770_v37, %v13737_v9  ;;  %9773 = vpow2.f32 %v9145_v46  ;;  %6351 = vadd.xlane.f32.xlu0 %v6350_v2  ;;  %v5879_v54 = vsel %vm5878_vm9, %v9764_v6, %v5875_v10  ;;  %v5910_v6 = vand.u32 2147483647, %v13737_v9  ;;  %v5471_v43 = vpop.f32.mrf.mxu0  ;;  %v14993_v10 = vld [vmem:[#allocation111_spill] sm:$0xff] }
 0x67d   : > { %9775 = vrcp.f32 %v13756_v30  ;;  %v5884_v55 = vsel %vm5881_vm14, %v5883_v8, %v5879_v54  ;;  %vm5907_vm10 = vweird.f32 %v9770_v37  ;;  %v5565_v9 = vadd.f32 %v13739_v22, %v5516_v53  ;;  %v5520_v48 = vpop.f32.mrf.mxu1 }
 0x67e   : > { %9777 = vtanh.f32 %v14992_v28  ;;  %v5903_v4 = vsub.f32 1.0, %v5902_v59  ;;  %v6283_v49 = vmul.f32 %v9772_v40, %v5884_v55  ;;  %vm5908_vm5 = vmor %vm5906_vm13, %vm5907_vm10  ;;  %vm5911_vm8 = vcmp.eq.f32.partialorder %v5910_v6, 8.507059e+37 }
 0x67f   : > { %v5611_v32 = vpop.f32.mrf.mxu3  ;;  %v5470_v40 = vadd.f32 %v13745_v31, %v13610_v24  ;;  %v5940_v55 = vand.u32 2147483647, %v13756_v30  ;;  %v5942_v28 = vand.u32 2147483648, %v13756_v30  ;;  %vm5936_vm12 = vweird.f32 %v13756_v30 }
 0x680   : > { %v5612_v41 = vadd.f32 %v5611_v32, %v5563_v0  ;;  %v6320_v21 = vmul.f32 %v13718_v16, %v6283_v49  ;;  %v5904_v39 = vmul.f32 %v9770_v37, %v5903_v4  ;;  %v5472_v53 = vadd.f32 %v5471_v43, %v13610_v24 }
 0x681   : > { %v5519_v15 = vadd.f32 %v5518_v47, %v5470_v40  ;;  %vm5941_vm2 = vcmp.eq.f32.partialorder %v5940_v55, 8.507059e+37 }
 0x682   : > { %v9774_v11 = vpop.eup %9773  ;;  %v9147_v61 = vmul.f32 -1.442695, %v5612_v41  ;;  %v6353_v33 = vadd.f32 %v6320_v21, %v6319_v44  ;;  %v5905_v18 = vadd.f32 %v9770_v37, %v5904_v39 }
 0x683   : > { %v9776_v1 = vpop.eup %9775  ;;  %v13773_v25 = vadd.f32 1.0, %v9774_v11  ;;  %v13781_v59 = vpop.f32.mrf.mxu2 }
 0x684   : > { %v9778_v45 = vpop.eup %9777  ;;  %v5932_v35 = vmul.f32 %v9776_v1, %v13756_v30  ;;  %9779 = vpow2.f32 %v9147_v61  ;;  %6354 = vadd.xlane.f32.xlu1 %v6353_v33  ;;  %v5909_v46 = vsel %vm5908_vm5, %v9770_v37, %v5905_v18  ;;  %v6321_v37 = vmul.f32 %v13711_v62, %v13459_v52  ;;  %v5474_v27 = vpop.f32.mrf.mxu0  ;;  %v14994_v33 = vld [vmem:[#allocation112_spill] sm:$0xff] }
 0x685   : > { %9781 = vrcp.f32 %v13773_v25  ;;  %v5914_v2 = vsel %vm5911_vm8, %v5913_v17, %v5909_v46  ;;  %vm5937_vm15 = vweird.f32 %v9776_v1  ;;  %v5943_v52 = vor.u32 1.1754944e-38, %v5942_v28  ;;  %v5523_v46 = vpop.f32.mrf.mxu1 }
 0x686   : > { %9783 = vtanh.f32 %v14993_v10  ;;  %v6285_v29 = vmul.f32 %v9778_v45, %v5914_v2  ;;  %v5933_v8 = vsub.f32 1.0, %v5932_v35  ;;  %vm5938_vm11 = vmor %vm5936_vm12, %vm5937_vm15  ;;  %v5568_v30 = vadd.f32 %v13760_v26, %v5519_v15 }
 0x687   : > { %v5613_v54 = vpop.f32.mrf.mxu3  ;;  %v6323_v45 = vmul.f32 %v13711_v62, %v13485_v36  ;;  %v5970_v35 = vand.u32 2147483647, %v13773_v25  ;;  %vm5966_vm14 = vweird.f32 %v13773_v25 }
 0x688   : > { %v5614_v4 = vadd.f32 %v5613_v54, %v5565_v9  ;;  %v6322_v0 = vmul.f32 %v13718_v16, %v6285_v29  ;;  %v5934_v22 = vmul.f32 %v9776_v1, %v5933_v8 }
 0x689   : > { %vm5971_vm13 = vcmp.eq.f32.partialorder %v5970_v35, 8.507059e+37 }
 0x68a   : > { %v9780_v49 = vpop.eup %9779  ;;  %v9149_v32 = vmul.f32 -1.442695, %v5614_v4  ;;  %v6356_v44 = vadd.f32 %v6322_v0, %v6321_v37  ;;  %v5935_v31 = vadd.f32 %v9776_v1, %v5934_v22  ;;  %v5521_v37 = vadd.f32 %v5520_v48, %v5472_v53 }
 0x68b   : > { %v9782_v6 = vpop.eup %9781  ;;  %v13789_v41 = vadd.f32 1.0, %v9780_v49  ;;  %v5572_v29 = vpop.f32.mrf.mxu2 }
 0x68c   : > { %v9784_v21 = vpop.eup %9783  ;;  %v5962_v39 = vmul.f32 %v9782_v6, %v13773_v25  ;;  %9785 = vpow2.f32 %v9149_v32  ;;  %6357 = vadd.xlane.f32.xlu1 %v6356_v44  ;;  %v5939_v11 = vsel %vm5938_vm11, %v9776_v1, %v5935_v31  ;;  %v5972_v1 = vand.u32 2147483648, %v13773_v25  ;;  %v5476_v0 = vpop.f32.mrf.mxu0  ;;  %v14995_v32 = vld [vmem:[#allocation113_spill] sm:$0xff] }
 0x68d   : > { %9787 = vrcp.f32 %v13789_v41  ;;  %v5944_v61 = vsel %vm5941_vm2, %v5943_v52, %v5939_v11  ;;  %vm5967_vm9 = vweird.f32 %v9782_v6  ;;  %v5570_v48 = vadd.f32 %v13781_v59, %v5521_v37 }
 0x68e   : > { %9789 = vtanh.f32 %v14994_v33  ;;  %v5963_v18 = vsub.f32 1.0, %v5962_v39  ;;  %v6287_v47 = vmul.f32 %v9784_v21, %v5944_v61  ;;  %vm5968_vm10 = vmor %vm5966_vm14, %vm5967_vm9  ;;  %v5973_v55 = vor.u32 1.1754944e-38, %v5972_v1 }
 0x68f   : > { %v5616_v17 = vpop.f32.mrf.mxu3  ;;  %v5475_v31 = vadd.f32 %v5474_v27, %v13610_v24  ;;  %v6325_v52 = vmul.f32 %v13711_v62, %v13499_v14  ;;  %v6000_v21 = vand.u32 2147483647, %v13789_v41  ;;  %vm5996_vm8 = vweird.f32 %v13789_v41 }
 0x690   : > { %v5617_v2 = vadd.f32 %v5616_v17, %v5568_v30  ;;  %v6324_v10 = vmul.f32 %v13718_v16, %v6287_v47  ;;  %v5964_v9 = vmul.f32 %v9782_v6, %v5963_v18  ;;  %v5525_v18 = vpop.f32.mrf.mxu1  ;;  %v6327_v37 = vmul.f32 %v13711_v62, %v13525_v63 }
 0x691   : > { %v5524_v53 = vadd.f32 %v5523_v46, %v5475_v31  ;;  %vm6001_vm12 = vcmp.eq.f32.partialorder %v6000_v21, 8.507059e+37 }
 0x692   : > { %v9786_v8 = vpop.eup %9785  ;;  %v9151_v26 = vmul.f32 -1.442695, %v5617_v2  ;;  %v6359_v40 = vadd.f32 %v6324_v10, %v6323_v45  ;;  %v5965_v54 = vadd.f32 %v9782_v6, %v5964_v9  ;;  %v14996_v9 = vld [vmem:[#allocation114_spill] sm:$0xff] }
 0x693   : > { %v9788_v43 = vpop.eup %9787  ;;  %v13802_v36 = vadd.f32 1.0, %v9786_v8  ;;  %v5574_v14 = vpop.f32.mrf.mxu2  ;;  %v5573_v8 = vadd.f32 %v5572_v29, %v5524_v53 }
 0x694   : > { %v9790_v28 = vpop.eup %9789  ;;  %v5992_v4 = vmul.f32 %v9788_v43, %v13789_v41  ;;  %9791 = vpow2.f32 %v9151_v26  ;;  %6360 = vadd.xlane.f32.xlu2 %v6359_v40  ;;  %v5969_v22 = vsel %vm5968_vm10, %v9782_v6, %v5965_v54  ;;  %v6002_v6 = vand.u32 2147483648, %v13789_v41  ;;  %v5479_v46 = vpop.f32.mrf.mxu0 }
 0x695   : > { %9793 = vrcp.f32 %v13802_v36  ;;  %v5974_v49 = vsel %vm5971_vm13, %v5973_v55, %v5969_v22  ;;  %vm5997_vm5 = vweird.f32 %v9788_v43  ;;  %v5477_v40 = vadd.f32 %v5476_v0, %v13610_v24 }
 0x696   : > { %9795 = vtanh.f32 %v14995_v32  ;;  %v5993_v25 = vsub.f32 1.0, %v5992_v4  ;;  %v6289_v44 = vmul.f32 %v9790_v28, %v5974_v49  ;;  %vm5998_vm15 = vmor %vm5996_vm8, %vm5997_vm5  ;;  %v6003_v45 = vor.u32 1.1754944e-38, %v6002_v6 }
 0x697   : > { %v5618_v15 = vpop.f32.mrf.mxu3  ;;  %v6030_v55 = vand.u32 2147483647, %v13802_v36  ;;  %vm6026_vm2 = vweird.f32 %v13802_v36 }
 0x698   : > { %v5619_v39 = vadd.f32 %v5618_v15, %v5570_v48  ;;  %v6326_v11 = vmul.f32 %v13718_v16, %v6289_v44  ;;  %v5994_v61 = vmul.f32 %v9788_v43, %v5993_v25  ;;  %v5526_v48 = vadd.f32 %v5525_v18, %v5477_v40 }
 0x699   : > { %vm6031_vm14 = vcmp.eq.f32.partialorder %v6030_v55, 8.507059e+37 }
 0x69a   : > { %v9792_v33 = vpop.eup %9791  ;;  %v9153_v30 = vmul.f32 -1.442695, %v5619_v39  ;;  %v6362_v59 = vadd.f32 %v6326_v11, %v6325_v52  ;;  %v5995_v47 = vadd.f32 %v9788_v43, %v5994_v61  ;;  %v5528_v52 = vpop.f32.mrf.mxu1  ;;  %v5575_v11 = vadd.f32 %v5574_v14, %v5526_v48 }
 0x69b   : > { %v9794_v27 = vpop.eup %9793  ;;  %v13815_v17 = vadd.f32 1.0, %v9792_v33  ;;  %v5577_v6 = vpop.f32.mrf.mxu2  ;;  %v5480_v33 = vadd.f32 %v5479_v46, %v13610_v24 }
 0x69c   : > { %v9796_v35 = vpop.eup %9795  ;;  %v6022_v1 = vmul.f32 %v9794_v27, %v13802_v36  ;;  %9797 = vpow2.f32 %v9153_v30  ;;  %6363 = vadd.xlane.f32.xlu2 %v6362_v59  ;;  %v5999_v2 = vsel %vm5998_vm15, %v9788_v43, %v5995_v47  ;;  %v6032_v43 = vand.u32 2147483648, %v13802_v36 }
 0x69d   : > { %9799 = vrcp.f32 %v13815_v17  ;;  %v6004_v10 = vsel %vm6001_vm12, %v6003_v45, %v5999_v2  ;;  %vm6027_vm11 = vweird.f32 %v9794_v27  ;;  %v6329_v30 = vmul.f32 %v13711_v62, %v13539_v12 }
 0x69e   : > { %9801 = vtanh.f32 %v14996_v9  ;;  %v6023_v41 = vsub.f32 1.0, %v6022_v1  ;;  %v6291_v26 = vmul.f32 %v9796_v35, %v6004_v10  ;;  %vm6028_vm9 = vmor %vm6026_vm2, %vm6027_vm11  ;;  %v6033_v63 = vor.u32 1.1754944e-38, %v6032_v43 }
 0x69f   : > { %v5621_v54 = vpop.f32.mrf.mxu3  ;;  %v6060_v59 = vand.u32 2147483647, %v13815_v17  ;;  %v6062_v47 = vand.u32 2147483648, %v13815_v17  ;;  %vm6056_vm13 = vweird.f32 %v13815_v17  ;;  %v5529_v9 = vadd.f32 %v5528_v52, %v5480_v33 }
 0x6a0   : > { %v5622_v28 = vadd.f32 %v5621_v54, %v5573_v8  ;;  %v6328_v4 = vmul.f32 %v13718_v16, %v6291_v26  ;;  %v6024_v22 = vmul.f32 %v9794_v27, %v6023_v41 }
 0x6a1   : > { %v6063_v12 = vor.u32 1.1754944e-38, %v6062_v47  ;;  %vm6061_vm8 = vcmp.eq.f32.partialorder %v6060_v59, 8.507059e+37  ;;  %v6333_v47 = vmul.f32 %v13711_v62, %v13582_v34 }
 0x6a2   : > { %v9798_v49 = vpop.eup %9797  ;;  %v9155_v32 = vmul.f32 -1.442695, %v5622_v28  ;;  %v6365_v29 = vadd.f32 %v6328_v4, %v6327_v37  ;;  %v6025_v25 = vadd.f32 %v9794_v27, %v6024_v22  ;;  %v5530_v37 = vpop.f32.mrf.mxu1  ;;  %v6331_v22 = vmul.f32 %v13711_v62, %v13565_v56 }
 0x6a3   : > { %v9800_v0 = vpop.eup %9799  ;;  %v13827_v44 = vadd.f32 1.0, %v9798_v49  ;;  %v5579_v28 = vpop.f32.mrf.mxu2 }
 0x6a4   : > { %v9802_v31 = vpop.eup %9801  ;;  %v6052_v15 = vmul.f32 %v9800_v0, %v13815_v17  ;;  %9803 = vpow2.f32 %v9155_v32  ;;  %6366 = vadd.xlane.f32.xlu0 %v6365_v29  ;;  %v6029_v21 = vsel %vm6028_vm9, %v9794_v27, %v6025_v25  ;;  %v5481_v27 = vpop.f32.mrf.mxu0  ;;  %vm6057_vm10 = vweird.f32 %v9800_v0 }
 0x6a5   : > { %9805 = vrcp.f32 %v13827_v44  ;;  %v6034_v39 = vsel %vm6031_vm14, %v6033_v63, %v6029_v21  ;;  %vm6058_vm5 = vmor %vm6056_vm13, %vm6057_vm10  ;;  %v5578_v17 = vadd.f32 %v5577_v6, %v5529_v9  ;;  %v5482_v43 = vadd.f32 %v5481_v27, %v13610_v24 }
 0x6a6   : > { %9807 = vtanh.f32 %v13296_v60  ;;  %v6053_v36 = vsub.f32 1.0, %v6052_v15  ;;  %v6293_v61 = vmul.f32 %v9802_v31, %v6034_v39  ;;  %v6090_v49 = vand.u32 2147483647, %v13827_v44 }
 0x6a7   : > { %v5623_v18 = vpop.f32.mrf.mxu3  ;;  %v6092_v32 = vand.u32 2147483648, %v13827_v44  ;;  %vm6086_vm12 = vweird.f32 %v13827_v44  ;;  %v5531_v21 = vadd.f32 %v5530_v37, %v5482_v43 }
 0x6a8   : > { %v5624_v53 = vadd.f32 %v5623_v18, %v5575_v11  ;;  %v6330_v45 = vmul.f32 %v13718_v16, %v6293_v61  ;;  %v6054_v35 = vmul.f32 %v9800_v0, %v6053_v36  ;;  %vm6091_vm2 = vcmp.eq.f32.partialorder %v6090_v49, 8.507059e+37 }
 0x6a9   : > { %v6093_v56 = vor.u32 1.1754944e-38, %v6092_v32 }
 0x6aa   : > { %v9804_v60 = vpop.eup %9803  ;;  %v9157_v1 = vmul.f32 -1.442695, %v5624_v53  ;;  %v6368_v14 = vadd.f32 %v6330_v45, %v6329_v30  ;;  %v6055_v2 = vadd.f32 %v9800_v0, %v6054_v35  ;;  %v5533_v45 = vpop.f32.mrf.mxu1 }
 0x6ab   : > { %v9806_v10 = vpop.eup %9805  ;;  %v13839_v41 = vadd.f32 1.0, %v9804_v60 }
 0x6ac   : > { %v9808_v8 = vpop.eup %9807  ;;  %v6082_v46 = vmul.f32 %v9806_v10, %v13827_v44  ;;  %9809 = vpow2.f32 %v9157_v1  ;;  %6369 = vadd.xlane.f32.xlu1 %v6368_v14  ;;  %v6059_v26 = vsel %vm6058_vm5, %v9800_v0, %v6055_v2  ;;  %vm6087_vm15 = vweird.f32 %v9806_v10  ;;  %v5484_v48 = vpop.f32.mrf.mxu0 }
 0x6ad   : > { %9811 = vrcp.f32 %v13839_v41  ;;  %v6064_v40 = vsel %vm6061_vm8, %v6063_v12, %v6059_v26  ;;  %vm6088_vm11 = vmor %vm6086_vm12, %vm6087_vm15  ;;  %v5580_v44 = vadd.f32 %v5579_v28, %v5531_v21  ;;  %v5485_v30 = vadd.f32 %v5484_v48, %v13610_v24 }
 0x6ae   : > { %9813 = vtanh.f32 %v13302_v7  ;;  %v6083_v54 = vsub.f32 1.0, %v6082_v46  ;;  %v6295_v55 = vmul.f32 %v9808_v8, %v6064_v40  ;;  %v6120_v27 = vand.u32 2147483647, %v13839_v41 }
 0x6af   : > { %v5626_v4 = vpop.f32.mrf.mxu3  ;;  %v6122_v53 = vand.u32 2147483648, %v13839_v41  ;;  %vm6116_vm14 = vweird.f32 %v13839_v41  ;;  %v5534_v8 = vadd.f32 %v5533_v45, %v5485_v30 }
 0x6b0   : > { %v5627_v29 = vadd.f32 %v5626_v4, %v5578_v17  ;;  %v6332_v25 = vmul.f32 %v13718_v16, %v6295_v55  ;;  %v6084_v0 = vmul.f32 %v9806_v10, %v6083_v54  ;;  %vm6121_vm13 = vcmp.eq.f32.partialorder %v6120_v27, 8.507059e+37 }
 0x6b1   : > { %v6123_v46 = vor.u32 1.1754944e-38, %v6122_v53 }
 0x6b2   : > { %v9810_v7 = vpop.eup %9809  ;;  %v9159_v63 = vmul.f32 -1.442695, %v5627_v29  ;;  %v6371_v31 = vadd.f32 %v6332_v25, %v6331_v22  ;;  %v6085_v15 = vadd.f32 %v9806_v10, %v6084_v0  ;;  %v6335_v22 = vmul.f32 %v13711_v62, %v13602_v38 }
 0x6b3   : > { %v9812_v52 = vpop.eup %9811  ;;  %v13851_v6 = vadd.f32 1.0, %v9810_v7 }
 0x6b4   : > { %v9814_v39 = vpop.eup %9813  ;;  %v6112_v36 = vmul.f32 %v9812_v52, %v13839_v41  ;;  %9815 = vpow2.f32 %v9159_v63  ;;  %6372 = vadd.xlane.f32.xlu2 %v6371_v31  ;;  %v6089_v11 = vsel %vm6088_vm11, %v9806_v10, %v6085_v15  ;;  %vm6117_vm9 = vweird.f32 %v9812_v52  ;;  %v5486_v54 = vpop.f32.mrf.mxu0 }
 0x6b5   : > { %9817 = vrcp.f32 %v13851_v6  ;;  %v6094_v61 = vsel %vm6091_vm2, %v6093_v56, %v6089_v11  ;;  %vm6118_vm10 = vmor %vm6116_vm14, %vm6117_vm9  ;;  %v5487_v28 = vadd.f32 %v5486_v54, %v13610_v24  ;;  %v6150_v49 = vand.u32 2147483647, %v13851_v6 }
 0x6b6   : > { %9819 = vtanh.f32 %v13314_v19  ;;  %v6113_v33 = vsub.f32 1.0, %v6112_v36  ;;  %v6297_v18 = vmul.f32 %v9814_v39, %v6094_v61  ;;  %v5582_v19 = vpop.f32.mrf.mxu2  ;;  %v6152_v32 = vand.u32 2147483648, %v13851_v6 }
 0x6b7   : > { %v5628_v59 = vpop.f32.mrf.mxu3  ;;  %v5583_v55 = vadd.f32 %v5582_v19, %v5534_v8  ;;  %vm6146_vm8 = vweird.f32 %v13851_v6  ;;  %vm6151_vm12 = vcmp.eq.f32.partialorder %v6150_v49, 8.507059e+37 }
 0x6b8   : > { %v5629_v35 = vadd.f32 %v5628_v59, %v5580_v44  ;;  %v6334_v60 = vmul.f32 %v13718_v16, %v6297_v18  ;;  %v6114_v1 = vmul.f32 %v9812_v52, %v6113_v33  ;;  %v6153_v21 = vor.u32 1.1754944e-38, %v6152_v32 }
 0x6b9   : > { %v6337_v18 = vmul.f32 %v13711_v62, %v13622_v20 }
 0x6ba   : > { %v9816_v14 = vpop.eup %9815  ;;  %v9161_v2 = vmul.f32 -1.442695, %v5629_v35  ;;  %v6374_v10 = vadd.f32 %v6334_v60, %v6333_v47  ;;  %v6115_v9 = vadd.f32 %v9812_v52, %v6114_v1 }
 0x6bb   : > { %v9818_v12 = vpop.eup %9817  ;;  %v13863_v34 = vadd.f32 1.0, %v9816_v14 }
 0x6bc   : > { %v9820_v26 = vpop.eup %9819  ;;  %v6142_v40 = vmul.f32 %v9818_v12, %v13851_v6  ;;  %9821 = vpow2.f32 %v9161_v2  ;;  %6375 = vadd.xlane.f32.xlu0 %v6374_v10  ;;  %v6119_v17 = vsel %vm6118_vm10, %v9812_v52, %v6115_v9  ;;  %vm6147_vm5 = vweird.f32 %v9818_v12 }
 0x6bd   : > { %9823 = vrcp.f32 %v13863_v34  ;;  %v6124_v37 = vsel %vm6121_vm13, %v6123_v46, %v6119_v17  ;;  %vm6148_vm15 = vmor %vm6146_vm8, %vm6147_vm5  ;;  %v6180_v30 = vand.u32 2147483647, %v13863_v34  ;;  %v6182_v59 = vand.u32 2147483648, %v13863_v34 }
 0x6be   : > { %9825 = vtanh.f32 %v13320_v13  ;;  %v6143_v41 = vsub.f32 1.0, %v6142_v40  ;;  %v6299_v43 = vmul.f32 %v9820_v26, %v6124_v37  ;;  %v5535_v13 = vpop.f32.mrf.mxu1  ;;  %v5584_v52 = vpop.f32.mrf.mxu2  ;;  %vm6176_vm2 = vweird.f32 %v13863_v34 }
 0x6bf   : > { %v5631_v4 = vpop.f32.mrf.mxu3  ;;  %v5536_v15 = vadd.f32 %v5535_v13, %v5487_v28  ;;  %v6183_v14 = vor.u32 1.1754944e-38, %v6182_v59  ;;  %vm6181_vm14 = vcmp.eq.f32.partialorder %v6180_v30, 8.507059e+37  ;;  %v6339_v46 = vmul.f32 %v13711_v62, %v13643_v42 }
 0x6c0   : > { %v5632_v29 = vadd.f32 %v5631_v4, %v5583_v55  ;;  %v6336_v25 = vmul.f32 %v13718_v16, %v6299_v43  ;;  %v6144_v0 = vmul.f32 %v9818_v12, %v6143_v41 }
 0x6c1   : > { %v5585_v33 = vadd.f32 %v5584_v52, %v5536_v15 }
 0x6c2   : > { %v9822_v7 = vpop.eup %9821  ;;  %v9163_v48 = vmul.f32 -1.442695, %v5632_v29  ;;  %v6377_v63 = vadd.f32 %v6336_v25, %v6335_v22  ;;  %v6145_v31 = vadd.f32 %v9818_v12, %v6144_v0  ;;  %v6341_v29 = vmul.f32 %v13711_v62, %v13663_v51 }
 0x6c3   : > { %v9824_v24 = vpop.eup %9823  ;;  %v5791_v38 = vadd.f32 1.0, %v9822_v7 }
 0x6c4   : > { %v9826_v56 = vpop.eup %9825  ;;  %v6172_v39 = vmul.f32 %v9824_v24, %v13863_v34  ;;  %9827 = vpow2.f32 %v9163_v48  ;;  %6378 = vadd.xlane.f32.xlu1 %v6377_v63  ;;  %v6149_v36 = vsel %vm6148_vm15, %v9818_v12, %v6145_v31  ;;  %vm6177_vm11 = vweird.f32 %v9824_v24 }
 0x6c5   : > { %9829 = vrcp.f32 %v5791_v38  ;;  %v6154_v11 = vsel %vm6151_vm12, %v6153_v21, %v6149_v36  ;;  %vm6178_vm9 = vmor %vm6176_vm2, %vm6177_vm11  ;;  %v6212_v34 = vand.u32 2147483648, %v5791_v38  ;;  %v6210_v54 = vand.u32 2147483647, %v5791_v38 }
 0x6c6   : > { %v6173_v61 = vsub.f32 1.0, %v6172_v39  ;;  %v6301_v44 = vmul.f32 %v9826_v56, %v6154_v11  ;;  %9831 = vtanh.f32 %v13332_v57  ;;  %vm6206_vm13 = vweird.f32 %v5791_v38 }
 0x6c7   : > { %v5633_v6 = vpop.f32.mrf.mxu3  ;;  %v6213_v28 = vor.u32 1.1754944e-38, %v6212_v34  ;;  %vm6211_vm8 = vcmp.eq.f32.partialorder %v6210_v54, 8.507059e+37  ;;  %v6343_v56 = vmul.f32 %v13711_v62, %v13683_v58  ;;  %v6345_v58 = vmul.f32 %v13711_v62, %v13708_v3 }
 0x6c8   : > { %v5634_v47 = vadd.f32 %v5633_v6, %v5585_v33  ;;  %v6338_v27 = vmul.f32 %v13718_v16, %v6301_v44  ;;  %v6174_v53 = vmul.f32 %v9824_v24, %v6173_v61 }
 0x6ca   : > { %v9828_v45 = vpop.eup %9827  ;;  %v9165_v35 = vmul.f32 -1.442695, %v5634_v47  ;;  %v6380_v60 = vadd.f32 %v6338_v27, %v6337_v18  ;;  %v6175_v1 = vadd.f32 %v9824_v24, %v6174_v53 }
 0x6cb   : > { %v9830_v57 = vpop.eup %9829  ;;  %v5793_v19 = vadd.f32 1.0, %v9828_v45 }
 0x6cc   : > { %v6202_v20 = vmul.f32 %v9830_v57, %v5791_v38  ;;  %9833 = vpow2.f32 %v9165_v35  ;;  %6381 = vadd.xlane.f32.xlu2 %v6380_v60  ;;  %v6179_v2 = vsel %vm6178_vm9, %v9824_v24, %v6175_v1  ;;  %v9832_v10 = vpop.eup %9831  ;;  %vm6207_vm10 = vweird.f32 %v9830_v57 }
 0x6cd   : > { %9835 = vrcp.f32 %v5793_v19  ;;  %v6184_v9 = vsel %vm6181_vm14, %v6183_v14, %v6179_v2  ;;  %vm6208_vm5 = vmor %vm6206_vm13, %vm6207_vm10  ;;  %v6242_v25 = vand.u32 2147483648, %v5793_v19  ;;  %v6240_v13 = vand.u32 2147483647, %v5793_v19  ;;  %v9652_v2 = vld [vmem:[#allocation6 + $0xd] ss:$0 sm:$0xff] }
 0x6ce   : > { %v6203_v12 = vsub.f32 1.0, %v6202_v20  ;;  %v6303_v8 = vmul.f32 %v9832_v10, %v6184_v9  ;;  %9837 = vtanh.f32 %v13343_v50  ;;  %vm6236_vm12 = vweird.f32 %v5793_v19 }
 0x6cf   : > { %v6243_v24 = vor.u32 1.1754944e-38, %v6242_v25  ;;  %vm6241_vm2 = vcmp.eq.f32.partialorder %v6240_v13, 8.507059e+37 }
 0x6d0   : > { %v6340_v26 = vmul.f32 %v13718_v16, %v6303_v8  ;;  %v6204_v40 = vmul.f32 %v9830_v57, %v6203_v12 }
 0x6d2   : > { %v9834_v17 = vpop.eup %9833  ;;  %v6383_v37 = vadd.f32 %v6340_v26, %v6339_v46  ;;  %v6205_v41 = vadd.f32 %v9830_v57, %v6204_v40  ;;  %v14998_v26 = vld [vmem:[#allocation17_spill] sm:$0xff] }
 0x6d3   : > { %v9836_v55 = vpop.eup %9835  ;;  %v5795_v43 = vadd.f32 1.0, %v9834_v17 }
 0x6d4   : > { %v6232_v4 = vmul.f32 %v9836_v55, %v5793_v19  ;;  %6384 = vadd.xlane.f32.xlu0 %v6383_v37  ;;  %v6209_v50 = vsel %vm6208_vm5, %v9830_v57, %v6205_v41  ;;  %v9838_v22 = vpop.eup %9837  ;;  %vm6237_vm15 = vweird.f32 %v9836_v55  ;;  %vm14638_vm5 = vcmask 7168  }
 0x6d5   : > { %9839 = vrcp.f32 %v5795_v43  ;;  %v6214_v42 = vsel %vm6211_vm8, %v6213_v28, %v6209_v50  ;;  %vm6238_vm11 = vmor %vm6236_vm12, %vm6237_vm15  ;;  %v6272_v39 = vand.u32 2147483648, %v5795_v43  ;;  %v6270_v61 = vand.u32 2147483647, %v5795_v43  ;;  %v14999_v50 = vld [vmem:[#allocation18_spill] sm:$0xff] }
 0x6d6   : > { %v6233_v49 = vsub.f32 1.0, %v6232_v4  ;;  %v6305_v32 = vmul.f32 %v9838_v22, %v6214_v42  ;;  %9841 = vtanh.f32 %v13355_v5  ;;  %vm6266_vm14 = vweird.f32 %v5795_v43 }
 0x6d7   : > { %9843 = vtanh.f32 %v13361_v23  ;;  %v6273_v6 = vor.u32 1.1754944e-38, %v6272_v39  ;;  %vm6271_vm13 = vcmp.eq.f32.partialorder %v6270_v61, 8.507059e+37 }
 0x6d8   : > { %v6342_v0 = vmul.f32 %v13718_v16, %v6305_v32  ;;  %v6234_v7 = vmul.f32 %v9836_v55, %v6233_v49 }
 0x6da   : > { %v6386_v48 = vadd.f32 %v6342_v0, %v6341_v29  ;;  %v6235_v63 = vadd.f32 %v9836_v55, %v6234_v7 }
 0x6db   : > { %v9840_v31 = vpop.eup %9839 }
 0x6dc   : > { %v6262_v15 = vmul.f32 %v9840_v31, %v5795_v43  ;;  %6387 = vadd.xlane.f32.xlu1 %v6386_v48  ;;  %v6239_v52 = vsel %vm6238_vm11, %v9836_v55, %v6235_v63  ;;  %v9842_v5 = vpop.eup %9841  ;;  %vm6267_vm9 = vweird.f32 %v9840_v31 }
 0x6dd   : > { %v6244_v38 = vsel %vm6241_vm2, %v6243_v24, %v6239_v52  ;;  %vm6268_vm10 = vmor %vm6266_vm14, %vm6267_vm9  ;;  %v9844_v30 = vpop.eup %9843 }
 0x6de   : > { %v6263_v21 = vsub.f32 1.0, %v6262_v15  ;;  %v6307_v51 = vmul.f32 %v9842_v5, %v6244_v38  ;;  %v15003_v15 = vld [vmem:[#allocation27_spill] sm:$0xff]  ;;  %v15005_v5 = vld [vmem:[#allocation28_spill] sm:$0xff] }
 0x6df   : > { %vm15004_vm8 = vnez %v15003_v15  ;;  %vm15006_vm15 = vnez %v15005_v5 }
 0x6e0   : > { %v6344_v36 = vmul.f32 %v13718_v16, %v6307_v51  ;;  %v6264_v11 = vmul.f32 %v9840_v31, %v6263_v21  ;;  %v15007_v21 = vld [vmem:[#allocation32_spill] sm:$0xff] }
 0x6e1   : > { %vm15008_vm12 = vnez %v15007_v21 }
 0x6e2   : > { %v6389_v33 = vadd.f32 %v6344_v36, %v6343_v56  ;;  %v6265_v44 = vadd.f32 %v9840_v31, %v6264_v11 }
 0x6e4   : > { %6390 = vadd.xlane.f32.xlu2 %v6389_v33  ;;  %v6269_v18 = vsel %vm6268_vm10, %v9840_v31, %v6265_v44  ;;  %v15009_v33 = vld [vmem:[#allocation31_spill] sm:$0xff] }
 0x6e5   : > { %v6274_v59 = vsel %vm6271_vm13, %v6273_v6, %v6269_v18  ;;  %vm15010_vm11 = vnez %v15009_v33  ;;  %v9961_v6 = vmov 0   ;;  %v15011_v18 = vld [vmem:[#allocation35_spill] sm:$0xff] }
 0x6e6   : > { %v6309_v23 = vmul.f32 %v9844_v30, %v6274_v59  ;;  %9651 = vset.pattern.permute.xlu0 %v9961_v6  ;;  %9650 = vset.pattern.permute.xlu2 %v9961_v6  ;;  %vm15012_vm2 = vnez %v15011_v18  ;;  %v15013_v59 = vld [vmem:[#allocation36_spill] sm:$0xff] }
 0x6e7   : > { %v6349_v45 = vpop.xlane.xlu0 %6348  ;;  %vm15014_vm9 = vnez %v15013_v59  ;;  %9649 = vset.pattern.permute.xlu1 %v9961_v6 }
 0x6e8   : > { %v6346_v47 = vmul.f32 %v13718_v16, %v6309_v23  ;;  %v6398_v9 = vadd.f32 %v9652_v2, %v6349_v45 }
 0x6ea   : > { %v6392_v27 = vadd.f32 %v6346_v47, %v6345_v58  ;;  %v13900_v62 = vsel %vm12660_vm0, %v6398_v9, -1e+30  ;;  %v15015_v58 = vld [vmem:[#allocation41_spill] sm:$0xff] }
 0x6eb   : > { %v6431_v43 = vsel %vm14638_vm5, %v13900_v62, -inf  ;;  %vm15016_vm14 = vnez %v15015_v58 }
 0x6ec   : > { %6393 = vadd.xlane.f32.xlu0 %v6392_v27 }
 0x6ef   : > { %v6352_v1 = vpop.xlane.xlu0 %6351 }
 0x6f0   : > { %v6399_v46 = vadd.f32 %v9652_v2, %v6352_v1 }
 0x6f2   : > { %v13904_v40 = vsel %vm12665_vm1, %v6399_v46, -1e+30 }
 0x6f3   : > { %v6432_v4 = vsel %vm14638_vm5, %v13904_v40, -inf }
 0x6f7   : > { %v6355_v53 = vpop.xlane.xlu1 %6354 }
 0x6f8   : > { %v6400_v16 = vadd.f32 %v9652_v2, %v6355_v53 }
 0x6fa   : > { %v13912_v22 = vsel %vm12697_vm3, %v6400_v16, -1e+30 }
 0x6fb   : > { %v6433_v36 = vsel %vm14638_vm5, %v13912_v22, -inf }
 0x6ff   : > { %v6358_v60 = vpop.xlane.xlu1 %6357 }
 0x700   : > { %v6401_v17 = vadd.f32 %v9652_v2, %v6358_v60 }
 0x702   : > { %v13924_v24 = vsel %vm12702_vm4, %v6401_v17, -1e+30 }
 0x703   : > { %v6434_v27 = vsel %vm14638_vm5, %v13924_v24, -inf }
 0x707   : > { %v6361_v35 = vpop.xlane.xlu2 %6360 }
 0x708   : > { %v6402_v34 = vadd.f32 %v9652_v2, %v6361_v35 }
 0x70a   : > { %v13916_v49 = vsel %vm12745_vm6, %v6402_v34, -1e+30 }
 0x70b   : > { %v6435_v11 = vsel %vm14638_vm5, %v13916_v49, -inf }
 0x70f   : > { %v6364_v57 = vpop.xlane.xlu2 %6363 }
 0x710   : > { %v6403_v54 = vadd.f32 %v9652_v2, %v6364_v57  ;;  %v15017_v57 = vld [vmem:[#allocation40_spill] sm:$0xff] }
 0x711   : > { %vm15018_vm10 = vnez %v15017_v57 }
 0x712   : > { %v13920_v7 = vsel %vm12750_vm7, %v6403_v54, -1e+30 }
 0x713   : > { %v6437_v61 = vsel %vm14638_vm5, %v13920_v7, -inf }
 0x714   : > { %v6438_v60 = vmax.f32 %v6432_v4, %v6437_v61 }
 0x717   : > { %v6367_v14 = vpop.xlane.xlu0 %6366 }
 0x718   : > { %v6404_v37 = vadd.f32 %v9652_v2, %v6367_v14  ;;  %v15019_v14 = vld [vmem:[#allocation44_spill] sm:$0xff] }
 0x719   : > { %vm15020_vm13 = vnez %v15019_v14 }
 0x71a   : > { %v13928_v52 = vsel %vm15004_vm8, %v6404_v37, -1e+30 }
 0x71b   : > { %v6439_v53 = vsel %vm14638_vm5, %v13928_v52, -inf }
 0x71c   : > { %v6440_v16 = vmax.f32 %v6433_v36, %v6439_v53 }
 0x71f   : > { %v6370_v19 = vpop.xlane.xlu1 %6369 }
 0x720   : > { %v6405_v41 = vadd.f32 %v9652_v2, %v6370_v19 }
 0x722   : > { %v13932_v38 = vsel %vm15006_vm15, %v6405_v41, -1e+30 }
 0x723   : > { %v6441_v45 = vsel %vm14638_vm5, %v13932_v38, -inf }
 0x724   : > { %v6442_v34 = vmax.f32 %v6434_v27, %v6441_v45 }
 0x727   : > { %v6373_v20 = vpop.xlane.xlu2 %6372 }
 0x728   : > { %v6406_v32 = vadd.f32 %v9652_v2, %v6373_v20 }
 0x72a   : > { %v13946_v44 = vsel %vm15010_vm11, %v6406_v32, -1e+30  ;;  %v15021_v32 = vld [vmem:[#allocation45_spill] sm:$0xff] }
 0x72b   : > { %v6443_v1 = vsel %vm14638_vm5, %v13946_v44, -inf }
 0x72f   : > { %v6376_v12 = vpop.xlane.xlu0 %6375 }
 0x730   : > { %v6407_v28 = vadd.f32 %v9652_v2, %v6376_v12 }
 0x732   : > { %v13936_v51 = vsel %vm15008_vm12, %v6407_v28, -1e+30 }
 0x733   : > { %v6445_v35 = vsel %vm14638_vm5, %v13936_v51, -inf }
 0x734   : > { %v6446_v54 = vmax.f32 %v6438_v60, %v6445_v35 }
 0x737   : > { %v6379_v10 = vpop.xlane.xlu1 %6378 }
 0x738   : > { %v6408_v13 = vadd.f32 %v9652_v2, %v6379_v10  ;;  %v6436_v10 = vmax.f32 %v6431_v43, %v6435_v11 }
 0x73a   : > { %v13950_v30 = vsel %vm15012_vm2, %v6408_v13, -1e+30  ;;  %v6444_v37 = vmax.f32 %v6436_v10, %v6443_v1 }
 0x73b   : > { %v6447_v9 = vsel %vm14638_vm5, %v13950_v30, -inf }
 0x73c   : > { %v6448_v43 = vmax.f32 %v6440_v16, %v6447_v9 }
 0x73f   : > { %v6382_v8 = vpop.xlane.xlu2 %6381 }
 0x740   : > { %v6409_v48 = vadd.f32 %v9652_v2, %v6382_v8 }
 0x742   : > { %v13954_v23 = vsel %vm15014_vm9, %v6409_v48, -1e+30 }
 0x743   : > { %v6449_v12 = vsel %vm14638_vm5, %v13954_v23, -inf }
 0x744   : > { %v6450_v28 = vmax.f32 %v6442_v34, %v6449_v12 }
 0x747   : > { %v6385_v29 = vpop.xlane.xlu0 %6384 }
 0x748   : > { %v6410_v56 = vadd.f32 %v9652_v2, %v6385_v29 }
 0x74a   : > { %v13972_v19 = vsel %vm15018_vm10, %v6410_v56, -1e+30 }
 0x74b   : > { %v6451_v41 = vsel %vm14638_vm5, %v13972_v19, -inf }
 0x74f   : > { %v6388_v55 = vpop.xlane.xlu1 %6387 }
 0x750   : > { %v6411_v63 = vadd.f32 %v9652_v2, %v6388_v55 }
 0x752   : > { %v13958_v47 = vsel %vm15016_vm14, %v6411_v63, -1e+30 }
 0x753   : > { %v6453_v8 = vsel %vm14638_vm5, %v13958_v47, -inf }
 0x754   : > { %v6454_v4 = vmax.f32 %v6446_v54, %v6453_v8 }
 0x757   : > { %v6391_v25 = vpop.xlane.xlu2 %6390 }
 0x758   : > { %v6412_v39 = vadd.f32 %v9652_v2, %v6391_v25 }
 0x75a   : > { %v13976_v20 = vsel %vm15020_vm13, %v6412_v39, -1e+30  ;;  %vm15022_vm13 = vnez %v15021_v32 }
 0x75b   : > { %v6455_v55 = vsel %vm14638_vm5, %v13976_v20, -inf }
 0x75c   : > { %v6456_v13 = vmax.f32 %v6448_v43, %v6455_v55 }
 0x75f   : > { %v6394_v46 = vpop.xlane.xlu0 %6393 }
 0x760   : > { %v6413_v17 = vadd.f32 %v9652_v2, %v6394_v46  ;;  %v6452_v2 = vmax.f32 %v6444_v37, %v6451_v41 }
 0x762   : > { %v13990_v29 = vsel %vm15022_vm13, %v6413_v17, -1e+30  ;;  %v6459_v63 = vmax.f32 %v6452_v2, %v6454_v4 }
 0x763   : > { %v6457_v25 = vsel %vm14638_vm5, %v13990_v29, -inf  ;;  %vm14639_vm5 = vcmask 0  }
 0x764   : > { %v6458_v48 = vmax.f32 %v6450_v28, %v6457_v25 }
 0x766   : > { %v6460_v56 = vmax.f32 %v6456_v13, %v6458_v48 }
 0x768   : > { %v6461_v39 = vmax.f32 %v6459_v63, %v6460_v56 }
 0x76a   : > { %v6462_v36 = vrot.slane %v6461_v39, 4 }
 0x76c   : > { %v6463_v11 = vmax.f32 %v6461_v39, %v6462_v36 }
 0x76e   : > { %v6464_v61 = vrot.slane %v6463_v11, 2 }
 0x770   : > { %v6465_v6 = vmax.f32 %v6463_v11, %v6464_v61 }
 0x772   : > { %v6466_v27 = vrot.slane %v6465_v6, 1 }
 0x774   : > { %v14002_v53 = vmax.f32 %v6465_v6, %v6466_v27 }
 0x776   : > { %v6470_v45 = vsub.f32 %v13912_v22, %v14002_v53  ;;  %v6469_v35 = vsub.f32 %v13904_v40, %v14002_v53  ;;  %v6468_v60 = vsub.f32 %v13900_v62, %v14002_v53  ;;  %6817 = vst.msk [vmem:[%s327_s13] sm:$0x1] %vm14639_vm5, %v14002_v53  ;;  %v6471_v1 = vsub.f32 %v13924_v24, %v14002_v53 }
 0x777   : > { %v6472_v12 = vsub.f32 %v13916_v49, %v14002_v53  ;;  %v6477_v22 = vsub.f32 %v13936_v51, %v14002_v53  ;;  %v6473_v40 = vsub.f32 %v13920_v7, %v14002_v53  ;;  %v6474_v46 = vsub.f32 %v13928_v52, %v14002_v53 }
 0x778   : > { %v6488_v10 = vmul.f32 1.442695, %v6470_v45  ;;  %v6486_v9 = vmul.f32 1.442695, %v6469_v35  ;;  %v6484_v8 = vmul.f32 1.442695, %v6468_v60  ;;  %v6475_v34 = vsub.f32 %v13932_v38, %v14002_v53 }
 0x779   : > { %v6490_v62 = vmul.f32 1.442695, %v6471_v1  ;;  %v6492_v16 = vmul.f32 1.442695, %v6472_v12  ;;  %v6502_v24 = vmul.f32 1.442695, %v6477_v22  ;;  %v6476_v51 = vsub.f32 %v13946_v44, %v14002_v53 }
 0x77a   : > { %9845 = vpow2.f32 %v6488_v10  ;;  %v6494_v49 = vmul.f32 1.442695, %v6473_v40  ;;  %v6496_v54 = vmul.f32 1.442695, %v6474_v46  ;;  %v6480_v17 = vsub.f32 %v13972_v19, %v14002_v53 }
 0x77b   : > { %9847 = vpow2.f32 %v6486_v9  ;;  %v6498_v52 = vmul.f32 1.442695, %v6475_v34  ;;  %v6500_v43 = vmul.f32 1.442695, %v6476_v51  ;;  %v6478_v44 = vsub.f32 %v13950_v30, %v14002_v53 }
 0x77c   : > { %9849 = vpow2.f32 %v6484_v8  ;;  %vm15023_vm5 = vcmask 7168   ;;  %v6508_v2 = vmul.f32 1.442695, %v6480_v17  ;;  %v6479_v13 = vsub.f32 %v13954_v23, %v14002_v53 }
 0x77d   : > { %9851 = vpow2.f32 %v6490_v62  ;;  %v6504_v36 = vmul.f32 1.442695, %v6478_v44  ;;  %v6483_v61 = vsub.f32 %v13990_v29, %v14002_v53  ;;  %v6481_v60 = vsub.f32 %v13958_v47, %v14002_v53 }
 0x77e   : > { %9853 = vpow2.f32 %v6492_v16  ;;  %v6506_v35 = vmul.f32 1.442695, %v6479_v13  ;;  %v6482_v8 = vsub.f32 %v13976_v20, %v14002_v53 }
 0x77f   : > { %9855 = vpow2.f32 %v6502_v24  ;;  %v6514_v22 = vmul.f32 1.442695, %v6483_v61  ;;  %v6510_v16 = vmul.f32 1.442695, %v6481_v60 }
 0x780   : > { %v9846_v7 = vpop.eup %9845  ;;  %9857 = vpow2.f32 %v6494_v49  ;;  %v6512_v20 = vmul.f32 1.442695, %v6482_v8 }
 0x781   : > { %v9848_v37 = vpop.eup %9847  ;;  %v6518_v41 = vsel %vm12697_vm3, %v9846_v7, 0.0  ;;  %9859 = vpow2.f32 %v6496_v54  ;;  %vm15024_vm3 = vmmov %vm15023_vm5 }
 0x782   : > { %v9850_v55 = vpop.eup %9849  ;;  %6581 = vperm.xlu0 %9651, %v6518_v41   ;;  %v6517_v38 = vsel %vm12665_vm1, %v9848_v37, 0.0  ;;  %9861 = vpow2.f32 %v6498_v52  ;;  %vm15025_vm1 = vmmov %vm15024_vm3 }
 0x783   : > { %6576 = vperm.xlu2 %9650, %v6517_v38   ;;  %v6533_v28 = vsel %vm15023_vm5, %v6517_v38, 0.0  ;;  %v6516_v19 = vsel %vm12660_vm0, %v9850_v55, 0.0  ;;  %v9852_v4 = vpop.eup %9851  ;;  %v6535_v39 = vsel %vm15025_vm1, %v6518_v41, 0.0  ;;  %9863 = vpow2.f32 %v6500_v43  ;;  %vm15027_vm5 = vmmov %vm15025_vm1 }
 0x784   : > { %6571 = vperm.xlu1 %9649, %v6516_v19   ;;  %v6532_v25 = vsel %vm15024_vm3, %v6516_v19, 0.0  ;;  %v9854_v48 = vpop.eup %9853  ;;  %v6519_v30 = vsel %vm12702_vm4, %v9852_v4, 0.0  ;;  %vm15026_vm3 = vmmov %vm15025_vm1  ;;  %9865 = vpow2.f32 %v6508_v2 }
 0x785   : > { %v6534_v63 = vadd.f32 %v6533_v28, %v6532_v25  ;;  %v9856_v56 = vpop.eup %9855  ;;  %v6520_v27 = vsel %vm12745_vm6, %v9854_v48, 0.0  ;;  %v6537_v23 = vsel %vm15026_vm3, %v6519_v30, 0.0  ;;  %9867 = vpow2.f32 %v6504_v36  ;;  %vm15028_vm3 = vmmov %vm15025_vm1 }
 0x786   : > { %v9858_v11 = vpop.eup %9857  ;;  %v6525_v1 = vsel %vm15008_vm12, %v9856_v56, 0.0  ;;  %v6539_v12 = vsel %vm15025_vm1, %v6520_v27, 0.0  ;;  %9869 = vpow2.f32 %v6506_v35 }
 0x787   : > { %v6536_v6 = vadd.f32 %v6535_v39, %v6534_v63  ;;  %v9860_v45 = vpop.eup %9859  ;;  %v6521_v9 = vsel %vm12750_vm7, %v9858_v11, 0.0  ;;  %9871 = vpow2.f32 %v6514_v22 }
 0x788   : > { %v9862_v29 = vpop.eup %9861  ;;  %v6522_v47 = vsel %vm15004_vm8, %v9860_v45, 0.0  ;;  %v6541_v46 = vsel %vm15027_vm5, %v6521_v9, 0.0  ;;  %9873 = vpow2.f32 %v6510_v16  ;;  %vm15029_vm5 = vmmov %vm15025_vm1  ;;  %v15039_v16 = vld [vmem:[#allocation49_spill] sm:$0xff] }
 0x789   : > { %v6538_v10 = vadd.f32 %v6537_v23, %v6536_v6  ;;  %v9864_v62 = vpop.eup %9863  ;;  %v6523_v34 = vsel %vm15006_vm15, %v9862_v29, 0.0  ;;  %v6543_v54 = vsel %vm15028_vm3, %v6522_v47, 0.0  ;;  %9875 = vpow2.f32 %v6512_v20  ;;  %vm15030_vm3 = vmmov %vm15025_vm1 }
 0x78a   : > { %6616 = vperm.xlu0 %9651, %v6525_v1   ;;  %v9866_v49 = vpop.eup %9865  ;;  %v6524_v51 = vsel %vm15010_vm11, %v9864_v62, 0.0  ;;  %v6545_v17 = vsel %vm15025_vm1, %v6523_v34, 0.0  ;;  %v6549_v44 = vsel %vm15030_vm3, %v6525_v1, 0.0  ;;  %vm15032_vm3 = vmmov %vm15025_vm1 }
 0x78b   : > { %6586 = vperm.xlu2 %9650, %v6519_v30   ;;  %v6540_v40 = vadd.f32 %v6539_v12, %v6538_v10  ;;  %v9868_v7 = vpop.eup %9867  ;;  %v6528_v52 = vsel %vm15018_vm10, %v9866_v49, 0.0  ;;  %v6547_v55 = vsel %vm15029_vm5, %v6524_v51, 0.0  ;;  %vm15031_vm5 = vmmov %vm15025_vm1  ;;  %vm15033_vm10 = vnez %v15019_v14  ;;  %v15042_v49 = vld [vmem:[#allocation51_spill] sm:$0xff] }
 0x78c   : > { %6591 = vperm.xlu1 %9649, %v6520_v27   ;;  %v9870_v41 = vpop.eup %9869  ;;  %v6526_v43 = vsel %vm15012_vm2, %v9868_v7, 0.0  ;;  %v6555_v36 = vsel %vm15032_vm3, %v6528_v52, 0.0  ;;  %vm15036_vm3 = vcmask 0  }
 0x78d   : > { %v6542_v24 = vadd.f32 %v6541_v46, %v6540_v40  ;;  %v9872_v28 = vpop.eup %9871  ;;  %v6527_v4 = vsel %vm15014_vm9, %v9870_v41, 0.0  ;;  %v6551_v2 = vsel %vm15025_vm1, %v6526_v43, 0.0  ;;  %v15049_v41 = vld [vmem:[#allocation71_spill] sm:$0xff] }
 0x78e   : > { %v9874_v25 = vpop.eup %9873  ;;  %v6553_v63 = vsel %vm15031_vm5, %v6527_v4, 0.0  ;;  %v6531_v30 = vsel %vm15022_vm13, %v9872_v28, 0.0  ;;  %vm15034_vm5 = vmmov %vm15025_vm1 }
 0x78f   : > { %v6544_v53 = vadd.f32 %v6543_v54, %v6542_v24  ;;  %v9876_v48 = vpop.eup %9875  ;;  %v6529_v39 = vsel %vm15016_vm14, %v9874_v25, 0.0  ;;  %vm15035_vm13 = vmmov %vm15025_vm1  ;;  %v15040_v24 = vmax.f32 %v15039_v16, 0.0  ;;  %v15043_v54 = vmax.f32 %v15042_v49, 0.0 }
 0x790   : > { %v6530_v61 = vsel %vm15033_vm10, %v9876_v48, 0.0  ;;  %v6557_v6 = vsel %vm15025_vm1, %v6529_v39, 0.0  ;;  %v6561_v35 = vsel %vm15035_vm13, %v6531_v30, 0.0  ;;  %vm15041_vm13 = vnez %v14998_v26 }
 0x791   : > { %v6546_v37 = vadd.f32 %v6545_v17, %v6544_v53  ;;  %v6559_v45 = vsel %vm15034_vm5, %v6530_v61, 0.0  ;;  %vm15044_vm1 = vnez %v14999_v50  ;;  %v15045_v53 = vld [vmem:[#allocation68_spill] sm:$0xff]  ;;  %v15047_v17 = vld [vmem:[#allocation69_spill] sm:$0xff] }
 0x792   : > { %6631 = vperm.xlu0 %9651, %v6528_v52   ;;  %v3986_v20 = vsel %vm15044_vm1, %v15043_v54, 0.0  ;;  %v15048_v52 = vmax.f32 %v15047_v17, 0.0 }
 0x793   : > { %6596 = vperm.xlu2 %9650, %v6521_v9   ;;  %v6548_v38 = vadd.f32 %v6547_v55, %v6546_v37  ;;  %v15050_v55 = vmax.f32 %v15049_v41, 0.0 }
 0x794   : > { %6601 = vperm.xlu1 %9649, %v6522_v47   ;;  %v15037_v47 = vld [vmem:[#allocation48_spill] sm:$0xff]  ;;  %v3983_v37 = vsel %vm15041_vm13, %v15048_v52, 0.0 }
 0x795   : > { %v6550_v19 = vadd.f32 %v6549_v44, %v6548_v38  ;;  %v15038_v62 = vmax.f32 %v15037_v47, 0.0  ;;  %v3987_v38 = vsel %vm15044_vm1, %v15050_v55, 0.0 }
 0x797   : > { %v6552_v13 = vadd.f32 %v6551_v2, %v6550_v19  ;;  %v3978_v46 = vsel %vm12660_vm0, %v15038_v62, 0.0  ;;  %v15053_v19 = vld [vmem:[#allocation91_spill] sm:$0xff]  ;;  %v15055_v2 = vld [vmem:[#allocation92_spill] sm:$0xff] }
 0x799   : > { %v6554_v56 = vadd.f32 %v6553_v63, %v6552_v13  ;;  %v15056_v13 = vmax.f32 %v15055_v2, 0.0  ;;  %v15057_v63 = vld [vmem:[#allocation20_spill] sm:$0xff]  ;;  %v15073_v2 = vld [vmem:[#allocation75_spill] sm:$0xff] }
 0x79a   : > { %6646 = vperm.xlu0 %9651, %v6531_v30   ;;  %v15058_v30 = vmax.f32 %v15057_v63, 0.0  ;;  %v15075_v63 = vld [vmem:[#allocation93_spill] sm:$0xff] }
 0x79b   : > { %6606 = vperm.xlu2 %9650, %v6523_v34   ;;  %v6556_v11 = vadd.f32 %v6555_v36, %v6554_v56  ;;  %v3982_v34 = vsel %vm15041_vm13, %v15040_v24, 0.0  ;;  %v3988_v48 = vsel %vm15044_vm1, %v15056_v13, 0.0  ;;  %v15074_v13 = vmax.f32 %v15073_v2, 0.0 }
 0x79c   : > { %6611 = vperm.xlu1 %9649, %v6524_v51   ;;  %v15046_v51 = vmax.f32 %v15045_v53, 0.0  ;;  %v3981_v56 = vsel %vm12660_vm0, %v15058_v30, 0.0  ;;  %v15063_v53 = vld [vmem:[#allocation52_spill] sm:$0xff]  ;;  %v15076_v30 = vmax.f32 %v15075_v63, 0.0 }
 0x79d   : > { %v6558_v27 = vadd.f32 %v6557_v6, %v6556_v11 }
 0x79e   : > { %v3979_v7 = vsel %vm12660_vm0, %v15046_v51, 0.0  ;;  %v15064_v51 = vmax.f32 %v15063_v53, 0.0 }
 0x79f   : > { %v6560_v23 = vadd.f32 %v6559_v45, %v6558_v27 }
 0x7a1   : > { %v6562_v60 = vadd.f32 %v6561_v35, %v6560_v23 }
 0x7a3   : > { %6621 = vperm.xlu2 %9650, %v6526_v43   ;;  %v6563_v1 = vrot.slane %v6562_v60, 4  ;;  %v15051_v43 = vld [vmem:[#allocation90_spill] sm:$0xff] }
 0x7a4   : > { %6626 = vperm.xlu1 %9649, %v6527_v4   ;;  %v15052_v44 = vmax.f32 %v15051_v43, 0.0  ;;  %v15054_v4 = vmax.f32 %v15053_v19, 0.0  ;;  %v15071_v19 = vld [vmem:[#allocation74_spill] sm:$0xff] }
 0x7a5   : > { %v6564_v10 = vadd.f32 %v6563_v1, %v6562_v60 }
 0x7a6   : > { %v3980_v28 = vsel %vm12660_vm0, %v15052_v44, 0.0  ;;  %v3984_v25 = vsel %vm15041_vm13, %v15054_v4, 0.0  ;;  %v15072_v4 = vmax.f32 %v15071_v19, 0.0  ;;  %vm15113_vm0 = vnez %v15017_v57 }
 0x7a7   : > { %v6565_v9 = vrot.slane %v6564_v10, 2 }
 0x7a9   : > { %v6566_v29 = vadd.f32 %v6565_v9, %v6564_v10 }
 0x7ab   : > { %6636 = vperm.xlu2 %9650, %v6529_v39   ;;  %v6567_v12 = vrot.slane %v6566_v29, 1  ;;  %v15059_v39 = vld [vmem:[#allocation21_spill] sm:$0xff] }
 0x7ac   : > { %6641 = vperm.xlu1 %9649, %v6530_v61   ;;  %v15060_v36 = vmax.f32 %v15059_v39, 0.0  ;;  %v15061_v61 = vld [vmem:[#allocation25_spill] sm:$0xff]  ;;  %v15077_v39 = vld [vmem:[#allocation94_spill] sm:$0xff] }
 0x7ad   : > { %v6568_v8 = vadd.f32 %v6567_v12, %v6566_v29  ;;  %v15062_v6 = vmax.f32 %v15061_v61, 0.0  ;;  %v15079_v61 = vld [vmem:[#allocation95_spill] sm:$0xff] }
 0x7ae   : > { %v3985_v11 = vsel %vm15041_vm13, %v15060_v36, 0.0  ;;  %v15078_v36 = vmax.f32 %v15077_v39, 0.0 }
 0x7af   : > { %6818 = vst.msk [vmem:[%s330_s9] sm:$0x1] %vm15036_vm3, %v6568_v8  ;;  %v3989_v27 = vsel %vm15044_vm1, %v15062_v6, 0.0  ;;  %v15080_v6 = vmax.f32 %v15079_v61, 0.0 }
 0x7dd   : > { %v6577_v22 = vpop.permute.xlu2 %6576 }
 0x7de   : > { %v6653_v23 = vmul.f32 %v6577_v22, %v3982_v34  ;;  %v6654_v35 = vmul.f32 %v6577_v22, %v3983_v37  ;;  %v6655_v60 = vmul.f32 %v6577_v22, %v3984_v25  ;;  %v6656_v1 = vmul.f32 %v6577_v22, %v3985_v11  ;;  %v15065_v22 = vld [vmem:[#allocation54_spill] sm:$0xff]  ;;  %v15069_v37 = vld [vmem:[#allocation72_spill] sm:$0xff] }
 0x7df   : > { %v3990_v34 = vsel %vm12702_vm4, %v15064_v51, 0.0  ;;  %v15066_v17 = vmax.f32 %v15065_v22, 0.0  ;;  %v15070_v41 = vmax.f32 %v15069_v37, 0.0  ;;  %v3995_v25 = vsel %vm12745_vm6, %v15072_v4, 0.0 }
 0x7e0   : > { %v3996_v11 = vsel %vm12745_vm6, %v15078_v36, 0.0 }
 0x7e1   : > { %v3991_v55 = vsel %vm12702_vm4, %v15070_v41, 0.0 }
 0x7e5   : > { %v6587_v40 = vpop.permute.xlu2 %6586 }
 0x7ed   : > { %v6597_v16 = vpop.permute.xlu2 %6596 }
 0x7f4   : > { %v6582_v45 = vpop.permute.xlu0 %6581 }
 0x7f5   : > { %v6657_v8 = vmul.f32 %v6582_v45, %v3986_v20  ;;  %v6658_v47 = vmul.f32 %v6582_v45, %v3987_v38  ;;  %v6659_v62 = vmul.f32 %v6582_v45, %v3988_v48  ;;  %v6660_v26 = vmul.f32 %v6582_v45, %v3989_v27  ;;  %v15081_v45 = vld [vmem:[#allocation26_spill] sm:$0xff] }
 0x7f6   : > { %v6572_v10 = vpop.permute.xlu1 %6571  ;;  %v3999_v48 = vsel %vm12750_vm7, %v15074_v13, 0.0  ;;  %v4000_v27 = vsel %vm12750_vm7, %v15080_v6, 0.0 }
 0x7f7   : > { %v6649_v9 = vmul.f32 %v6572_v10, %v3978_v46  ;;  %v6650_v29 = vmul.f32 %v6572_v10, %v3979_v7  ;;  %v6651_v3 = vmul.f32 %v6572_v10, %v3980_v28  ;;  %v6652_v12 = vmul.f32 %v6572_v10, %v3981_v56  ;;  %v15067_v7 = vld [vmem:[#allocation55_spill] sm:$0xff] }
 0x7f8   : > { %v3994_v46 = vsel %vm12745_vm6, %v15066_v17, 0.0  ;;  %v15068_v20 = vmax.f32 %v15067_v7, 0.0  ;;  %v3992_v56 = vsel %vm12702_vm4, %v15076_v30, 0.0  ;;  %v6670_v17 = vmul.f32 %v6597_v16, %v3999_v48  ;;  %v15093_v48 = vld [vmem:[#allocation78_spill] sm:$0xff] }
 0x7f9   : > { %v6713_v24 = vadd.f32 %v6653_v23, %v6649_v9  ;;  %v6734_v49 = vadd.f32 %v6654_v35, %v6650_v29  ;;  %v6755_v54 = vadd.f32 %v6655_v60, %v6651_v3  ;;  %v6776_v50 = vadd.f32 %v6656_v1, %v6652_v12  ;;  %v15083_v60 = vld [vmem:[#allocation29_spill] sm:$0xff]  ;;  %v15085_v9 = vld [vmem:[#allocation30_spill] sm:$0xff] }
 0x7fa   : > { %v3998_v52 = vsel %vm12750_vm7, %v15068_v20, 0.0  ;;  %v15082_v23 = vmax.f32 %v15081_v45, 0.0  ;;  %v15084_v1 = vmax.f32 %v15083_v60, 0.0  ;;  %v15086_v29 = vmax.f32 %v15085_v9, 0.0 }
 0x7fb   : > { %v6714_v38 = vadd.f32 %v6713_v24, %v6657_v8  ;;  %v6735_v43 = vadd.f32 %v6734_v49, %v6658_v47  ;;  %v6756_v44 = vadd.f32 %v6755_v54, %v6659_v62  ;;  %v6777_v28 = vadd.f32 %v6776_v50, %v6660_v26 }
 0x7fc   : > { %v3993_v35 = vsel %vm12702_vm4, %v15082_v23, 0.0  ;;  %v3997_v10 = vsel %vm12745_vm6, %v15084_v1, 0.0  ;;  %v4001_v3 = vsel %vm12750_vm7, %v15086_v29, 0.0  ;;  %v6661_v12 = vmul.f32 %v6587_v40, %v3990_v34 }
 0x7fd   : > { %v6662_v8 = vmul.f32 %v6587_v40, %v3991_v55  ;;  %v6663_v47 = vmul.f32 %v6587_v40, %v3992_v56  ;;  %v6664_v62 = vmul.f32 %v6587_v40, %v3993_v35  ;;  %v6669_v42 = vmul.f32 %v6597_v16, %v3998_v52  ;;  %v6607_v55 = vpop.permute.xlu2 %6606  ;;  %v15095_v56 = vld [vmem:[#allocation96_spill] sm:$0xff]  ;;  %v15101_v35 = vld [vmem:[#allocation34_spill] sm:$0xff] }
 0x7fe   : > { %v6592_v26 = vpop.permute.xlu1 %6591  ;;  %v6715_v50 = vadd.f32 %v6714_v38, %v6661_v12  ;;  %v6671_v7 = vmul.f32 %v6597_v16, %v4000_v27  ;;  %v6672_v20 = vmul.f32 %v6597_v16, %v4001_v3  ;;  %v15091_v16 = vld [vmem:[#allocation77_spill] sm:$0xff]  ;;  %v15094_v63 = vmax.f32 %v15093_v48, 0.0 }
 0x7ff   : > { %v6665_v24 = vmul.f32 %v6592_v26, %v3994_v46  ;;  %v6666_v49 = vmul.f32 %v6592_v26, %v3995_v25  ;;  %v6667_v54 = vmul.f32 %v6592_v26, %v3996_v11  ;;  %v6668_v31 = vmul.f32 %v6592_v26, %v3997_v10  ;;  %v15087_v25 = vld [vmem:[#allocation57_spill] sm:$0xff] }
 0x800   : > { %v6736_v53 = vadd.f32 %v6735_v43, %v6662_v8  ;;  %v6757_v51 = vadd.f32 %v6756_v44, %v6663_v47  ;;  %v6778_v22 = vadd.f32 %v6777_v28, %v6664_v62  ;;  %v15088_v2 = vmax.f32 %v15087_v25, 0.0  ;;  %v15089_v43 = vld [vmem:[#allocation58_spill] sm:$0xff]  ;;  %v15097_v11 = vld [vmem:[#allocation97_spill] sm:$0xff] }
 0x801   : > { %v6716_v37 = vadd.f32 %v6715_v50, %v6665_v24  ;;  %v15090_v44 = vmax.f32 %v15089_v43, 0.0  ;;  %v15092_v28 = vmax.f32 %v15091_v16, 0.0  ;;  %v4007_v30 = vsel %vm15006_vm15, %v15094_v63, 0.0  ;;  %v15099_v27 = vld [vmem:[#allocation33_spill] sm:$0xff]  ;;  %v6617_v24 = vpop.permute.xlu0 %6616  ;;  %v15103_v50 = vld [vmem:[#allocation60_spill] sm:$0xff]  ;;  %v15120_v63 = vld [vmem:[#allocation83_spill] sm:$0xff] }
 0x802   : > { %v6737_v0 = vadd.f32 %v6736_v53, %v6666_v49  ;;  %v6758_v41 = vadd.f32 %v6757_v51, %v6667_v54  ;;  %v6779_v34 = vadd.f32 %v6778_v22, %v6668_v31  ;;  %v4002_v38 = vsel %vm15004_vm8, %v15088_v2, 0.0  ;;  %v15105_v51 = vld [vmem:[#allocation61_spill] sm:$0xff] }
 0x803   : > { %v6717_v19 = vadd.f32 %v6716_v37, %v6669_v42  ;;  %v4006_v52 = vsel %vm15006_vm15, %v15090_v44, 0.0  ;;  %v4003_v13 = vsel %vm15004_vm8, %v15092_v28, 0.0  ;;  %v15096_v39 = vmax.f32 %v15095_v56, 0.0  ;;  %v15109_v37 = vld [vmem:[#allocation64_spill] sm:$0xff]  ;;  %v15114_v2 = vld [vmem:[#allocation65_spill] sm:$0xff] }
 0x804   : > { %v6738_v40 = vadd.f32 %v6737_v0, %v6670_v17  ;;  %v6759_v4 = vadd.f32 %v6758_v41, %v6671_v7  ;;  %v6780_v46 = vadd.f32 %v6779_v34, %v6672_v20  ;;  %v15098_v61 = vmax.f32 %v15097_v11, 0.0  ;;  %v15107_v17 = vld [vmem:[#allocation63_spill] sm:$0xff]  ;;  %v15116_v44 = vld [vmem:[#allocation80_spill] sm:$0xff]  ;;  %v15118_v28 = vld [vmem:[#allocation81_spill] sm:$0xff] }
 0x805   : > { %v4004_v36 = vsel %vm15004_vm8, %v15096_v39, 0.0  ;;  %v15100_v45 = vmax.f32 %v15099_v27, 0.0  ;;  %v15102_v60 = vmax.f32 %v15101_v35, 0.0  ;;  %v6677_v8 = vmul.f32 %v6607_v55, %v4006_v52  ;;  %v15122_v39 = vld [vmem:[#allocation84_spill] sm:$0xff] }
 0x806   : > { %v4008_v6 = vsel %vm15006_vm15, %v15098_v61, 0.0  ;;  %v6602_v10 = vpop.permute.xlu1 %6601  ;;  %v6678_v47 = vmul.f32 %v6607_v55, %v4007_v30  ;;  %v15104_v53 = vmax.f32 %v15103_v50, 0.0  ;;  %v15106_v22 = vmax.f32 %v15105_v51, 0.0  ;;  %v15124_v61 = vld [vmem:[#allocation98_spill] sm:$0xff] }
 0x807   : > { %v4005_v23 = vsel %vm15004_vm8, %v15100_v45, 0.0  ;;  %v4009_v1 = vsel %vm15006_vm15, %v15102_v60, 0.0  ;;  %v6673_v9 = vmul.f32 %v6602_v10, %v4002_v38  ;;  %v6674_v29 = vmul.f32 %v6602_v10, %v4003_v13  ;;  %v15126_v45 = vld [vmem:[#allocation99_spill] sm:$0xff]  ;;  %v6622_v60 = vpop.permute.xlu2 %6621 }
 0x808   : > { %v6675_v3 = vmul.f32 %v6602_v10, %v4004_v36  ;;  %v6676_v12 = vmul.f32 %v6602_v10, %v4005_v23  ;;  %v6679_v62 = vmul.f32 %v6607_v55, %v4008_v6  ;;  %v6680_v26 = vmul.f32 %v6607_v55, %v4009_v1  ;;  %v15128_v1 = vld [vmem:[#allocation100_spill] sm:$0xff] }
 0x809   : > { %v6718_v49 = vadd.f32 %v6717_v19, %v6673_v9  ;;  %v6739_v54 = vadd.f32 %v6738_v40, %v6674_v29  ;;  %v4010_v5 = vsel %vm15010_vm11, %v15104_v53, 0.0  ;;  %v4014_v42 = vsel %vm15008_vm12, %v15106_v22, 0.0  ;;  %v15130_v29 = vld [vmem:[#allocation37_spill] sm:$0xff] }
 0x80a   : > { %v6760_v31 = vadd.f32 %v6759_v4, %v6675_v3  ;;  %v6781_v15 = vadd.f32 %v6780_v46, %v6676_v12  ;;  %v15108_v7 = vmax.f32 %v15107_v17, 0.0  ;;  %v15110_v0 = vmax.f32 %v15109_v37, 0.0  ;;  %v15111_v4 = vld [vmem:[#allocation11_spill] sm:$0xff] }
 0x80b   : > { %v6719_v34 = vadd.f32 %v6718_v49, %v6677_v8  ;;  %v6740_v55 = vadd.f32 %v6739_v54, %v6678_v47  ;;  %v15112_v46 = vmax.f32 %v15111_v4, 0.0  ;;  %v15115_v38 = vmax.f32 %v15114_v2, 0.0  ;;  %v15132_v8 = vld [vmem:[#allocation38_spill] sm:$0xff] }
 0x80c   : > { %v4018_v20 = vsel %vm15012_vm2, %v15108_v7, 0.0  ;;  %v4022_v41 = vsel %vm15014_vm9, %v15110_v0, 0.0  ;;  %v6761_v19 = vadd.f32 %v6760_v31, %v6679_v62  ;;  %v6782_v40 = vadd.f32 %v6781_v15, %v6680_v26  ;;  %v15134_v26 = vld [vmem:[#allocation42_spill] sm:$0xff] }
 0x80d   : > { %v4026_v25 = vsel %vm15113_vm0, %v15112_v46, 0.0  ;;  %v4030_v43 = vsel %vm15016_vm14, %v15115_v38, 0.0  ;;  %v15117_v52 = vmax.f32 %v15116_v44, 0.0  ;;  %v15119_v13 = vmax.f32 %v15118_v28, 0.0 }
 0x80e   : > { %v15121_v30 = vmax.f32 %v15120_v63, 0.0  ;;  %v15123_v36 = vmax.f32 %v15122_v39, 0.0  ;;  %v15125_v6 = vmax.f32 %v15124_v61, 0.0  ;;  %v15127_v23 = vmax.f32 %v15126_v45, 0.0  ;;  %v6612_v31 = vpop.permute.xlu1 %6611 }
 0x80f   : > { %v4011_v16 = vsel %vm15010_vm11, %v15117_v52, 0.0  ;;  %v4015_v48 = vsel %vm15008_vm12, %v15119_v13, 0.0  ;;  %v15129_v10 = vmax.f32 %v15128_v1, 0.0  ;;  %v15131_v3 = vmax.f32 %v15130_v29, 0.0  ;;  %v6632_v52 = vpop.permute.xlu0 %6631 }
 0x810   : > { %v4019_v56 = vsel %vm15012_vm2, %v15121_v30, 0.0  ;;  %v4023_v11 = vsel %vm15014_vm9, %v15123_v36, 0.0  ;;  %v4012_v27 = vsel %vm15010_vm11, %v15125_v6, 0.0  ;;  %v4016_v35 = vsel %vm15008_vm12, %v15127_v23, 0.0 }
 0x811   : > { %v4020_v9 = vsel %vm15012_vm2, %v15129_v10, 0.0  ;;  %v4013_v12 = vsel %vm15010_vm11, %v15131_v3, 0.0  ;;  %v15133_v47 = vmax.f32 %v15132_v8, 0.0  ;;  %v15135_v49 = vmax.f32 %v15134_v26, 0.0  ;;  %v15148_v10 = vld [vmem:[#allocation46_spill] sm:$0xff]  ;;  %v15150_v3 = vld [vmem:[#allocation47_spill] sm:$0xff] }
 0x812   : > { %v6681_v15 = vmul.f32 %v6612_v31, %v4010_v5  ;;  %v6682_v50 = vmul.f32 %v6612_v31, %v4011_v16  ;;  %v6683_v53 = vmul.f32 %v6612_v31, %v4012_v27  ;;  %v6684_v51 = vmul.f32 %v6612_v31, %v4013_v12  ;;  %v15136_v16 = vld [vmem:[#allocation86_spill] sm:$0xff]  ;;  %v15144_v27 = vld [vmem:[#allocation103_spill] sm:$0xff] }
 0x813   : > { %v4017_v62 = vsel %vm15008_vm12, %v15133_v47, 0.0  ;;  %v4021_v54 = vsel %vm15012_vm2, %v15135_v49, 0.0  ;;  %v6685_v22 = vmul.f32 %v6617_v24, %v4014_v42  ;;  %v6686_v17 = vmul.f32 %v6617_v24, %v4015_v48  ;;  %v15138_v48 = vld [vmem:[#allocation87_spill] sm:$0xff] }
 0x814   : > { %v6687_v7 = vmul.f32 %v6617_v24, %v4016_v35  ;;  %v6688_v33 = vmul.f32 %v6617_v24, %v4017_v62  ;;  %v6720_v37 = vadd.f32 %v6719_v34, %v6681_v15  ;;  %v6741_v0 = vadd.f32 %v6740_v55, %v6682_v50  ;;  %v15140_v55 = vld [vmem:[#allocation101_spill] sm:$0xff]  ;;  %v15146_v35 = vld [vmem:[#allocation43_spill] sm:$0xff]  ;;  %v6637_v62 = vpop.permute.xlu2 %6636 }
 0x815   : > { %v6762_v4 = vadd.f32 %v6761_v19, %v6683_v53  ;;  %v6783_v46 = vadd.f32 %v6782_v40, %v6684_v51  ;;  %v6689_v21 = vmul.f32 %v6622_v60, %v4018_v20  ;;  %v6690_v2 = vmul.f32 %v6622_v60, %v4019_v56  ;;  %v15142_v40 = vld [vmem:[#allocation102_spill] sm:$0xff] }
 0x816   : > { %v6691_v38 = vmul.f32 %v6622_v60, %v4020_v9  ;;  %v6692_v44 = vmul.f32 %v6622_v60, %v4021_v54  ;;  %v6721_v18 = vadd.f32 %v6720_v37, %v6685_v22  ;;  %v6742_v28 = vadd.f32 %v6741_v0, %v6686_v17  ;;  %v6627_v47 = vpop.permute.xlu1 %6626 }
 0x817   : > { %v6763_v13 = vadd.f32 %v6762_v4, %v6687_v7  ;;  %v6784_v5 = vadd.f32 %v6783_v46, %v6688_v33  ;;  %v15137_v63 = vmax.f32 %v15136_v16, 0.0  ;;  %v15139_v24 = vmax.f32 %v15138_v48, 0.0  ;;  %v6647_v16 = vpop.permute.xlu0 %6646 }
 0x818   : > { %v15141_v20 = vmax.f32 %v15140_v55, 0.0  ;;  %v15143_v30 = vmax.f32 %v15142_v40, 0.0  ;;  %v6722_v39 = vadd.f32 %v6721_v18, %v6689_v21  ;;  %v6743_v36 = vadd.f32 %v6742_v28, %v6690_v2  ;;  %v15154_v2 = vld [vmem:[#allocation66_spill] sm:$0xff]  ;;  %v15159_v28 = vld [vmem:[#allocation88_spill] sm:$0xff] }
 0x819   : > { %v4027_v42 = vsel %vm15113_vm0, %v15137_v63, 0.0  ;;  %v4031_v34 = vsel %vm15016_vm14, %v15139_v24, 0.0  ;;  %v6764_v61 = vadd.f32 %v6763_v13, %v6691_v38  ;;  %v6785_v6 = vadd.f32 %v6784_v5, %v6692_v44 }
 0x81a   : > { %v4024_v19 = vsel %vm15014_vm9, %v15141_v20, 0.0  ;;  %v4028_v56 = vsel %vm15113_vm0, %v15143_v30, 0.0  ;;  %v15145_v45 = vmax.f32 %v15144_v27, 0.0  ;;  %v15147_v60 = vmax.f32 %v15146_v35, 0.0 }
 0x81b   : > { %v15149_v9 = vmax.f32 %v15148_v10, 0.0  ;;  %v15151_v12 = vmax.f32 %v15150_v3, 0.0  ;;  %v6693_v26 = vmul.f32 %v6627_v47, %v4022_v41  ;;  %v6694_v49 = vmul.f32 %v6627_v47, %v4023_v11  ;;  %v15152_v41 = vld [vmem:[#allocation13_spill] sm:$0xff] }
 0x81c   : > { %v4032_v23 = vsel %vm15016_vm14, %v15145_v45, 0.0  ;;  %v4025_v1 = vsel %vm15014_vm9, %v15147_v60, 0.0  ;;  %v6695_v54 = vmul.f32 %v6627_v47, %v4024_v19  ;;  %v6697_v15 = vmul.f32 %v6632_v52, %v4026_v25  ;;  %v15163_v19 = vld [vmem:[#allocation105_spill] sm:$0xff] }
 0x81d   : > { %v4029_v29 = vsel %vm15113_vm0, %v15149_v9, 0.0  ;;  %v4033_v8 = vsel %vm15016_vm14, %v15151_v12, 0.0  ;;  %v6696_v31 = vmul.f32 %v6627_v47, %v4025_v1  ;;  %v6698_v50 = vmul.f32 %v6632_v52, %v4027_v42 }
 0x81e   : > { %v6699_v59 = vmul.f32 %v6632_v52, %v4028_v56  ;;  %v6700_v53 = vmul.f32 %v6632_v52, %v4029_v29  ;;  %v6723_v51 = vadd.f32 %v6722_v39, %v6693_v26  ;;  %v6744_v22 = vadd.f32 %v6743_v36, %v6694_v49  ;;  %v15157_v52 = vld [vmem:[#allocation15_spill] sm:$0xff]  ;;  %v15165_v56 = vld [vmem:[#allocation50_spill] sm:$0xff]  ;;  %v6642_v45 = vpop.permute.xlu1 %6641 }
 0x81f   : > { %v6765_v17 = vadd.f32 %v6764_v61, %v6695_v54  ;;  %v6786_v57 = vadd.f32 %v6785_v6, %v6696_v31  ;;  %v6701_v7 = vmul.f32 %v6637_v62, %v4030_v43  ;;  %v6702_v33 = vmul.f32 %v6637_v62, %v4031_v34  ;;  %v15161_v34 = vld [vmem:[#allocation104_spill] sm:$0xff]  ;;  %v15167_v61 = vld [vmem:[#allocation70_spill] sm:$0xff] }
 0x820   : > { %v6703_v37 = vmul.f32 %v6637_v62, %v4032_v23  ;;  %v6704_v0 = vmul.f32 %v6637_v62, %v4033_v8  ;;  %v6724_v58 = vadd.f32 %v6723_v51, %v6697_v15  ;;  %v6745_v4 = vadd.f32 %v6744_v22, %v6698_v50 }
 0x821   : > { %v6766_v46 = vadd.f32 %v6765_v17, %v6699_v59  ;;  %v6787_v21 = vadd.f32 %v6786_v57, %v6700_v53  ;;  %v15153_v11 = vmax.f32 %v15152_v41, 0.0  ;;  %v15155_v38 = vmax.f32 %v15154_v2, 0.0 }
 0x822   : > { %vm15156_vm4 = vnez %v15021_v32  ;;  %v15158_v18 = vmax.f32 %v15157_v52, 0.0  ;;  %v15160_v13 = vmax.f32 %v15159_v28, 0.0  ;;  %v6725_v63 = vadd.f32 %v6724_v58, %v6701_v7 }
 0x823   : > { %v4034_v25 = vsel %vm15033_vm10, %v15153_v11, 0.0  ;;  %v4038_v44 = vsel %vm15156_vm4, %v15155_v38, 0.0  ;;  %v6746_v42 = vadd.f32 %v6745_v4, %v6702_v33  ;;  %v6767_v48 = vadd.f32 %v6766_v46, %v6703_v37 }
 0x824   : > { %v4035_v43 = vsel %vm15033_vm10, %v15158_v18, 0.0  ;;  %v4039_v5 = vsel %vm15156_vm4, %v15160_v13, 0.0  ;;  %v6788_v24 = vadd.f32 %v6787_v21, %v6704_v0  ;;  %v15162_v55 = vmax.f32 %v15161_v34, 0.0 }
 0x825   : > { %v15164_v40 = vmax.f32 %v15163_v19, 0.0  ;;  %v15166_v39 = vmax.f32 %v15165_v56, 0.0  ;;  %v15168_v6 = vmax.f32 %v15167_v61, 0.0  ;;  %v6705_v23 = vmul.f32 %v6642_v45, %v4034_v25 }
 0x826   : > { %v4036_v20 = vsel %vm15033_vm10, %v15162_v55, 0.0  ;;  %v6706_v35 = vmul.f32 %v6642_v45, %v4035_v43  ;;  %v6709_v10 = vmul.f32 %v6647_v16, %v4038_v44  ;;  %v6710_v9 = vmul.f32 %v6647_v16, %v4039_v5 }
 0x827   : > { %v4040_v30 = vsel %vm15156_vm4, %v15164_v40, 0.0  ;;  %v4037_v36 = vsel %vm15033_vm10, %v15166_v39, 0.0  ;;  %v4041_v27 = vsel %vm15156_vm4, %v15168_v6, 0.0  ;;  %v6707_v60 = vmul.f32 %v6642_v45, %v4036_v20 }
 0x828   : > { %v6708_v1 = vmul.f32 %v6642_v45, %v4037_v36  ;;  %v6711_v29 = vmul.f32 %v6647_v16, %v4040_v30  ;;  %v6712_v3 = vmul.f32 %v6647_v16, %v4041_v27  ;;  %v6726_v12 = vadd.f32 %v6725_v63, %v6705_v23 }
 0x829   : > { %v6747_v8 = vadd.f32 %v6746_v42, %v6706_v35  ;;  %v6768_v47 = vadd.f32 %v6767_v48, %v6707_v60  ;;  %vm6804_vm6 = vcmask 1040384   ;;  %vm6806_vm7 = vcmask 1042434  }
 0x82a   : > { %v6789_v62 = vadd.f32 %v6788_v24, %v6708_v1  ;;  %v6727_v14 = vadd.f32 %v6726_v12, %v6709_v10  ;;  %vm6808_vm8 = vcmask 1041408   ;;  %v15169_v28 = vlaneseq }
 0x82b   : > { %v6748_v26 = vadd.f32 %v6747_v8, %v6710_v9  ;;  %v6769_v49 = vadd.f32 %v6768_v47, %v6711_v29 }
 0x82c   : > { %v6790_v54 = vadd.f32 %v6789_v62, %v6712_v3  ;;  %v6728_v31 = vrot.slane %v6727_v14, 4  ;;  %vm6813_vm15 = vcmp.lt.s32.totalorder %v15169_v28, 512 }
 0x82d   : > { %v6749_v32 = vrot.slane %v6748_v26, 4  ;;  %v6770_v15 = vrot.slane %v6769_v49, 4 }
 0x82e   : > { %v6791_v50 = vrot.slane %v6790_v54, 4  ;;  %v6729_v59 = vadd.f32 %v6728_v31, %v6727_v14 }
 0x82f   : > { %v6750_v53 = vadd.f32 %v6749_v32, %v6748_v26  ;;  %v6771_v51 = vadd.f32 %v6770_v15, %v6769_v49 }
 0x830   : > { %v6792_v22 = vadd.f32 %v6791_v50, %v6790_v54  ;;  %v6730_v17 = vrot.slane %v6729_v59, 2 }
 0x831   : > { %v6751_v57 = vrot.slane %v6750_v53, 2  ;;  %v6772_v7 = vrot.slane %v6771_v51, 2 }
 0x832   : > { %v6793_v33 = vrot.slane %v6792_v22, 2  ;;  %v6731_v37 = vadd.f32 %v6730_v17, %v6729_v59 }
 0x833   : > { %v6752_v0 = vadd.f32 %v6751_v57, %v6750_v53  ;;  %v6773_v58 = vadd.f32 %v6772_v7, %v6771_v51 }
 0x834   : > { %v6794_v4 = vadd.f32 %v6793_v33, %v6792_v22  ;;  %v6732_v46 = vrot.slane %v6731_v37, 1 }
 0x835   : > { %v6753_v21 = vrot.slane %v6752_v0, 1  ;;  %v6774_v41 = vrot.slane %v6773_v58, 1 }
 0x836   : > { %v6795_v11 = vrot.slane %v6794_v4, 1  ;;  %v6733_v44 = vadd.f32 %v6732_v46, %v6731_v37 }
 0x837   : > { %v6754_v25 = vadd.f32 %v6753_v21, %v6752_v0  ;;  %v6775_v2 = vadd.f32 %v6774_v41, %v6773_v58 }
 0x838   : > { %v6796_v38 = vadd.f32 %v6795_v11, %v6794_v4 }
 0x839   : > { %v6801_v52 = vrot.slane %v6754_v25, 7  ;;  %v6802_v18 = vrot.slane %v6775_v2, 6 }
 0x83a   : > { %v6803_v43 = vrot.slane %v6796_v38, 5 }
 0x83b   : > { %v6805_v13 = vsel %vm6804_vm6, %v6733_v44, %v6801_v52 }
 0x83c   : > { %v6807_v5 = vsel %vm6806_vm7, %v6802_v18, %v6803_v43 }
 0x83d   : > { %v6809_v16 = vsel %vm6808_vm8, %v6805_v13, %v6807_v5 }
 0x83e   : > { %6815 = vst.msk [vmem:[%s324_s20] sm:$0xf] %vm6813_vm15, %v6809_v16 }
 0x83f PF: > { %s21_s26 = sadd.s32 1, %s9955_s26  }
 0x840   : > { %p18_p8 = scmp.ge.s32.totalorder %s21_s26, 4  }
 0x842   :  { %20 = sbr.rel (!%p18_p8) target bundleno = 4 (0x4), region = 99 }
 0x847   :  { %6862 = vsyncpa [#allocation5], 1 }
 0x848   :  { %6864 = vsyncpa [#allocation5 + $0x1], 1 }
 0x849   :  { %6865 = vsyncpa [#allocation7], 1 }

</bundles_post_ra>
